<compile_context>
chip_gen: v7x
topology: tpu7x:2x2x1
jax: 0.10.0
libtpu: 0.0.40
codegen_flags: <defaults>
</compile_context>

<pallas_src>
import jax
import jax.numpy as jnp
from jax.experimental import pallas as pl
from jax.experimental.pallas import tpu as pltpu


# ------------------------------ Pallas kernel ------------------------------ #

def _dw_conv_bias_silu_kernel(H, W, KH, KW, pad_left, row_strip):
    """Depthwise KHxKW conv (stride 1, zero 'same' padding) + bias + SiLU."""
    ph, pw = KH // 2, KW // 2
    Hp = H + KH - 1

    def kernel(x_ref, w_ref, b_ref, o_ref, xpad_ref):
        # x_ref:    (1, H, W, ct)     input tile (native dtype)
        # w_ref:    (KH*KW, ct)       folded per-channel taps (f32)
        # b_ref:    (1, ct)           folded per-channel bias (f32)
        # o_ref:    (1, H, W, ct)     output tile
        # xpad_ref: (Hp, Wq, ct) f32  zero-halo scratch built in VMEM (no HBM pad)
        ct = x_ref.shape[-1]
        Wq = xpad_ref.shape[1]

        # Build the zero-halo padded copy of this block entirely in VMEM.
        # Interior lands at column offset `pad_left` (multiple of 8) -> aligned store;
        # row offsets only touch the leading dim, so all stores are alignment-safe.
        xpad_ref[...] = jnp.zeros((Hp, Wq, ct), jnp.float32)
        xpad_ref[ph:ph + H, pad_left:pad_left + W, :] = x_ref[0].astype(jnp.float32)

        w = w_ref[...].astype(jnp.float32)            # (KH*KW, ct)
        b = b_ref[...].astype(jnp.float32)            # (1, ct)

        # Row strips bound vreg pressure: at most acc + one shifted window live.
        for s in range(0, H, row_strip):
            sh = min(row_strip, H - s)
            acc = jnp.broadcast_to(b, (sh, W, ct))
            for dy in range(KH):                      # KH*KW shifted VPU MACs, unrolled
                for dx in range(KW):
                    col0 = pad_left - pw + dx         # >= 0 by construction
                    win = xpad_ref[s + dy:s + dy + sh, col0:col0 + W, :]
                    acc = acc + win * w[dy * KW + dx, :]
            y = acc * jax.nn.sigmoid(acc)             # SiLU (sigmoid on EUP, overlaps)
            o_ref[0, s:s + sh, :, :] = y.astype(o_ref.dtype)

    return kernel


def depthwise_conv_bias_silu(x_nhwc, w_hwc, bias):
    """y = SiLU(depthwise_conv(x, w) + bias), stride 1, 'same' padding.

    x_nhwc: (N, H, W, C); w_hwc: (KH, KW, C); bias: (C,)
    """
    N, H, W, C = x_nhwc.shape
    KH, KW, Cw = w_hwc.shape
    assert Cw == C and KH % 2 == 1 and KW % 2 == 1
    pw = KW // 2
    out_dtype = x_nhwc.dtype

    # Lane-dense channel tiling: one tile if C <= 128, else 128-wide tiles.
    if C <= 128:
        ct, C_pad = C, C
    else:
        ct = 128
        C_pad = pl.cdiv(C, 128) * 128
    if C_pad != C:
        x_nhwc = jnp.pad(x_nhwc, ((0, 0), (0, 0), (0, 0), (0, C_pad - C)))
        w_hwc = jnp.pad(w_hwc, ((0, 0), (0, 0), (0, C_pad - C)))
        bias = jnp.pad(bias, (0, C_pad - C))

    wmat = w_hwc.reshape(KH * KW, C_pad).astype(jnp.float32)
    b2d = bias.reshape(1, C_pad).astype(jnp.float32)

    # Halo geometry for the in-kernel VMEM scratch (no wrapper-side jnp.pad of x).
    pad_left = ((pw + 7) // 8) * 8          # sublane-aligned interior column start
    Hp = H + KH - 1
    Wq = pad_left + W + pw

    # In-kernel row-strip: keep the f32 accumulator around ~16 vregs, cap strip count.
    row_strip = max(1, min(H, (16 * 1024) // max(1, W * ct)))
    row_strip = min(H, max(row_strip, pl.cdiv(H, 16)))

    grid = (N, C_pad // ct)
    itemsize = jnp.dtype(out_dtype).itemsize

    block_bytes = (2 * 2 * H * W * ct * itemsize        # double-buffered in + out
                   + Hp * Wq * ct * 4                   # halo scratch
                   + 2 * (KH * KW + 1) * ct * 4)        # weights + bias
    vmem_limit = int(min(64 * 2**20, max(16 * 2**20, 2 * block_bytes)))

    cost = pl.CostEstimate(
        flops=2 * N * H * W * C_pad * KH * KW,
        transcendentals=N * H * W * C_pad,
        bytes_accessed=int(2 * N * H * W * C_pad * itemsize
                           + (KH * KW + 1) * C_pad * 4),
    )

    out = pl.pallas_call(
        _dw_conv_bias_silu_kernel(H, W, KH, KW, pad_left, row_strip),
        out_shape=jax.ShapeDtypeStruct((N, H, W, C_pad), out_dtype),
        grid=grid,
        in_specs=[
            pl.BlockSpec((1, H, W, ct), lambda n, c: (n, 0, 0, c)),
            pl.BlockSpec((KH * KW, ct), lambda n, c: (0, c)),
            pl.BlockSpec((1, ct), lambda n, c: (0, c)),
        ],
        out_specs=pl.BlockSpec((1, H, W, ct), lambda n, c: (n, 0, 0, c)),
        scratch_shapes=[pltpu.VMEM((Hp, Wq, ct), jnp.float32)],
        compiler_params=pltpu.CompilerParams(
            dimension_semantics=("parallel", "parallel"),
            vmem_limit_bytes=vmem_limit,
        ),
        cost_estimate=cost,
    )(x_nhwc, wmat, b2d)

    if C_pad != C:
        out = out[..., :C]
    return out


# --------------------------- parameters (synthetic) ------------------------ #

def _fold_bn_depthwise(w_oikk, gamma, beta, mean, var, eps=1e-5):
    """Fold eval-mode BatchNorm2d into a depthwise conv.  w_oikk: (C, 1, K, K)."""
    scale = gamma / jnp.sqrt(var + eps)
    w_eff = w_oikk[:, 0] * scale[:, None, None]          # (C, K, K)
    b_eff = beta - mean * scale
    return jnp.transpose(w_eff, (1, 2, 0)), b_eff        # (K, K, C), (C,)


def _init_dw_conv_bn(key, ed, k):
    k1, k2, k3, k4, k5 = jax.random.split(key, 5)
    w = jax.random.normal(k1, (ed, 1, k, k), jnp.float32) * 0.1
    gamma = jax.random.uniform(k2, (ed,), jnp.float32, 0.8, 1.2)
    beta = jax.random.normal(k3, (ed,), jnp.float32) * 0.1
    mean = jax.random.normal(k4, (ed,), jnp.float32) * 0.1
    var = jax.random.uniform(k5, (ed,), jnp.float32, 0.5, 1.5)
    return _fold_bn_depthwise(w, gamma, beta, mean, var)


def init_repvggdw_params(key, ed):
    k7, k3 = jax.random.split(key)
    w7, b7 = _init_dw_conv_bn(k7, ed, 7)    # Conv(ed, ed, 7, 1, 3, g=ed, act=False)
    w3, b3 = _init_dw_conv_bn(k3, ed, 3)    # Conv(ed, ed, 3, 1, 1, g=ed, act=False)
    return {"w7": w7, "b7": b7, "w3": w3, "b3": b3}


# ---------------------------- RepVGGDW forward ------------------------------ #

def repvggdw_forward(x_nchw, params):
    """SiLU(conv7x7_dw(x) + conv3x3_dw(x)) — convs combined via the fuse() identity."""
    w = params["w7"] + jnp.pad(params["w3"], ((2, 2), (2, 2), (0, 0)))
    b = params["b7"] + params["b3"]
    x = jnp.transpose(x_nchw, (0, 2, 3, 1))              # NCHW -> NHWC
    y = depthwise_conv_bias_silu(x, w, b)
    return jnp.transpose(y, (0, 3, 1, 2))                # NHWC -> NCHW


# ---------------------------- pure-JAX reference ---------------------------- #

def _ref_dwconv(x_nhwc, w_hwc, b, pad):
    C = x_nhwc.shape[-1]
    w = w_hwc[:, :, None, :]                             # (KH, KW, 1, C) HWIO, groups=C
    y = jax.lax.conv_general_dilated(
        x_nhwc, w, (1, 1), [(pad, pad), (pad, pad)],
        dimension_numbers=("NHWC", "HWIO", "NHWC"),
        feature_group_count=C)
    return y + b


def repvggdw_ref(x_nchw, params):
    x = jnp.transpose(x_nchw, (0, 2, 3, 1))
    y7 = _ref_dwconv(x, params["w7"], params["b7"], 3)
    y3 = _ref_dwconv(x, params["w3"], params["b3"], 1)
    y = y7 + y3
    y = y * jax.nn.sigmoid(y)                            # SiLU
    return jnp.transpose(y, (0, 3, 1, 2))


# ----------------------------------- main ----------------------------------- #

if __name__ == "__main__":
    key = jax.random.PRNGKey(0)
    kx, kp = jax.random.split(key)

    ed, N, H, W = 32, 2, 16, 16
    x = jax.random.normal(kx, (N, ed, H, W), jnp.float32)   # NCHW like PyTorch
    params = init_repvggdw_params(kp, ed)

    fwd = jax.jit(repvggdw_forward)
    out = fwd(x, params)
    out = jax.block_until_ready(out)

    ref = repvggdw_ref(x, params)
    assert out.shape == (N, ed, H, W), out.shape
    max_err = float(jnp.max(jnp.abs(out - ref)))
    if max_err > 1e-3:
        raise AssertionError(f"Pallas RepVGGDW mismatch vs reference: max_err={max_err}")

    print("KERNEL_OK")
</pallas_src>

<mosaic_0001>
module attributes {stable_mosaic.version = 11 : i64} {
  func.func @kernel(%arg0: i32, %arg1: i32, %arg2: memref<1x16x16x32xf32, #tpu.memory_space<vmem>>, %arg3: memref<49x32xf32, #tpu.memory_space<vmem>>, %arg4: memref<1x32xf32, #tpu.memory_space<vmem>>, %arg5: memref<1x16x16x32xf32, #tpu.memory_space<vmem>>, %arg6: memref<22x27x32xf32, #tpu.memory_space<vmem>>) attributes {dimension_semantics = [#tpu.dimension_semantics<parallel>, #tpu.dimension_semantics<parallel>], iteration_bounds = array<i64: 2, 1>, scalar_prefetch = 0 : i64, scratch_operands = 1 : i64, tpu.core_type = #tpu.core_type<tc>, window_params = [{transform_indices = @transform_0, window_bounds = array<i64: 1, 16, 16, 32>}, {transform_indices = @transform_1, window_bounds = array<i64: 49, 32>}, {transform_indices = @transform_2, window_bounds = array<i64: 1, 32>}, {transform_indices = @transform_3, window_bounds = array<i64: 1, 16, 16, 32>}]} {
    %cst = arith.constant 0.000000e+00 : f32
    %0 = vector.broadcast %cst : f32 to vector<22x27x32xf32>
    %c0 = arith.constant 0 : index
    %c0_0 = arith.constant 0 : index
    %c0_1 = arith.constant 0 : index
    %1 = vector.load %arg6[%c0, %c0_0, %c0_1] : memref<22x27x32xf32, #tpu.memory_space<vmem>>, vector<22x27x32xf32>
    tpu.vector_store %arg6[%c0, %c0_0, %c0_1], %0 {strides = array<i32>} : memref<22x27x32xf32, #tpu.memory_space<vmem>>, vector<22x27x32xf32>,
    %c0_2 = arith.constant 0 : index
    %c0_3 = arith.constant 0 : index
    %c0_4 = arith.constant 0 : index
    %c0_5 = arith.constant 0 : index
    %2 = vector.load %arg2[%c0_2, %c0_3, %c0_4, %c0_5] : memref<1x16x16x32xf32, #tpu.memory_space<vmem>>, vector<1x16x16x32xf32>
    %3 = vector.shape_cast %2 : vector<1x16x16x32xf32> to vector<16x16x32xf32>
    %c3 = arith.constant 3 : index
    %c8 = arith.constant 8 : index
    %c0_6 = arith.constant 0 : index
    %4 = vector.load %arg6[%c3, %c8, %c0_6] : memref<22x27x32xf32, #tpu.memory_space<vmem>>, vector<16x16x32xf32>
    tpu.vector_store %arg6[%c3, %c8, %c0_6], %3 {strides = array<i32>} : memref<22x27x32xf32, #tpu.memory_space<vmem>>, vector<16x16x32xf32>,
    %c0_7 = arith.constant 0 : index
    %c0_8 = arith.constant 0 : index
    %5 = vector.load %arg3[%c0_7, %c0_8] : memref<49x32xf32, #tpu.memory_space<vmem>>, vector<49x32xf32>
    %c0_9 = arith.constant 0 : index
    %c0_10 = arith.constant 0 : index
    %6 = vector.load %arg4[%c0_9, %c0_10] : memref<1x32xf32, #tpu.memory_space<vmem>>, vector<1x32xf32>
    %7 = vector.shape_cast %6 : vector<1x32xf32> to vector<1x1x32xf32>
    %8 = vector.broadcast %7 : vector<1x1x32xf32> to vector<16x16x32xf32>
    %c0_11 = arith.constant 0 : index
    %c5 = arith.constant 5 : index
    %c0_12 = arith.constant 0 : index
    %9 = vector.load %arg6[%c0_11, %c5, %c0_12] : memref<22x27x32xf32, #tpu.memory_space<vmem>>, vector<16x16x32xf32>
    %10 = vector.extract_strided_slice %5 {offsets = [0, 0], sizes = [1, 32], strides = [1, 1]} : vector<49x32xf32> to vector<1x32xf32>
    %11 = vector.shape_cast %10 : vector<1x32xf32> to vector<32xf32>
    %12 = vector.shape_cast %11 : vector<32xf32> to vector<1x1x32xf32>
    %13 = vector.broadcast %12 : vector<1x1x32xf32> to vector<16x16x32xf32>
    %14 = arith.mulf %9, %13 : vector<16x16x32xf32>
    %15 = arith.addf %8, %14 : vector<16x16x32xf32>
    %c0_13 = arith.constant 0 : index
    %c6 = arith.constant 6 : index
    %c0_14 = arith.constant 0 : index
    %16 = vector.load %arg6[%c0_13, %c6, %c0_14] : memref<22x27x32xf32, #tpu.memory_space<vmem>>, vector<16x16x32xf32>
    %17 = vector.extract_strided_slice %5 {offsets = [1, 0], sizes = [1, 32], strides = [1, 1]} : vector<49x32xf32> to vector<1x32xf32>
    %18 = vector.shape_cast %17 : vector<1x32xf32> to vector<32xf32>
    %19 = vector.shape_cast %18 : vector<32xf32> to vector<1x1x32xf32>
    %20 = vector.broadcast %19 : vector<1x1x32xf32> to vector<16x16x32xf32>
    %21 = arith.mulf %16, %20 : vector<16x16x32xf32>
    %22 = arith.addf %15, %21 : vector<16x16x32xf32>
    %c0_15 = arith.constant 0 : index
    %c7 = arith.constant 7 : index
    %c0_16 = arith.constant 0 : index
    %23 = vector.load %arg6[%c0_15, %c7, %c0_16] : memref<22x27x32xf32, #tpu.memory_space<vmem>>, vector<16x16x32xf32>
    %24 = vector.extract_strided_slice %5 {offsets = [2, 0], sizes = [1, 32], strides = [1, 1]} : vector<49x32xf32> to vector<1x32xf32>
    %25 = vector.shape_cast %24 : vector<1x32xf32> to vector<32xf32>
    %26 = vector.shape_cast %25 : vector<32xf32> to vector<1x1x32xf32>
    %27 = vector.broadcast %26 : vector<1x1x32xf32> to vector<16x16x32xf32>
    %28 = arith.mulf %23, %27 : vector<16x16x32xf32>
    %29 = arith.addf %22, %28 : vector<16x16x32xf32>
    %c0_17 = arith.constant 0 : index
    %c8_18 = arith.constant 8 : index
    %c0_19 = arith.constant 0 : index
    %30 = vector.load %arg6[%c0_17, %c8_18, %c0_19] : memref<22x27x32xf32, #tpu.memory_space<vmem>>, vector<16x16x32xf32>
    %31 = vector.extract_strided_slice %5 {offsets = [3, 0], sizes = [1, 32], strides = [1, 1]} : vector<49x32xf32> to vector<1x32xf32>
    %32 = vector.shape_cast %31 : vector<1x32xf32> to vector<32xf32>
    %33 = vector.shape_cast %32 : vector<32xf32> to vector<1x1x32xf32>
    %34 = vector.broadcast %33 : vector<1x1x32xf32> to vector<16x16x32xf32>
    %35 = arith.mulf %30, %34 : vector<16x16x32xf32>
    %36 = arith.addf %29, %35 : vector<16x16x32xf32>
    %c0_20 = arith.constant 0 : index
    %c9 = arith.constant 9 : index
    %c0_21 = arith.constant 0 : index
    %37 = vector.load %arg6[%c0_20, %c9, %c0_21] : memref<22x27x32xf32, #tpu.memory_space<vmem>>, vector<16x16x32xf32>
    %38 = vector.extract_strided_slice %5 {offsets = [4, 0], sizes = [1, 32], strides = [1, 1]} : vector<49x32xf32> to vector<1x32xf32>
    %39 = vector.shape_cast %38 : vector<1x32xf32> to vector<32xf32>
    %40 = vector.shape_cast %39 : vector<32xf32> to vector<1x1x32xf32>
    %41 = vector.broadcast %40 : vector<1x1x32xf32> to vector<16x16x32xf32>
    %42 = arith.mulf %37, %41 : vector<16x16x32xf32>
    %43 = arith.addf %36, %42 : vector<16x16x32xf32>
    %c0_22 = arith.constant 0 : index
    %c10 = arith.constant 10 : index
    %c0_23 = arith.constant 0 : index
    %44 = vector.load %arg6[%c0_22, %c10, %c0_23] : memref<22x27x32xf32, #tpu.memory_space<vmem>>, vector<16x16x32xf32>
    %45 = vector.extract_strided_slice %5 {offsets = [5, 0], sizes = [1, 32], strides = [1, 1]} : vector<49x32xf32> to vector<1x32xf32>
    %46 = vector.shape_cast %45 : vector<1x32xf32> to vector<32xf32>
    %47 = vector.shape_cast %46 : vector<32xf32> to vector<1x1x32xf32>
    %48 = vector.broadcast %47 : vector<1x1x32xf32> to vector<16x16x32xf32>
    %49 = arith.mulf %44, %48 : vector<16x16x32xf32>
    %50 = arith.addf %43, %49 : vector<16x16x32xf32>
    %c0_24 = arith.constant 0 : index
    %c11 = arith.constant 11 : index
    %c0_25 = arith.constant 0 : index
    %51 = vector.load %arg6[%c0_24, %c11, %c0_25] : memref<22x27x32xf32, #tpu.memory_space<vmem>>, vector<16x16x32xf32>
    %52 = vector.extract_strided_slice %5 {offsets = [6, 0], sizes = [1, 32], strides = [1, 1]} : vector<49x32xf32> to vector<1x32xf32>
    %53 = vector.shape_cast %52 : vector<1x32xf32> to vector<32xf32>
    %54 = vector.shape_cast %53 : vector<32xf32> to vector<1x1x32xf32>
    %55 = vector.broadcast %54 : vector<1x1x32xf32> to vector<16x16x32xf32>
    %56 = arith.mulf %51, %55 : vector<16x16x32xf32>
    %57 = arith.addf %50, %56 : vector<16x16x32xf32>
    %c1 = arith.constant 1 : index
    %c5_26 = arith.constant 5 : index
    %c0_27 = arith.constant 0 : index
    %58 = vector.load %arg6[%c1, %c5_26, %c0_27] : memref<22x27x32xf32, #tpu.memory_space<vmem>>, vector<16x16x32xf32>
    %59 = vector.extract_strided_slice %5 {offsets = [7, 0], sizes = [1, 32], strides = [1, 1]} : vector<49x32xf32> to vector<1x32xf32>
    %60 = vector.shape_cast %59 : vector<1x32xf32> to vector<32xf32>
    %61 = vector.shape_cast %60 : vector<32xf32> to vector<1x1x32xf32>
    %62 = vector.broadcast %61 : vector<1x1x32xf32> to vector<16x16x32xf32>
    %63 = arith.mulf %58, %62 : vector<16x16x32xf32>
    %64 = arith.addf %57, %63 : vector<16x16x32xf32>
    %c1_28 = arith.constant 1 : index
    %c6_29 = arith.constant 6 : index
    %c0_30 = arith.constant 0 : index
    %65 = vector.load %arg6[%c1_28, %c6_29, %c0_30] : memref<22x27x32xf32, #tpu.memory_space<vmem>>, vector<16x16x32xf32>
    %66 = vector.extract_strided_slice %5 {offsets = [8, 0], sizes = [1, 32], strides = [1, 1]} : vector<49x32xf32> to vector<1x32xf32>
    %67 = vector.shape_cast %66 : vector<1x32xf32> to vector<32xf32>
    %68 = vector.shape_cast %67 : vector<32xf32> to vector<1x1x32xf32>
    %69 = vector.broadcast %68 : vector<1x1x32xf32> to vector<16x16x32xf32>
    %70 = arith.mulf %65, %69 : vector<16x16x32xf32>
    %71 = arith.addf %64, %70 : vector<16x16x32xf32>
    %c1_31 = arith.constant 1 : index
    %c7_32 = arith.constant 7 : index
    %c0_33 = arith.constant 0 : index
    %72 = vector.load %arg6[%c1_31, %c7_32, %c0_33] : memref<22x27x32xf32, #tpu.memory_space<vmem>>, vector<16x16x32xf32>
    %73 = vector.extract_strided_slice %5 {offsets = [9, 0], sizes = [1, 32], strides = [1, 1]} : vector<49x32xf32> to vector<1x32xf32>
    %74 = vector.shape_cast %73 : vector<1x32xf32> to vector<32xf32>
    %75 = vector.shape_cast %74 : vector<32xf32> to vector<1x1x32xf32>
    %76 = vector.broadcast %75 : vector<1x1x32xf32> to vector<16x16x32xf32>
    %77 = arith.mulf %72, %76 : vector<16x16x32xf32>
    %78 = arith.addf %71, %77 : vector<16x16x32xf32>
    %c1_34 = arith.constant 1 : index
    %c8_35 = arith.constant 8 : index
    %c0_36 = arith.constant 0 : index
    %79 = vector.load %arg6[%c1_34, %c8_35, %c0_36] : memref<22x27x32xf32, #tpu.memory_space<vmem>>, vector<16x16x32xf32>
    %80 = vector.extract_strided_slice %5 {offsets = [10, 0], sizes = [1, 32], strides = [1, 1]} : vector<49x32xf32> to vector<1x32xf32>
    %81 = vector.shape_cast %80 : vector<1x32xf32> to vector<32xf32>
    %82 = vector.shape_cast %81 : vector<32xf32> to vector<1x1x32xf32>
    %83 = vector.broadcast %82 : vector<1x1x32xf32> to vector<16x16x32xf32>
    %84 = arith.mulf %79, %83 : vector<16x16x32xf32>
    %85 = arith.addf %78, %84 : vector<16x16x32xf32>
    %c1_37 = arith.constant 1 : index
    %c9_38 = arith.constant 9 : index
    %c0_39 = arith.constant 0 : index
    %86 = vector.load %arg6[%c1_37, %c9_38, %c0_39] : memref<22x27x32xf32, #tpu.memory_space<vmem>>, vector<16x16x32xf32>
    %87 = vector.extract_strided_slice %5 {offsets = [11, 0], sizes = [1, 32], strides = [1, 1]} : vector<49x32xf32> to vector<1x32xf32>
    %88 = vector.shape_cast %87 : vector<1x32xf32> to vector<32xf32>
    %89 = vector.shape_cast %88 : vector<32xf32> to vector<1x1x32xf32>
    %90 = vector.broadcast %89 : vector<1x1x32xf32> to vector<16x16x32xf32>
    %91 = arith.mulf %86, %90 : vector<16x16x32xf32>
    %92 = arith.addf %85, %91 : vector<16x16x32xf32>
    %c1_40 = arith.constant 1 : index
    %c10_41 = arith.constant 10 : index
    %c0_42 = arith.constant 0 : index
    %93 = vector.load %arg6[%c1_40, %c10_41, %c0_42] : memref<22x27x32xf32, #tpu.memory_space<vmem>>, vector<16x16x32xf32>
    %94 = vector.extract_strided_slice %5 {offsets = [12, 0], sizes = [1, 32], strides = [1, 1]} : vector<49x32xf32> to vector<1x32xf32>
    %95 = vector.shape_cast %94 : vector<1x32xf32> to vector<32xf32>
    %96 = vector.shape_cast %95 : vector<32xf32> to vector<1x1x32xf32>
    %97 = vector.broadcast %96 : vector<1x1x32xf32> to vector<16x16x32xf32>
    %98 = arith.mulf %93, %97 : vector<16x16x32xf32>
    %99 = arith.addf %92, %98 : vector<16x16x32xf32>
    %c1_43 = arith.constant 1 : index
    %c11_44 = arith.constant 11 : index
    %c0_45 = arith.constant 0 : index
    %100 = vector.load %arg6[%c1_43, %c11_44, %c0_45] : memref<22x27x32xf32, #tpu.memory_space<vmem>>, vector<16x16x32xf32>
    %101 = vector.extract_strided_slice %5 {offsets = [13, 0], sizes = [1, 32], strides = [1, 1]} : vector<49x32xf32> to vector<1x32xf32>
    %102 = vector.shape_cast %101 : vector<1x32xf32> to vector<32xf32>
    %103 = vector.shape_cast %102 : vector<32xf32> to vector<1x1x32xf32>
    %104 = vector.broadcast %103 : vector<1x1x32xf32> to vector<16x16x32xf32>
    %105 = arith.mulf %100, %104 : vector<16x16x32xf32>
    %106 = arith.addf %99, %105 : vector<16x16x32xf32>
    %c2 = arith.constant 2 : index
    %c5_46 = arith.constant 5 : index
    %c0_47 = arith.constant 0 : index
    %107 = vector.load %arg6[%c2, %c5_46, %c0_47] : memref<22x27x32xf32, #tpu.memory_space<vmem>>, vector<16x16x32xf32>
    %108 = vector.extract_strided_slice %5 {offsets = [14, 0], sizes = [1, 32], strides = [1, 1]} : vector<49x32xf32> to vector<1x32xf32>
    %109 = vector.shape_cast %108 : vector<1x32xf32> to vector<32xf32>
    %110 = vector.shape_cast %109 : vector<32xf32> to vector<1x1x32xf32>
    %111 = vector.broadcast %110 : vector<1x1x32xf32> to vector<16x16x32xf32>
    %112 = arith.mulf %107, %111 : vector<16x16x32xf32>
    %113 = arith.addf %106, %112 : vector<16x16x32xf32>
    %c2_48 = arith.constant 2 : index
    %c6_49 = arith.constant 6 : index
    %c0_50 = arith.constant 0 : index
    %114 = vector.load %arg6[%c2_48, %c6_49, %c0_50] : memref<22x27x32xf32, #tpu.memory_space<vmem>>, vector<16x16x32xf32>
    %115 = vector.extract_strided_slice %5 {offsets = [15, 0], sizes = [1, 32], strides = [1, 1]} : vector<49x32xf32> to vector<1x32xf32>
    %116 = vector.shape_cast %115 : vector<1x32xf32> to vector<32xf32>
    %117 = vector.shape_cast %116 : vector<32xf32> to vector<1x1x32xf32>
    %118 = vector.broadcast %117 : vector<1x1x32xf32> to vector<16x16x32xf32>
    %119 = arith.mulf %114, %118 : vector<16x16x32xf32>
    %120 = arith.addf %113, %119 : vector<16x16x32xf32>
    %c2_51 = arith.constant 2 : index
    %c7_52 = arith.constant 7 : index
    %c0_53 = arith.constant 0 : index
    %121 = vector.load %arg6[%c2_51, %c7_52, %c0_53] : memref<22x27x32xf32, #tpu.memory_space<vmem>>, vector<16x16x32xf32>
    %122 = vector.extract_strided_slice %5 {offsets = [16, 0], sizes = [1, 32], strides = [1, 1]} : vector<49x32xf32> to vector<1x32xf32>
    %123 = vector.shape_cast %122 : vector<1x32xf32> to vector<32xf32>
    %124 = vector.shape_cast %123 : vector<32xf32> to vector<1x1x32xf32>
    %125 = vector.broadcast %124 : vector<1x1x32xf32> to vector<16x16x32xf32>
    %126 = arith.mulf %121, %125 : vector<16x16x32xf32>
    %127 = arith.addf %120, %126 : vector<16x16x32xf32>
    %c2_54 = arith.constant 2 : index
    %c8_55 = arith.constant 8 : index
    %c0_56 = arith.constant 0 : index
    %128 = vector.load %arg6[%c2_54, %c8_55, %c0_56] : memref<22x27x32xf32, #tpu.memory_space<vmem>>, vector<16x16x32xf32>
    %129 = vector.extract_strided_slice %5 {offsets = [17, 0], sizes = [1, 32], strides = [1, 1]} : vector<49x32xf32> to vector<1x32xf32>
    %130 = vector.shape_cast %129 : vector<1x32xf32> to vector<32xf32>
    %131 = vector.shape_cast %130 : vector<32xf32> to vector<1x1x32xf32>
    %132 = vector.broadcast %131 : vector<1x1x32xf32> to vector<16x16x32xf32>
    %133 = arith.mulf %128, %132 : vector<16x16x32xf32>
    %134 = arith.addf %127, %133 : vector<16x16x32xf32>
    %c2_57 = arith.constant 2 : index
    %c9_58 = arith.constant 9 : index
    %c0_59 = arith.constant 0 : index
    %135 = vector.load %arg6[%c2_57, %c9_58, %c0_59] : memref<22x27x32xf32, #tpu.memory_space<vmem>>, vector<16x16x32xf32>
    %136 = vector.extract_strided_slice %5 {offsets = [18, 0], sizes = [1, 32], strides = [1, 1]} : vector<49x32xf32> to vector<1x32xf32>
    %137 = vector.shape_cast %136 : vector<1x32xf32> to vector<32xf32>
    %138 = vector.shape_cast %137 : vector<32xf32> to vector<1x1x32xf32>
    %139 = vector.broadcast %138 : vector<1x1x32xf32> to vector<16x16x32xf32>
    %140 = arith.mulf %135, %139 : vector<16x16x32xf32>
    %141 = arith.addf %134, %140 : vector<16x16x32xf32>
    %c2_60 = arith.constant 2 : index
    %c10_61 = arith.constant 10 : index
    %c0_62 = arith.constant 0 : index
    %142 = vector.load %arg6[%c2_60, %c10_61, %c0_62] : memref<22x27x32xf32, #tpu.memory_space<vmem>>, vector<16x16x32xf32>
    %143 = vector.extract_strided_slice %5 {offsets = [19, 0], sizes = [1, 32], strides = [1, 1]} : vector<49x32xf32> to vector<1x32xf32>
    %144 = vector.shape_cast %143 : vector<1x32xf32> to vector<32xf32>
    %145 = vector.shape_cast %144 : vector<32xf32> to vector<1x1x32xf32>
    %146 = vector.broadcast %145 : vector<1x1x32xf32> to vector<16x16x32xf32>
    %147 = arith.mulf %142, %146 : vector<16x16x32xf32>
    %148 = arith.addf %141, %147 : vector<16x16x32xf32>
    %c2_63 = arith.constant 2 : index
    %c11_64 = arith.constant 11 : index
    %c0_65 = arith.constant 0 : index
    %149 = vector.load %arg6[%c2_63, %c11_64, %c0_65] : memref<22x27x32xf32, #tpu.memory_space<vmem>>, vector<16x16x32xf32>
    %150 = vector.extract_strided_slice %5 {offsets = [20, 0], sizes = [1, 32], strides = [1, 1]} : vector<49x32xf32> to vector<1x32xf32>
    %151 = vector.shape_cast %150 : vector<1x32xf32> to vector<32xf32>
    %152 = vector.shape_cast %151 : vector<32xf32> to vector<1x1x32xf32>
    %153 = vector.broadcast %152 : vector<1x1x32xf32> to vector<16x16x32xf32>
    %154 = arith.mulf %149, %153 : vector<16x16x32xf32>
    %155 = arith.addf %148, %154 : vector<16x16x32xf32>
    %c3_66 = arith.constant 3 : index
    %c5_67 = arith.constant 5 : index
    %c0_68 = arith.constant 0 : index
    %156 = vector.load %arg6[%c3_66, %c5_67, %c0_68] : memref<22x27x32xf32, #tpu.memory_space<vmem>>, vector<16x16x32xf32>
    %157 = vector.extract_strided_slice %5 {offsets = [21, 0], sizes = [1, 32], strides = [1, 1]} : vector<49x32xf32> to vector<1x32xf32>
    %158 = vector.shape_cast %157 : vector<1x32xf32> to vector<32xf32>
    %159 = vector.shape_cast %158 : vector<32xf32> to vector<1x1x32xf32>
    %160 = vector.broadcast %159 : vector<1x1x32xf32> to vector<16x16x32xf32>
    %161 = arith.mulf %156, %160 : vector<16x16x32xf32>
    %162 = arith.addf %155, %161 : vector<16x16x32xf32>
    %c3_69 = arith.constant 3 : index
    %c6_70 = arith.constant 6 : index
    %c0_71 = arith.constant 0 : index
    %163 = vector.load %arg6[%c3_69, %c6_70, %c0_71] : memref<22x27x32xf32, #tpu.memory_space<vmem>>, vector<16x16x32xf32>
    %164 = vector.extract_strided_slice %5 {offsets = [22, 0], sizes = [1, 32], strides = [1, 1]} : vector<49x32xf32> to vector<1x32xf32>
    %165 = vector.shape_cast %164 : vector<1x32xf32> to vector<32xf32>
    %166 = vector.shape_cast %165 : vector<32xf32> to vector<1x1x32xf32>
    %167 = vector.broadcast %166 : vector<1x1x32xf32> to vector<16x16x32xf32>
    %168 = arith.mulf %163, %167 : vector<16x16x32xf32>
    %169 = arith.addf %162, %168 : vector<16x16x32xf32>
    %c3_72 = arith.constant 3 : index
    %c7_73 = arith.constant 7 : index
    %c0_74 = arith.constant 0 : index
    %170 = vector.load %arg6[%c3_72, %c7_73, %c0_74] : memref<22x27x32xf32, #tpu.memory_space<vmem>>, vector<16x16x32xf32>
    %171 = vector.extract_strided_slice %5 {offsets = [23, 0], sizes = [1, 32], strides = [1, 1]} : vector<49x32xf32> to vector<1x32xf32>
    %172 = vector.shape_cast %171 : vector<1x32xf32> to vector<32xf32>
    %173 = vector.shape_cast %172 : vector<32xf32> to vector<1x1x32xf32>
    %174 = vector.broadcast %173 : vector<1x1x32xf32> to vector<16x16x32xf32>
    %175 = arith.mulf %170, %174 : vector<16x16x32xf32>
    %176 = arith.addf %169, %175 : vector<16x16x32xf32>
    %c3_75 = arith.constant 3 : index
    %c8_76 = arith.constant 8 : index
    %c0_77 = arith.constant 0 : index
    %177 = vector.load %arg6[%c3_75, %c8_76, %c0_77] : memref<22x27x32xf32, #tpu.memory_space<vmem>>, vector<16x16x32xf32>
    %178 = vector.extract_strided_slice %5 {offsets = [24, 0], sizes = [1, 32], strides = [1, 1]} : vector<49x32xf32> to vector<1x32xf32>
    %179 = vector.shape_cast %178 : vector<1x32xf32> to vector<32xf32>
    %180 = vector.shape_cast %179 : vector<32xf32> to vector<1x1x32xf32>
    %181 = vector.broadcast %180 : vector<1x1x32xf32> to vector<16x16x32xf32>
    %182 = arith.mulf %177, %181 : vector<16x16x32xf32>
    %183 = arith.addf %176, %182 : vector<16x16x32xf32>
    %c3_78 = arith.constant 3 : index
    %c9_79 = arith.constant 9 : index
    %c0_80 = arith.constant 0 : index
    %184 = vector.load %arg6[%c3_78, %c9_79, %c0_80] : memref<22x27x32xf32, #tpu.memory_space<vmem>>, vector<16x16x32xf32>
    %185 = vector.extract_strided_slice %5 {offsets = [25, 0], sizes = [1, 32], strides = [1, 1]} : vector<49x32xf32> to vector<1x32xf32>
    %186 = vector.shape_cast %185 : vector<1x32xf32> to vector<32xf32>
    %187 = vector.shape_cast %186 : vector<32xf32> to vector<1x1x32xf32>
    %188 = vector.broadcast %187 : vector<1x1x32xf32> to vector<16x16x32xf32>
    %189 = arith.mulf %184, %188 : vector<16x16x32xf32>
    %190 = arith.addf %183, %189 : vector<16x16x32xf32>
    %c3_81 = arith.constant 3 : index
    %c10_82 = arith.constant 10 : index
    %c0_83 = arith.constant 0 : index
    %191 = vector.load %arg6[%c3_81, %c10_82, %c0_83] : memref<22x27x32xf32, #tpu.memory_space<vmem>>, vector<16x16x32xf32>
    %192 = vector.extract_strided_slice %5 {offsets = [26, 0], sizes = [1, 32], strides = [1, 1]} : vector<49x32xf32> to vector<1x32xf32>
    %193 = vector.shape_cast %192 : vector<1x32xf32> to vector<32xf32>
    %194 = vector.shape_cast %193 : vector<32xf32> to vector<1x1x32xf32>
    %195 = vector.broadcast %194 : vector<1x1x32xf32> to vector<16x16x32xf32>
    %196 = arith.mulf %191, %195 : vector<16x16x32xf32>
    %197 = arith.addf %190, %196 : vector<16x16x32xf32>
    %c3_84 = arith.constant 3 : index
    %c11_85 = arith.constant 11 : index
    %c0_86 = arith.constant 0 : index
    %198 = vector.load %arg6[%c3_84, %c11_85, %c0_86] : memref<22x27x32xf32, #tpu.memory_space<vmem>>, vector<16x16x32xf32>
    %199 = vector.extract_strided_slice %5 {offsets = [27, 0], sizes = [1, 32], strides = [1, 1]} : vector<49x32xf32> to vector<1x32xf32>
    %200 = vector.shape_cast %199 : vector<1x32xf32> to vector<32xf32>
    %201 = vector.shape_cast %200 : vector<32xf32> to vector<1x1x32xf32>
    %202 = vector.broadcast %201 : vector<1x1x32xf32> to vector<16x16x32xf32>
    %203 = arith.mulf %198, %202 : vector<16x16x32xf32>
    %204 = arith.addf %197, %203 : vector<16x16x32xf32>
    %c4 = arith.constant 4 : index
    %c5_87 = arith.constant 5 : index
    %c0_88 = arith.constant 0 : index
    %205 = vector.load %arg6[%c4, %c5_87, %c0_88] : memref<22x27x32xf32, #tpu.memory_space<vmem>>, vector<16x16x32xf32>
    %206 = vector.extract_strided_slice %5 {offsets = [28, 0], sizes = [1, 32], strides = [1, 1]} : vector<49x32xf32> to vector<1x32xf32>
    %207 = vector.shape_cast %206 : vector<1x32xf32> to vector<32xf32>
    %208 = vector.shape_cast %207 : vector<32xf32> to vector<1x1x32xf32>
    %209 = vector.broadcast %208 : vector<1x1x32xf32> to vector<16x16x32xf32>
    %210 = arith.mulf %205, %209 : vector<16x16x32xf32>
    %211 = arith.addf %204, %210 : vector<16x16x32xf32>
    %c4_89 = arith.constant 4 : index
    %c6_90 = arith.constant 6 : index
    %c0_91 = arith.constant 0 : index
    %212 = vector.load %arg6[%c4_89, %c6_90, %c0_91] : memref<22x27x32xf32, #tpu.memory_space<vmem>>, vector<16x16x32xf32>
    %213 = vector.extract_strided_slice %5 {offsets = [29, 0], sizes = [1, 32], strides = [1, 1]} : vector<49x32xf32> to vector<1x32xf32>
    %214 = vector.shape_cast %213 : vector<1x32xf32> to vector<32xf32>
    %215 = vector.shape_cast %214 : vector<32xf32> to vector<1x1x32xf32>
    %216 = vector.broadcast %215 : vector<1x1x32xf32> to vector<16x16x32xf32>
    %217 = arith.mulf %212, %216 : vector<16x16x32xf32>
    %218 = arith.addf %211, %217 : vector<16x16x32xf32>
    %c4_92 = arith.constant 4 : index
    %c7_93 = arith.constant 7 : index
    %c0_94 = arith.constant 0 : index
    %219 = vector.load %arg6[%c4_92, %c7_93, %c0_94] : memref<22x27x32xf32, #tpu.memory_space<vmem>>, vector<16x16x32xf32>
    %220 = vector.extract_strided_slice %5 {offsets = [30, 0], sizes = [1, 32], strides = [1, 1]} : vector<49x32xf32> to vector<1x32xf32>
    %221 = vector.shape_cast %220 : vector<1x32xf32> to vector<32xf32>
    %222 = vector.shape_cast %221 : vector<32xf32> to vector<1x1x32xf32>
    %223 = vector.broadcast %222 : vector<1x1x32xf32> to vector<16x16x32xf32>
    %224 = arith.mulf %219, %223 : vector<16x16x32xf32>
    %225 = arith.addf %218, %224 : vector<16x16x32xf32>
    %c4_95 = arith.constant 4 : index
    %c8_96 = arith.constant 8 : index
    %c0_97 = arith.constant 0 : index
    %226 = vector.load %arg6[%c4_95, %c8_96, %c0_97] : memref<22x27x32xf32, #tpu.memory_space<vmem>>, vector<16x16x32xf32>
    %227 = vector.extract_strided_slice %5 {offsets = [31, 0], sizes = [1, 32], strides = [1, 1]} : vector<49x32xf32> to vector<1x32xf32>
    %228 = vector.shape_cast %227 : vector<1x32xf32> to vector<32xf32>
    %229 = vector.shape_cast %228 : vector<32xf32> to vector<1x1x32xf32>
    %230 = vector.broadcast %229 : vector<1x1x32xf32> to vector<16x16x32xf32>
    %231 = arith.mulf %226, %230 : vector<16x16x32xf32>
    %232 = arith.addf %225, %231 : vector<16x16x32xf32>
    %c4_98 = arith.constant 4 : index
    %c9_99 = arith.constant 9 : index
    %c0_100 = arith.constant 0 : index
    %233 = vector.load %arg6[%c4_98, %c9_99, %c0_100] : memref<22x27x32xf32, #tpu.memory_space<vmem>>, vector<16x16x32xf32>
    %234 = vector.extract_strided_slice %5 {offsets = [32, 0], sizes = [1, 32], strides = [1, 1]} : vector<49x32xf32> to vector<1x32xf32>
    %235 = vector.shape_cast %234 : vector<1x32xf32> to vector<32xf32>
    %236 = vector.shape_cast %235 : vector<32xf32> to vector<1x1x32xf32>
    %237 = vector.broadcast %236 : vector<1x1x32xf32> to vector<16x16x32xf32>
    %238 = arith.mulf %233, %237 : vector<16x16x32xf32>
    %239 = arith.addf %232, %238 : vector<16x16x32xf32>
    %c4_101 = arith.constant 4 : index
    %c10_102 = arith.constant 10 : index
    %c0_103 = arith.constant 0 : index
    %240 = vector.load %arg6[%c4_101, %c10_102, %c0_103] : memref<22x27x32xf32, #tpu.memory_space<vmem>>, vector<16x16x32xf32>
    %241 = vector.extract_strided_slice %5 {offsets = [33, 0], sizes = [1, 32], strides = [1, 1]} : vector<49x32xf32> to vector<1x32xf32>
    %242 = vector.shape_cast %241 : vector<1x32xf32> to vector<32xf32>
    %243 = vector.shape_cast %242 : vector<32xf32> to vector<1x1x32xf32>
    %244 = vector.broadcast %243 : vector<1x1x32xf32> to vector<16x16x32xf32>
    %245 = arith.mulf %240, %244 : vector<16x16x32xf32>
    %246 = arith.addf %239, %245 : vector<16x16x32xf32>
    %c4_104 = arith.constant 4 : index
    %c11_105 = arith.constant 11 : index
    %c0_106 = arith.constant 0 : index
    %247 = vector.load %arg6[%c4_104, %c11_105, %c0_106] : memref<22x27x32xf32, #tpu.memory_space<vmem>>, vector<16x16x32xf32>
    %248 = vector.extract_strided_slice %5 {offsets = [34, 0], sizes = [1, 32], strides = [1, 1]} : vector<49x32xf32> to vector<1x32xf32>
    %249 = vector.shape_cast %248 : vector<1x32xf32> to vector<32xf32>
    %250 = vector.shape_cast %249 : vector<32xf32> to vector<1x1x32xf32>
    %251 = vector.broadcast %250 : vector<1x1x32xf32> to vector<16x16x32xf32>
    %252 = arith.mulf %247, %251 : vector<16x16x32xf32>
    %253 = arith.addf %246, %252 : vector<16x16x32xf32>
    %c5_107 = arith.constant 5 : index
    %c5_108 = arith.constant 5 : index
    %c0_109 = arith.constant 0 : index
    %254 = vector.load %arg6[%c5_107, %c5_108, %c0_109] : memref<22x27x32xf32, #tpu.memory_space<vmem>>, vector<16x16x32xf32>
    %255 = vector.extract_strided_slice %5 {offsets = [35, 0], sizes = [1, 32], strides = [1, 1]} : vector<49x32xf32> to vector<1x32xf32>
    %256 = vector.shape_cast %255 : vector<1x32xf32> to vector<32xf32>
    %257 = vector.shape_cast %256 : vector<32xf32> to vector<1x1x32xf32>
    %258 = vector.broadcast %257 : vector<1x1x32xf32> to vector<16x16x32xf32>
    %259 = arith.mulf %254, %258 : vector<16x16x32xf32>
    %260 = arith.addf %253, %259 : vector<16x16x32xf32>
    %c5_110 = arith.constant 5 : index
    %c6_111 = arith.constant 6 : index
    %c0_112 = arith.constant 0 : index
    %261 = vector.load %arg6[%c5_110, %c6_111, %c0_112] : memref<22x27x32xf32, #tpu.memory_space<vmem>>, vector<16x16x32xf32>
    %262 = vector.extract_strided_slice %5 {offsets = [36, 0], sizes = [1, 32], strides = [1, 1]} : vector<49x32xf32> to vector<1x32xf32>
    %263 = vector.shape_cast %262 : vector<1x32xf32> to vector<32xf32>
    %264 = vector.shape_cast %263 : vector<32xf32> to vector<1x1x32xf32>
    %265 = vector.broadcast %264 : vector<1x1x32xf32> to vector<16x16x32xf32>
    %266 = arith.mulf %261, %265 : vector<16x16x32xf32>
    %267 = arith.addf %260, %266 : vector<16x16x32xf32>
    %c5_113 = arith.constant 5 : index
    %c7_114 = arith.constant 7 : index
    %c0_115 = arith.constant 0 : index
    %268 = vector.load %arg6[%c5_113, %c7_114, %c0_115] : memref<22x27x32xf32, #tpu.memory_space<vmem>>, vector<16x16x32xf32>
    %269 = vector.extract_strided_slice %5 {offsets = [37, 0], sizes = [1, 32], strides = [1, 1]} : vector<49x32xf32> to vector<1x32xf32>
    %270 = vector.shape_cast %269 : vector<1x32xf32> to vector<32xf32>
    %271 = vector.shape_cast %270 : vector<32xf32> to vector<1x1x32xf32>
    %272 = vector.broadcast %271 : vector<1x1x32xf32> to vector<16x16x32xf32>
    %273 = arith.mulf %268, %272 : vector<16x16x32xf32>
    %274 = arith.addf %267, %273 : vector<16x16x32xf32>
    %c5_116 = arith.constant 5 : index
    %c8_117 = arith.constant 8 : index
    %c0_118 = arith.constant 0 : index
    %275 = vector.load %arg6[%c5_116, %c8_117, %c0_118] : memref<22x27x32xf32, #tpu.memory_space<vmem>>, vector<16x16x32xf32>
    %276 = vector.extract_strided_slice %5 {offsets = [38, 0], sizes = [1, 32], strides = [1, 1]} : vector<49x32xf32> to vector<1x32xf32>
    %277 = vector.shape_cast %276 : vector<1x32xf32> to vector<32xf32>
    %278 = vector.shape_cast %277 : vector<32xf32> to vector<1x1x32xf32>
    %279 = vector.broadcast %278 : vector<1x1x32xf32> to vector<16x16x32xf32>
    %280 = arith.mulf %275, %279 : vector<16x16x32xf32>
    %281 = arith.addf %274, %280 : vector<16x16x32xf32>
    %c5_119 = arith.constant 5 : index
    %c9_120 = arith.constant 9 : index
    %c0_121 = arith.constant 0 : index
    %282 = vector.load %arg6[%c5_119, %c9_120, %c0_121] : memref<22x27x32xf32, #tpu.memory_space<vmem>>, vector<16x16x32xf32>
    %283 = vector.extract_strided_slice %5 {offsets = [39, 0], sizes = [1, 32], strides = [1, 1]} : vector<49x32xf32> to vector<1x32xf32>
    %284 = vector.shape_cast %283 : vector<1x32xf32> to vector<32xf32>
    %285 = vector.shape_cast %284 : vector<32xf32> to vector<1x1x32xf32>
    %286 = vector.broadcast %285 : vector<1x1x32xf32> to vector<16x16x32xf32>
    %287 = arith.mulf %282, %286 : vector<16x16x32xf32>
    %288 = arith.addf %281, %287 : vector<16x16x32xf32>
    %c5_122 = arith.constant 5 : index
    %c10_123 = arith.constant 10 : index
    %c0_124 = arith.constant 0 : index
    %289 = vector.load %arg6[%c5_122, %c10_123, %c0_124] : memref<22x27x32xf32, #tpu.memory_space<vmem>>, vector<16x16x32xf32>
    %290 = vector.extract_strided_slice %5 {offsets = [40, 0], sizes = [1, 32], strides = [1, 1]} : vector<49x32xf32> to vector<1x32xf32>
    %291 = vector.shape_cast %290 : vector<1x32xf32> to vector<32xf32>
    %292 = vector.shape_cast %291 : vector<32xf32> to vector<1x1x32xf32>
    %293 = vector.broadcast %292 : vector<1x1x32xf32> to vector<16x16x32xf32>
    %294 = arith.mulf %289, %293 : vector<16x16x32xf32>
    %295 = arith.addf %288, %294 : vector<16x16x32xf32>
    %c5_125 = arith.constant 5 : index
    %c11_126 = arith.constant 11 : index
    %c0_127 = arith.constant 0 : index
    %296 = vector.load %arg6[%c5_125, %c11_126, %c0_127] : memref<22x27x32xf32, #tpu.memory_space<vmem>>, vector<16x16x32xf32>
    %297 = vector.extract_strided_slice %5 {offsets = [41, 0], sizes = [1, 32], strides = [1, 1]} : vector<49x32xf32> to vector<1x32xf32>
    %298 = vector.shape_cast %297 : vector<1x32xf32> to vector<32xf32>
    %299 = vector.shape_cast %298 : vector<32xf32> to vector<1x1x32xf32>
    %300 = vector.broadcast %299 : vector<1x1x32xf32> to vector<16x16x32xf32>
    %301 = arith.mulf %296, %300 : vector<16x16x32xf32>
    %302 = arith.addf %295, %301 : vector<16x16x32xf32>
    %c6_128 = arith.constant 6 : index
    %c5_129 = arith.constant 5 : index
    %c0_130 = arith.constant 0 : index
    %303 = vector.load %arg6[%c6_128, %c5_129, %c0_130] : memref<22x27x32xf32, #tpu.memory_space<vmem>>, vector<16x16x32xf32>
    %304 = vector.extract_strided_slice %5 {offsets = [42, 0], sizes = [1, 32], strides = [1, 1]} : vector<49x32xf32> to vector<1x32xf32>
    %305 = vector.shape_cast %304 : vector<1x32xf32> to vector<32xf32>
    %306 = vector.shape_cast %305 : vector<32xf32> to vector<1x1x32xf32>
    %307 = vector.broadcast %306 : vector<1x1x32xf32> to vector<16x16x32xf32>
    %308 = arith.mulf %303, %307 : vector<16x16x32xf32>
    %309 = arith.addf %302, %308 : vector<16x16x32xf32>
    %c6_131 = arith.constant 6 : index
    %c6_132 = arith.constant 6 : index
    %c0_133 = arith.constant 0 : index
    %310 = vector.load %arg6[%c6_131, %c6_132, %c0_133] : memref<22x27x32xf32, #tpu.memory_space<vmem>>, vector<16x16x32xf32>
    %311 = vector.extract_strided_slice %5 {offsets = [43, 0], sizes = [1, 32], strides = [1, 1]} : vector<49x32xf32> to vector<1x32xf32>
    %312 = vector.shape_cast %311 : vector<1x32xf32> to vector<32xf32>
    %313 = vector.shape_cast %312 : vector<32xf32> to vector<1x1x32xf32>
    %314 = vector.broadcast %313 : vector<1x1x32xf32> to vector<16x16x32xf32>
    %315 = arith.mulf %310, %314 : vector<16x16x32xf32>
    %316 = arith.addf %309, %315 : vector<16x16x32xf32>
    %c6_134 = arith.constant 6 : index
    %c7_135 = arith.constant 7 : index
    %c0_136 = arith.constant 0 : index
    %317 = vector.load %arg6[%c6_134, %c7_135, %c0_136] : memref<22x27x32xf32, #tpu.memory_space<vmem>>, vector<16x16x32xf32>
    %318 = vector.extract_strided_slice %5 {offsets = [44, 0], sizes = [1, 32], strides = [1, 1]} : vector<49x32xf32> to vector<1x32xf32>
    %319 = vector.shape_cast %318 : vector<1x32xf32> to vector<32xf32>
    %320 = vector.shape_cast %319 : vector<32xf32> to vector<1x1x32xf32>
    %321 = vector.broadcast %320 : vector<1x1x32xf32> to vector<16x16x32xf32>
    %322 = arith.mulf %317, %321 : vector<16x16x32xf32>
    %323 = arith.addf %316, %322 : vector<16x16x32xf32>
    %c6_137 = arith.constant 6 : index
    %c8_138 = arith.constant 8 : index
    %c0_139 = arith.constant 0 : index
    %324 = vector.load %arg6[%c6_137, %c8_138, %c0_139] : memref<22x27x32xf32, #tpu.memory_space<vmem>>, vector<16x16x32xf32>
    %325 = vector.extract_strided_slice %5 {offsets = [45, 0], sizes = [1, 32], strides = [1, 1]} : vector<49x32xf32> to vector<1x32xf32>
    %326 = vector.shape_cast %325 : vector<1x32xf32> to vector<32xf32>
    %327 = vector.shape_cast %326 : vector<32xf32> to vector<1x1x32xf32>
    %328 = vector.broadcast %327 : vector<1x1x32xf32> to vector<16x16x32xf32>
    %329 = arith.mulf %324, %328 : vector<16x16x32xf32>
    %330 = arith.addf %323, %329 : vector<16x16x32xf32>
    %c6_140 = arith.constant 6 : index
    %c9_141 = arith.constant 9 : index
    %c0_142 = arith.constant 0 : index
    %331 = vector.load %arg6[%c6_140, %c9_141, %c0_142] : memref<22x27x32xf32, #tpu.memory_space<vmem>>, vector<16x16x32xf32>
    %332 = vector.extract_strided_slice %5 {offsets = [46, 0], sizes = [1, 32], strides = [1, 1]} : vector<49x32xf32> to vector<1x32xf32>
    %333 = vector.shape_cast %332 : vector<1x32xf32> to vector<32xf32>
    %334 = vector.shape_cast %333 : vector<32xf32> to vector<1x1x32xf32>
    %335 = vector.broadcast %334 : vector<1x1x32xf32> to vector<16x16x32xf32>
    %336 = arith.mulf %331, %335 : vector<16x16x32xf32>
    %337 = arith.addf %330, %336 : vector<16x16x32xf32>
    %c6_143 = arith.constant 6 : index
    %c10_144 = arith.constant 10 : index
    %c0_145 = arith.constant 0 : index
    %338 = vector.load %arg6[%c6_143, %c10_144, %c0_145] : memref<22x27x32xf32, #tpu.memory_space<vmem>>, vector<16x16x32xf32>
    %339 = vector.extract_strided_slice %5 {offsets = [47, 0], sizes = [1, 32], strides = [1, 1]} : vector<49x32xf32> to vector<1x32xf32>
    %340 = vector.shape_cast %339 : vector<1x32xf32> to vector<32xf32>
    %341 = vector.shape_cast %340 : vector<32xf32> to vector<1x1x32xf32>
    %342 = vector.broadcast %341 : vector<1x1x32xf32> to vector<16x16x32xf32>
    %343 = arith.mulf %338, %342 : vector<16x16x32xf32>
    %344 = arith.addf %337, %343 : vector<16x16x32xf32>
    %c6_146 = arith.constant 6 : index
    %c11_147 = arith.constant 11 : index
    %c0_148 = arith.constant 0 : index
    %345 = vector.load %arg6[%c6_146, %c11_147, %c0_148] : memref<22x27x32xf32, #tpu.memory_space<vmem>>, vector<16x16x32xf32>
    %346 = vector.extract_strided_slice %5 {offsets = [48, 0], sizes = [1, 32], strides = [1, 1]} : vector<49x32xf32> to vector<1x32xf32>
    %347 = vector.shape_cast %346 : vector<1x32xf32> to vector<32xf32>
    %348 = vector.shape_cast %347 : vector<32xf32> to vector<1x1x32xf32>
    %349 = vector.broadcast %348 : vector<1x1x32xf32> to vector<16x16x32xf32>
    %350 = arith.mulf %345, %349 : vector<16x16x32xf32>
    %351 = arith.addf %344, %350 : vector<16x16x32xf32>
    %352 = arith.negf %351 : vector<16x16x32xf32>
    %353 = math.exp %352 : vector<16x16x32xf32>
    %cst_149 = arith.constant 1.000000e+00 : f32
    %354 = vector.broadcast %cst_149 : f32 to vector<16x16x32xf32>
    %355 = arith.addf %354, %353 : vector<16x16x32xf32>
    %356 = arith.divf %354, %355 : vector<16x16x32xf32>
    %357 = arith.mulf %351, %356 : vector<16x16x32xf32>
    %c0_150 = arith.constant 0 : index
    %c0_151 = arith.constant 0 : index
    %c0_152 = arith.constant 0 : index
    %c0_153 = arith.constant 0 : index
    %358 = vector.load %arg5[%c0_150, %c0_151, %c0_152, %c0_153] : memref<1x16x16x32xf32, #tpu.memory_space<vmem>>, vector<1x16x16x32xf32>
    %359 = vector.shape_cast %358 : vector<1x16x16x32xf32> to vector<16x16x32xf32>
    %360 = vector.shape_cast %357 : vector<16x16x32xf32> to vector<1x16x16x32xf32>
    tpu.vector_store %arg5[%c0_150, %c0_151, %c0_152, %c0_153], %360 {strides = array<i32>} : memref<1x16x16x32xf32, #tpu.memory_space<vmem>>, vector<1x16x16x32xf32>,
    return
  }
  func.func @transform_0(%arg0: i32, %arg1: i32) -> (i32, i32, i32, i32) {
    %c0_i32 = arith.constant 0 : i32
    %c0_i32_0 = arith.constant 0 : i32
    %c0_i32_1 = arith.constant 0 : i32
    return %arg0, %c0_i32, %c0_i32_0, %arg1 : i32, i32, i32, i32
  }
  func.func @transform_1(%arg0: i32, %arg1: i32) -> (i32, i32) {
    %c0_i32 = arith.constant 0 : i32
    %c0_i32_0 = arith.constant 0 : i32
    return %c0_i32, %arg1 : i32, i32
  }
  func.func @transform_2(%arg0: i32, %arg1: i32) -> (i32, i32) {
    %c0_i32 = arith.constant 0 : i32
    %c0_i32_0 = arith.constant 0 : i32
    return %c0_i32, %arg1 : i32, i32
  }
  func.func @transform_3(%arg0: i32, %arg1: i32) -> (i32, i32, i32, i32) {
    %c0_i32 = arith.constant 0 : i32
    %c0_i32_0 = arith.constant 0 : i32
    %c0_i32_1 = arith.constant 0 : i32
    return %arg0, %c0_i32, %c0_i32_0, %arg1 : i32, i32, i32, i32
  }
}

</mosaic_0001>

<bundles_post_ra>
// kernel: repvggdw_forward.1
= control target key start
LH: loop header
LB: loop body
LE: loop exit
PB: predicated region body
PF: predicated region fallthrough
CT: control target
= control target key end

     0   :  { %8 = vsyncpa [#allocation4], 0  ;;  %s10623_s0 = inlined_call_operand.hbm [shape: f32[2,16,16,32], index: 0, kind: input, shape index: {}]   ;;  %s10624_s1 = inlined_call_operand.vmem [shape: f32[49,32], index: 1, kind: input, shape index: {}]   ;;  %s10625_s2 = inlined_call_operand.vmem [shape: f32[1,32], index: 2, kind: input, shape index: {}]   ;;  %s10626_s3 = inlined_call_operand.hbm [shape: f32[2,16,16,32], index: 3, kind: output, shape index: {}]  }
   0x1   :  { %10 = vsyncpa [#allocation4 + $0x1], 0 }
   0x2   :  { %11 = vsyncpa [#allocation5], 0 }
   0x3   :  { %13 = vsyncpa [#allocation5 + $0x1], 0  ;;  %s6120_s12 = smov 0   ;;  %s6122_s13 = smov 0  }
   0x4   :  { %s6124_s14 = smov 0   ;;  %s6126_s15 = smov 0  }
   0x5   :  { %s6128_s16 = smov 0   ;;  %s6130_s17 = smov 0  }
   0x6 LB: > { %s5694_s18 = sadd.s32 4294967295, %s6091_s17   ;;  %s5695_s19 = sadd.s32 4294967294, %s6091_s17   ;;  %s6091_s17 = sphi %s6130_s17, %s19_s17   ;;  %s6087_s16 = sphi %s6128_s16, %s11316_s16   ;;  %s6083_s15 = sphi %s6126_s15, %s11315_s15   ;;  %s6079_s14 = sphi %s6124_s14, %s11314_s14   ;;  %s6075_s13 = sphi %s6122_s13, %s11313_s13   ;;  %s6071_s12 = sphi %s6120_s12, %s11312_s12  }
   0x7   : > { %s31_s20 = sadd.s32 1, %s6087_s16  ;;  %s40_s21 = sadd.s32 1, %s6079_s14 }
   0x8   : > { %p33_p0 = scmp.ge.s32.totalorder %s31_s20, 2  ;;  %p47_p1 = scmp.ne.s32.totalorder %s6079_s14, %s6075_s13 }
   0x9   : > { %p48_p2 = scmp.eq.s32.totalorder %s6091_s17, 0  ;;  %p53_p3 = scmp.ne.s32.totalorder %s6075_s13, %s6071_s12 }
   0xa   : > { %s11318_s20 = smov (%p33_p0, %s31_s20), 0  ;;  %p54_p5 = scmp.eq.s32.totalorder %s5694_s18, 0 }
   0xb   : > { %p6161_p4 = por %p48_p2, %p47_p1  ;;  %s35_s23 = ssub.s32 %s6087_s16, %s11318_s20 }
   0xc   : > { %p131_p6 = scmp.eq.s32.totalorder %s5694_s18, 1  ;;  %p38_p7 = scmp.eq.s32.totalorder %s35_s23, 0 }
   0xd   : > { %p6167_p8 = por %p54_p5, %p53_p3  ;;  %p137_p10 = scmp.eq.s32.totalorder %s5695_s19, 1 }
   0xe   : > { %p6171_p9 = por %p131_p6, %p47_p1  ;;  %p5759_p13 = scmp.lt.s32.totalorder %s6091_s17, 2 }
   0xf   : > { %s6176_s26 = scalar_select %p38_p7, %s6079_s14, %s40_s21  }
  0x10   : > { %s10845_s25 = scalar_select %p6171_p9, 1, 0 }
  0x11   : > { %p6178_p11 = por %p137_p10, %p53_p3  ;;  %s170_s28 = sand.u32 1, %s6079_s14  }
  0x12   : > { %s5700_s29 = sshll.u32 %s170_s28, 8  ;;  %s5745_s30 = sshll.u32 %s6087_s16, 12 }
  0x13   : > { %s10846_s27 = scalar_select %p6178_p11, 1, 0 }
  0x14   : > { %s6189_s6 = scalar_lea.hbm %s10623_s0, %s5745_s30  ;;  %s174_s7 = scalar_lea.vmem [#allocation3], %s5700_s29 }
  0x15   : > { %s182_s8 = sshll.u32 %s174_s7, 4  ;;  %p6195_p0 = pnand %p5759_p13, %p6161_p4  ;;  %s6191_s8 = int_to_ptr.vmem [resolvable:$true] %s182_s8 }
  0x16   : > { %s6200_s10 = scalar_lea.sflag [#allocation4], %s170_s28  ;;  %s5979_s11 = scalar_lea.hbm %s6189_s6, 4096 }
  0x17   : > { %p5980_p2 = scmp.ne.s32.totalorder %s6189_s6, %s5979_s11  ;;  %p5981_p3 = pneg %p6195_p0 }
  0x18   : > { %s5984_s21 = scalar_lea.hbm %s10623_s0, 8192  ;;  %p5985_p4 = scmp.lt.u32.totalorder %s6189_s6, %s10623_s0 }
  0x19   : > { %p5982_p5 = pnand %p5981_p3, %p5980_p2  ;;  %p5986_p7 = scmp.lt.u32.totalorder %s5984_s21, %s5979_s11 }
  0x1a   : > { %p5988_p13 = scmp.lt.u32.totalorder %s5979_s11, %s6189_s6 }
  0x1b   : > { %p5983_p6 = pneg %p5982_p5  ;;  %p5987_p10 = por %p5986_p7, %p5985_p4 }
  0x1d   : > { %p5989_p12 = por %p5988_p13, %p5987_p10 }
  0x1f   : > { %p5990_p1 = pnand %p5989_p12, %p5983_p6 }
  0x21   : > { %5993 = shalt.err (!%p5990_p1)
}
  0x22   : > { %s5994_s28 = scalar_lea.vmem %s6191_s8, 4096  ;;  %s6093_s29 = smov [#allocation3]  }
  0x23   : > { %p5995_p2 = scmp.ne.s32.totalorder %s6191_s8, %s5994_s28  ;;  %s5999_s30 = sshll.u32 %s6093_s29, 4  ;;  %s6000_s30 = int_to_ptr.vmem [resolvable:$false] %s5999_s30 }
  0x24   : > { %s6001_s4 = scalar_lea.vmem %s6000_s30, 8192  ;;  %p6002_p9 = scmp.lt.s32.totalorder %s6191_s8, %s6000_s30 }
  0x25   : > { %p5997_p5 = pnand %p5995_p2, %p5981_p3  ;;  %p6003_p4 = scmp.lt.s32.totalorder %s6001_s4, %s5994_s28 }
  0x27   : > { %p5998_p11 = pneg %p5997_p5  ;;  %p6004_p7 = por %p6003_p4, %p6002_p9 }
  0x29   : > { %p6005_p10 = pnand %p6004_p7, %p5998_p11 }
  0x2b   : > { %6008 = shalt.err (!%p6005_p10)
}
  0x2c   : > { %s6094_s5 = smov 128   ;;  %s6095_s7 = smov 8  }
  0x2d   : > { %5754 = dma.hbm_to_vmem [thread:$0]  (!%p6195_p0), %s6189_s6, 4096, %s6191_s8, %s6200_s10, %s6094_s5, %s6094_s5, %s6095_s7  }
  0x2e   : > { %p190_p12 = scmp.lt.s32.totalorder %s6091_s17, 3  ;;  %p10848_p1 = scmp.ge.s32.totalorder %s6091_s17, 1 }
  0x30   : > { %p191_p3 = pnand %p10848_p1, %p190_p12 }
  0x32   : > { %194 = sbr.rel (%p191_p3) target bundleno = 990 (0x3de), region = 32 }
  0x39   : > { %s6232_s11 = sand.u32 1, %s6075_s13  }
  0x3a   : > { %s5704_s18 = sshll.u32 %s6232_s11, 8  ;;  %s197_s19 = scalar_lea.sflag [#allocation4], %s6232_s11 }
  0x3b   : > { %s6238_s21 = scalar_lea.vmem [#allocation3], %s5704_s18 }
  0x3c   : > { %6062 = dma.done.wait (%p6167_p8), %s197_s19, 4096  }
  0x3d   : > { %6064 = vsyncadd (%p6167_p8), %s197_s19, 4294963200  ;;  %vm237_vm0 = vcmask 261120   ;;  %v438_v0 = vlaneseq  ;;  %vm241_vm1 = vcmask 256000   ;;  %v6096_v1 = vmov 0.0   ;;  %v6428_v5 = vld [vmem:[%s10624_s1] sm:$0xff]  ;;  %s10038_s5 = scalar_lea.vmem [#allocation6], %s5704_s18 }
  0x3e   : > { %238 = vst.msk [vmem:[#allocation2] sm:$0xff] %vm237_vm0, %v6096_v1  ;;  %239 = vst.msk [vmem:[#allocation2 + $0x8] sm:$0xff] %vm237_vm0, %v6096_v1  ;;  %v6433_v6 = vld [vmem:[%s10625_s2] ss:$0 sm:$0xff]  ;;  %s5746_s6 = sshll.u32 %s6083_s15, 12  ;;  %s5582_s8 = sshll.u32 %s10038_s5, 4  ;;  %s10572_s8 = int_to_ptr.vmem [resolvable:$true] %s5582_s8 }
  0x3f   : > { %240 = vst.msk [vmem:[#allocation2 + $0x10] sm:$0xff] %vm237_vm0, %v6096_v1  ;;  %243 = vst.msk [vmem:[#allocation2 + $0x20] sm:$0xff] %vm237_vm0, %v6096_v1  ;;  %v439_v2 = vshrl.u32 %v438_v0, 7  ;;  %s10570_s10 = scalar_lea.hbm %s10626_s3, %s5746_s6  ;;  %s5568_s22 = scalar_lea.sflag [#allocation5], %s6232_s11 }
  0x40   : > { %244 = vst.msk [vmem:[#allocation2 + $0x28] sm:$0xff] %vm237_vm0, %v6096_v1  ;;  %245 = vst.msk [vmem:[#allocation2 + $0x30] sm:$0xff] %vm237_vm0, %v6096_v1  ;;  %s6009_s23 = scalar_lea.vmem %s10572_s8, 4096  ;;  %p11309_p9 = scmp.ne.s32.totalorder %s10845_s25, 0 }
  0x41   : > { %247 = vst.msk [vmem:[#allocation2 + $0x40] sm:$0xff] %vm237_vm0, %v6096_v1  ;;  %248 = vst.msk [vmem:[#allocation2 + $0x48] sm:$0xff] %vm237_vm0, %v6096_v1  ;;  %v6421_v3 = vsub.s32 0, %v439_v2  ;;  %v6423_v4 = vsub.s32 1, %v439_v2  ;;  %v6435_v7 = vsub.s32 2, %v439_v2  ;;  %v6453_v16 = vsub.s32 3, %v439_v2  ;;  %p6010_p8 = scmp.ne.s32.totalorder %s10572_s8, %s6009_s23 }
  0x42   : > { %249 = vst.msk [vmem:[#allocation2 + $0x50] sm:$0xff] %vm237_vm0, %v6096_v1  ;;  %251 = vst.msk [vmem:[#allocation2 + $0x60] sm:$0xff] %vm237_vm0, %v6096_v1  ;;  %v6455_v17 = vsub.s32 4, %v439_v2  ;;  %v6457_v18 = vsub.s32 5, %v439_v2  ;;  %v6502_v47 = vsub.s32 6, %v439_v2  ;;  %v6511_v54 = vsub.s32 7, %v439_v2 }
  0x43   : > { %252 = vst.msk [vmem:[#allocation2 + $0x68] sm:$0xff] %vm237_vm0, %v6096_v1  ;;  %253 = vst.msk [vmem:[#allocation2 + $0x70] sm:$0xff] %vm237_vm0, %v6096_v1  ;;  %v6441_v11 = vrot.slane %v6428_v5, %v6421_v3  ;;  %v6445_v12 = vrot.slane %v6428_v5, %v6423_v4  ;;  %v6478_v31 = vrot.slane %v6428_v5, %v6435_v7  ;;  %p6011_p11 = pnand %p6010_p8, %p11309_p9  ;;  %s6097_s15 = smov [#allocation6]  }
  0x44   : > { %255 = vst.msk [vmem:[#allocation2 + $0x80] sm:$0xff] %vm237_vm0, %v6096_v1  ;;  %256 = vst.msk [vmem:[#allocation2 + $0x88] sm:$0xff] %vm237_vm0, %v6096_v1  ;;  %v6500_v46 = vrot.slane %v6428_v5, %v6453_v16  ;;  %v6509_v53 = vrot.slane %v6428_v5, %v6455_v17  ;;  %s6013_s28 = sshll.u32 %s6097_s15, 4  ;;  %s6014_s28 = int_to_ptr.vmem [resolvable:$false] %s6013_s28 }
  0x45   : > { %257 = vst.msk [vmem:[#allocation2 + $0x90] sm:$0xff] %vm237_vm0, %v6096_v1  ;;  %259 = vst.msk [vmem:[#allocation2 + $0xa0] sm:$0xff] %vm237_vm0, %v6096_v1  ;;  %v406_v8 = vld [vmem:[#allocation2 + $0x5] sm:$0xff]  ;;  %p6012_p0 = pneg %p6011_p11  ;;  %s6015_s29 = scalar_lea.vmem %s6014_s28, 8192 }
  0x46   : > { %260 = vst.msk [vmem:[#allocation2 + $0xa8] sm:$0xff] %vm237_vm0, %v6096_v1  ;;  %261 = vst.msk [vmem:[#allocation2 + $0xb0] sm:$0xff] %vm237_vm0, %v6096_v1  ;;  %v407_v9 = vld [vmem:[#allocation2 + $0xd] sm:$0xff]  ;;  %v442_v19 = vmul.f32 %v6441_v11, %v406_v8  ;;  %p6016_p6 = scmp.lt.s32.totalorder %s10572_s8, %s6014_s28  ;;  %p6017_p13 = scmp.lt.s32.totalorder %s6015_s29, %s6009_s23 }
  0x47   : > { %263 = vst.msk [vmem:[#allocation2 + $0xc0] sm:$0xff] %vm237_vm0, %v6096_v1  ;;  %264 = vst.msk [vmem:[#allocation2 + $0xc8] sm:$0xff] %vm237_vm0, %v6096_v1  ;;  %v6437_v10 = vld [vmem:[#allocation2 + $0x25] sm:$0xff]  ;;  %v6447_v13 = vld [vmem:[#allocation2 + $0x2d] sm:$0xff]  ;;  %v443_v20 = vmul.f32 %v6441_v11, %v407_v9 }
  0x48   : > { %265 = vst.msk [vmem:[#allocation2 + $0xd0] sm:$0xff] %vm237_vm0, %v6096_v1  ;;  %267 = vst.msk [vmem:[#allocation2 + $0xe0] sm:$0xff] %vm237_vm0, %v6096_v1  ;;  %v6449_v14 = vld [vmem:[#allocation2 + $0x45] sm:$0xff]  ;;  %v444_v21 = vmul.f32 %v6441_v11, %v6437_v10  ;;  %v445_v22 = vmul.f32 %v6441_v11, %v6447_v13  ;;  %v507_v24 = vld [vmem:[#allocation2 + $0xe] sm:$0xff]  ;;  %v474_v32 = vadd.f32 %v6433_v6, %v442_v19  ;;  %p6018_p2 = por %p6017_p13, %p6016_p6 }
  0x49   : > { %268 = vst.msk [vmem:[#allocation2 + $0xe8] sm:$0xff] %vm237_vm0, %v6096_v1  ;;  %269 = vst.msk [vmem:[#allocation2 + $0xf0] sm:$0xff] %vm237_vm0, %v6096_v1  ;;  %v6451_v15 = vld [vmem:[#allocation2 + $0x4d] sm:$0xff]  ;;  %v446_v26 = vmul.f32 %v6441_v11, %v6449_v14  ;;  %v475_v33 = vadd.f32 %v6433_v6, %v443_v20  ;;  %v543_v35 = vmul.f32 %v6445_v12, %v507_v24 }
  0x4a   : > { %271 = vst.msk [vmem:[#allocation2 + $0x100] sm:$0xff] %vm237_vm0, %v6096_v1  ;;  %272 = vst.msk [vmem:[#allocation2 + $0x108] sm:$0xff] %vm237_vm0, %v6096_v1  ;;  %v506_v23 = vld [vmem:[#allocation2 + $0x6] sm:$0xff]  ;;  %v447_v27 = vmul.f32 %v6441_v11, %v6451_v15  ;;  %v6471_v28 = vld [vmem:[#allocation2 + $0x2e] sm:$0xff]  ;;  %v476_v34 = vadd.f32 %v6433_v6, %v444_v21  ;;  %v477_v37 = vadd.f32 %v6433_v6, %v445_v22  ;;  %p6019_p5 = pnand %p6018_p2, %p6012_p0 }
  0x4b   : > { %273 = vst.msk [vmem:[#allocation2 + $0x110] sm:$0xff] %vm237_vm0, %v6096_v1  ;;  %275 = vst.msk [vmem:[#allocation2 + $0x120] sm:$0xff] %vm237_vm0, %v6096_v1  ;;  %v6465_v25 = vld [vmem:[#allocation2 + $0x26] sm:$0xff]  ;;  %v542_v30 = vmul.f32 %v6445_v12, %v506_v23  ;;  %v478_v38 = vadd.f32 %v6433_v6, %v446_v26  ;;  %v6486_v39 = vld [vmem:[#allocation2 + $0x4e] sm:$0xff]  ;;  %v545_v41 = vmul.f32 %v6445_v12, %v6471_v28 }
  0x4c   : > { %276 = vst.msk [vmem:[#allocation2 + $0x128] sm:$0xff] %vm237_vm0, %v6096_v1  ;;  %277 = vst.msk [vmem:[#allocation2 + $0x130] sm:$0xff] %vm237_vm0, %v6096_v1  ;;  %v6473_v29 = vld [vmem:[#allocation2 + $0x46] sm:$0xff]  ;;  %v544_v40 = vmul.f32 %v6445_v12, %v6465_v25  ;;  %v607_v49 = vld [vmem:[#allocation2 + $0xf] sm:$0xff]  ;;  %v479_v55 = vadd.f32 %v6433_v6, %v447_v27  ;;  %v547_v56 = vmul.f32 %v6445_v12, %v6486_v39 }
  0x4d   : > { %279 = vst.msk [vmem:[#allocation2 + $0x140] sm:$0xff] %vm237_vm0, %v6096_v1  ;;  %280 = vst.msk [vmem:[#allocation2 + $0x148] sm:$0xff] %vm237_vm0, %v6096_v1  ;;  %v606_v36 = vld [vmem:[#allocation2 + $0x7] sm:$0xff]  ;;  %v546_v43 = vmul.f32 %v6445_v12, %v6473_v29  ;;  %v574_v44 = vadd.f32 %v542_v30, %v474_v32  ;;  %v6504_v50 = vld [vmem:[#allocation2 + $0x2f] sm:$0xff]  ;;  %v575_v60 = vadd.f32 %v543_v35, %v475_v33 }
  0x4e   : > { %281 = vst.msk [vmem:[#allocation2 + $0x150] sm:$0xff] %vm237_vm0, %v6096_v1  ;;  %283 = vst.msk [vmem:[#allocation2 + $0x160] sm:$0xff] %vm237_vm0, %v6096_v1  ;;  %v6492_v42 = vld [vmem:[#allocation2 + $0x27] sm:$0xff]  ;;  %v576_v48 = vadd.f32 %v544_v40, %v476_v34  ;;  %v642_v51 = vmul.f32 %v6478_v31, %v606_v36  ;;  %v577_v61 = vadd.f32 %v545_v41, %v477_v37  ;;  %v6520_v62 = vld [vmem:[#allocation2 + $0x4f] sm:$0xff] }
  0x4f   : > { %284 = vst.msk [vmem:[#allocation2 + $0x168] sm:$0xff] %vm237_vm0, %v6096_v1  ;;  %285 = vst.msk [vmem:[#allocation2 + $0x170] sm:$0xff] %vm237_vm0, %v6096_v1  ;;  %v6496_v45 = vld [vmem:[#allocation2 + $0x47] sm:$0xff]  ;;  %v578_v57 = vadd.f32 %v546_v43, %v478_v38  ;;  %v644_v58 = vmul.f32 %v6478_v31, %v6492_v42  ;;  %v643_v2 = vmul.f32 %v6478_v31, %v607_v49  ;;  %v707_v35 = vld [vmem:[#allocation2 + $0x10] sm:$0xff] }
  0x50   : > { %287 = vst.msk [vmem:[#allocation2 + $0x180] sm:$0xff] %vm237_vm0, %v6096_v1  ;;  %288 = vst.msk [vmem:[#allocation2 + $0x188] sm:$0xff] %vm237_vm0, %v6096_v1  ;;  %v706_v52 = vld [vmem:[#allocation2 + $0x8] sm:$0xff]  ;;  %v646_v63 = vmul.f32 %v6478_v31, %v6496_v45  ;;  %v674_v0 = vadd.f32 %v642_v51, %v574_v44  ;;  %v645_v8 = vmul.f32 %v6478_v31, %v6504_v50  ;;  %v6544_v36 = vld [vmem:[#allocation2 + $0x30] sm:$0xff] }
  0x51   : > { %289 = vst.msk [vmem:[#allocation2 + $0x190] sm:$0xff] %vm237_vm0, %v6096_v1  ;;  %291 = vst.msk [vmem:[#allocation2 + $0x1a0] sm:$0xff] %vm237_vm0, %v6096_v1  ;;  %v6518_v59 = vld [vmem:[#allocation2 + $0x28] sm:$0xff]  ;;  %v676_v9 = vadd.f32 %v644_v58, %v576_v48  ;;  %v742_v19 = vmul.f32 %v6500_v46, %v706_v52  ;;  %v6536_v24 = vrot.slane %v6428_v5, %v6457_v18 }
  0x52   : > { %292 = vst.msk [vmem:[#allocation2 + $0x1a8] sm:$0xff] %vm237_vm0, %v6096_v1  ;;  %293 = vst.msk [vmem:[#allocation2 + $0x1b0] sm:$0xff] %vm237_vm0, %v6096_v1  ;;  %v806_v20 = vld [vmem:[#allocation2 + $0x9] sm:$0xff]  ;;  %v678_v22 = vadd.f32 %v646_v63, %v578_v57  ;;  %v744_v23 = vmul.f32 %v6500_v46, %v6518_v59  ;;  %v579_v26 = vadd.f32 %v547_v56, %v479_v55 }
  0x53   : > { %295 = vst.msk [vmem:[#allocation2 + $0x1c0] sm:$0xff] %vm237_vm0, %v6096_v1  ;;  %296 = vst.msk [vmem:[#allocation2 + $0x1c8] sm:$0xff] %vm237_vm0, %v6096_v1  ;;  %v6530_v21 = vld [vmem:[#allocation2 + $0x29] sm:$0xff]  ;;  %v647_v27 = vmul.f32 %v6478_v31, %v6520_v62  ;;  %v774_v32 = vadd.f32 %v742_v19, %v674_v0  ;;  %v842_v40 = vmul.f32 %v6509_v53, %v806_v20 }
  0x54   : > { %297 = vst.msk [vmem:[#allocation2 + $0x1d0] sm:$0xff] %vm237_vm0, %v6096_v1  ;;  %299 = vst.msk [vmem:[#allocation2 + $0x1e0] sm:$0xff] %vm237_vm0, %v6096_v1  ;;  %v906_v33 = vld [vmem:[#allocation2 + $0xa] sm:$0xff]  ;;  %v776_v37 = vadd.f32 %v744_v23, %v676_v9  ;;  %v844_v41 = vmul.f32 %v6509_v53, %v6530_v21  ;;  %v6553_v43 = vrot.slane %v6428_v5, %v6502_v47 }
  0x55   : > { %300 = vst.msk [vmem:[#allocation2 + $0x1e8] sm:$0xff] %vm237_vm0, %v6096_v1  ;;  %301 = vst.msk [vmem:[#allocation2 + $0x1f0] sm:$0xff] %vm237_vm0, %v6096_v1  ;;  %v6542_v34 = vld [vmem:[#allocation2 + $0x2a] sm:$0xff]  ;;  %v675_v44 = vadd.f32 %v643_v2, %v575_v60  ;;  %v677_v48 = vadd.f32 %v645_v8, %v577_v61  ;;  %v6559_v55 = vrot.slane %v6428_v5, %v6511_v54 }
  0x56   : > { %303 = vst.msk [vmem:[#allocation2 + $0x200] sm:$0xff] %vm237_vm0, %v6096_v1  ;;  %304 = vst.msk [vmem:[#allocation2 + $0x208] sm:$0xff] %vm237_vm0, %v6096_v1  ;;  %v6546_v38 = vld [vmem:[#allocation2 + $0x49] sm:$0xff]  ;;  %v874_v57 = vadd.f32 %v842_v40, %v774_v32  ;;  %v876_v58 = vadd.f32 %v844_v41, %v776_v37  ;;  %v942_v63 = vmul.f32 %v6536_v24, %v906_v33 }
  0x57   : > { %305 = vst.msk [vmem:[#allocation2 + $0x210] sm:$0xff] %vm237_vm0, %v6096_v1  ;;  %307 = vst.msk [vmem:[#allocation2 + $0x220] sm:$0xff] %vm237_vm0, %v6096_v1  ;;  %v1006_v51 = vld [vmem:[#allocation2 + $0xb] sm:$0xff]  ;;  %v944_v0 = vmul.f32 %v6536_v24, %v6542_v34  ;;  %v679_v61 = vadd.f32 %v647_v27, %v579_v26  ;;  %v743_v2 = vmul.f32 %v6500_v46, %v707_v35 }
  0x58   : > { %308 = vst.msk [vmem:[#allocation2 + $0x228] sm:$0xff] %vm237_vm0, %v6096_v1  ;;  %309 = vst.msk [vmem:[#allocation2 + $0x230] sm:$0xff] %vm237_vm0, %v6096_v1  ;;  %v6555_v52 = vld [vmem:[#allocation2 + $0x2b] sm:$0xff]  ;;  %v745_v5 = vmul.f32 %v6500_v46, %v6544_v36  ;;  %v846_v8 = vmul.f32 %v6509_v53, %v6546_v38  ;;  %v974_v19 = vadd.f32 %v942_v63, %v874_v57 }
  0x59   : > { %311 = vst.msk [vmem:[#allocation2 + $0x240] sm:$0xff] %vm237_vm0, %v6096_v1  ;;  %312 = vst.msk [vmem:[#allocation2 + $0x248] sm:$0xff] %vm237_vm0, %v6096_v1  ;;  %v6561_v56 = vld [vmem:[#allocation2 + $0x50] sm:$0xff]  ;;  %v6569_v60 = vld [vmem:[%s10624_s1 + $0x8] sm:$0xff]  ;;  %v976_v20 = vadd.f32 %v944_v0, %v876_v58  ;;  %v1044_v23 = vmul.f32 %v6553_v43, %v6555_v52  ;;  %v1145_v37 = vmul.f32 %v6559_v55, %v6449_v14 }
  0x5a   : > { %313 = vst.msk [vmem:[#allocation2 + $0x250] sm:$0xff] %vm237_vm0, %v6096_v1  ;;  %315 = vst.msk [vmem:[#allocation2 + $0x260] sm:$0xff] %vm237_vm0, %v6096_v1  ;;  %v6576_v9 = vld [vmem:[#allocation2 + $0x4a] sm:$0xff]  ;;  %v747_v26 = vmul.f32 %v6500_v46, %v6561_v56  ;;  %v6587_v32 = vrot.slane %v6569_v60, %v6421_v3  ;;  %v6593_v40 = vrot.slane %v6569_v60, %v6423_v4  ;;  %v327_v0 = vld [vmem:[%s6238_s21] sm:$0xff] }
  0x5b   : > { %316 = vst.msk [vmem:[#allocation2 + $0x268] sm:$0xff] %vm237_vm0, %v6096_v1  ;;  %317 = vst.msk [vmem:[#allocation2 + $0x270] sm:$0xff] %vm237_vm0, %v6096_v1  ;;  %v1076_v35 = vadd.f32 %v1044_v23, %v976_v20  ;;  %v946_v41 = vmul.f32 %v6536_v24, %v6576_v9  ;;  %v328_v23 = vld [vmem:[%s6238_s21 + $0x8] sm:$0xff] }
  0x5c   : > { %319 = vst.msk [vmem:[#allocation2 + $0x280] sm:$0xff] %vm237_vm0, %v6096_v1  ;;  %320 = vst.msk [vmem:[#allocation2 + $0x288] sm:$0xff] %vm237_vm0, %v6096_v1  ;;  %v1243_v58 = vmul.f32 %v6587_v32, %v6465_v25  ;;  %v1245_v63 = vmul.f32 %v6587_v32, %v6473_v29  ;;  %v6612_v20 = vadd.f32 %v747_v26, %v679_v61  ;;  %v331_v61 = vld [vmem:[%s6238_s21 + $0x20] sm:$0xff] }
  0x5d   : > { %321 = vst.msk [vmem:[#allocation2 + $0x290] sm:$0xff] %vm237_vm0, %v6096_v1  ;;  %323 = vst.msk [vmem:[#allocation2 + $0x2a0] sm:$0xff] %vm237_vm0, %v6096_v1  ;;  %v1177_v57 = vadd.f32 %v1145_v37, %v1076_v35  ;;  %v1343_v35 = vmul.f32 %v6593_v40, %v6492_v42  ;;  %v6635_v42 = vrot.slane %v6569_v60, %v6453_v16  ;;  %v333_v37 = vld [vmem:[%s6238_s21 + $0x30] sm:$0xff] }
  0x5e   : > { %324 = vst.msk [vmem:[#allocation2 + $0x2a8] sm:$0xff] %vm237_vm0, %v6096_v1  ;;  %325 = vst.msk [vmem:[#allocation2 + $0x2b0] sm:$0xff] %vm237_vm0, %v6096_v1 }
  0x5f   : > { %242 = vst.msk [vmem:[#allocation2 + $0x18] sm:$0x7] %vm241_vm1, %v6096_v1  ;;  %246 = vst.msk [vmem:[#allocation2 + $0x38] sm:$0x7] %vm241_vm1, %v6096_v1 }
  0x60   : > { %250 = vst.msk [vmem:[#allocation2 + $0x58] sm:$0x7] %vm241_vm1, %v6096_v1  ;;  %254 = vst.msk [vmem:[#allocation2 + $0x78] sm:$0x7] %vm241_vm1, %v6096_v1 }
  0x61   : > { %258 = vst.msk [vmem:[#allocation2 + $0x98] sm:$0x7] %vm241_vm1, %v6096_v1  ;;  %262 = vst.msk [vmem:[#allocation2 + $0xb8] sm:$0x7] %vm241_vm1, %v6096_v1 }
  0x62   : > { %266 = vst.msk [vmem:[#allocation2 + $0xd8] sm:$0x7] %vm241_vm1, %v6096_v1  ;;  %270 = vst.msk [vmem:[#allocation2 + $0xf8] sm:$0x7] %vm241_vm1, %v6096_v1 }
  0x63   : > { %274 = vst.msk [vmem:[#allocation2 + $0x118] sm:$0x7] %vm241_vm1, %v6096_v1  ;;  %278 = vst.msk [vmem:[#allocation2 + $0x138] sm:$0x7] %vm241_vm1, %v6096_v1 }
  0x64   : > { %282 = vst.msk [vmem:[#allocation2 + $0x158] sm:$0x7] %vm241_vm1, %v6096_v1  ;;  %286 = vst.msk [vmem:[#allocation2 + $0x178] sm:$0x7] %vm241_vm1, %v6096_v1 }
  0x65   : > { %290 = vst.msk [vmem:[#allocation2 + $0x198] sm:$0x7] %vm241_vm1, %v6096_v1  ;;  %294 = vst.msk [vmem:[#allocation2 + $0x1b8] sm:$0x7] %vm241_vm1, %v6096_v1 }
  0x66   : > { %298 = vst.msk [vmem:[#allocation2 + $0x1d8] sm:$0x7] %vm241_vm1, %v6096_v1  ;;  %302 = vst.msk [vmem:[#allocation2 + $0x1f8] sm:$0x7] %vm241_vm1, %v6096_v1 }
  0x67   : > { %306 = vst.msk [vmem:[#allocation2 + $0x218] sm:$0x7] %vm241_vm1, %v6096_v1  ;;  %310 = vst.msk [vmem:[#allocation2 + $0x238] sm:$0x7] %vm241_vm1, %v6096_v1 }
  0x68   : > { %314 = vst.msk [vmem:[#allocation2 + $0x258] sm:$0x7] %vm241_vm1, %v6096_v1  ;;  %318 = vst.msk [vmem:[#allocation2 + $0x278] sm:$0x7] %vm241_vm1, %v6096_v1 }
  0x69   : > { %322 = vst.msk [vmem:[#allocation2 + $0x298] sm:$0x7] %vm241_vm1, %v6096_v1  ;;  %326 = vst.msk [vmem:[#allocation2 + $0x2b8] sm:$0x7] %vm241_vm1, %v6096_v1  ;;  %v6524_v1 = vld [vmem:[#allocation2 + $0x48] sm:$0xff] }
  0x6a   : > { %10849 = vst [vmem:[#allocation9_spill] sm:$0xff] %v6421_v3  ;;  %10850 = vst [vmem:[#allocation10_spill] sm:$0xff] %v6423_v4  ;;  %v746_v30 = vmul.f32 %v6500_v46, %v6524_v1 }
  0x6b   : > { %10851 = vst [vmem:[#allocation11_spill] sm:$0xff] %v6435_v7  ;;  %10852 = vst [vmem:[#allocation12_spill] sm:$0xff] %v6441_v11 }
  0x6c   : > { %10853 = vst [vmem:[#allocation13_spill] sm:$0xff] %v6445_v12  ;;  %10854 = vst [vmem:[#allocation14_spill] sm:$0xff] %v6453_v16  ;;  %v778_v49 = vadd.f32 %v746_v30, %v678_v22  ;;  %v1042_v22 = vmul.f32 %v6553_v43, %v1006_v51  ;;  %v1143_v30 = vmul.f32 %v6559_v55, %v6437_v10 }
  0x6d   : > { %10855 = vst [vmem:[#allocation15_spill] sm:$0xff] %v6455_v17  ;;  %10856 = vst [vmem:[#allocation16_spill] sm:$0xff] %v6457_v18  ;;  %v6599_v10 = vrot.slane %v6569_v60, %v6435_v7 }
  0x6e   : > { %10857 = vst [vmem:[#allocation17_spill] sm:$0xff] %v6478_v31  ;;  %10858 = vst [vmem:[#allocation18_spill] sm:$0xff] %v6500_v46  ;;  %v878_v27 = vadd.f32 %v846_v8, %v778_v49  ;;  %v1074_v33 = vadd.f32 %v1042_v22, %v974_v19  ;;  %v6601_v49 = vld [vmem:[#allocation2 + $0x4b] sm:$0xff]  ;;  %v6608_v8 = vadd.f32 %v743_v2, %v675_v44 }
  0x6f   : > { %10859 = vst [vmem:[#allocation19_spill] sm:$0xff] %v6502_v47  ;;  %10860 = vst [vmem:[#allocation20_spill] sm:$0xff] %v6509_v53  ;;  %v6610_v19 = vadd.f32 %v745_v5, %v677_v48  ;;  %v1345_v44 = vmul.f32 %v6593_v40, %v6496_v45  ;;  %v330_v48 = vld [vmem:[%s6238_s21 + $0x18] sm:$0xff]  ;;  %v1046_v2 = vmul.f32 %v6553_v43, %v6601_v49 }
  0x70   : > { %10861 = vst [vmem:[#allocation21_spill] sm:$0xff] %v6511_v54  ;;  %10862 = vst [vmem:[#allocation22_spill] sm:$0xff] %v6536_v24  ;;  %v1175_v51 = vadd.f32 %v1143_v30, %v1074_v33  ;;  %v978_v22 = vadd.f32 %v946_v41, %v878_v27  ;;  %v329_v30 = vld [vmem:[%s6238_s21 + $0x10] sm:$0xff]  ;;  %v1277_v33 = vadd.f32 %v1245_v63, %v1177_v57  ;;  %v332_v27 = vld [vmem:[%s6238_s21 + $0x28] sm:$0xff] }
  0x71   : > { %10863 = vst [vmem:[#allocation23_spill] sm:$0xff] %v6553_v43  ;;  %10864 = vst [vmem:[#allocation24_spill] sm:$0xff] %v6587_v32  ;;  %v6629_v5 = vmul.f32 %v6559_v55, %v6447_v13  ;;  %v1443_v26 = vmul.f32 %v6599_v10, %v6518_v59  ;;  %v1445_v57 = vmul.f32 %v6599_v10, %v6524_v1 }
  0x72   : > { %10865 = vst [vmem:[#allocation25_spill] sm:$0xff] %v6593_v40  ;;  %10866 = vst [vmem:[#allocation26_spill] sm:$0xff] %v6599_v10  ;;  %v1275_v25 = vadd.f32 %v1243_v58, %v1175_v51  ;;  %v1377_v51 = vadd.f32 %v1345_v44, %v1277_v33  ;;  %v6645_v13 = vrot.slane %v6569_v60, %v6455_v17 }
  0x73   : > { %360 = vst.msk [vmem:[#allocation2 + $0x68] sm:$0xff] %vm237_vm0, %v327_v0  ;;  %361 = vst.msk [vmem:[#allocation2 + $0x70] sm:$0xff] %vm237_vm0, %v328_v23  ;;  %v6649_v59 = vadd.f32 %v1046_v2, %v978_v22  ;;  %v6653_v58 = vmul.f32 %v6559_v55, %v6451_v15  ;;  %v6657_v63 = vmul.f32 %v6587_v32, %v6471_v28 }
  0x74   : > { %362 = vst.msk [vmem:[#allocation2 + $0x88] sm:$0xff] %vm237_vm0, %v329_v30  ;;  %10867 = vst [vmem:[#allocation27_spill] sm:$0xff] %v6635_v42  ;;  %v1375_v41 = vadd.f32 %v1343_v35, %v1275_v25  ;;  %v6661_v0 = vrot.slane %v6569_v60, %v6457_v18  ;;  %v6665_v23 = vmul.f32 %v6587_v32, %v6486_v39 }
  0x75   : > { %363 = vst.msk [vmem:[#allocation2 + $0x90] sm:$0xff] %vm237_vm0, %v330_v48  ;;  %364 = vst.msk [vmem:[#allocation2 + $0xa8] sm:$0xff] %vm237_vm0, %v331_v61  ;;  %v1477_v25 = vadd.f32 %v1445_v57, %v1377_v51  ;;  %v1543_v22 = vmul.f32 %v6635_v42, %v6530_v21  ;;  %v6671_v33 = vmul.f32 %v6593_v40, %v6504_v50  ;;  %v6688_v21 = vld [vmem:[%s10624_s1 + $0x10] sm:$0xff] }
  0x76   : > { %10868 = vst [vmem:[#allocation28_spill] sm:$0xff] %v6645_v13  ;;  %365 = vst.msk [vmem:[#allocation2 + $0xb0] sm:$0xff] %vm237_vm0, %v332_v27  ;;  %v1475_v30 = vadd.f32 %v1443_v26, %v1375_v41  ;;  %v6675_v28 = vmul.f32 %v6593_v40, %v6520_v62  ;;  %v6679_v35 = vrot.slane %v6569_v60, %v6502_v47  ;;  %v807_v48 = vld [vmem:[#allocation2 + $0x11] sm:$0xff] }
  0x77   : > { %366 = vst.msk [vmem:[#allocation2 + $0xc8] sm:$0xff] %vm237_vm0, %v333_v37  ;;  %10869 = vst [vmem:[#allocation29_spill] sm:$0xff] %v6661_v0  ;;  %v6683_v44 = vrot.slane %v6569_v60, %v6511_v54  ;;  %v6692_v50 = vmul.f32 %v6599_v10, %v6544_v36  ;;  %v1545_v61 = vmul.f32 %v6635_v42, %v6546_v38 }
  0x78   : > { %v1575_v2 = vadd.f32 %v1543_v22, %v1475_v30  ;;  %v1643_v26 = vmul.f32 %v6645_v13, %v6542_v34  ;;  %v6700_v60 = vmul.f32 %v6599_v10, %v6561_v56  ;;  %v1645_v27 = vmul.f32 %v6645_v13, %v6576_v9  ;;  %v907_v30 = vld [vmem:[#allocation2 + $0x12] sm:$0xff] }
  0x79   : > { %v1743_v37 = vmul.f32 %v6661_v0, %v6555_v52  ;;  %v1745_v36 = vmul.f32 %v6661_v0, %v6601_v49  ;;  %v1577_v41 = vadd.f32 %v1545_v61, %v1477_v25  ;;  %v6710_v57 = vrot.slane %v6688_v21, %v6421_v3  ;;  %v809_v22 = vld [vmem:[#allocation2 + $0x31] sm:$0xff] }
  0x7a   : > { %v1675_v51 = vadd.f32 %v1643_v26, %v1575_v2  ;;  %v843_v34 = vmul.f32 %v6509_v53, %v807_v48  ;;  %v1844_v10 = vmul.f32 %v6679_v35, %v6449_v14  ;;  %v6717_v54 = vmul.f32 %v6679_v35, %v6451_v15  ;;  %v1007_v15 = vld [vmem:[#allocation2 + $0x13] sm:$0xff] }
  0x7b   : > { %v1944_v52 = vmul.f32 %v6683_v44, %v6473_v29  ;;  %v6723_v25 = vmul.f32 %v6683_v44, %v6486_v39  ;;  %v6727_v48 = vrot.slane %v6688_v21, %v6423_v4  ;;  %v6731_v2 = vrot.slane %v6688_v21, %v6435_v7  ;;  %v909_v26 = vld [vmem:[#allocation2 + $0x32] sm:$0xff] }
  0x7c   : > { %10870 = vst [vmem:[#allocation30_spill] sm:$0xff] %v6717_v54  ;;  %v1775_v61 = vadd.f32 %v1743_v37, %v1675_v51  ;;  %v875_v14 = vadd.f32 %v843_v34, %v6608_v8  ;;  %v6736_v29 = vrot.slane %v6688_v21, %v6453_v16  ;;  %v6740_v39 = vrot.slane %v6688_v21, %v6455_v17  ;;  %v6743_v51 = vld [vmem:[#allocation2 + $0x51] sm:$0xff] }
  0x7d   : > { %10871 = vst [vmem:[#allocation31_spill] sm:$0xff] %v6723_v25  ;;  %10872 = vst [vmem:[#allocation32_spill] sm:$0xff] %v6731_v2  ;;  %v943_v37 = vmul.f32 %v6536_v24, %v907_v30  ;;  %v845_v4 = vmul.f32 %v6509_v53, %v809_v22  ;;  %v1677_v7 = vadd.f32 %v1645_v27, %v1577_v41  ;;  %v1009_v16 = vld [vmem:[#allocation2 + $0x33] sm:$0xff] }
  0x7e   : > { %10873 = vst [vmem:[#allocation33_spill] sm:$0xff] %v6736_v29  ;;  %10874 = vst [vmem:[#allocation34_spill] sm:$0xff] %v6740_v39  ;;  %v1876_v25 = vadd.f32 %v1844_v10, %v1775_v61  ;;  %v2044_v8 = vmul.f32 %v6710_v57, %v6496_v45  ;;  %v6750_v34 = vmul.f32 %v6710_v57, %v6520_v62  ;;  %v911_v62 = vld [vmem:[#allocation2 + $0x52] sm:$0xff] }
  0x7f   : > { %v975_v3 = vadd.f32 %v943_v37, %v875_v14  ;;  %v1043_v17 = vmul.f32 %v6553_v43, %v1007_v15  ;;  %v877_v54 = vadd.f32 %v845_v4, %v6610_v19  ;;  %v945_v30 = vmul.f32 %v6536_v24, %v909_v26  ;;  %v6765_v4 = vld [vmem:[#allocation2 + $0x53] sm:$0xff] }
  0x80   : > { %v1976_v47 = vadd.f32 %v1944_v52, %v1876_v25  ;;  %v2144_v27 = vmul.f32 %v6727_v48, %v6524_v1  ;;  %v6759_v10 = vmul.f32 %v6727_v48, %v6561_v56  ;;  %v847_v45 = vmul.f32 %v6509_v53, %v6743_v51  ;;  %v412_v52 = vld [vmem:[#allocation2 + $0x65] sm:$0xff] }
  0x81   : > { %v2244_v41 = vmul.f32 %v6731_v2, %v6546_v38  ;;  %v1075_v61 = vadd.f32 %v1043_v17, %v975_v3  ;;  %v977_v14 = vadd.f32 %v945_v30, %v877_v54  ;;  %v1045_v19 = vmul.f32 %v6553_v43, %v1009_v16 }
  0x82   : > { %10875 = vst [vmem:[#allocation35_spill] sm:$0xff] %v6759_v10  ;;  %v1777_v25 = vadd.f32 %v1745_v36, %v1677_v7  ;;  %v2076_v1 = vadd.f32 %v2044_v8, %v1976_v47  ;;  %v2344_v56 = vmul.f32 %v6736_v29, %v6576_v9  ;;  %v879_v15 = vadd.f32 %v847_v45, %v6612_v20  ;;  %v6779_v9 = vld [vmem:[#allocation2 + $0x66] sm:$0xff] }
  0x83   : > { %v2444_v37 = vmul.f32 %v6740_v39, %v6601_v49  ;;  %v1176_v10 = vadd.f32 %v6629_v5, %v1075_v61  ;;  %v947_v3 = vmul.f32 %v6536_v24, %v911_v62  ;;  %v1077_v17 = vadd.f32 %v1045_v19, %v977_v14 }
  0x84   : > { %v2176_v54 = vadd.f32 %v2144_v27, %v2076_v1  ;;  %v1047_v38 = vmul.f32 %v6553_v43, %v6765_v4  ;;  %v1544_v7 = vmul.f32 %v6635_v42, %v809_v22  ;;  %v448_v47 = vmul.f32 %v6441_v11, %v412_v52 }
  0x85   : > { %v1276_v20 = vadd.f32 %v6657_v63, %v1176_v10  ;;  %v1178_v49 = vadd.f32 %v6653_v58, %v1077_v17  ;;  %v1546_v5 = vmul.f32 %v6635_v42, %v6743_v51  ;;  %v1644_v36 = vmul.f32 %v6645_v13, %v909_v26  ;;  %v612_v63 = vld [vmem:[#allocation2 + $0x67] sm:$0xff]  ;;  %v334_v10 = vld [vmem:[%s6238_s21 + $0x38] sm:$0xff] }
  0x86   : > { %v2276_v8 = vadd.f32 %v2244_v41, %v2176_v54  ;;  %v979_v30 = vadd.f32 %v947_v3, %v879_v15  ;;  %v480_v27 = vadd.f32 %v6433_v6, %v448_v47  ;;  %v1147_v22 = vmul.f32 %v6559_v55, %v412_v52  ;;  %367 = vst.msk [vmem:[#allocation2 + $0xd0] sm:$0xff] %vm237_vm0, %v334_v10  ;;  %v6823_v10 = vld [vmem:[%s10624_s1 + $0x18] sm:$0xff] }
  0x87   : > { %v1278_v45 = vadd.f32 %v6665_v23, %v1178_v49  ;;  %v1376_v61 = vadd.f32 %v6671_v33, %v1276_v20  ;;  %v1646_v14 = vmul.f32 %v6645_v13, %v911_v62  ;;  %v548_v58 = vmul.f32 %v6445_v12, %v6779_v9  ;;  %v712_v20 = vld [vmem:[#allocation2 + $0x68] sm:$0xff] }
  0x88   : > { %v2376_v19 = vadd.f32 %v2344_v56, %v2276_v8  ;;  %v1744_v26 = vmul.f32 %v6661_v0, %v1009_v16  ;;  %v1179_v41 = vadd.f32 %v1147_v22, %v6649_v59  ;;  %v1846_v1 = vmul.f32 %v6679_v35, %v412_v52 }
  0x89   : > { %v1378_v23 = vadd.f32 %v6675_v28, %v1278_v45  ;;  %v1476_v33 = vadd.f32 %v6692_v50, %v1376_v61  ;;  %v580_v15 = vadd.f32 %v548_v58, %v480_v27  ;;  %v1247_v3 = vmul.f32 %v6587_v32, %v6779_v9 }
  0x8a   : > { %v1746_v17 = vmul.f32 %v6661_v0, %v6765_v4  ;;  %v648_v56 = vmul.f32 %v6478_v31, %v612_v63  ;;  %v1878_v16 = vadd.f32 %v1846_v1, %v1777_v25  ;;  %v1946_v59 = vmul.f32 %v6683_v44, %v6779_v9  ;;  %v6836_v1 = vld [vmem:[#allocation2 + $0x6e] sm:$0xff] }
  0x8b   : > { %v1478_v54 = vadd.f32 %v6700_v60, %v1378_v23  ;;  %v1576_v47 = vadd.f32 %v1544_v7, %v1476_v33  ;;  %v1279_v28 = vadd.f32 %v1247_v3, %v1179_v41  ;;  %v6810_v50 = vrot.slane %v6688_v21, %v6457_v18  ;;  %v6818_v7 = vld [vmem:[#allocation2 + $0x6d] sm:$0xff]  ;;  %v10877_v41 = vld [vmem:[#allocation21_spill] sm:$0xff] }
  0x8c   : > { %v2476_v49 = vadd.f32 %v2444_v37, %v2376_v19  ;;  %v1079_v8 = vadd.f32 %v1047_v38, %v979_v30  ;;  %v2245_v27 = vmul.f32 %v6731_v2, %v6743_v51  ;;  %v6815_v22 = vmul.f32 %v6736_v29, %v911_v62  ;;  %v10876_v38 = vld [vmem:[#allocation19_spill] sm:$0xff]  ;;  %v10879_v3 = vld [vmem:[#allocation30_spill] sm:$0xff] }
  0x8d   : > { %v1676_v25 = vadd.f32 %v1644_v36, %v1576_v47  ;;  %v680_v45 = vadd.f32 %v648_v56, %v580_v15  ;;  %v1347_v61 = vmul.f32 %v6593_v40, %v612_v63  ;;  %v1978_v60 = vadd.f32 %v1946_v59, %v1878_v16  ;;  %v6850_v47 = vld [vmem:[#allocation2 + $0x6f] sm:$0xff] }
  0x8e   : > { %v1578_v58 = vadd.f32 %v1546_v5, %v1478_v54  ;;  %v748_v37 = vmul.f32 %v6500_v46, %v712_v20  ;;  %v2544_v51 = vmul.f32 %v6810_v50, %v412_v52  ;;  %v6829_v62 = vrot.slane %v6688_v21, %v10876_v38  ;;  %v10878_v52 = vld [vmem:[#allocation26_spill] sm:$0xff]  ;;  %v10880_v54 = vld [vmem:[#allocation9_spill] sm:$0xff] }
  0x8f   : > { %v1776_v36 = vadd.f32 %v1744_v26, %v1676_v25  ;;  %v1379_v30 = vadd.f32 %v1347_v61, %v1279_v28  ;;  %v2046_v19 = vmul.f32 %v6710_v57, %v612_v63  ;;  %v6834_v5 = vrot.slane %v6688_v21, %v10877_v41  ;;  %v6852_v28 = vld [vmem:[#allocation2 + $0x69] sm:$0xff] }
  0x90   : > { %v6840_v23 = vmul.f32 %v6740_v39, %v6765_v4  ;;  %v1447_v33 = vmul.f32 %v10878_v52, %v712_v20  ;;  %v2576_v15 = vadd.f32 %v2544_v51, %v2476_v49  ;;  %v449_v26 = vmul.f32 %v6441_v11, %v6818_v7  ;;  %v335_v51 = vld [vmem:[%s6238_s21 + $0x40] sm:$0xff]  ;;  %v10882_v41 = vld [vmem:[#allocation35_spill] sm:$0xff] }
  0x91   : > { %v1877_v56 = vadd.f32 %v10879_v3, %v1776_v36  ;;  %v780_v16 = vadd.f32 %v748_v37, %v680_v45  ;;  %v2078_v59 = vadd.f32 %v2046_v19, %v1978_v60  ;;  %v6848_v21 = vrot.slane %v6823_v10, %v10880_v54  ;;  %v10881_v45 = vld [vmem:[#allocation31_spill] sm:$0xff]  ;;  %368 = vst.msk [vmem:[#allocation2 + $0xe8] sm:$0xff] %vm237_vm0, %v335_v51 }
  0x92   : > { %v1678_v4 = vadd.f32 %v1646_v14, %v1578_v58  ;;  %v2644_v25 = vmul.f32 %v6829_v62, %v6779_v9  ;;  %v481_v49 = vadd.f32 %v6433_v6, %v449_v26  ;;  %v549_v61 = vmul.f32 %v6445_v12, %v6836_v1  ;;  %v6863_v3 = vld [vmem:[#allocation2 + $0x70] sm:$0xff] }
  0x93   : > { %v1977_v60 = vadd.f32 %v10881_v45, %v1877_v56  ;;  %v1479_v37 = vadd.f32 %v1447_v33, %v1379_v30  ;;  %v2146_v36 = vmul.f32 %v6727_v48, %v712_v20  ;;  %v2744_v19 = vmul.f32 %v6834_v5, %v612_v63  ;;  %v6868_v26 = vld [vmem:[#allocation2 + $0x71] sm:$0xff] }
  0x94   : > { %v2676_v14 = vadd.f32 %v2644_v25, %v2576_v15  ;;  %v581_v58 = vadd.f32 %v549_v61, %v481_v49  ;;  %v649_v9 = vmul.f32 %v6478_v31, %v6850_v47  ;;  %v848_v54 = vmul.f32 %v6509_v53, %v6852_v28  ;;  %v6874_v63 = vld [vmem:[#allocation2 + $0x6a] sm:$0xff]  ;;  %v6880_v45 = vld [vmem:[#allocation2 + $0x72] sm:$0xff] }
  0x95   : > { %v2077_v30 = vadd.f32 %v6750_v34, %v1977_v60  ;;  %v2178_v33 = vadd.f32 %v2146_v36, %v2078_v59  ;;  %v2844_v56 = vmul.f32 %v6848_v21, %v712_v20  ;;  %v1148_v51 = vmul.f32 %v6559_v55, %v6818_v7  ;;  %v6885_v59 = vld [vmem:[#allocation2 + $0x6b] sm:$0xff] }
  0x96   : > { %v1778_v15 = vadd.f32 %v1746_v17, %v1678_v4  ;;  %v681_v25 = vadd.f32 %v649_v9, %v581_v58  ;;  %v749_v49 = vmul.f32 %v6500_v46, %v6863_v3  ;;  %v880_v61 = vadd.f32 %v848_v54, %v780_v16  ;;  %v6895_v58 = vld [vmem:[#allocation2 + $0x73] sm:$0xff] }
  0x97   : > { %v2177_v38 = vadd.f32 %v10882_v41, %v2077_v30  ;;  %v849_v34 = vmul.f32 %v6509_v53, %v6868_v26  ;;  %v1180_v20 = vadd.f32 %v1148_v51, %v1079_v8  ;;  %v1248_v60 = vmul.f32 %v6587_v32, %v6836_v1 }
  0x98   : > { %v2776_v36 = vadd.f32 %v2744_v19, %v2676_v14  ;;  %v781_v17 = vadd.f32 %v749_v49, %v681_v25  ;;  %v948_v4 = vmul.f32 %v6536_v24, %v6874_v63  ;;  %v1547_v16 = vmul.f32 %v6635_v42, %v6852_v28 }
  0x99   : > { %v2277_v54 = vadd.f32 %v2245_v27, %v2177_v38  ;;  %v949_v41 = vmul.f32 %v6536_v24, %v6880_v45  ;;  %v1280_v9 = vadd.f32 %v1248_v60, %v1180_v20  ;;  %v1348_v8 = vmul.f32 %v6593_v40, %v6850_v47 }
  0x9a   : > { %v980_v30 = vadd.f32 %v948_v4, %v880_v61  ;;  %v1048_v19 = vmul.f32 %v6553_v43, %v6885_v59  ;;  %v1579_v14 = vadd.f32 %v1547_v16, %v1479_v37  ;;  %v1847_v51 = vmul.f32 %v6679_v35, %v6818_v7 }
  0x9b   : > { %v2377_v25 = vadd.f32 %v6815_v22, %v2277_v54  ;;  %v881_v27 = vadd.f32 %v849_v34, %v781_v17  ;;  %v1380_v38 = vadd.f32 %v1348_v8, %v1280_v9  ;;  %v1448_v49 = vmul.f32 %v10878_v52, %v6863_v3 }
  0x9c   : > { %v1049_v20 = vmul.f32 %v6553_v43, %v6895_v58  ;;  %v1647_v61 = vmul.f32 %v6645_v13, %v6874_v63  ;;  %v1879_v60 = vadd.f32 %v1847_v51, %v1778_v15  ;;  %v1947_v37 = vmul.f32 %v6683_v44, %v6836_v1  ;;  %v336_v43 = vld [vmem:[%s6238_s21 + $0x48] sm:$0xff] }
  0x9d   : > { %v2876_v4 = vadd.f32 %v2844_v56, %v2776_v36  ;;  %v1480_v16 = vadd.f32 %v1448_v49, %v1380_v38  ;;  %v1548_v22 = vmul.f32 %v6635_v42, %v6868_v26  ;;  %v2246_v34 = vmul.f32 %v6731_v2, %v6852_v28  ;;  %369 = vst.msk [vmem:[#allocation2 + $0xf0] sm:$0xff] %vm237_vm0, %v336_v43 }
  0x9e   : > { %v2477_v17 = vadd.f32 %v6840_v23, %v2377_v25  ;;  %v1679_v54 = vadd.f32 %v1647_v61, %v1579_v14  ;;  %v1979_v9 = vadd.f32 %v1947_v37, %v1879_v60  ;;  %v2047_v8 = vmul.f32 %v6710_v57, %v6850_v47  ;;  %v414_v61 = vld [vmem:[#allocation2 + $0x85] sm:$0xff] }
  0x9f   : > { %v981_v15 = vadd.f32 %v949_v41, %v881_v27  ;;  %v1080_v51 = vadd.f32 %v1048_v19, %v980_v30  ;;  %v1648_v56 = vmul.f32 %v6645_v13, %v6880_v45  ;;  %v2278_v36 = vadd.f32 %v2246_v34, %v2178_v33  ;;  %v10883_v33 = vld [vmem:[#allocation10_spill] sm:$0xff] }
  0xa0   : > { %v1580_v38 = vadd.f32 %v1548_v22, %v1480_v16  ;;  %v1747_v49 = vmul.f32 %v6661_v0, %v6885_v59  ;;  %v2079_v42 = vadd.f32 %v2047_v8, %v1979_v9  ;;  %v2545_v23 = vmul.f32 %v6810_v50, %v6818_v7  ;;  %v10884_v22 = vld [vmem:[#allocation11_spill] sm:$0xff] }
  0xa1   : > { %v1748_v14 = vmul.f32 %v6661_v0, %v6895_v58  ;;  %v2147_v41 = vmul.f32 %v6727_v48, %v6863_v3  ;;  %v2346_v30 = vmul.f32 %v6736_v29, %v6874_v63  ;;  %v6935_v43 = vrot.slane %v6823_v10, %v10883_v33 }
  0xa2   : > { %v1779_v19 = vadd.f32 %v1747_v49, %v1679_v54  ;;  %v2247_v25 = vmul.f32 %v6731_v2, %v6868_v26  ;;  %v2577_v27 = vadd.f32 %v2545_v23, %v2477_v17  ;;  %v2645_v7 = vmul.f32 %v6829_v62, %v6836_v1 }
  0xa3   : > { %v6941_v60 = vadd.f32 %v1049_v20, %v981_v15  ;;  %v2378_v37 = vadd.f32 %v2346_v30, %v2278_v36  ;;  %v2944_v16 = vmul.f32 %v6935_v43, %v6852_v28  ;;  %v6947_v34 = vrot.slane %v6823_v10, %v10884_v22  ;;  %v6956_v28 = vld [vmem:[#allocation2 + $0x86] sm:$0xff]  ;;  %v7033_v22 = vld [vmem:[#allocation2 + $0x8e] sm:$0xff] }
  0xa4   : > { %v1680_v9 = vadd.f32 %v1648_v56, %v1580_v38  ;;  %v2179_v54 = vadd.f32 %v2147_v41, %v2079_v42  ;;  %v2677_v8 = vadd.f32 %v2645_v7, %v2577_v27  ;;  %v2745_v17 = vmul.f32 %v6834_v5, %v6850_v47  ;;  %v10886_v38 = vld [vmem:[#allocation14_spill] sm:$0xff] }
  0xa5   : > { %10885 = vst [vmem:[#allocation30_spill] sm:$0xff] %v6947_v34  ;;  %v2347_v1 = vmul.f32 %v6736_v29, %v6880_v45  ;;  %v2446_v20 = vmul.f32 %v6740_v39, %v6885_v59  ;;  %v2976_v15 = vadd.f32 %v2944_v16, %v2876_v4  ;;  %v450_v36 = vmul.f32 %v6441_v11, %v414_v61 }
  0xa6   : > { %v2447_v49 = vmul.f32 %v6740_v39, %v6895_v58  ;;  %v2777_v56 = vadd.f32 %v2745_v17, %v2677_v8  ;;  %v2845_v42 = vmul.f32 %v6848_v21, %v6863_v3  ;;  %v6964_v47 = vrot.slane %v6823_v10, %v10886_v38  ;;  %v614_v38 = vld [vmem:[#allocation2 + $0x87] sm:$0xff] }
  0xa7   : > { %v2478_v23 = vadd.f32 %v2446_v20, %v2378_v37  ;;  %v3044_v41 = vmul.f32 %v6947_v34, %v6874_v63  ;;  %v482_v4 = vadd.f32 %v6433_v6, %v450_v36  ;;  %v1149_v30 = vmul.f32 %v6559_v55, %v414_v61 }
  0xa8   : > { %10887 = vst [vmem:[#allocation31_spill] sm:$0xff] %v6964_v47  ;;  %v6970_v27 = vadd.f32 %v1748_v14, %v1680_v9  ;;  %v2279_v7 = vadd.f32 %v2247_v25, %v2179_v54  ;;  %v2877_v16 = vadd.f32 %v2845_v42, %v2777_v56  ;;  %v550_v8 = vmul.f32 %v6445_v12, %v6956_v28 }
  0xa9   : > { %v2945_v3 = vmul.f32 %v6935_v43, %v6868_v26  ;;  %v3076_v17 = vadd.f32 %v3044_v41, %v2976_v15  ;;  %v1181_v37 = vadd.f32 %v1149_v30, %v1080_v51  ;;  %v1249_v63 = vmul.f32 %v6587_v32, %v6956_v28  ;;  %v714_v30 = vld [vmem:[#allocation2 + $0x88] sm:$0xff] }
  0xaa   : > { %v3045_v20 = vmul.f32 %v6947_v34, %v6880_v45  ;;  %v3144_v14 = vmul.f32 %v6964_v47, %v6885_v59  ;;  %v582_v25 = vadd.f32 %v550_v8, %v482_v4  ;;  %v1848_v9 = vmul.f32 %v6679_v35, %v414_v61 }
  0xab   : > { %v2977_v54 = vadd.f32 %v2945_v3, %v2877_v16  ;;  %v3145_v36 = vmul.f32 %v6964_v47, %v6895_v58  ;;  %v1281_v26 = vadd.f32 %v1249_v63, %v1181_v37  ;;  %v2546_v15 = vmul.f32 %v6810_v50, %v414_v61  ;;  %v10888_v37 = vld [vmem:[#allocation15_spill] sm:$0xff]  ;;  %v7035_v47 = vld [vmem:[#allocation2 + $0x267] sm:$0xff] }
  0xac   : > { %v2379_v51 = vadd.f32 %v2347_v1, %v2279_v7  ;;  %v650_v56 = vmul.f32 %v6478_v31, %v614_v38  ;;  %v1880_v42 = vadd.f32 %v1848_v9, %v1779_v19  ;;  %v1948_v45 = vmul.f32 %v6683_v44, %v6956_v28  ;;  %v10889_v9 = vld [vmem:[#allocation19_spill] sm:$0xff]  ;;  %10896 = vst [vmem:[#allocation40_spill] sm:$0xff] %v7035_v47 }
  0xad   : > { %v3176_v41 = vadd.f32 %v3144_v14, %v3076_v17  ;;  %v1349_v59 = vmul.f32 %v6593_v40, %v614_v38  ;;  %v2578_v4 = vadd.f32 %v2546_v15, %v2478_v23  ;;  %v2646_v16 = vmul.f32 %v6829_v62, %v6956_v28  ;;  %v10890_v15 = vld [vmem:[#allocation21_spill] sm:$0xff] }
  0xae   : > { %v682_v8 = vadd.f32 %v650_v56, %v582_v25  ;;  %v1980_v58 = vadd.f32 %v1948_v45, %v1880_v42  ;;  %v2048_v3 = vmul.f32 %v6710_v57, %v614_v38  ;;  %v6995_v1 = vrot.slane %v6823_v10, %v10888_v37  ;;  %v7011_v42 = vld [vmem:[#allocation2 + $0x265] sm:$0xff] }
  0xaf   : > { %v3077_v19 = vadd.f32 %v3045_v20, %v2977_v54  ;;  %v1381_v7 = vadd.f32 %v1349_v59, %v1281_v26  ;;  %v2678_v63 = vadd.f32 %v2646_v16, %v2578_v4  ;;  %v6999_v17 = vrot.slane %v6823_v10, %v6457_v18  ;;  %10892 = vst [vmem:[#allocation36_spill] sm:$0xff] %v7011_v42  ;;  %v7017_v59 = vld [vmem:[#allocation2 + $0x8d] sm:$0xff] }
  0xb0   : > { %v750_v23 = vmul.f32 %v6500_v46, %v714_v30  ;;  %v3245_v14 = vmul.f32 %v6995_v1, %v414_v61  ;;  %v7005_v25 = vrot.slane %v6823_v10, %v10889_v9  ;;  %v7009_v56 = vrot.slane %v6823_v10, %v10890_v15  ;;  %v7019_v61 = vld [vmem:[#allocation2 + $0x26d] sm:$0xff] }
  0xb1   : > { %v7013_v20 = vadd.f32 %v2447_v49, %v2379_v51  ;;  %v1449_v54 = vmul.f32 %v10878_v52, %v714_v30  ;;  %v2080_v26 = vadd.f32 %v2048_v3, %v1980_v58  ;;  %v2746_v45 = vmul.f32 %v6834_v5, %v614_v38  ;;  %10893 = vst [vmem:[#allocation37_spill] sm:$0xff] %v7019_v61  ;;  %v7021_v4 = vld [vmem:[#allocation2 + $0x266] sm:$0xff]  ;;  %v7027_v49 = vld [vmem:[#allocation2 + $0x26e] sm:$0xff] }
  0xb2   : > { %10891 = vst [vmem:[#allocation35_spill] sm:$0xff] %v7009_v56  ;;  %10894 = vst [vmem:[#allocation38_spill] sm:$0xff] %v7021_v4  ;;  %v782_v16 = vadd.f32 %v750_v23, %v682_v8  ;;  %v2148_v9 = vmul.f32 %v6727_v48, %v714_v30  ;;  %v2846_v10 = vmul.f32 %v6848_v21, %v714_v30  ;;  %v7025_v18 = vld [vmem:[#allocation2 + $0x89] sm:$0xff] }
  0xb3   : > { %v3277_v15 = vadd.f32 %v3245_v14, %v3176_v41  ;;  %10895 = vst [vmem:[#allocation39_spill] sm:$0xff] %v7027_v49  ;;  %v7029_v51 = vadd.f32 %v3145_v36, %v3077_v19  ;;  %v1481_v58 = vadd.f32 %v1449_v54, %v1381_v7  ;;  %v2778_v3 = vadd.f32 %v2746_v45, %v2678_v63  ;;  %v7045_v19 = vld [vmem:[#allocation2 + $0x26f] sm:$0xff] }
  0xb4   : > { %v3345_v37 = vmul.f32 %v6999_v17, %v6956_v28  ;;  %v3445_v8 = vmul.f32 %v7005_v25, %v614_v38  ;;  %v3545_v23 = vmul.f32 %v7009_v56, %v714_v30  ;;  %v7041_v41 = vmul.f32 %v6995_v1, %v7011_v42  ;;  %10898 = vst [vmem:[#allocation42_spill] sm:$0xff] %v7045_v19  ;;  %v3539_v7 = vld [vmem:[#allocation2 + $0x268] sm:$0xff]  ;;  %v7109_v42 = vld [vmem:[#allocation2 + $0x93] sm:$0xff] }
  0xb5   : > { %v451_v36 = vmul.f32 %v6441_v11, %v7017_v59  ;;  %v7047_v63 = vadd.f32 %v2148_v9, %v2080_v26  ;;  %v7051_v28 = vmul.f32 %v6995_v1, %v7019_v61  ;;  %v7055_v38 = vmul.f32 %v6999_v17, %v7021_v4  ;;  %v7057_v30 = vld [vmem:[#allocation2 + $0x8f] sm:$0xff] }
  0xb6   : > { %10897 = vst [vmem:[#allocation41_spill] sm:$0xff] %v7041_v41  ;;  %v850_v14 = vmul.f32 %v6509_v53, %v7025_v18  ;;  %v3377_v54 = vadd.f32 %v3345_v37, %v3277_v15  ;;  %v7063_v45 = vmul.f32 %v6999_v17, %v7027_v49  ;;  %v551_v26 = vmul.f32 %v6445_v12, %v7033_v22  ;;  %v3540_v41 = vld [vmem:[#allocation2 + $0x270] sm:$0xff] }
  0xb7   : > { %10899 = vst [vmem:[#allocation43_spill] sm:$0xff] %v7051_v28  ;;  %10900 = vst [vmem:[#allocation44_spill] sm:$0xff] %v7055_v38  ;;  %v483_v9 = vadd.f32 %v6433_v6, %v451_v36  ;;  %v7068_v28 = vld [vmem:[#allocation2 + $0x8a] sm:$0xff]  ;;  %v7070_v4 = vadd.f32 %v2846_v10, %v2778_v3  ;;  %v7074_v38 = vmul.f32 %v7005_v25, %v7035_v47 }
  0xb8   : > { %10901 = vst [vmem:[#allocation45_spill] sm:$0xff] %v7063_v45  ;;  %v7076_v61 = vld [vmem:[#allocation2 + $0x90] sm:$0xff]  ;;  %v882_v37 = vadd.f32 %v850_v14, %v782_v16  ;;  %v1150_v15 = vmul.f32 %v6559_v55, %v7017_v59  ;;  %v7083_v6 = vmul.f32 %v7005_v25, %v7045_v19  ;;  %v7086_v36 = vmul.f32 %v7009_v56, %v3539_v7 }
  0xb9   : > { %10902 = vst [vmem:[#allocation46_spill] sm:$0xff] %v7074_v38  ;;  %v337_v45 = vld [vmem:[%s6238_s21 + $0x50] sm:$0xff]  ;;  %v583_v10 = vadd.f32 %v551_v26, %v483_v9  ;;  %v651_v3 = vmul.f32 %v6478_v31, %v7057_v30  ;;  %v950_v14 = vmul.f32 %v6536_v24, %v7068_v28  ;;  %v3477_v26 = vadd.f32 %v3445_v8, %v3377_v54 }
  0xba   : > { %10903 = vst [vmem:[#allocation47_spill] sm:$0xff] %v7083_v6  ;;  %10904 = vst [vmem:[#allocation48_spill] sm:$0xff] %v7086_v36  ;;  %v7091_v38 = vld [vmem:[#allocation2 + $0x91] sm:$0xff]  ;;  %v1182_v47 = vadd.f32 %v1150_v15, %v6941_v60  ;;  %v1250_v6 = vmul.f32 %v6587_v32, %v7033_v22  ;;  %v7103_v36 = vmul.f32 %v7009_v56, %v3540_v41 }
  0xbb   : > { %370 = vst.msk [vmem:[#allocation2 + $0x108] sm:$0xff] %vm237_vm0, %v337_v45  ;;  %v7093_v16 = vld [vmem:[#allocation2 + $0x92] sm:$0xff]  ;;  %v683_v45 = vadd.f32 %v651_v3, %v583_v10  ;;  %v751_v19 = vmul.f32 %v6500_v46, %v7076_v61  ;;  %v982_v31 = vadd.f32 %v950_v14, %v882_v37  ;;  %v1350_v15 = vmul.f32 %v6593_v40, %v7057_v30 }
  0xbc   : > { %v10905_v7 = vld [vmem:[#allocation27_spill] sm:$0xff]  ;;  %10906 = vst [vmem:[#allocation49_spill] sm:$0xff] %v7103_v36  ;;  %v1282_v60 = vadd.f32 %v1250_v6, %v1182_v47  ;;  %v851_v8 = vmul.f32 %v6509_v53, %v7091_v38  ;;  %v951_v41 = vmul.f32 %v6536_v24, %v7093_v16  ;;  %v1649_v54 = vmul.f32 %v6645_v13, %v7068_v28 }
  0xbd   : > { %v1549_v9 = vmul.f32 %v10905_v7, %v7025_v18  ;;  %v7107_v49 = vld [vmem:[#allocation2 + $0x8b] sm:$0xff]  ;;  %v1849_v10 = vmul.f32 %v6679_v35, %v7017_v59  ;;  %v783_v3 = vadd.f32 %v751_v19, %v683_v45  ;;  %v1450_v14 = vmul.f32 %v10878_v52, %v7076_v61 }
  0xbe   : > { %v10907_v37 = vld [vmem:[#allocation23_spill] sm:$0xff]  ;;  %v1949_v24 = vmul.f32 %v6683_v44, %v7033_v22  ;;  %v7130_v53 = vadd.f32 %v3545_v23, %v3477_v26  ;;  %v1550_v19 = vmul.f32 %v10905_v7, %v7091_v38  ;;  %v1650_v45 = vmul.f32 %v6645_v13, %v7093_v16 }
  0xbf   : > { %v1581_v32 = vadd.f32 %v1549_v9, %v1481_v58  ;;  %v1050_v47 = vmul.f32 %v10907_v37, %v7107_v49  ;;  %v1051_v6 = vmul.f32 %v10907_v37, %v7109_v42  ;;  %v1382_v58 = vadd.f32 %v1350_v15, %v1282_v60 }
  0xc0   : > { %v1881_v36 = vadd.f32 %v1849_v10, %v6970_v27  ;;  %v2049_v27 = vmul.f32 %v6710_v57, %v7057_v30  ;;  %v2248_v23 = vmul.f32 %v6731_v2, %v7025_v18  ;;  %v2547_v26 = vmul.f32 %v6810_v50, %v7017_v59 }
  0xc1   : > { %v1681_v9 = vadd.f32 %v1649_v54, %v1581_v32  ;;  %v7132_v46 = vadd.f32 %v1050_v47, %v982_v31  ;;  %v1482_v60 = vadd.f32 %v1450_v14, %v1382_v58  ;;  %v1749_v32 = vmul.f32 %v6661_v0, %v7107_v49 }
  0xc2   : > { %v1981_v15 = vadd.f32 %v1949_v24, %v1881_v36  ;;  %v883_v54 = vadd.f32 %v851_v8, %v783_v3  ;;  %v1750_v31 = vmul.f32 %v6661_v0, %v7109_v42  ;;  %v2149_v58 = vmul.f32 %v6727_v48, %v7076_v61  ;;  %v338_v0 = vld [vmem:[%s6238_s21 + $0x58] sm:$0xff] }
  0xc3   : > { %v7148_v10 = vadd.f32 %v1749_v32, %v1681_v9  ;;  %v2249_v24 = vmul.f32 %v6731_v2, %v7091_v38  ;;  %v2280_v36 = vadd.f32 %v2248_v23, %v7047_v63  ;;  %v2579_v8 = vadd.f32 %v2547_v26, %v7013_v20  ;;  %371 = vst.msk [vmem:[#allocation2 + $0x110] sm:$0xff] %vm237_vm0, %v338_v0  ;;  %v7169_v20 = vld [vmem:[%s10624_s1 + $0x20] sm:$0xff] }
  0xc4   : > { %v2081_v47 = vadd.f32 %v2049_v27, %v1981_v15  ;;  %v2647_v3 = vmul.f32 %v6829_v62, %v7033_v22  ;;  %v2946_v14 = vmul.f32 %v6935_v43, %v7025_v18  ;;  %v1582_v9 = vadd.f32 %v1550_v19, %v1482_v60 }
  0xc5   : > { %v2348_v15 = vmul.f32 %v6736_v29, %v7068_v28  ;;  %v2349_v27 = vmul.f32 %v6736_v29, %v7093_v16  ;;  %v983_v63 = vadd.f32 %v951_v41, %v883_v54  ;;  %v2747_v26 = vmul.f32 %v6834_v5, %v7057_v30 }
  0xc6   : > { %v2181_v32 = vadd.f32 %v2149_v58, %v2081_v47  ;;  %v2679_v23 = vadd.f32 %v2647_v3, %v2579_v8  ;;  %v2978_v19 = vadd.f32 %v2946_v14, %v7070_v4  ;;  %v2448_v47 = vmul.f32 %v6740_v39, %v7107_v49  ;;  %v10908_v3 = vld [vmem:[#allocation9_spill] sm:$0xff] }
  0xc7   : > { %v2449_v58 = vmul.f32 %v6740_v39, %v7109_v42  ;;  %v3246_v0 = vmul.f32 %v6995_v1, %v7017_v59  ;;  %v2380_v29 = vadd.f32 %v2348_v15, %v2280_v36  ;;  %v2847_v41 = vmul.f32 %v6848_v21, %v7076_v61 }
  0xc8   : > { %v2281_v60 = vadd.f32 %v2249_v24, %v2181_v32  ;;  %v2779_v2 = vadd.f32 %v2747_v26, %v2679_v23  ;;  %v3046_v54 = vmul.f32 %v6947_v34, %v7068_v28  ;;  %v1682_v8 = vadd.f32 %v1650_v45, %v1582_v9  ;;  %v10911_v9 = vld [vmem:[#allocation31_spill] sm:$0xff] }
  0xc9   : > { %v3278_v4 = vadd.f32 %v3246_v0, %v7029_v51  ;;  %v3346_v24 = vmul.f32 %v6999_v17, %v7033_v22  ;;  %v7189_v14 = vrot.slane %v7169_v20, %v10908_v3  ;;  %v7191_v32 = vadd.f32 %v1051_v6, %v983_v63  ;;  %v10912_v6 = vld [vmem:[#allocation11_spill] sm:$0xff]  ;;  %v10921_v3 = vld [vmem:[#allocation17_spill] sm:$0xff] }
  0xca   : > { %v2879_v59 = vadd.f32 %v2847_v41, %v2779_v2  ;;  %v2947_v36 = vmul.f32 %v6935_v43, %v7091_v38  ;;  %v3078_v15 = vadd.f32 %v3046_v54, %v2978_v19  ;;  %v2381_v23 = vadd.f32 %v2349_v27, %v2281_v60  ;;  %v7213_v41 = vld [vmem:[#allocation2 + $0xa5] sm:$0xff] }
  0xcb   : > { %10909 = vst [vmem:[#allocation50_spill] sm:$0xff] %v7189_v14  ;;  %v3378_v26 = vadd.f32 %v3346_v24, %v3278_v4  ;;  %v3446_v45 = vmul.f32 %v7005_v25, %v7057_v30  ;;  %v7199_v51 = vrot.slane %v7169_v20, %v10883_v33  ;;  %v2480_v22 = vadd.f32 %v2448_v47, %v2380_v29  ;;  %v3639_v29 = vld [vmem:[#allocation2 + $0x269] sm:$0xff]  ;;  %v3640_v47 = vld [vmem:[#allocation2 + $0x271] sm:$0xff] }
  0xcc   : > { %v3146_v0 = vmul.f32 %v10911_v9, %v7107_v49  ;;  %v3645_v2 = vmul.f32 %v7189_v14, %v7025_v18  ;;  %v7207_v63 = vrot.slane %v7169_v20, %v10912_v6  ;;  %v7209_v27 = vadd.f32 %v1750_v31, %v1682_v8  ;;  %v3739_v31 = vld [vmem:[#allocation2 + $0x26a] sm:$0xff]  ;;  %v3740_v8 = vld [vmem:[#allocation2 + $0x272] sm:$0xff] }
  0xcd   : > { %10910 = vst [vmem:[#allocation51_spill] sm:$0xff] %v7199_v51  ;;  %v2979_v19 = vadd.f32 %v2947_v36, %v2879_v59  ;;  %v3047_v30 = vmul.f32 %v6947_v34, %v7093_v16  ;;  %v3478_v60 = vadd.f32 %v3446_v45, %v3378_v26  ;;  %v3147_v54 = vmul.f32 %v10911_v9, %v7109_v42 }
  0xce   : > { %10913 = vst [vmem:[#allocation52_spill] sm:$0xff] %v7207_v63  ;;  %v3178_v4 = vadd.f32 %v3146_v0, %v3078_v15  ;;  %v3546_v18 = vmul.f32 %v7009_v56, %v7076_v61  ;;  %v3677_v24 = vadd.f32 %v3645_v2, %v7130_v53  ;;  %v7220_v59 = vadd.f32 %v2449_v58, %v2381_v23  ;;  %v7234_v58 = vld [vmem:[#allocation2 + $0xa6] sm:$0xff] }
  0xcf   : > { %v3646_v36 = vmul.f32 %v7189_v14, %v7091_v38  ;;  %v3745_v26 = vmul.f32 %v7199_v51, %v7068_v28  ;;  %v3746_v45 = vmul.f32 %v7199_v51, %v7093_v16  ;;  %v3845_v15 = vmul.f32 %v7207_v63, %v7107_v49  ;;  %v3839_v23 = vld [vmem:[#allocation2 + $0x26b] sm:$0xff]  ;;  %v3840_v38 = vld [vmem:[#allocation2 + $0x273] sm:$0xff] }
  0xd0   : > { %v3578_v6 = vadd.f32 %v3546_v18, %v3478_v60  ;;  %v3846_v53 = vmul.f32 %v7207_v63, %v7109_v42  ;;  %v452_v61 = vmul.f32 %v6441_v11, %v7213_v41  ;;  %v3079_v0 = vadd.f32 %v3047_v30, %v2979_v19  ;;  %v7253_v19 = vld [vmem:[%s10625_s2] ss:$0 sm:$0xff] }
  0xd1   : > { %v7237_v28 = vmul.f32 %v7189_v14, %v3639_v29  ;;  %v7240_v16 = vmul.f32 %v7189_v14, %v3640_v47  ;;  %v1151_v49 = vmul.f32 %v6559_v55, %v7213_v41  ;;  %v3777_v2 = vadd.f32 %v3745_v26, %v3677_v24  ;;  %v616_v47 = vld [vmem:[#allocation2 + $0xa7] sm:$0xff]  ;;  %v10918_v24 = vld [vmem:[#allocation24_spill] sm:$0xff] }
  0xd2   : > { %v7245_v42 = vmul.f32 %v7199_v51, %v3739_v31  ;;  %v7248_v60 = vmul.f32 %v7199_v51, %v3740_v8  ;;  %v484_v30 = vadd.f32 %v7253_v19, %v452_v61  ;;  %v552_v29 = vmul.f32 %v6445_v12, %v7234_v58  ;;  %v10923_v51 = vld [vmem:[#allocation14_spill] sm:$0xff] }
  0xd3   : > { %10914 = vst [vmem:[#allocation53_spill] sm:$0xff] %v7237_v28  ;;  %10915 = vst [vmem:[#allocation54_spill] sm:$0xff] %v7240_v16  ;;  %v1183_v18 = vadd.f32 %v1151_v49, %v7132_v46  ;;  %v1251_v31 = vmul.f32 %v10918_v24, %v7234_v58  ;;  %v1850_v8 = vmul.f32 %v6679_v35, %v7213_v41 }
  0xd4   : > { %10916 = vst [vmem:[#allocation55_spill] sm:$0xff] %v7245_v42  ;;  %10917 = vst [vmem:[#allocation56_spill] sm:$0xff] %v7248_v60  ;;  %v3678_v26 = vadd.f32 %v3646_v36, %v3578_v6  ;;  %v7264_v60 = vmul.f32 %v7207_v63, %v3839_v23  ;;  %v7267_v16 = vmul.f32 %v7207_v63, %v3840_v38 }
  0xd5   : > { %v2548_v61 = vmul.f32 %v6810_v50, %v7213_v41  ;;  %v584_v42 = vadd.f32 %v552_v29, %v484_v30  ;;  %v1283_v28 = vadd.f32 %v1251_v31, %v1183_v18  ;;  %v1882_v46 = vadd.f32 %v1850_v8, %v7148_v10 }
  0xd6   : > { %10919 = vst [vmem:[#allocation57_spill] sm:$0xff] %v7264_v60  ;;  %10920 = vst [vmem:[#allocation58_spill] sm:$0xff] %v7267_v16  ;;  %v1950_v49 = vmul.f32 %v6683_v44, %v7234_v58  ;;  %v7274_v33 = vadd.f32 %v3147_v54, %v3079_v0  ;;  %v652_v6 = vmul.f32 %v10921_v3, %v616_v47  ;;  %v716_v16 = vld [vmem:[#allocation2 + $0xa8] sm:$0xff] }
  0xd7   : > { %v2580_v36 = vadd.f32 %v2548_v61, %v2480_v22  ;;  %v2648_v23 = vmul.f32 %v6829_v62, %v7234_v58  ;;  %v3877_v38 = vadd.f32 %v3845_v15, %v3777_v2  ;;  %v1351_v60 = vmul.f32 %v6593_v40, %v616_v47  ;;  %v7286_v15 = vld [vmem:[#allocation2 + $0xad] sm:$0xff] }
  0xd8   : > { %v1982_v63 = vadd.f32 %v1950_v49, %v1882_v46  ;;  %v3247_v30 = vmul.f32 %v6995_v1, %v7213_v41  ;;  %v3778_v10 = vadd.f32 %v3746_v45, %v3678_v26  ;;  %v2050_v29 = vmul.f32 %v6710_v57, %v616_v47  ;;  %v10922_v2 = vld [vmem:[#allocation18_spill] sm:$0xff] }
  0xd9   : > { %v2680_v18 = vadd.f32 %v2648_v23, %v2580_v36  ;;  %v2748_v54 = vmul.f32 %v6834_v5, %v616_v47  ;;  %v684_v0 = vadd.f32 %v652_v6, %v584_v42  ;;  %v1383_v31 = vadd.f32 %v1351_v60, %v1283_v28  ;;  %v10924_v42 = vld [vmem:[#allocation15_spill] sm:$0xff]  ;;  %v10926_v28 = vld [vmem:[#allocation16_spill] sm:$0xff] }
  0xda   : > { %v3279_v22 = vadd.f32 %v3247_v30, %v3178_v4  ;;  %v3347_v8 = vmul.f32 %v6999_v17, %v7234_v58  ;;  %v752_v61 = vmul.f32 %v10922_v2, %v716_v16  ;;  %v2082_v46 = vadd.f32 %v2050_v29, %v1982_v63  ;;  %v3940_v29 = vld [vmem:[#allocation2 + $0x285] sm:$0xff] }
  0xdb   : > { %v2780_v49 = vadd.f32 %v2748_v54, %v2680_v18  ;;  %v7291_v45 = vrot.slane %v7169_v20, %v10923_v51  ;;  %v1451_v26 = vmul.f32 %v10878_v52, %v716_v16  ;;  %v7296_v4 = vrot.slane %v7169_v20, %v10924_v42  ;;  %v7310_v42 = vld [vmem:[#allocation2 + $0xae] sm:$0xff] }
  0xdc   : > { %v3379_v36 = vadd.f32 %v3347_v8, %v3279_v22  ;;  %v7300_v60 = vrot.slane %v7169_v20, %v10926_v28  ;;  %v7302_v6 = vadd.f32 %v3846_v53, %v3778_v10  ;;  %v2150_v63 = vmul.f32 %v6727_v48, %v716_v16  ;;  %v339_v20 = vld [vmem:[%s6238_s21 + $0x60] sm:$0xff]  ;;  %v3941_v28 = vld [vmem:[#allocation2 + $0x28d] sm:$0xff] }
  0xdd   : > { %10925 = vst [vmem:[#allocation59_spill] sm:$0xff] %v7296_v4  ;;  %v2848_v23 = vmul.f32 %v6848_v21, %v716_v16  ;;  %v453_v30 = vmul.f32 %v6441_v11, %v7286_v15  ;;  %v784_v18 = vadd.f32 %v752_v61, %v684_v0  ;;  %v1483_v54 = vadd.f32 %v1451_v26, %v1383_v31  ;;  %v4040_v53 = vld [vmem:[#allocation2 + $0x286] sm:$0xff]  ;;  %v10929_v11 = vld [vmem:[#allocation36_spill] sm:$0xff]  ;;  %v4041_v31 = vld [vmem:[#allocation2 + $0x28e] sm:$0xff] }
  0xde   : > { %10927 = vst [vmem:[#allocation60_spill] sm:$0xff] %v7300_v60  ;;  %10928 = vst [vmem:[#allocation61_spill] sm:$0xff] %v7302_v6  ;;  %v3447_v22 = vmul.f32 %v7005_v25, %v616_v47  ;;  %v3547_v8 = vmul.f32 %v7009_v56, %v716_v16  ;;  %v7313_v10 = vadd.f32 %v2150_v63, %v2082_v46  ;;  %v7337_v63 = vld [vmem:[#allocation2 + $0xa9] sm:$0xff] }
  0xdf   : > { %v7315_v51 = vadd.f32 %v2848_v23, %v2780_v49  ;;  %v3946_v6 = vmul.f32 %v7291_v45, %v7213_v41  ;;  %v7321_v0 = vmul.f32 %v7291_v45, %v10929_v11  ;;  %372 = vst.msk [vmem:[#allocation2 + $0x128] sm:$0xff] %vm237_vm0, %v339_v20  ;;  %v7326_v61 = vmul.f32 %v7296_v4, %v7234_v58  ;;  %v10933_v49 = vld [vmem:[#allocation37_spill] sm:$0xff]  ;;  %v7335_v41 = vld [vmem:[#allocation2 + $0xaf] sm:$0xff] }
  0xe0   : > { %v3479_v16 = vadd.f32 %v3447_v22, %v3379_v36  ;;  %v7329_v46 = vmul.f32 %v7300_v60, %v616_v47  ;;  %v7333_v26 = vmul.f32 %v7291_v45, %v10933_v49  ;;  %v7342_v23 = vmul.f32 %v7291_v45, %v3940_v29  ;;  %v10938_v22 = vld [vmem:[#allocation38_spill] sm:$0xff]  ;;  %v10940_v49 = vld [vmem:[#allocation39_spill] sm:$0xff] }
  0xe1   : > { %10930 = vst [vmem:[#allocation36_spill] sm:$0xff] %v7321_v0  ;;  %10931 = vst [vmem:[#allocation62_spill] sm:$0xff] %v7326_v61  ;;  %v7339_v11 = vadd.f32 %v3946_v6, %v3877_v38  ;;  %v485_v36 = vadd.f32 %v7253_v19, %v453_v30  ;;  %v553_v58 = vmul.f32 %v6445_v12, %v7310_v42  ;;  %v7361_v6 = vld [vmem:[#allocation2 + $0xb0] sm:$0xff]  ;;  %v4140_v30 = vld [vmem:[#allocation2 + $0x287] sm:$0xff] }
  0xe2   : > { %10932 = vst [vmem:[#allocation63_spill] sm:$0xff] %v7329_v46  ;;  %10934 = vst [vmem:[#allocation37_spill] sm:$0xff] %v7333_v26  ;;  %v7348_v47 = vmul.f32 %v7291_v45, %v3941_v28  ;;  %v7352_v20 = vmul.f32 %v7296_v4, %v10938_v22  ;;  %v7356_v26 = vmul.f32 %v7296_v4, %v10940_v49  ;;  %v4141_v29 = vld [vmem:[#allocation2 + $0x28f] sm:$0xff]  ;;  %v10944_v22 = vld [vmem:[#allocation20_spill] sm:$0xff] }
  0xe3   : > { %10935 = vst [vmem:[#allocation64_spill] sm:$0xff] %v7339_v11  ;;  %10936 = vst [vmem:[#allocation65_spill] sm:$0xff] %v7342_v23  ;;  %v7359_v38 = vmul.f32 %v7296_v4, %v4040_v53  ;;  %v7364_v23 = vmul.f32 %v7296_v4, %v4041_v31  ;;  %v585_v28 = vadd.f32 %v553_v58, %v485_v36  ;;  %v10945_v49 = vld [vmem:[#allocation40_spill] sm:$0xff]  ;;  %v7382_v31 = vld [vmem:[#allocation2 + $0xaa] sm:$0xff] }
  0xe4   : > { %10937 = vst [vmem:[#allocation66_spill] sm:$0xff] %v7348_v47  ;;  %10939 = vst [vmem:[#allocation38_spill] sm:$0xff] %v7352_v20  ;;  %v653_v47 = vmul.f32 %v10921_v3, %v7335_v41  ;;  %v852_v20 = vmul.f32 %v10944_v22, %v7337_v63  ;;  %v7370_v0 = vadd.f32 %v3547_v8, %v3479_v16  ;;  %v7380_v46 = vld [vmem:[#allocation2 + $0xb1] sm:$0xff] }
  0xe5   : > { %10941 = vst [vmem:[#allocation39_spill] sm:$0xff] %v7356_v26  ;;  %10942 = vst [vmem:[#allocation67_spill] sm:$0xff] %v7359_v38  ;;  %v7374_v53 = vmul.f32 %v7300_v60, %v10945_v49  ;;  %v10947_v38 = vld [vmem:[#allocation42_spill] sm:$0xff]  ;;  %v1152_v36 = vmul.f32 %v6559_v55, %v7286_v15  ;;  %v753_v8 = vmul.f32 %v10922_v2, %v7361_v6 }
  0xe6   : > { %10943 = vst [vmem:[#allocation68_spill] sm:$0xff] %v7364_v23  ;;  %v7378_v26 = vmul.f32 %v7300_v60, %v10947_v38  ;;  %v685_v58 = vadd.f32 %v653_v47, %v585_v28  ;;  %v884_v16 = vadd.f32 %v852_v20, %v784_v18  ;;  %v7388_v23 = vld [vmem:[#allocation2 + $0xb2] sm:$0xff]  ;;  %v1551_v49 = vmul.f32 %v10905_v7, %v7337_v63  ;;  %v10951_v20 = vld [vmem:[#allocation22_spill] sm:$0xff] }
  0xe7   : > { %10946 = vst [vmem:[#allocation40_spill] sm:$0xff] %v7374_v53  ;;  %v7393_v38 = vmul.f32 %v7300_v60, %v4140_v30  ;;  %v7398_v53 = vld [vmem:[#allocation2 + $0xab] sm:$0xff]  ;;  %v1184_v61 = vadd.f32 %v1152_v36, %v7191_v32  ;;  %v1252_v47 = vmul.f32 %v10918_v24, %v7310_v42  ;;  %v853_v18 = vmul.f32 %v10944_v22, %v7380_v46 }
  0xe8   : > { %10948 = vst [vmem:[#allocation42_spill] sm:$0xff] %v7378_v26  ;;  %v7396_v26 = vmul.f32 %v7300_v60, %v4141_v29  ;;  %v785_v28 = vadd.f32 %v753_v8, %v685_v58  ;;  %v952_v11 = vmul.f32 %v10951_v20, %v7382_v31  ;;  %v1583_v30 = vadd.f32 %v1551_v49, %v1483_v54  ;;  %v340_v2 = vld [vmem:[%s6238_s21 + $0x68] sm:$0xff] }
  0xe9   : > { %10949 = vst [vmem:[#allocation69_spill] sm:$0xff] %v7393_v38  ;;  %v953_v29 = vmul.f32 %v10951_v20, %v7388_v23  ;;  %v1284_v38 = vadd.f32 %v1252_v47, %v1184_v61  ;;  %v1352_v32 = vmul.f32 %v6593_v40, %v7335_v41  ;;  %v1851_v36 = vmul.f32 %v6679_v35, %v7286_v15 }
  0xea   : > { %10950 = vst [vmem:[#allocation70_spill] sm:$0xff] %v7396_v26  ;;  %v7409_v26 = vld [vmem:[#allocation2 + $0xb3] sm:$0xff]  ;;  %v984_v58 = vadd.f32 %v952_v11, %v884_v16  ;;  %v1052_v8 = vmul.f32 %v10907_v37, %v7398_v53  ;;  %v1452_v22 = vmul.f32 %v10878_v52, %v7361_v6  ;;  %v1651_v54 = vmul.f32 %v6645_v13, %v7382_v31 }
  0xeb   : > { %v885_v49 = vadd.f32 %v853_v18, %v785_v28  ;;  %v1384_v20 = vadd.f32 %v1352_v32, %v1284_v38  ;;  %v1883_v61 = vadd.f32 %v1851_v36, %v7209_v27  ;;  %v1951_v47 = vmul.f32 %v6683_v44, %v7310_v42  ;;  %373 = vst.msk [vmem:[#allocation2 + $0x130] sm:$0xff] %vm237_vm0, %v340_v2  ;;  %v10952_v18 = vld [vmem:[#allocation32_spill] sm:$0xff] }
  0xec   : > { %v1053_v11 = vmul.f32 %v10907_v37, %v7409_v26  ;;  %v1552_v16 = vmul.f32 %v10905_v7, %v7380_v46  ;;  %v1652_v52 = vmul.f32 %v6645_v13, %v7388_v23  ;;  %v1683_v40 = vadd.f32 %v1651_v54, %v1583_v30  ;;  %v10953_v37 = vld [vmem:[#allocation29_spill] sm:$0xff] }
  0xed   : > { %v1484_v28 = vadd.f32 %v1452_v22, %v1384_v20  ;;  %v1983_v38 = vadd.f32 %v1951_v47, %v1883_v61  ;;  %v2051_v27 = vmul.f32 %v6710_v57, %v7335_v41  ;;  %v2250_v32 = vmul.f32 %v10952_v18, %v7337_v63 }
  0xee   : > { %v7436_v36 = vadd.f32 %v1052_v8, %v984_v58  ;;  %v1751_v3 = vmul.f32 %v10953_v37, %v7398_v53  ;;  %v1752_v7 = vmul.f32 %v10953_v37, %v7409_v26  ;;  %v2549_v30 = vmul.f32 %v6810_v50, %v7286_v15 }
  0xef   : > { %v985_v2 = vadd.f32 %v953_v29, %v885_v49  ;;  %v2083_v22 = vadd.f32 %v2051_v27, %v1983_v38  ;;  %v2151_v20 = vmul.f32 %v6727_v48, %v7361_v6  ;;  %v2282_v54 = vadd.f32 %v2250_v32, %v7313_v10  ;;  %v10954_v49 = vld [vmem:[#allocation33_spill] sm:$0xff] }
  0xf0   : > { %v1584_v61 = vadd.f32 %v1552_v16, %v1484_v28  ;;  %v2581_v58 = vadd.f32 %v2549_v30, %v7220_v59  ;;  %v2649_v8 = vmul.f32 %v6829_v62, %v7310_v42  ;;  %v2948_v47 = vmul.f32 %v6935_v43, %v7337_v63 }
  0xf1   : > { %v1783_v37 = vadd.f32 %v1751_v3, %v1683_v40  ;;  %v2183_v13 = vadd.f32 %v2151_v20, %v2083_v22  ;;  %v2251_v29 = vmul.f32 %v10952_v18, %v7380_v46  ;;  %v2350_v38 = vmul.f32 %v10954_v49, %v7382_v31 }
  0xf2   : > { %v2351_v10 = vmul.f32 %v10954_v49, %v7388_v23  ;;  %v2681_v16 = vadd.f32 %v2649_v8, %v2581_v58  ;;  %v2749_v59 = vmul.f32 %v6834_v5, %v7335_v41  ;;  %v2980_v28 = vadd.f32 %v2948_v47, %v7315_v51 }
  0xf3   : > { %v2283_v27 = vadd.f32 %v2251_v29, %v2183_v13  ;;  %v2450_v40 = vmul.f32 %v6740_v39, %v7398_v53  ;;  %v3048_v3 = vmul.f32 %v6947_v34, %v7382_v31  ;;  %v3248_v32 = vmul.f32 %v6995_v1, %v7286_v15 }
  0xf4   : > { %v7467_v30 = vadd.f32 %v1053_v11, %v985_v2  ;;  %v1684_v22 = vadd.f32 %v1652_v52, %v1584_v61  ;;  %v2382_v20 = vadd.f32 %v2350_v38, %v2282_v54  ;;  %v2781_v58 = vadd.f32 %v2749_v59, %v2681_v16  ;;  %v7484_v38 = vld [vmem:[#allocation2 + $0xc5] sm:$0xff] }
  0xf5   : > { %v2849_v8 = vmul.f32 %v6848_v21, %v7361_v6  ;;  %v3080_v49 = vadd.f32 %v3048_v3, %v2980_v28  ;;  %v3280_v13 = vadd.f32 %v3248_v32, %v7274_v33  ;;  %v3348_v51 = vmul.f32 %v6999_v17, %v7310_v42 }
  0xf6   : > { %v2383_v47 = vadd.f32 %v2351_v10, %v2283_v27  ;;  %v2451_v29 = vmul.f32 %v6740_v39, %v7409_v26  ;;  %v2949_v11 = vmul.f32 %v6935_v43, %v7380_v46  ;;  %v3148_v52 = vmul.f32 %v10911_v9, %v7398_v53 }
  0xf7   : > { %v2881_v2 = vadd.f32 %v2849_v8, %v2781_v58  ;;  %v3380_v54 = vadd.f32 %v3348_v51, %v3280_v13  ;;  %v3448_v61 = vmul.f32 %v7005_v25, %v7335_v41  ;;  %v3647_v33 = vmul.f32 %v7189_v14, %v7337_v63  ;;  %v7495_v8 = vld [vmem:[#allocation2 + $0xc6] sm:$0xff] }
  0xf8   : > { %v7486_v10 = vadd.f32 %v1752_v7, %v1684_v22  ;;  %v2482_v16 = vadd.f32 %v2450_v40, %v2382_v20  ;;  %v3049_v59 = vmul.f32 %v6947_v34, %v7388_v23  ;;  %v3149_v28 = vmul.f32 %v10911_v9, %v7409_v26  ;;  %v10955_v40 = vld [vmem:[#allocation51_spill] sm:$0xff]  ;;  %v10956_v20 = vld [vmem:[#allocation12_spill] sm:$0xff] }
  0xf9   : > { %v3180_v27 = vadd.f32 %v3148_v52, %v3080_v49  ;;  %v3480_v3 = vadd.f32 %v3448_v61, %v3380_v54  ;;  %v3548_v32 = vmul.f32 %v7009_v56, %v7361_v6  ;;  %v3679_v58 = vadd.f32 %v3647_v33, %v7370_v0  ;;  %v10957_v0 = vld [vmem:[#allocation52_spill] sm:$0xff] }
  0xfa   : > { %v7497_v63 = vadd.f32 %v2451_v29, %v2383_v47  ;;  %v3648_v7 = vmul.f32 %v7189_v14, %v7380_v46  ;;  %v3747_v22 = vmul.f32 %v10955_v40, %v7382_v31  ;;  %v454_v13 = vmul.f32 %v10956_v20, %v7484_v38 }
  0xfb   : > { %v2981_v49 = vadd.f32 %v2949_v11, %v2881_v2  ;;  %v3580_v51 = vadd.f32 %v3548_v32, %v3480_v3  ;;  %v3748_v6 = vmul.f32 %v10955_v40, %v7388_v23  ;;  %v3847_v52 = vmul.f32 %v10957_v0, %v7398_v53  ;;  %v618_v23 = vld [vmem:[#allocation2 + $0xc7] sm:$0xff] }
  0xfc   : > { %v3848_v47 = vmul.f32 %v10957_v0, %v7409_v26  ;;  %v486_v29 = vadd.f32 %v7253_v19, %v454_v13  ;;  %v554_v46 = vmul.f32 %v6445_v12, %v7495_v8  ;;  %v1153_v31 = vmul.f32 %v6559_v55, %v7484_v38  ;;  %v10963_v0 = vld [vmem:[#allocation25_spill] sm:$0xff] }
  0xfd   : > { %v3680_v54 = vadd.f32 %v3648_v7, %v3580_v51  ;;  %v3779_v11 = vadd.f32 %v3747_v22, %v3679_v58  ;;  %v3947_v2 = vmul.f32 %v7291_v45, %v7286_v15  ;;  %v1852_v53 = vmul.f32 %v6679_v35, %v7484_v38  ;;  %v10959_v22 = vld [vmem:[#allocation61_spill] sm:$0xff] }
  0xfe   : > { %v7522_v26 = vmul.f32 %v7296_v4, %v7310_v42  ;;  %v586_v61 = vadd.f32 %v554_v46, %v486_v29  ;;  %v1185_v33 = vadd.f32 %v1153_v31, %v7436_v36  ;;  %v1253_v3 = vmul.f32 %v10918_v24, %v7495_v8  ;;  %v10962_v51 = vld [vmem:[#allocation17_spill] sm:$0xff]  ;;  %v718_v29 = vld [vmem:[#allocation2 + $0xc8] sm:$0xff] }
  0xff   : > { %v3081_v32 = vadd.f32 %v3049_v59, %v2981_v49  ;;  %v1884_v7 = vadd.f32 %v1852_v53, %v1783_v37  ;;  %v1952_v58 = vmul.f32 %v6683_v44, %v7495_v8  ;;  %v2550_v15 = vmul.f32 %v6810_v50, %v7484_v38 }
 0x100   : > { %10958 = vst [vmem:[#allocation32_spill] sm:$0xff] %v7522_v26  ;;  %v7532_v13 = vadd.f32 %v3947_v2, %v10959_v22  ;;  %v7536_v42 = vmul.f32 %v7300_v60, %v7335_v41  ;;  %v654_v36 = vmul.f32 %v10962_v51, %v618_v23  ;;  %v1285_v46 = vadd.f32 %v1253_v3, %v1185_v33  ;;  %v7544_v41 = vld [vmem:[#allocation2 + $0xcd] sm:$0xff] }
 0x101   : > { %v3780_v31 = vadd.f32 %v3748_v6, %v3680_v54  ;;  %v1984_v59 = vadd.f32 %v1952_v58, %v1884_v7  ;;  %v2582_v37 = vadd.f32 %v2550_v15, %v2482_v16  ;;  %v2650_v49 = vmul.f32 %v6829_v62, %v7495_v8  ;;  %v10965_v3 = vld [vmem:[#allocation26_spill] sm:$0xff]  ;;  %v341_v58 = vld [vmem:[%s6238_s21 + $0x70] sm:$0xff] }
 0x102   : > { %10960 = vst [vmem:[#allocation61_spill] sm:$0xff] %v7532_v13  ;;  %10961 = vst [vmem:[#allocation71_spill] sm:$0xff] %v7536_v42  ;;  %v3879_v53 = vadd.f32 %v3847_v52, %v3779_v11  ;;  %v686_v26 = vadd.f32 %v654_v36, %v586_v61  ;;  %v1353_v2 = vmul.f32 %v10963_v0, %v618_v23  ;;  %v10964_v13 = vld [vmem:[#allocation18_spill] sm:$0xff] }
 0x103   : > { %v3249_v22 = vmul.f32 %v6995_v1, %v7484_v38  ;;  %v7546_v42 = vadd.f32 %v3149_v28, %v3081_v32  ;;  %v754_v33 = vmul.f32 %v10964_v13, %v718_v29  ;;  %v2052_v6 = vmul.f32 %v6710_v57, %v618_v23  ;;  %v7552_v61 = vld [vmem:[#allocation2 + $0xce] sm:$0xff]  ;;  %374 = vst.msk [vmem:[#allocation2 + $0x148] sm:$0xff] %vm237_vm0, %v341_v58 }
 0x104   : > { %v2682_v16 = vadd.f32 %v2650_v49, %v2582_v37  ;;  %v1385_v54 = vadd.f32 %v1353_v2, %v1285_v46  ;;  %v1453_v7 = vmul.f32 %v10965_v3, %v718_v29  ;;  %v2750_v52 = vmul.f32 %v6834_v5, %v618_v23  ;;  %v7564_v2 = vld [vmem:[#allocation2 + $0xcf] sm:$0xff] }
 0x105   : > { %v3281_v11 = vadd.f32 %v3249_v22, %v3180_v27  ;;  %v7555_v15 = vadd.f32 %v3848_v47, %v3780_v31  ;;  %v2084_v36 = vadd.f32 %v2052_v6, %v1984_v59  ;;  %v2152_v28 = vmul.f32 %v6727_v48, %v718_v29  ;;  %v7566_v22 = vld [vmem:[#allocation2 + $0xc9] sm:$0xff] }
 0x106   : > { %v455_v32 = vmul.f32 %v10956_v20, %v7544_v41  ;;  %v786_v37 = vadd.f32 %v754_v33, %v686_v26  ;;  %v2782_v46 = vadd.f32 %v2750_v52, %v2682_v16  ;;  %v2850_v49 = vmul.f32 %v6848_v21, %v718_v29  ;;  %v7579_v58 = vld [vmem:[#allocation2 + $0xd0] sm:$0xff] }
 0x107   : > { %10966 = vst [vmem:[#allocation72_spill] sm:$0xff] %v7555_v15  ;;  %v3349_v27 = vmul.f32 %v6999_v17, %v7495_v8  ;;  %v3449_v47 = vmul.f32 %v7005_v25, %v618_v23  ;;  %v3549_v31 = vmul.f32 %v7009_v56, %v718_v29  ;;  %v555_v6 = vmul.f32 %v6445_v12, %v7552_v61  ;;  %v10968_v12 = vld [vmem:[#allocation20_spill] sm:$0xff] }
 0x108   : > { %v487_v59 = vadd.f32 %v7253_v19, %v455_v32  ;;  %v1485_v26 = vadd.f32 %v1453_v7, %v1385_v54  ;;  %v3948_v16 = vmul.f32 %v7291_v45, %v7484_v38  ;;  %v7577_v52 = vmul.f32 %v7296_v4, %v7495_v8  ;;  %v7583_v32 = vld [vmem:[#allocation2 + $0xd1] sm:$0xff] }
 0x109   : > { %v3381_v33 = vadd.f32 %v3349_v27, %v3281_v11  ;;  %v2184_v15 = vadd.f32 %v2152_v28, %v2084_v36  ;;  %v655_v29 = vmul.f32 %v10962_v51, %v7564_v2  ;;  %v854_v54 = vmul.f32 %v10968_v12, %v7566_v22  ;;  %v7592_v8 = vld [vmem:[#allocation2 + $0xca] sm:$0xff]  ;;  %v7594_v27 = vld [vmem:[#allocation2 + $0xd2] sm:$0xff] }
 0x10a   : > { %10967 = vst [vmem:[#allocation73_spill] sm:$0xff] %v7577_v52  ;;  %v587_v20 = vadd.f32 %v555_v6, %v487_v59  ;;  %v2882_v7 = vadd.f32 %v2850_v49, %v2782_v46  ;;  %v7587_v11 = vadd.f32 %v3948_v16, %v3879_v53  ;;  %v7590_v38 = vmul.f32 %v7300_v60, %v618_v23  ;;  %v7600_v52 = vld [vmem:[#allocation2 + $0xcb] sm:$0xff]  ;;  %v7606_v16 = vld [vmem:[#allocation2 + $0xd3] sm:$0xff] }
 0x10b   : > { %v1154_v36 = vmul.f32 %v6559_v55, %v7544_v41  ;;  %v755_v59 = vmul.f32 %v10964_v13, %v7579_v58  ;;  %v886_v6 = vadd.f32 %v854_v54, %v786_v37  ;;  %v10971_v53 = vld [vmem:[#allocation27_spill] sm:$0xff]  ;;  %v3481_v49 = vadd.f32 %v3449_v47, %v3381_v33 }
 0x10c   : > { %10969 = vst [vmem:[#allocation74_spill] sm:$0xff] %v7587_v11  ;;  %10970 = vst [vmem:[#allocation75_spill] sm:$0xff] %v7590_v38  ;;  %v687_v28 = vadd.f32 %v655_v29, %v587_v20  ;;  %v1553_v46 = vmul.f32 %v10971_v53, %v7566_v22  ;;  %v855_v23 = vmul.f32 %v10968_v12, %v7583_v32  ;;  %v10972_v11 = vld [vmem:[#allocation22_spill] sm:$0xff]  ;;  %v10973_v47 = vld [vmem:[#allocation23_spill] sm:$0xff] }
 0x10d   : > { %v1186_v38 = vadd.f32 %v1154_v36, %v7467_v30  ;;  %v1254_v20 = vmul.f32 %v10918_v24, %v7552_v61  ;;  %v954_v37 = vmul.f32 %v10972_v11, %v7592_v8  ;;  %v955_v54 = vmul.f32 %v10972_v11, %v7594_v27  ;;  %v10974_v11 = vld [vmem:[#allocation28_spill] sm:$0xff] }
 0x10e   : > { %v787_v29 = vadd.f32 %v755_v59, %v687_v28  ;;  %v1585_v13 = vadd.f32 %v1553_v46, %v1485_v26  ;;  %v1054_v33 = vmul.f32 %v10973_v47, %v7600_v52  ;;  %v1354_v51 = vmul.f32 %v10963_v0, %v7564_v2  ;;  %v342_v0 = vld [vmem:[%s6238_s21 + $0x78] sm:$0xff] }
 0x10f   : > { %v1286_v12 = vadd.f32 %v1254_v20, %v1186_v38  ;;  %v1853_v30 = vmul.f32 %v6679_v35, %v7544_v41  ;;  %v986_v36 = vadd.f32 %v954_v37, %v886_v6  ;;  %v1055_v28 = vmul.f32 %v10973_v47, %v7606_v16  ;;  %375 = vst.msk [vmem:[#allocation2 + $0x150] sm:$0xff] %vm237_vm0, %v342_v0 }
 0x110   : > { %v1454_v59 = vmul.f32 %v10965_v3, %v7579_v58  ;;  %v1653_v26 = vmul.f32 %v10974_v11, %v7592_v8  ;;  %v887_v46 = vadd.f32 %v855_v23, %v787_v29  ;;  %v1953_v20 = vmul.f32 %v6683_v44, %v7552_v61 }
 0x111   : > { %v1386_v60 = vadd.f32 %v1354_v51, %v1286_v12  ;;  %v1885_v38 = vadd.f32 %v1853_v30, %v7486_v10  ;;  %v3581_v24 = vadd.f32 %v3549_v31, %v3481_v49  ;;  %v1554_v6 = vmul.f32 %v10971_v53, %v7583_v32  ;;  %v10975_v31 = vld [vmem:[#allocation29_spill] sm:$0xff] }
 0x112   : > { %v1654_v37 = vmul.f32 %v10974_v11, %v7594_v27  ;;  %v1685_v47 = vadd.f32 %v1653_v26, %v1585_v13  ;;  %v2053_v12 = vmul.f32 %v6710_v57, %v7564_v2  ;;  %v2252_v10 = vmul.f32 %v10952_v18, %v7566_v22 }
 0x113   : > { %v1486_v3 = vadd.f32 %v1454_v59, %v1386_v60  ;;  %v1985_v4 = vadd.f32 %v1953_v20, %v1885_v38  ;;  %v7640_v51 = vadd.f32 %v1054_v33, %v986_v36  ;;  %v1753_v49 = vmul.f32 %v10975_v31, %v7600_v52 }
 0x114   : > { %v1754_v23 = vmul.f32 %v10975_v31, %v7606_v16  ;;  %v2551_v13 = vmul.f32 %v6810_v50, %v7544_v41  ;;  %v987_v0 = vadd.f32 %v955_v54, %v887_v46  ;;  %v2153_v29 = vmul.f32 %v6727_v48, %v7579_v58 }
 0x115   : > { %v2085_v60 = vadd.f32 %v2053_v12, %v1985_v4  ;;  %v2284_v30 = vadd.f32 %v2252_v10, %v2184_v15  ;;  %v1586_v59 = vadd.f32 %v1554_v6, %v1486_v3  ;;  %v2651_v33 = vmul.f32 %v6829_v62, %v7552_v61  ;;  %v10976_v4 = vld [vmem:[#allocation33_spill] sm:$0xff] }
 0x116   : > { %v2583_v26 = vadd.f32 %v2551_v13, %v7497_v63  ;;  %v2950_v36 = vmul.f32 %v6935_v43, %v7566_v22  ;;  %v1785_v38 = vadd.f32 %v1753_v49, %v1685_v47  ;;  %v2253_v31 = vmul.f32 %v10952_v18, %v7583_v32 }
 0x117   : > { %v2185_v20 = vadd.f32 %v2153_v29, %v2085_v60  ;;  %v2352_v54 = vmul.f32 %v10976_v4, %v7592_v8  ;;  %v2353_v15 = vmul.f32 %v10976_v4, %v7594_v27  ;;  %v2751_v63 = vmul.f32 %v6834_v5, %v7564_v2 }
 0x118   : > { %v2683_v3 = vadd.f32 %v2651_v33, %v2583_v26  ;;  %v2982_v46 = vadd.f32 %v2950_v36, %v2882_v7  ;;  %v2452_v12 = vmul.f32 %v6740_v39, %v7600_v52  ;;  %v3050_v47 = vmul.f32 %v6947_v34, %v7592_v8 }
 0x119   : > { %v2285_v6 = vadd.f32 %v2253_v31, %v2185_v20  ;;  %v3250_v10 = vmul.f32 %v6995_v1, %v7544_v41  ;;  %v7669_v49 = vadd.f32 %v1055_v28, %v987_v0  ;;  %v1686_v13 = vadd.f32 %v1654_v37, %v1586_v59 }
 0x11a   : > { %v2384_v60 = vadd.f32 %v2352_v54, %v2284_v30  ;;  %v2783_v29 = vadd.f32 %v2751_v63, %v2683_v3  ;;  %v2851_v26 = vmul.f32 %v6848_v21, %v7579_v58  ;;  %v3082_v33 = vadd.f32 %v3050_v47, %v2982_v46  ;;  %v7686_v54 = vld [vmem:[#allocation2 + $0xe5] sm:$0xff] }
 0x11b   : > { %v3282_v7 = vadd.f32 %v3250_v10, %v7546_v42  ;;  %v3350_v31 = vmul.f32 %v6999_v17, %v7552_v61  ;;  %v2385_v36 = vadd.f32 %v2353_v15, %v2285_v6  ;;  %v2453_v20 = vmul.f32 %v6740_v39, %v7606_v16 }
 0x11c   : > { %v2951_v28 = vmul.f32 %v6935_v43, %v7583_v32  ;;  %v3150_v37 = vmul.f32 %v10911_v9, %v7600_v52  ;;  %v2883_v0 = vadd.f32 %v2851_v26, %v2783_v29  ;;  %v3450_v59 = vmul.f32 %v7005_v25, %v7564_v2  ;;  %v7696_v26 = vld [vmem:[#allocation2 + $0xe6] sm:$0xff] }
 0x11d   : > { %v3382_v30 = vadd.f32 %v3350_v31, %v3282_v7  ;;  %v3649_v42 = vmul.f32 %v7189_v14, %v7566_v22  ;;  %v7688_v15 = vadd.f32 %v1754_v23, %v1686_v13  ;;  %v2484_v3 = vadd.f32 %v2452_v12, %v2384_v60  ;;  %v10977_v13 = vld [vmem:[#allocation12_spill] sm:$0xff] }
 0x11e   : > { %v3051_v63 = vmul.f32 %v6947_v34, %v7594_v27  ;;  %v3151_v46 = vmul.f32 %v10911_v9, %v7606_v16  ;;  %v3182_v6 = vadd.f32 %v3150_v37, %v3082_v33  ;;  %v3550_v10 = vmul.f32 %v7009_v56, %v7579_v58  ;;  %v10988_v9 = vld [vmem:[#allocation25_spill] sm:$0xff] }
 0x11f   : > { %v3482_v47 = vadd.f32 %v3450_v59, %v3382_v30  ;;  %v3681_v29 = vadd.f32 %v3649_v42, %v3581_v24  ;;  %v7698_v22 = vadd.f32 %v2453_v20, %v2385_v36  ;;  %v3650_v23 = vmul.f32 %v7189_v14, %v7583_v32  ;;  %v10978_v24 = vld [vmem:[#allocation52_spill] sm:$0xff]  ;;  %v10979_v32 = vld [vmem:[#allocation13_spill] sm:$0xff]  ;;  %v10980_v59 = vld [vmem:[#allocation59_spill] sm:$0xff] }
 0x120   : > { %v3749_v12 = vmul.f32 %v10955_v40, %v7592_v8  ;;  %v456_v60 = vmul.f32 %v10977_v13, %v7686_v54  ;;  %v2983_v7 = vadd.f32 %v2951_v28, %v2883_v0  ;;  %v3750_v31 = vmul.f32 %v10955_v40, %v7594_v27  ;;  %v620_v27 = vld [vmem:[#allocation2 + $0xe7] sm:$0xff] }
 0x121   : > { %v3582_v33 = vadd.f32 %v3550_v10, %v3482_v47  ;;  %v3849_v58 = vmul.f32 %v10978_v24, %v7600_v52  ;;  %v3850_v36 = vmul.f32 %v10978_v24, %v7606_v16  ;;  %v556_v37 = vmul.f32 %v10979_v32, %v7696_v26  ;;  %v10982_v10 = vld [vmem:[#allocation24_spill] sm:$0xff] }
 0x122   : > { %v488_v20 = vadd.f32 %v7253_v19, %v456_v60  ;;  %v1155_v8 = vmul.f32 %v6559_v55, %v7686_v54  ;;  %v3781_v28 = vadd.f32 %v3749_v12, %v3681_v29  ;;  %v3949_v0 = vmul.f32 %v7291_v45, %v7544_v41  ;;  %v10983_v12 = vld [vmem:[#allocation72_spill] sm:$0xff] }
 0x123   : > { %v3682_v30 = vadd.f32 %v3650_v23, %v3582_v33  ;;  %v1854_v52 = vmul.f32 %v6679_v35, %v7686_v54  ;;  %v7723_v16 = vmul.f32 %v10980_v59, %v7552_v61  ;;  %v1255_v60 = vmul.f32 %v10982_v10, %v7696_v26  ;;  %v10985_v61 = vld [vmem:[#allocation60_spill] sm:$0xff] }
 0x124   : > { %v588_v42 = vadd.f32 %v556_v37, %v488_v20  ;;  %v1187_v47 = vadd.f32 %v1155_v8, %v7640_v51  ;;  %v3083_v24 = vadd.f32 %v3051_v63, %v2983_v7  ;;  %v1954_v29 = vmul.f32 %v6683_v44, %v7696_v26  ;;  %v10987_v20 = vld [vmem:[#allocation17_spill] sm:$0xff]  ;;  %v720_v37 = vld [vmem:[#allocation2 + $0xe8] sm:$0xff] }
 0x125   : > { %10981 = vst [vmem:[#allocation27_spill] sm:$0xff] %v7723_v16  ;;  %v1886_v23 = vadd.f32 %v1854_v52, %v1785_v38  ;;  %v2552_v41 = vmul.f32 %v6810_v50, %v7686_v54  ;;  %v7733_v33 = vadd.f32 %v3949_v0, %v10983_v12  ;;  %v7737_v16 = vmul.f32 %v10985_v61, %v7564_v2  ;;  %v7745_v2 = vld [vmem:[#allocation2 + $0xed] sm:$0xff] }
 0x126   : > { %v656_v51 = vmul.f32 %v10987_v20, %v620_v27  ;;  %v1287_v8 = vadd.f32 %v1255_v60, %v1187_v47  ;;  %v3782_v40 = vadd.f32 %v3750_v31, %v3682_v30  ;;  %v2652_v7 = vmul.f32 %v6829_v62, %v7696_v26  ;;  %v10990_v60 = vld [vmem:[#allocation26_spill] sm:$0xff] }
 0x127   : > { %10984 = vst [vmem:[#allocation72_spill] sm:$0xff] %v7733_v33  ;;  %10986 = vst [vmem:[#allocation76_spill] sm:$0xff] %v7737_v16  ;;  %v1986_v63 = vadd.f32 %v1954_v29, %v1886_v23  ;;  %v2584_v38 = vadd.f32 %v2552_v41, %v2484_v3  ;;  %v3881_v52 = vadd.f32 %v3849_v58, %v3781_v28  ;;  %v10989_v33 = vld [vmem:[#allocation18_spill] sm:$0xff]  ;;  %v343_v29 = vld [vmem:[%s6238_s21 + $0x80] sm:$0xff] }
 0x128   : > { %v688_v14 = vadd.f32 %v656_v51, %v588_v42  ;;  %v1355_v0 = vmul.f32 %v10988_v9, %v620_v27  ;;  %v3251_v12 = vmul.f32 %v6995_v1, %v7686_v54  ;;  %v7747_v16 = vadd.f32 %v3151_v46, %v3083_v24  ;;  %v7753_v42 = vld [vmem:[#allocation2 + $0xee] sm:$0xff]  ;;  %376 = vst.msk [vmem:[#allocation2 + $0x168] sm:$0xff] %vm237_vm0, %v343_v29 }
 0x129   : > { %v756_v47 = vmul.f32 %v10989_v33, %v720_v37  ;;  %v2054_v31 = vmul.f32 %v6710_v57, %v620_v27  ;;  %v2684_v3 = vadd.f32 %v2652_v7, %v2584_v38  ;;  %v1455_v23 = vmul.f32 %v10990_v60, %v720_v37  ;;  %v7780_v29 = vld [vmem:[#allocation2 + $0xf0] sm:$0xff] }
 0x12a   : > { %v1387_v30 = vadd.f32 %v1355_v0, %v1287_v8  ;;  %v2752_v58 = vmul.f32 %v6834_v5, %v620_v27  ;;  %v3283_v28 = vadd.f32 %v3251_v12, %v3182_v6  ;;  %v7756_v41 = vadd.f32 %v3850_v36, %v3782_v40  ;;  %v7765_v0 = vld [vmem:[#allocation2 + $0xef] sm:$0xff] }
 0x12b   : > { %v2086_v51 = vadd.f32 %v2054_v31, %v1986_v63  ;;  %v2154_v46 = vmul.f32 %v6727_v48, %v720_v37  ;;  %v457_v24 = vmul.f32 %v10977_v13, %v7745_v2  ;;  %v788_v38 = vadd.f32 %v756_v47, %v688_v14  ;;  %v7767_v12 = vld [vmem:[#allocation2 + $0xe9] sm:$0xff] }
 0x12c   : > { %10991 = vst [vmem:[#allocation77_spill] sm:$0xff] %v7756_v41  ;;  %v2784_v8 = vadd.f32 %v2752_v58, %v2684_v3  ;;  %v2852_v7 = vmul.f32 %v6848_v21, %v720_v37  ;;  %v3351_v6 = vmul.f32 %v6999_v17, %v7696_v26  ;;  %v3451_v40 = vmul.f32 %v7005_v25, %v620_v27 }
 0x12d   : > { %v3551_v36 = vmul.f32 %v7009_v56, %v720_v37  ;;  %v489_v63 = vadd.f32 %v7253_v19, %v457_v24  ;;  %v557_v31 = vmul.f32 %v10979_v32, %v7753_v42  ;;  %v1487_v14 = vadd.f32 %v1455_v23, %v1387_v30  ;;  %v7784_v19 = vld [vmem:[#allocation2 + $0xf1] sm:$0xff] }
 0x12e   : > { %v3383_v47 = vadd.f32 %v3351_v6, %v3283_v28  ;;  %v3950_v3 = vmul.f32 %v7291_v45, %v7686_v54  ;;  %v7778_v58 = vmul.f32 %v10980_v59, %v7696_v26  ;;  %v2186_v41 = vadd.f32 %v2154_v46, %v2086_v51  ;;  %v10993_v24 = vld [vmem:[#allocation20_spill] sm:$0xff]  ;;  %v7793_v26 = vld [vmem:[#allocation2 + $0xea] sm:$0xff] }
 0x12f   : > { %v589_v13 = vadd.f32 %v557_v31, %v489_v63  ;;  %v657_v37 = vmul.f32 %v10987_v20, %v7765_v0  ;;  %v856_v30 = vmul.f32 %v10993_v24, %v7767_v12  ;;  %v2884_v23 = vadd.f32 %v2852_v7, %v2784_v8  ;;  %v7795_v6 = vld [vmem:[#allocation2 + $0xf2] sm:$0xff] }
 0x130   : > { %10992 = vst [vmem:[#allocation78_spill] sm:$0xff] %v7778_v58  ;;  %v7788_v28 = vadd.f32 %v3950_v3, %v3881_v52  ;;  %v7791_v54 = vmul.f32 %v10985_v61, %v620_v27  ;;  %v1156_v51 = vmul.f32 %v6559_v55, %v7745_v2  ;;  %v757_v63 = vmul.f32 %v10989_v33, %v7780_v29  ;;  %v7801_v58 = vld [vmem:[#allocation2 + $0xeb] sm:$0xff]  ;;  %v7807_v7 = vld [vmem:[#allocation2 + $0xf3] sm:$0xff] }
 0x131   : > { %v689_v46 = vadd.f32 %v657_v37, %v589_v13  ;;  %v888_v31 = vadd.f32 %v856_v30, %v788_v38  ;;  %v1555_v52 = vmul.f32 %v10971_v53, %v7767_v12  ;;  %v3483_v8 = vadd.f32 %v3451_v40, %v3383_v47  ;;  %v10997_v40 = vld [vmem:[#allocation23_spill] sm:$0xff] }
 0x132   : > { %10994 = vst [vmem:[#allocation79_spill] sm:$0xff] %v7788_v28  ;;  %10995 = vst [vmem:[#allocation80_spill] sm:$0xff] %v7791_v54  ;;  %v857_v27 = vmul.f32 %v10993_v24, %v7784_v19  ;;  %v1188_v3 = vadd.f32 %v1156_v51, %v7669_v49  ;;  %v1256_v13 = vmul.f32 %v10982_v10, %v7753_v42  ;;  %v10996_v54 = vld [vmem:[#allocation22_spill] sm:$0xff] }
 0x133   : > { %v789_v37 = vadd.f32 %v757_v63, %v689_v46  ;;  %v956_v38 = vmul.f32 %v10996_v54, %v7793_v26  ;;  %v957_v30 = vmul.f32 %v10996_v54, %v7795_v6  ;;  %v1587_v28 = vadd.f32 %v1555_v52, %v1487_v14 }
 0x134   : > { %v1056_v47 = vmul.f32 %v10997_v40, %v7801_v58  ;;  %v1288_v24 = vadd.f32 %v1256_v13, %v1188_v3  ;;  %v1356_v33 = vmul.f32 %v10988_v9, %v7765_v0  ;;  %v1855_v49 = vmul.f32 %v6679_v35, %v7745_v2  ;;  %v344_v9 = vld [vmem:[%s6238_s21 + $0x88] sm:$0xff] }
 0x135   : > { %v988_v51 = vadd.f32 %v956_v38, %v888_v31  ;;  %v1057_v46 = vmul.f32 %v10997_v40, %v7807_v7  ;;  %v1456_v63 = vmul.f32 %v10990_v60, %v7780_v29  ;;  %v1655_v14 = vmul.f32 %v10974_v11, %v7793_v26  ;;  %377 = vst.msk [vmem:[#allocation2 + $0x170] sm:$0xff] %vm237_vm0, %v344_v9 }
 0x136   : > { %v889_v52 = vadd.f32 %v857_v27, %v789_v37  ;;  %v1388_v54 = vadd.f32 %v1356_v33, %v1288_v24  ;;  %v1887_v3 = vadd.f32 %v1855_v49, %v7688_v15  ;;  %v1955_v13 = vmul.f32 %v6683_v44, %v7753_v42 }
 0x137   : > { %v3583_v20 = vadd.f32 %v3551_v36, %v3483_v8  ;;  %v1556_v31 = vmul.f32 %v10971_v53, %v7784_v19  ;;  %v1656_v38 = vmul.f32 %v10974_v11, %v7795_v6  ;;  %v1687_v40 = vadd.f32 %v1655_v14, %v1587_v28  ;;  %v10998_v36 = vld [vmem:[#allocation29_spill] sm:$0xff] }
 0x138   : > { %v1488_v60 = vadd.f32 %v1456_v63, %v1388_v54  ;;  %v1987_v61 = vadd.f32 %v1955_v13, %v1887_v3  ;;  %v2055_v33 = vmul.f32 %v6710_v57, %v7765_v0  ;;  %v2254_v15 = vmul.f32 %v10952_v18, %v7767_v12 }
 0x139   : > { %v7841_v24 = vadd.f32 %v1056_v47, %v988_v51  ;;  %v1755_v8 = vmul.f32 %v10998_v36, %v7801_v58  ;;  %v1756_v27 = vmul.f32 %v10998_v36, %v7807_v7  ;;  %v2553_v28 = vmul.f32 %v6810_v50, %v7745_v2 }
 0x13a   : > { %v989_v9 = vadd.f32 %v957_v30, %v889_v52  ;;  %v2087_v54 = vadd.f32 %v2055_v33, %v1987_v61  ;;  %v2155_v37 = vmul.f32 %v6727_v48, %v7780_v29  ;;  %v2286_v49 = vadd.f32 %v2254_v15, %v2186_v41 }
 0x13b   : > { %v1588_v63 = vadd.f32 %v1556_v31, %v1488_v60  ;;  %v2585_v14 = vadd.f32 %v2553_v28, %v7698_v22  ;;  %v2653_v47 = vmul.f32 %v6829_v62, %v7753_v42  ;;  %v2952_v51 = vmul.f32 %v6935_v43, %v7767_v12 }
 0x13c   : > { %v1787_v3 = vadd.f32 %v1755_v8, %v1687_v40  ;;  %v2187_v13 = vadd.f32 %v2155_v37, %v2087_v54  ;;  %v2255_v36 = vmul.f32 %v10952_v18, %v7784_v19  ;;  %v2354_v61 = vmul.f32 %v10976_v4, %v7793_v26 }
 0x13d   : > { %v2355_v41 = vmul.f32 %v10976_v4, %v7795_v6  ;;  %v2685_v60 = vadd.f32 %v2653_v47, %v2585_v14  ;;  %v2753_v22 = vmul.f32 %v6834_v5, %v7765_v0  ;;  %v2984_v30 = vadd.f32 %v2952_v51, %v2884_v23 }
 0x13e   : > { %v2287_v52 = vadd.f32 %v2255_v36, %v2187_v13  ;;  %v2454_v31 = vmul.f32 %v6740_v39, %v7801_v58  ;;  %v3052_v40 = vmul.f32 %v6947_v34, %v7793_v26  ;;  %v3252_v33 = vmul.f32 %v6995_v1, %v7745_v2 }
 0x13f   : > { %v7870_v15 = vadd.f32 %v1057_v46, %v989_v9  ;;  %v1688_v8 = vadd.f32 %v1656_v38, %v1588_v63  ;;  %v2386_v28 = vadd.f32 %v2354_v61, %v2286_v49  ;;  %v2785_v54 = vadd.f32 %v2753_v22, %v2685_v60  ;;  %v10999_v38 = vld [vmem:[#allocation31_spill] sm:$0xff]  ;;  %v7887_v60 = vld [vmem:[#allocation2 + $0x105] sm:$0xff] }
 0x140   : > { %v2853_v37 = vmul.f32 %v6848_v21, %v7780_v29  ;;  %v3084_v14 = vadd.f32 %v3052_v40, %v2984_v30  ;;  %v3284_v23 = vadd.f32 %v3252_v33, %v7747_v16  ;;  %v3352_v36 = vmul.f32 %v6999_v17, %v7753_v42  ;;  %v11000_v16 = vld [vmem:[#allocation50_spill] sm:$0xff] }
 0x141   : > { %v2387_v47 = vadd.f32 %v2355_v41, %v2287_v52  ;;  %v2455_v51 = vmul.f32 %v6740_v39, %v7807_v7  ;;  %v2953_v46 = vmul.f32 %v6935_v43, %v7784_v19  ;;  %v3152_v9 = vmul.f32 %v10999_v38, %v7801_v58 }
 0x142   : > { %v2885_v49 = vadd.f32 %v2853_v37, %v2785_v54  ;;  %v3384_v63 = vadd.f32 %v3352_v36, %v3284_v23  ;;  %v3452_v13 = vmul.f32 %v7005_v25, %v7765_v0  ;;  %v3651_v61 = vmul.f32 %v11000_v16, %v7767_v12  ;;  %v7897_v23 = vld [vmem:[#allocation2 + $0x106] sm:$0xff] }
 0x143   : > { %v7889_v41 = vadd.f32 %v1756_v27, %v1688_v8  ;;  %v2486_v22 = vadd.f32 %v2454_v31, %v2386_v28  ;;  %v3053_v30 = vmul.f32 %v6947_v34, %v7795_v6  ;;  %v3153_v52 = vmul.f32 %v10999_v38, %v7807_v7  ;;  %v11001_v31 = vld [vmem:[#allocation51_spill] sm:$0xff]  ;;  %v11002_v28 = vld [vmem:[#allocation12_spill] sm:$0xff] }
 0x144   : > { %v3184_v40 = vadd.f32 %v3152_v9, %v3084_v14  ;;  %v3484_v33 = vadd.f32 %v3452_v13, %v3384_v63  ;;  %v3552_v54 = vmul.f32 %v7009_v56, %v7780_v29  ;;  %v3683_v37 = vadd.f32 %v3651_v61, %v3583_v20  ;;  %v11003_v20 = vld [vmem:[#allocation52_spill] sm:$0xff]  ;;  %v622_v63 = vld [vmem:[#allocation2 + $0x107] sm:$0xff] }
 0x145   : > { %v7899_v12 = vadd.f32 %v2455_v51, %v2387_v47  ;;  %v3652_v27 = vmul.f32 %v11000_v16, %v7784_v19  ;;  %v3751_v8 = vmul.f32 %v11001_v31, %v7793_v26  ;;  %v458_v36 = vmul.f32 %v11002_v28, %v7887_v60  ;;  %v7916_v19 = vld [vmem:[%s10625_s2] ss:$0 sm:$0xff] }
 0x146   : > { %v2985_v38 = vadd.f32 %v2953_v46, %v2885_v49  ;;  %v3584_v14 = vadd.f32 %v3552_v54, %v3484_v33  ;;  %v3752_v9 = vmul.f32 %v11001_v31, %v7795_v6  ;;  %v3851_v29 = vmul.f32 %v11003_v20, %v7801_v58  ;;  %v11010_v16 = vld [vmem:[#allocation25_spill] sm:$0xff] }
 0x147   : > { %v3852_v47 = vmul.f32 %v11003_v20, %v7807_v7  ;;  %v490_v26 = vadd.f32 %v7916_v19, %v458_v36  ;;  %v558_v51 = vmul.f32 %v10979_v32, %v7897_v23  ;;  %v1157_v46 = vmul.f32 %v6559_v55, %v7887_v60 }
 0x148   : > { %v3684_v6 = vadd.f32 %v3652_v27, %v3584_v14  ;;  %v3783_v49 = vadd.f32 %v3751_v8, %v3683_v37  ;;  %v3951_v58 = vmul.f32 %v7291_v45, %v7745_v2  ;;  %v1856_v7 = vmul.f32 %v6679_v35, %v7887_v60  ;;  %v11005_v8 = vld [vmem:[#allocation77_spill] sm:$0xff] }
 0x149   : > { %v7929_v13 = vmul.f32 %v10980_v59, %v7753_v42  ;;  %v590_v61 = vadd.f32 %v558_v51, %v490_v26  ;;  %v1189_v33 = vadd.f32 %v1157_v46, %v7841_v24  ;;  %v1257_v54 = vmul.f32 %v10982_v10, %v7897_v23  ;;  %v11007_v42 = vld [vmem:[#allocation60_spill] sm:$0xff]  ;;  %v11009_v26 = vld [vmem:[#allocation17_spill] sm:$0xff]  ;;  %v722_v51 = vld [vmem:[#allocation2 + $0x108] sm:$0xff] }
 0x14a   : > { %v3085_v36 = vadd.f32 %v3053_v30, %v2985_v38  ;;  %v1888_v27 = vadd.f32 %v1856_v7, %v1787_v3  ;;  %v1956_v37 = vmul.f32 %v6683_v44, %v7897_v23  ;;  %v2554_v2 = vmul.f32 %v6810_v50, %v7887_v60 }
 0x14b   : > { %11004 = vst [vmem:[#allocation81_spill] sm:$0xff] %v7929_v13  ;;  %v7939_v14 = vadd.f32 %v3951_v58, %v11005_v8  ;;  %v7943_v13 = vmul.f32 %v11007_v42, %v7765_v0  ;;  %v658_v24 = vmul.f32 %v11009_v26, %v622_v63  ;;  %v1289_v46 = vadd.f32 %v1257_v54, %v1189_v33  ;;  %v7951_v0 = vld [vmem:[#allocation2 + $0x10d] sm:$0xff] }
 0x14c   : > { %v3784_v20 = vadd.f32 %v3752_v9, %v3684_v6  ;;  %v1988_v38 = vadd.f32 %v1956_v37, %v1888_v27  ;;  %v2586_v3 = vadd.f32 %v2554_v2, %v2486_v22  ;;  %v2654_v30 = vmul.f32 %v6829_v62, %v7897_v23  ;;  %v11012_v54 = vld [vmem:[#allocation26_spill] sm:$0xff]  ;;  %v345_v37 = vld [vmem:[%s6238_s21 + $0x90] sm:$0xff] }
 0x14d   : > { %11006 = vst [vmem:[#allocation77_spill] sm:$0xff] %v7939_v14  ;;  %11008 = vst [vmem:[#allocation82_spill] sm:$0xff] %v7943_v13  ;;  %v3883_v7 = vadd.f32 %v3851_v29, %v3783_v49  ;;  %v690_v31 = vadd.f32 %v658_v24, %v590_v61  ;;  %v1357_v58 = vmul.f32 %v11010_v16, %v622_v63  ;;  %v11011_v14 = vld [vmem:[#allocation18_spill] sm:$0xff] }
 0x14e   : > { %v3253_v8 = vmul.f32 %v6995_v1, %v7887_v60  ;;  %v7953_v13 = vadd.f32 %v3153_v52, %v3085_v36  ;;  %v758_v33 = vmul.f32 %v11011_v14, %v722_v51  ;;  %v2056_v9 = vmul.f32 %v6710_v57, %v622_v63  ;;  %v7959_v61 = vld [vmem:[#allocation2 + $0x10e] sm:$0xff]  ;;  %378 = vst.msk [vmem:[#allocation2 + $0x188] sm:$0xff] %vm237_vm0, %v345_v37 }
 0x14f   : > { %v2686_v22 = vadd.f32 %v2654_v30, %v2586_v3  ;;  %v1389_v6 = vadd.f32 %v1357_v58, %v1289_v46  ;;  %v1457_v27 = vmul.f32 %v11012_v54, %v722_v51  ;;  %v2754_v29 = vmul.f32 %v6834_v5, %v622_v63  ;;  %v7971_v58 = vld [vmem:[#allocation2 + $0x10f] sm:$0xff] }
 0x150   : > { %v3285_v49 = vadd.f32 %v3253_v8, %v3184_v40  ;;  %v7962_v2 = vadd.f32 %v3852_v47, %v3784_v20  ;;  %v2088_v24 = vadd.f32 %v2056_v9, %v1988_v38  ;;  %v2156_v52 = vmul.f32 %v6727_v48, %v722_v51  ;;  %v7973_v8 = vld [vmem:[#allocation2 + $0x109] sm:$0xff] }
 0x151   : > { %v459_v36 = vmul.f32 %v11002_v28, %v7951_v0  ;;  %v790_v3 = vadd.f32 %v758_v33, %v690_v31  ;;  %v2786_v46 = vadd.f32 %v2754_v29, %v2686_v22  ;;  %v2854_v30 = vmul.f32 %v6848_v21, %v722_v51  ;;  %v7986_v37 = vld [vmem:[#allocation2 + $0x110] sm:$0xff] }
 0x152   : > { %11013 = vst [vmem:[#allocation83_spill] sm:$0xff] %v7962_v2  ;;  %v3353_v40 = vmul.f32 %v6999_v17, %v7897_v23  ;;  %v3453_v20 = vmul.f32 %v7005_v25, %v622_v63  ;;  %v3553_v47 = vmul.f32 %v7009_v56, %v722_v51  ;;  %v559_v9 = vmul.f32 %v10979_v32, %v7959_v61  ;;  %v11015_v32 = vld [vmem:[#allocation20_spill] sm:$0xff] }
 0x153   : > { %v491_v38 = vadd.f32 %v7916_v19, %v459_v36  ;;  %v1489_v31 = vadd.f32 %v1457_v27, %v1389_v6  ;;  %v3952_v22 = vmul.f32 %v7291_v45, %v7887_v60  ;;  %v7984_v29 = vmul.f32 %v10980_v59, %v7897_v23  ;;  %v7990_v36 = vld [vmem:[#allocation2 + $0x111] sm:$0xff] }
 0x154   : > { %v3385_v33 = vadd.f32 %v3353_v40, %v3285_v49  ;;  %v2188_v2 = vadd.f32 %v2156_v52, %v2088_v24  ;;  %v659_v51 = vmul.f32 %v11009_v26, %v7971_v58  ;;  %v858_v6 = vmul.f32 %v11015_v32, %v7973_v8  ;;  %v7999_v23 = vld [vmem:[#allocation2 + $0x10a] sm:$0xff]  ;;  %v8001_v40 = vld [vmem:[#allocation2 + $0x112] sm:$0xff] }
 0x155   : > { %11014 = vst [vmem:[#allocation84_spill] sm:$0xff] %v7984_v29  ;;  %v591_v28 = vadd.f32 %v559_v9, %v491_v38  ;;  %v2886_v27 = vadd.f32 %v2854_v30, %v2786_v46  ;;  %v7994_v49 = vadd.f32 %v3952_v22, %v3883_v7  ;;  %v7997_v60 = vmul.f32 %v11007_v42, %v622_v63  ;;  %v8007_v29 = vld [vmem:[#allocation2 + $0x10b] sm:$0xff]  ;;  %v8013_v30 = vld [vmem:[#allocation2 + $0x113] sm:$0xff] }
 0x156   : > { %v1158_v24 = vmul.f32 %v6559_v55, %v7951_v0  ;;  %v759_v38 = vmul.f32 %v11011_v14, %v7986_v37  ;;  %v890_v9 = vadd.f32 %v858_v6, %v790_v3  ;;  %v1557_v7 = vmul.f32 %v10971_v53, %v7973_v8 }
 0x157   : > { %11016 = vst [vmem:[#allocation85_spill] sm:$0xff] %v7994_v49  ;;  %11017 = vst [vmem:[#allocation86_spill] sm:$0xff] %v7997_v60  ;;  %v691_v52 = vadd.f32 %v659_v51, %v591_v28  ;;  %v3485_v46 = vadd.f32 %v3453_v20, %v3385_v33  ;;  %v859_v63 = vmul.f32 %v11015_v32, %v7990_v36  ;;  %v11018_v60 = vld [vmem:[#allocation22_spill] sm:$0xff]  ;;  %v11019_v20 = vld [vmem:[#allocation23_spill] sm:$0xff] }
 0x158   : > { %v1190_v22 = vadd.f32 %v1158_v24, %v7870_v15  ;;  %v1258_v28 = vmul.f32 %v10982_v10, %v7959_v61  ;;  %v958_v3 = vmul.f32 %v11018_v60, %v7999_v23  ;;  %v959_v6 = vmul.f32 %v11018_v60, %v8001_v40 }
 0x159   : > { %v791_v51 = vadd.f32 %v759_v38, %v691_v52  ;;  %v1589_v49 = vadd.f32 %v1557_v7, %v1489_v31  ;;  %v1058_v33 = vmul.f32 %v11019_v20, %v8007_v29  ;;  %v1358_v14 = vmul.f32 %v11010_v16, %v7971_v58  ;;  %v346_v16 = vld [vmem:[%s6238_s21 + $0x98] sm:$0xff] }
 0x15a   : > { %v1290_v32 = vadd.f32 %v1258_v28, %v1190_v22  ;;  %v1857_v15 = vmul.f32 %v6679_v35, %v7951_v0  ;;  %v990_v24 = vadd.f32 %v958_v3, %v890_v9  ;;  %v1059_v52 = vmul.f32 %v11019_v20, %v8013_v30  ;;  %379 = vst.msk [vmem:[#allocation2 + $0x190] sm:$0xff] %vm237_vm0, %v346_v16 }
 0x15b   : > { %v1458_v38 = vmul.f32 %v11012_v54, %v7986_v37  ;;  %v1657_v31 = vmul.f32 %v10974_v11, %v7999_v23  ;;  %v891_v7 = vadd.f32 %v859_v63, %v791_v51  ;;  %v1957_v28 = vmul.f32 %v6683_v44, %v7959_v61 }
 0x15c   : > { %v1390_v60 = vadd.f32 %v1358_v14, %v1290_v32  ;;  %v1889_v22 = vadd.f32 %v1857_v15, %v7889_v41  ;;  %v3585_v26 = vadd.f32 %v3553_v47, %v3485_v46  ;;  %v1558_v9 = vmul.f32 %v10971_v53, %v7990_v36  ;;  %v11020_v47 = vld [vmem:[#allocation29_spill] sm:$0xff] }
 0x15d   : > { %v1658_v3 = vmul.f32 %v10974_v11, %v8001_v40  ;;  %v1689_v20 = vadd.f32 %v1657_v31, %v1589_v49  ;;  %v2057_v32 = vmul.f32 %v6710_v57, %v7971_v58  ;;  %v2256_v41 = vmul.f32 %v10952_v18, %v7973_v8 }
 0x15e   : > { %v1490_v54 = vadd.f32 %v1458_v38, %v1390_v60  ;;  %v1989_v42 = vadd.f32 %v1957_v28, %v1889_v22  ;;  %v8047_v14 = vadd.f32 %v1058_v33, %v990_v24  ;;  %v1757_v46 = vmul.f32 %v11020_v47, %v8007_v29 }
 0x15f   : > { %v1758_v63 = vmul.f32 %v11020_v47, %v8013_v30  ;;  %v2555_v49 = vmul.f32 %v6810_v50, %v7951_v0  ;;  %v991_v16 = vadd.f32 %v959_v6, %v891_v7  ;;  %v2157_v51 = vmul.f32 %v6727_v48, %v7986_v37 }
 0x160   : > { %v2089_v60 = vadd.f32 %v2057_v32, %v1989_v42  ;;  %v2288_v15 = vadd.f32 %v2256_v41, %v2188_v2  ;;  %v1590_v38 = vadd.f32 %v1558_v9, %v1490_v54  ;;  %v2655_v33 = vmul.f32 %v6829_v62, %v7959_v61 }
 0x161   : > { %v2587_v31 = vadd.f32 %v2555_v49, %v7899_v12  ;;  %v2954_v24 = vmul.f32 %v6935_v43, %v7973_v8  ;;  %v1789_v22 = vadd.f32 %v1757_v46, %v1689_v20  ;;  %v2257_v47 = vmul.f32 %v10952_v18, %v7990_v36 }
 0x162   : > { %v2189_v28 = vadd.f32 %v2157_v51, %v2089_v60  ;;  %v2356_v42 = vmul.f32 %v10976_v4, %v7999_v23  ;;  %v2357_v2 = vmul.f32 %v10976_v4, %v8001_v40  ;;  %v2755_v12 = vmul.f32 %v6834_v5, %v7971_v58 }
 0x163   : > { %v2687_v54 = vadd.f32 %v2655_v33, %v2587_v31  ;;  %v2986_v6 = vadd.f32 %v2954_v24, %v2886_v27  ;;  %v2456_v9 = vmul.f32 %v6740_v39, %v8007_v29  ;;  %v3054_v20 = vmul.f32 %v6947_v34, %v7999_v23 }
 0x164   : > { %v2289_v7 = vadd.f32 %v2257_v47, %v2189_v28  ;;  %v3254_v32 = vmul.f32 %v6995_v1, %v7951_v0  ;;  %v8076_v41 = vadd.f32 %v1059_v52, %v991_v16  ;;  %v1690_v46 = vadd.f32 %v1658_v3, %v1590_v38  ;;  %v11021_v3 = vld [vmem:[#allocation31_spill] sm:$0xff] }
 0x165   : > { %v2388_v49 = vadd.f32 %v2356_v42, %v2288_v15  ;;  %v2787_v60 = vadd.f32 %v2755_v12, %v2687_v54  ;;  %v2855_v51 = vmul.f32 %v6848_v21, %v7986_v37  ;;  %v3086_v31 = vadd.f32 %v3054_v20, %v2986_v6  ;;  %v8093_v54 = vld [vmem:[#allocation2 + $0x125] sm:$0xff] }
 0x166   : > { %v3286_v27 = vadd.f32 %v3254_v32, %v7953_v13  ;;  %v3354_v47 = vmul.f32 %v6999_v17, %v7959_v61  ;;  %v2389_v33 = vadd.f32 %v2357_v2, %v2289_v7  ;;  %v2457_v24 = vmul.f32 %v6740_v39, %v8013_v30  ;;  %v11022_v13 = vld [vmem:[#allocation50_spill] sm:$0xff] }
 0x167   : > { %v2955_v52 = vmul.f32 %v6935_v43, %v7990_v36  ;;  %v3154_v16 = vmul.f32 %v11021_v3, %v8007_v29  ;;  %v2887_v15 = vadd.f32 %v2855_v51, %v2787_v60  ;;  %v3454_v28 = vmul.f32 %v7005_v25, %v7971_v58 }
 0x168   : > { %v3386_v38 = vadd.f32 %v3354_v47, %v3286_v27  ;;  %v3653_v42 = vmul.f32 %v11022_v13, %v7973_v8  ;;  %v8095_v2 = vadd.f32 %v1758_v63, %v1690_v46  ;;  %v2488_v12 = vadd.f32 %v2456_v9, %v2388_v49  ;;  %v8103_v27 = vld [vmem:[#allocation2 + $0x126] sm:$0xff]  ;;  %v11023_v9 = vld [vmem:[#allocation51_spill] sm:$0xff]  ;;  %v11024_v49 = vld [vmem:[#allocation12_spill] sm:$0xff] }
 0x169   : > { %v3055_v6 = vmul.f32 %v6947_v34, %v8001_v40  ;;  %v3155_v7 = vmul.f32 %v11021_v3, %v8013_v30  ;;  %v3186_v20 = vadd.f32 %v3154_v16, %v3086_v31  ;;  %v3554_v60 = vmul.f32 %v7009_v56, %v7986_v37 }
 0x16a   : > { %v3486_v32 = vadd.f32 %v3454_v28, %v3386_v38  ;;  %v3685_v51 = vadd.f32 %v3653_v42, %v3585_v26  ;;  %v8105_v8 = vadd.f32 %v2457_v24, %v2389_v33  ;;  %v3654_v63 = vmul.f32 %v11022_v13, %v7990_v36  ;;  %v11025_v26 = vld [vmem:[#allocation52_spill] sm:$0xff]  ;;  %v11026_v36 = vld [vmem:[#allocation13_spill] sm:$0xff] }
 0x16b   : > { %v3753_v46 = vmul.f32 %v11023_v9, %v7999_v23  ;;  %v460_v47 = vmul.f32 %v11024_v49, %v8093_v54  ;;  %v2987_v3 = vadd.f32 %v2955_v52, %v2887_v15  ;;  %v3754_v16 = vmul.f32 %v11023_v9, %v8001_v40  ;;  %v624_v40 = vld [vmem:[#allocation2 + $0x127] sm:$0xff] }
 0x16c   : > { %v3586_v31 = vadd.f32 %v3554_v60, %v3486_v32  ;;  %v3853_v37 = vmul.f32 %v11025_v26, %v8007_v29  ;;  %v3854_v33 = vmul.f32 %v11025_v26, %v8013_v30  ;;  %v560_v38 = vmul.f32 %v11026_v36, %v8103_v27  ;;  %v11033_v13 = vld [vmem:[#allocation25_spill] sm:$0xff] }
 0x16d   : > { %v492_v24 = vadd.f32 %v7916_v19, %v460_v47  ;;  %v1159_v23 = vmul.f32 %v6559_v55, %v8093_v54  ;;  %v3785_v52 = vadd.f32 %v3753_v46, %v3685_v51  ;;  %v3953_v15 = vmul.f32 %v7291_v45, %v7951_v0  ;;  %v11028_v46 = vld [vmem:[#allocation83_spill] sm:$0xff] }
 0x16e   : > { %v3686_v28 = vadd.f32 %v3654_v63, %v3586_v31  ;;  %v1858_v29 = vmul.f32 %v6679_v35, %v8093_v54  ;;  %v8130_v30 = vmul.f32 %v10980_v59, %v7959_v61  ;;  %v1259_v60 = vmul.f32 %v10982_v10, %v8103_v27  ;;  %v11030_v61 = vld [vmem:[#allocation60_spill] sm:$0xff] }
 0x16f   : > { %v592_v42 = vadd.f32 %v560_v38, %v492_v24  ;;  %v1191_v32 = vadd.f32 %v1159_v23, %v8047_v14  ;;  %v3087_v47 = vadd.f32 %v3055_v6, %v2987_v3  ;;  %v1958_v51 = vmul.f32 %v6683_v44, %v8103_v27  ;;  %v11032_v24 = vld [vmem:[#allocation17_spill] sm:$0xff]  ;;  %v724_v38 = vld [vmem:[#allocation2 + $0x128] sm:$0xff] }
 0x170   : > { %11027 = vst [vmem:[#allocation87_spill] sm:$0xff] %v8130_v30  ;;  %v1890_v63 = vadd.f32 %v1858_v29, %v1789_v22  ;;  %v2556_v0 = vmul.f32 %v6810_v50, %v8093_v54  ;;  %v8140_v31 = vadd.f32 %v3953_v15, %v11028_v46  ;;  %v8144_v30 = vmul.f32 %v11030_v61, %v7971_v58  ;;  %v8152_v58 = vld [vmem:[#allocation2 + $0x12d] sm:$0xff] }
 0x171   : > { %v660_v14 = vmul.f32 %v11032_v24, %v624_v40  ;;  %v1291_v23 = vadd.f32 %v1259_v60, %v1191_v32  ;;  %v3786_v26 = vadd.f32 %v3754_v16, %v3686_v28  ;;  %v2656_v6 = vmul.f32 %v6829_v62, %v8103_v27  ;;  %v11035_v60 = vld [vmem:[#allocation26_spill] sm:$0xff] }
 0x172   : > { %11029 = vst [vmem:[#allocation83_spill] sm:$0xff] %v8140_v31  ;;  %11031 = vst [vmem:[#allocation88_spill] sm:$0xff] %v8144_v30  ;;  %v1990_v3 = vadd.f32 %v1958_v51, %v1890_v63  ;;  %v2588_v22 = vadd.f32 %v2556_v0, %v2488_v12  ;;  %v3885_v29 = vadd.f32 %v3853_v37, %v3785_v52  ;;  %v11034_v31 = vld [vmem:[#allocation18_spill] sm:$0xff]  ;;  %v347_v51 = vld [vmem:[%s6238_s21 + $0xa0] sm:$0xff] }
 0x173   : > { %v692_v9 = vadd.f32 %v660_v14, %v592_v42  ;;  %v1359_v15 = vmul.f32 %v11033_v13, %v624_v40  ;;  %v3255_v46 = vmul.f32 %v6995_v1, %v8093_v54  ;;  %v8154_v30 = vadd.f32 %v3155_v7, %v3087_v47  ;;  %v8160_v42 = vld [vmem:[#allocation2 + $0x12e] sm:$0xff]  ;;  %380 = vst.msk [vmem:[#allocation2 + $0x1a8] sm:$0xff] %vm237_vm0, %v347_v51 }
 0x174   : > { %v760_v32 = vmul.f32 %v11034_v31, %v724_v38  ;;  %v2058_v16 = vmul.f32 %v6710_v57, %v624_v40  ;;  %v2688_v12 = vadd.f32 %v2656_v6, %v2588_v22  ;;  %v1459_v63 = vmul.f32 %v11035_v60, %v724_v38  ;;  %v8187_v51 = vld [vmem:[#allocation2 + $0x130] sm:$0xff] }
 0x175   : > { %v1391_v28 = vadd.f32 %v1359_v15, %v1291_v23  ;;  %v2756_v37 = vmul.f32 %v6834_v5, %v624_v40  ;;  %v3287_v52 = vadd.f32 %v3255_v46, %v3186_v20  ;;  %v8163_v0 = vadd.f32 %v3854_v33, %v3786_v26  ;;  %v8172_v15 = vld [vmem:[#allocation2 + $0x12f] sm:$0xff] }
 0x176   : > { %v2090_v14 = vadd.f32 %v2058_v16, %v1990_v3  ;;  %v2158_v7 = vmul.f32 %v6727_v48, %v724_v38  ;;  %v461_v47 = vmul.f32 %v11024_v49, %v8152_v58  ;;  %v792_v22 = vadd.f32 %v760_v32, %v692_v9  ;;  %v8174_v46 = vld [vmem:[#allocation2 + $0x129] sm:$0xff] }
 0x177   : > { %11036 = vst [vmem:[#allocation89_spill] sm:$0xff] %v8163_v0  ;;  %v2788_v23 = vadd.f32 %v2756_v37, %v2688_v12  ;;  %v2856_v6 = vmul.f32 %v6848_v21, %v724_v38  ;;  %v3355_v20 = vmul.f32 %v6999_v17, %v8103_v27  ;;  %v3455_v26 = vmul.f32 %v7005_v25, %v624_v40 }
 0x178   : > { %v3555_v33 = vmul.f32 %v7009_v56, %v724_v38  ;;  %v493_v3 = vadd.f32 %v7916_v19, %v461_v47  ;;  %v561_v16 = vmul.f32 %v11026_v36, %v8160_v42  ;;  %v1491_v9 = vadd.f32 %v1459_v63, %v1391_v28  ;;  %v8191_v47 = vld [vmem:[#allocation2 + $0x131] sm:$0xff] }
 0x179   : > { %v3387_v32 = vadd.f32 %v3355_v20, %v3287_v52  ;;  %v3954_v12 = vmul.f32 %v7291_v45, %v8093_v54  ;;  %v8185_v37 = vmul.f32 %v10980_v59, %v8103_v27  ;;  %v2190_v0 = vadd.f32 %v2158_v7, %v2090_v14  ;;  %v11038_v36 = vld [vmem:[#allocation20_spill] sm:$0xff]  ;;  %v8200_v27 = vld [vmem:[#allocation2 + $0x12a] sm:$0xff] }
 0x17a   : > { %v593_v49 = vadd.f32 %v561_v16, %v493_v3  ;;  %v661_v38 = vmul.f32 %v11032_v24, %v8172_v15  ;;  %v860_v28 = vmul.f32 %v11038_v36, %v8174_v46  ;;  %v2888_v63 = vadd.f32 %v2856_v6, %v2788_v23  ;;  %v8202_v20 = vld [vmem:[#allocation2 + $0x132] sm:$0xff] }
 0x17b   : > { %11037 = vst [vmem:[#allocation90_spill] sm:$0xff] %v8185_v37  ;;  %v8195_v52 = vadd.f32 %v3954_v12, %v3885_v29  ;;  %v8198_v54 = vmul.f32 %v11030_v61, %v624_v40  ;;  %v1160_v14 = vmul.f32 %v6559_v55, %v8152_v58  ;;  %v761_v3 = vmul.f32 %v11034_v31, %v8187_v51  ;;  %v8208_v37 = vld [vmem:[#allocation2 + $0x12b] sm:$0xff]  ;;  %v8214_v6 = vld [vmem:[#allocation2 + $0x133] sm:$0xff] }
 0x17c   : > { %v693_v7 = vadd.f32 %v661_v38, %v593_v49  ;;  %v892_v16 = vadd.f32 %v860_v28, %v792_v22  ;;  %v1559_v29 = vmul.f32 %v10971_v53, %v8174_v46  ;;  %v3487_v23 = vadd.f32 %v3455_v26, %v3387_v32  ;;  %v11042_v26 = vld [vmem:[#allocation23_spill] sm:$0xff] }
 0x17d   : > { %11039 = vst [vmem:[#allocation91_spill] sm:$0xff] %v8195_v52  ;;  %11040 = vst [vmem:[#allocation92_spill] sm:$0xff] %v8198_v54  ;;  %v861_v40 = vmul.f32 %v11038_v36, %v8191_v47  ;;  %v1192_v12 = vadd.f32 %v1160_v14, %v8076_v41  ;;  %v1260_v49 = vmul.f32 %v10982_v10, %v8160_v42  ;;  %v11041_v54 = vld [vmem:[#allocation22_spill] sm:$0xff] }
 0x17e   : > { %v793_v38 = vadd.f32 %v761_v3, %v693_v7  ;;  %v960_v22 = vmul.f32 %v11041_v54, %v8200_v27  ;;  %v961_v28 = vmul.f32 %v11041_v54, %v8202_v20  ;;  %v1591_v52 = vadd.f32 %v1559_v29, %v1491_v9 }
 0x17f   : > { %v1060_v32 = vmul.f32 %v11042_v26, %v8208_v37  ;;  %v1292_v36 = vadd.f32 %v1260_v49, %v1192_v12  ;;  %v1360_v31 = vmul.f32 %v11033_v13, %v8172_v15  ;;  %v1859_v41 = vmul.f32 %v6679_v35, %v8152_v58  ;;  %v348_v13 = vld [vmem:[%s6238_s21 + $0xa8] sm:$0xff] }
 0x180   : > { %v992_v14 = vadd.f32 %v960_v22, %v892_v16  ;;  %v1061_v7 = vmul.f32 %v11042_v26, %v8214_v6  ;;  %v1460_v3 = vmul.f32 %v11035_v60, %v8187_v51  ;;  %v1659_v9 = vmul.f32 %v10974_v11, %v8200_v27  ;;  %381 = vst.msk [vmem:[#allocation2 + $0x1b0] sm:$0xff] %vm237_vm0, %v348_v13 }
 0x181   : > { %v893_v29 = vadd.f32 %v861_v40, %v793_v38  ;;  %v1392_v54 = vadd.f32 %v1360_v31, %v1292_v36  ;;  %v1891_v12 = vadd.f32 %v1859_v41, %v8095_v2  ;;  %v1959_v49 = vmul.f32 %v6683_v44, %v8160_v42 }
 0x182   : > { %v3587_v24 = vadd.f32 %v3555_v33, %v3487_v23  ;;  %v1560_v16 = vmul.f32 %v10971_v53, %v8191_v47  ;;  %v1660_v22 = vmul.f32 %v10974_v11, %v8202_v20  ;;  %v1691_v26 = vadd.f32 %v1659_v9, %v1591_v52  ;;  %v11043_v33 = vld [vmem:[#allocation29_spill] sm:$0xff] }
 0x183   : > { %v1492_v60 = vadd.f32 %v1460_v3, %v1392_v54  ;;  %v1991_v61 = vadd.f32 %v1959_v49, %v1891_v12  ;;  %v2059_v36 = vmul.f32 %v6710_v57, %v8172_v15  ;;  %v2258_v2 = vmul.f32 %v10952_v18, %v8174_v46 }
 0x184   : > { %v8248_v31 = vadd.f32 %v1060_v32, %v992_v14  ;;  %v1759_v23 = vmul.f32 %v11043_v33, %v8208_v37  ;;  %v1760_v40 = vmul.f32 %v11043_v33, %v8214_v6  ;;  %v2557_v52 = vmul.f32 %v6810_v50, %v8152_v58 }
 0x185   : > { %v993_v13 = vadd.f32 %v961_v28, %v893_v29  ;;  %v2091_v54 = vadd.f32 %v2059_v36, %v1991_v61  ;;  %v2159_v38 = vmul.f32 %v6727_v48, %v8187_v51  ;;  %v2290_v41 = vadd.f32 %v2258_v2, %v2190_v0 }
 0x186   : > { %v1592_v3 = vadd.f32 %v1560_v16, %v1492_v60  ;;  %v2589_v9 = vadd.f32 %v2557_v52, %v8105_v8  ;;  %v2657_v32 = vmul.f32 %v6829_v62, %v8160_v42  ;;  %v2956_v14 = vmul.f32 %v6935_v43, %v8174_v46 }
 0x187   : > { %v1791_v12 = vadd.f32 %v1759_v23, %v1691_v26  ;;  %v2191_v49 = vadd.f32 %v2159_v38, %v2091_v54  ;;  %v2259_v33 = vmul.f32 %v10952_v18, %v8191_v47  ;;  %v2358_v61 = vmul.f32 %v10976_v4, %v8200_v27 }
 0x188   : > { %v2359_v0 = vmul.f32 %v10976_v4, %v8202_v20  ;;  %v2689_v60 = vadd.f32 %v2657_v32, %v2589_v9  ;;  %v2757_v8 = vmul.f32 %v6834_v5, %v8172_v15  ;;  %v2988_v28 = vadd.f32 %v2956_v14, %v2888_v63 }
 0x189   : > { %v2291_v29 = vadd.f32 %v2259_v33, %v2191_v49  ;;  %v2458_v16 = vmul.f32 %v6740_v39, %v8208_v37  ;;  %v3056_v26 = vmul.f32 %v6947_v34, %v8200_v27  ;;  %v3256_v36 = vmul.f32 %v6995_v1, %v8152_v58 }
 0x18a   : > { %v8277_v2 = vadd.f32 %v1061_v7, %v993_v13  ;;  %v1692_v23 = vadd.f32 %v1660_v22, %v1592_v3  ;;  %v2390_v52 = vadd.f32 %v2358_v61, %v2290_v41  ;;  %v2789_v54 = vadd.f32 %v2757_v8, %v2689_v60  ;;  %v11044_v22 = vld [vmem:[#allocation31_spill] sm:$0xff]  ;;  %v8294_v60 = vld [vmem:[#allocation2 + $0x145] sm:$0xff] }
 0x18b   : > { %v2857_v38 = vmul.f32 %v6848_v21, %v8187_v51  ;;  %v3088_v9 = vadd.f32 %v3056_v26, %v2988_v28  ;;  %v3288_v63 = vadd.f32 %v3256_v36, %v8154_v30  ;;  %v3356_v33 = vmul.f32 %v6999_v17, %v8160_v42  ;;  %v11045_v30 = vld [vmem:[#allocation50_spill] sm:$0xff] }
 0x18c   : > { %v2391_v32 = vadd.f32 %v2359_v0, %v2291_v29  ;;  %v2459_v14 = vmul.f32 %v6740_v39, %v8214_v6  ;;  %v2957_v7 = vmul.f32 %v6935_v43, %v8191_v47  ;;  %v3156_v13 = vmul.f32 %v11044_v22, %v8208_v37 }
 0x18d   : > { %v2889_v41 = vadd.f32 %v2857_v38, %v2789_v54  ;;  %v3388_v3 = vadd.f32 %v3356_v33, %v3288_v63  ;;  %v3456_v49 = vmul.f32 %v7005_v25, %v8172_v15  ;;  %v3655_v61 = vmul.f32 %v11045_v30, %v8174_v46  ;;  %v8304_v63 = vld [vmem:[#allocation2 + $0x146] sm:$0xff] }
 0x18e   : > { %v8296_v0 = vadd.f32 %v1760_v40, %v1692_v23  ;;  %v2490_v8 = vadd.f32 %v2458_v16, %v2390_v52  ;;  %v3057_v28 = vmul.f32 %v6947_v34, %v8202_v20  ;;  %v3157_v29 = vmul.f32 %v11044_v22, %v8214_v6  ;;  %v11046_v16 = vld [vmem:[#allocation51_spill] sm:$0xff]  ;;  %v11047_v52 = vld [vmem:[#allocation12_spill] sm:$0xff] }
 0x18f   : > { %v3188_v26 = vadd.f32 %v3156_v13, %v3088_v9  ;;  %v3488_v36 = vadd.f32 %v3456_v49, %v3388_v3  ;;  %v3556_v54 = vmul.f32 %v7009_v56, %v8187_v51  ;;  %v3687_v38 = vadd.f32 %v3655_v61, %v3587_v24  ;;  %v11048_v24 = vld [vmem:[#allocation52_spill] sm:$0xff] }
 0x190   : > { %v8306_v46 = vadd.f32 %v2459_v14, %v2391_v32  ;;  %v3656_v40 = vmul.f32 %v11045_v30, %v8191_v47  ;;  %v3755_v23 = vmul.f32 %v11046_v16, %v8200_v27  ;;  %v462_v33 = vmul.f32 %v11047_v52, %v8294_v60  ;;  %v11049_v47 = vld [vmem:[#allocation13_spill] sm:$0xff] }
 0x191   : > { %v2989_v22 = vadd.f32 %v2957_v7, %v2889_v41  ;;  %v3588_v9 = vadd.f32 %v3556_v54, %v3488_v36  ;;  %v3756_v13 = vmul.f32 %v11046_v16, %v8202_v20  ;;  %v3855_v51 = vmul.f32 %v11048_v24, %v8208_v37  ;;  %v626_v20 = vld [vmem:[#allocation2 + $0x147] sm:$0xff] }
 0x192   : > { %v3856_v32 = vmul.f32 %v11048_v24, %v8214_v6  ;;  %v494_v14 = vadd.f32 %v7916_v19, %v462_v33  ;;  %v562_v3 = vmul.f32 %v11049_v47, %v8304_v63  ;;  %v1161_v27 = vmul.f32 %v6559_v55, %v8294_v60  ;;  %v11056_v30 = vld [vmem:[#allocation25_spill] sm:$0xff] }
 0x193   : > { %v3688_v49 = vadd.f32 %v3656_v40, %v3588_v9  ;;  %v3787_v7 = vadd.f32 %v3755_v23, %v3687_v38  ;;  %v3955_v41 = vmul.f32 %v7291_v45, %v8152_v58  ;;  %v1860_v37 = vmul.f32 %v6679_v35, %v8294_v60  ;;  %v11051_v23 = vld [vmem:[#allocation89_spill] sm:$0xff] }
 0x194   : > { %v8331_v6 = vmul.f32 %v10980_v59, %v8160_v42  ;;  %v594_v61 = vadd.f32 %v562_v3, %v494_v14  ;;  %v1193_v36 = vadd.f32 %v1161_v27, %v8248_v31  ;;  %v1261_v54 = vmul.f32 %v10982_v10, %v8304_v63  ;;  %v11053_v42 = vld [vmem:[#allocation60_spill] sm:$0xff]  ;;  %v11055_v14 = vld [vmem:[#allocation17_spill] sm:$0xff]  ;;  %v726_v3 = vld [vmem:[#allocation2 + $0x148] sm:$0xff] }
 0x195   : > { %v3089_v33 = vadd.f32 %v3057_v28, %v2989_v22  ;;  %v1892_v40 = vadd.f32 %v1860_v37, %v1791_v12  ;;  %v1960_v38 = vmul.f32 %v6683_v44, %v8304_v63  ;;  %v2558_v58 = vmul.f32 %v6810_v50, %v8294_v60 }
 0x196   : > { %11050 = vst [vmem:[#allocation93_spill] sm:$0xff] %v8331_v6  ;;  %v8341_v9 = vadd.f32 %v3955_v41, %v11051_v23  ;;  %v8345_v6 = vmul.f32 %v11053_v42, %v8172_v15  ;;  %v662_v31 = vmul.f32 %v11055_v14, %v626_v20  ;;  %v1293_v27 = vadd.f32 %v1261_v54, %v1193_v36  ;;  %v8353_v15 = vld [vmem:[#allocation2 + $0x14d] sm:$0xff] }
 0x197   : > { %v3788_v24 = vadd.f32 %v3756_v13, %v3688_v49  ;;  %v1992_v22 = vadd.f32 %v1960_v38, %v1892_v40  ;;  %v2590_v12 = vadd.f32 %v2558_v58, %v2490_v8  ;;  %v2658_v28 = vmul.f32 %v6829_v62, %v8304_v63  ;;  %v11058_v54 = vld [vmem:[#allocation26_spill] sm:$0xff]  ;;  %v349_v38 = vld [vmem:[%s6238_s21 + $0xb0] sm:$0xff] }
 0x198   : > { %11052 = vst [vmem:[#allocation89_spill] sm:$0xff] %v8341_v9  ;;  %11054 = vst [vmem:[#allocation94_spill] sm:$0xff] %v8345_v6  ;;  %v3887_v37 = vadd.f32 %v3855_v51, %v3787_v7  ;;  %v694_v16 = vadd.f32 %v662_v31, %v594_v61  ;;  %v1361_v41 = vmul.f32 %v11056_v30, %v626_v20  ;;  %v11057_v9 = vld [vmem:[#allocation18_spill] sm:$0xff] }
 0x199   : > { %v3257_v23 = vmul.f32 %v6995_v1, %v8294_v60  ;;  %v8355_v6 = vadd.f32 %v3157_v29, %v3089_v33  ;;  %v762_v36 = vmul.f32 %v11057_v9, %v726_v3  ;;  %v2060_v13 = vmul.f32 %v6710_v57, %v626_v20  ;;  %v8361_v61 = vld [vmem:[#allocation2 + $0x14e] sm:$0xff]  ;;  %382 = vst.msk [vmem:[#allocation2 + $0x1c8] sm:$0xff] %vm237_vm0, %v349_v38 }
 0x19a   : > { %v2690_v8 = vadd.f32 %v2658_v28, %v2590_v12  ;;  %v1393_v49 = vadd.f32 %v1361_v41, %v1293_v27  ;;  %v1461_v40 = vmul.f32 %v11058_v54, %v726_v3  ;;  %v2758_v51 = vmul.f32 %v6834_v5, %v626_v20  ;;  %v8373_v41 = vld [vmem:[#allocation2 + $0x14f] sm:$0xff] }
 0x19b   : > { %v3289_v7 = vadd.f32 %v3257_v23, %v3188_v26  ;;  %v8364_v58 = vadd.f32 %v3856_v32, %v3788_v24  ;;  %v2092_v31 = vadd.f32 %v2060_v13, %v1992_v22  ;;  %v2160_v29 = vmul.f32 %v6727_v48, %v726_v3  ;;  %v8375_v23 = vld [vmem:[#allocation2 + $0x149] sm:$0xff] }
 0x19c   : > { %v463_v33 = vmul.f32 %v11047_v52, %v8353_v15  ;;  %v794_v12 = vadd.f32 %v762_v36, %v694_v16  ;;  %v2790_v27 = vadd.f32 %v2758_v51, %v2690_v8  ;;  %v2858_v28 = vmul.f32 %v6848_v21, %v726_v3  ;;  %v8388_v38 = vld [vmem:[#allocation2 + $0x150] sm:$0xff] }
 0x19d   : > { %11059 = vst [vmem:[#allocation95_spill] sm:$0xff] %v8364_v58  ;;  %v3357_v26 = vmul.f32 %v6999_v17, %v8304_v63  ;;  %v3457_v24 = vmul.f32 %v7005_v25, %v626_v20  ;;  %v3557_v32 = vmul.f32 %v7009_v56, %v726_v3  ;;  %v563_v13 = vmul.f32 %v11049_v47, %v8361_v61  ;;  %v11061_v47 = vld [vmem:[#allocation20_spill] sm:$0xff] }
 0x19e   : > { %v495_v22 = vadd.f32 %v7916_v19, %v463_v33  ;;  %v1493_v16 = vadd.f32 %v1461_v40, %v1393_v49  ;;  %v3956_v8 = vmul.f32 %v7291_v45, %v8294_v60  ;;  %v8386_v51 = vmul.f32 %v10980_v59, %v8304_v63  ;;  %v8392_v33 = vld [vmem:[#allocation2 + $0x151] sm:$0xff] }
 0x19f   : > { %v3389_v36 = vadd.f32 %v3357_v26, %v3289_v7  ;;  %v2192_v58 = vadd.f32 %v2160_v29, %v2092_v31  ;;  %v663_v3 = vmul.f32 %v11055_v14, %v8373_v41  ;;  %v862_v49 = vmul.f32 %v11061_v47, %v8375_v23  ;;  %v8401_v63 = vld [vmem:[#allocation2 + $0x14a] sm:$0xff]  ;;  %v8403_v26 = vld [vmem:[#allocation2 + $0x152] sm:$0xff] }
 0x1a0   : > { %11060 = vst [vmem:[#allocation96_spill] sm:$0xff] %v8386_v51  ;;  %v595_v52 = vadd.f32 %v563_v13, %v495_v22  ;;  %v2890_v40 = vadd.f32 %v2858_v28, %v2790_v27  ;;  %v8396_v7 = vadd.f32 %v3956_v8, %v3887_v37  ;;  %v8399_v60 = vmul.f32 %v11053_v42, %v626_v20  ;;  %v8409_v51 = vld [vmem:[#allocation2 + $0x14b] sm:$0xff]  ;;  %v8415_v28 = vld [vmem:[#allocation2 + $0x153] sm:$0xff] }
 0x1a1   : > { %v1162_v31 = vmul.f32 %v6559_v55, %v8353_v15  ;;  %v763_v22 = vmul.f32 %v11057_v9, %v8388_v38  ;;  %v894_v13 = vadd.f32 %v862_v49, %v794_v12  ;;  %v1561_v37 = vmul.f32 %v10971_v53, %v8375_v23 }
 0x1a2   : > { %11062 = vst [vmem:[#allocation97_spill] sm:$0xff] %v8396_v7  ;;  %11063 = vst [vmem:[#allocation98_spill] sm:$0xff] %v8399_v60  ;;  %v695_v29 = vadd.f32 %v663_v3, %v595_v52  ;;  %v3489_v27 = vadd.f32 %v3457_v24, %v3389_v36  ;;  %v863_v20 = vmul.f32 %v11061_v47, %v8392_v33  ;;  %v11064_v60 = vld [vmem:[#allocation22_spill] sm:$0xff]  ;;  %v11065_v24 = vld [vmem:[#allocation23_spill] sm:$0xff] }
 0x1a3   : > { %v1194_v8 = vadd.f32 %v1162_v31, %v8277_v2  ;;  %v1262_v52 = vmul.f32 %v10982_v10, %v8361_v61  ;;  %v962_v12 = vmul.f32 %v11064_v60, %v8401_v63  ;;  %v963_v49 = vmul.f32 %v11064_v60, %v8403_v26 }
 0x1a4   : > { %v795_v3 = vadd.f32 %v763_v22, %v695_v29  ;;  %v1593_v7 = vadd.f32 %v1561_v37, %v1493_v16  ;;  %v1062_v36 = vmul.f32 %v11065_v24, %v8409_v51  ;;  %v1362_v9 = vmul.f32 %v11056_v30, %v8373_v41  ;;  %v350_v30 = vld [vmem:[%s6238_s21 + $0xb8] sm:$0xff] }
 0x1a5   : > { %v1294_v47 = vadd.f32 %v1262_v52, %v1194_v8  ;;  %v1861_v2 = vmul.f32 %v6679_v35, %v8353_v15  ;;  %v994_v31 = vadd.f32 %v962_v12, %v894_v13  ;;  %v1063_v29 = vmul.f32 %v11065_v24, %v8415_v28  ;;  %383 = vst.msk [vmem:[#allocation2 + $0x1d0] sm:$0xff] %vm237_vm0, %v350_v30 }
 0x1a6   : > { %v1462_v22 = vmul.f32 %v11058_v54, %v8388_v38  ;;  %v1661_v16 = vmul.f32 %v10974_v11, %v8401_v63  ;;  %v895_v37 = vadd.f32 %v863_v20, %v795_v3  ;;  %v1961_v52 = vmul.f32 %v6683_v44, %v8361_v61 }
 0x1a7   : > { %v1394_v60 = vadd.f32 %v1362_v9, %v1294_v47  ;;  %v1893_v8 = vadd.f32 %v1861_v2, %v8296_v0  ;;  %v3589_v14 = vadd.f32 %v3557_v32, %v3489_v27  ;;  %v1562_v13 = vmul.f32 %v10971_v53, %v8392_v33  ;;  %v11066_v32 = vld [vmem:[#allocation29_spill] sm:$0xff] }
 0x1a8   : > { %v1662_v12 = vmul.f32 %v10974_v11, %v8403_v26  ;;  %v1693_v24 = vadd.f32 %v1661_v16, %v1593_v7  ;;  %v2061_v47 = vmul.f32 %v6710_v57, %v8373_v41  ;;  %v2260_v0 = vmul.f32 %v10952_v18, %v8375_v23 }
 0x1a9   : > { %v1494_v54 = vadd.f32 %v1462_v22, %v1394_v60  ;;  %v1993_v42 = vadd.f32 %v1961_v52, %v1893_v8  ;;  %v8449_v9 = vadd.f32 %v1062_v36, %v994_v31  ;;  %v1761_v27 = vmul.f32 %v11066_v32, %v8409_v51 }
 0x1aa   : > { %v1762_v20 = vmul.f32 %v11066_v32, %v8415_v28  ;;  %v2559_v7 = vmul.f32 %v6810_v50, %v8353_v15  ;;  %v995_v30 = vadd.f32 %v963_v49, %v895_v37  ;;  %v2161_v3 = vmul.f32 %v6727_v48, %v8388_v38 }
 0x1ab   : > { %v2093_v60 = vadd.f32 %v2061_v47, %v1993_v42  ;;  %v2292_v2 = vadd.f32 %v2260_v0, %v2192_v58  ;;  %v1594_v22 = vadd.f32 %v1562_v13, %v1494_v54  ;;  %v2659_v36 = vmul.f32 %v6829_v62, %v8361_v61 }
 0x1ac   : > { %v2591_v16 = vadd.f32 %v2559_v7, %v8306_v46  ;;  %v2958_v31 = vmul.f32 %v6935_v43, %v8375_v23  ;;  %v1793_v8 = vadd.f32 %v1761_v27, %v1693_v24  ;;  %v2261_v32 = vmul.f32 %v10952_v18, %v8392_v33 }
 0x1ad   : > { %v2193_v52 = vadd.f32 %v2161_v3, %v2093_v60  ;;  %v2360_v42 = vmul.f32 %v10976_v4, %v8401_v63  ;;  %v2361_v58 = vmul.f32 %v10976_v4, %v8403_v26  ;;  %v2759_v46 = vmul.f32 %v6834_v5, %v8373_v41 }
 0x1ae   : > { %v2691_v54 = vadd.f32 %v2659_v36, %v2591_v16  ;;  %v2990_v49 = vadd.f32 %v2958_v31, %v2890_v40  ;;  %v2460_v13 = vmul.f32 %v6740_v39, %v8409_v51  ;;  %v3058_v24 = vmul.f32 %v6947_v34, %v8401_v63 }
 0x1af   : > { %v2293_v37 = vadd.f32 %v2261_v32, %v2193_v52  ;;  %v3258_v47 = vmul.f32 %v6995_v1, %v8353_v15  ;;  %v8478_v0 = vadd.f32 %v1063_v29, %v995_v30  ;;  %v1694_v27 = vadd.f32 %v1662_v12, %v1594_v22  ;;  %v11067_v12 = vld [vmem:[#allocation31_spill] sm:$0xff] }
 0x1b0   : > { %v2392_v7 = vadd.f32 %v2360_v42, %v2292_v2  ;;  %v2791_v60 = vadd.f32 %v2759_v46, %v2691_v54  ;;  %v2859_v3 = vmul.f32 %v6848_v21, %v8388_v38  ;;  %v3090_v16 = vadd.f32 %v3058_v24, %v2990_v49  ;;  %v8495_v54 = vld [vmem:[#allocation2 + $0x165] sm:$0xff] }
 0x1b1   : > { %v3290_v40 = vadd.f32 %v3258_v47, %v8355_v6  ;;  %v3358_v32 = vmul.f32 %v6999_v17, %v8361_v61  ;;  %v2393_v36 = vadd.f32 %v2361_v58, %v2293_v37  ;;  %v2461_v31 = vmul.f32 %v6740_v39, %v8415_v28  ;;  %v11068_v6 = vld [vmem:[#allocation50_spill] sm:$0xff] }
 0x1b2   : > { %v2959_v29 = vmul.f32 %v6935_v43, %v8392_v33  ;;  %v3158_v30 = vmul.f32 %v11067_v12, %v8409_v51  ;;  %v2891_v2 = vadd.f32 %v2859_v3, %v2791_v60  ;;  %v3458_v52 = vmul.f32 %v7005_v25, %v8373_v41 }
 0x1b3   : > { %v3390_v22 = vadd.f32 %v3358_v32, %v3290_v40  ;;  %v3657_v42 = vmul.f32 %v11068_v6, %v8375_v23  ;;  %v8497_v58 = vadd.f32 %v1762_v20, %v1694_v27  ;;  %v2492_v46 = vadd.f32 %v2460_v13, %v2392_v7  ;;  %v8505_v40 = vld [vmem:[#allocation2 + $0x166] sm:$0xff]  ;;  %v11069_v13 = vld [vmem:[#allocation51_spill] sm:$0xff]  ;;  %v11070_v7 = vld [vmem:[#allocation12_spill] sm:$0xff] }
 0x1b4   : > { %v3059_v49 = vmul.f32 %v6947_v34, %v8403_v26  ;;  %v3159_v37 = vmul.f32 %v11067_v12, %v8415_v28  ;;  %v3190_v24 = vadd.f32 %v3158_v30, %v3090_v16  ;;  %v3558_v60 = vmul.f32 %v7009_v56, %v8388_v38 }
 0x1b5   : > { %v3490_v47 = vadd.f32 %v3458_v52, %v3390_v22  ;;  %v3689_v3 = vadd.f32 %v3657_v42, %v3589_v14  ;;  %v8507_v23 = vadd.f32 %v2461_v31, %v2393_v36  ;;  %v3658_v20 = vmul.f32 %v11068_v6, %v8392_v33  ;;  %v11071_v14 = vld [vmem:[#allocation52_spill] sm:$0xff]  ;;  %v11072_v33 = vld [vmem:[#allocation13_spill] sm:$0xff] }
 0x1b6   : > { %v3757_v27 = vmul.f32 %v11069_v13, %v8401_v63  ;;  %v464_v32 = vmul.f32 %v11070_v7, %v8495_v54  ;;  %v2991_v12 = vadd.f32 %v2959_v29, %v2891_v2  ;;  %v3758_v30 = vmul.f32 %v11069_v13, %v8403_v26  ;;  %v628_v26 = vld [vmem:[#allocation2 + $0x167] sm:$0xff] }
 0x1b7   : > { %v3590_v16 = vadd.f32 %v3558_v60, %v3490_v47  ;;  %v3857_v38 = vmul.f32 %v11071_v14, %v8409_v51  ;;  %v3858_v36 = vmul.f32 %v11071_v14, %v8415_v28  ;;  %v564_v22 = vmul.f32 %v11072_v33, %v8505_v40  ;;  %v11079_v13 = vld [vmem:[#allocation25_spill] sm:$0xff] }
 0x1b8   : > { %v496_v31 = vadd.f32 %v7916_v19, %v464_v32  ;;  %v1163_v63 = vmul.f32 %v6559_v55, %v8495_v54  ;;  %v3789_v29 = vadd.f32 %v3757_v27, %v3689_v3  ;;  %v3957_v2 = vmul.f32 %v7291_v45, %v8353_v15  ;;  %v11074_v27 = vld [vmem:[#allocation95_spill] sm:$0xff] }
 0x1b9   : > { %v3690_v52 = vadd.f32 %v3658_v20, %v3590_v16  ;;  %v1862_v51 = vmul.f32 %v6679_v35, %v8495_v54  ;;  %v8532_v28 = vmul.f32 %v10980_v59, %v8361_v61  ;;  %v1263_v47 = vmul.f32 %v10982_v10, %v8505_v40  ;;  %v11076_v61 = vld [vmem:[#allocation60_spill] sm:$0xff] }
 0x1ba   : > { %v596_v19 = vadd.f32 %v564_v22, %v496_v31  ;;  %v1195_v42 = vadd.f32 %v1163_v63, %v8449_v9  ;;  %v3091_v60 = vadd.f32 %v3059_v49, %v2991_v12  ;;  %v1962_v3 = vmul.f32 %v6683_v44, %v8505_v40  ;;  %v11078_v31 = vld [vmem:[#allocation17_spill] sm:$0xff]  ;;  %v728_v22 = vld [vmem:[#allocation2 + $0x168] sm:$0xff] }
 0x1bb   : > { %11073 = vst [vmem:[#allocation99_spill] sm:$0xff] %v8532_v28  ;;  %v1894_v20 = vadd.f32 %v1862_v51, %v1793_v8  ;;  %v2560_v15 = vmul.f32 %v6810_v50, %v8495_v54  ;;  %v8542_v32 = vadd.f32 %v3957_v2, %v11074_v27  ;;  %v8546_v16 = vmul.f32 %v11076_v61, %v8373_v41  ;;  %v8554_v41 = vld [vmem:[#allocation2 + $0x16d] sm:$0xff] }
 0x1bc   : > { %v664_v9 = vmul.f32 %v11078_v31, %v628_v26  ;;  %v1295_v63 = vadd.f32 %v1263_v47, %v1195_v42  ;;  %v3790_v28 = vadd.f32 %v3758_v30, %v3690_v52  ;;  %v2660_v49 = vmul.f32 %v6829_v62, %v8505_v40  ;;  %v11081_v47 = vld [vmem:[#allocation26_spill] sm:$0xff] }
 0x1bd   : > { %11075 = vst [vmem:[#allocation95_spill] sm:$0xff] %v8542_v32  ;;  %11077 = vst [vmem:[#allocation100_spill] sm:$0xff] %v8546_v16  ;;  %v1994_v12 = vadd.f32 %v1962_v3, %v1894_v20  ;;  %v2592_v8 = vadd.f32 %v2560_v15, %v2492_v46  ;;  %v3889_v51 = vadd.f32 %v3857_v38, %v3789_v29  ;;  %v11080_v32 = vld [vmem:[#allocation18_spill] sm:$0xff]  ;;  %v351_v3 = vld [vmem:[%s6238_s21 + $0xc0] sm:$0xff] }
 0x1be   : > { %v696_v14 = vadd.f32 %v664_v9, %v596_v19  ;;  %v1363_v2 = vmul.f32 %v11079_v13, %v628_v26  ;;  %v3259_v27 = vmul.f32 %v6995_v1, %v8495_v54  ;;  %v8556_v16 = vadd.f32 %v3159_v37, %v3091_v60  ;;  %v8562_v19 = vld [vmem:[#allocation2 + $0x16e] sm:$0xff]  ;;  %384 = vst.msk [vmem:[#allocation2 + $0x1e8] sm:$0xff] %vm237_vm0, %v351_v3 }
 0x1bf   : > { %v764_v42 = vmul.f32 %v11080_v32, %v728_v22  ;;  %v2062_v30 = vmul.f32 %v6710_v57, %v628_v26  ;;  %v2692_v46 = vadd.f32 %v2660_v49, %v2592_v8  ;;  %v1463_v20 = vmul.f32 %v11081_v47, %v728_v22 }
 0x1c0   : > { %v1395_v52 = vadd.f32 %v1363_v2, %v1295_v63  ;;  %v2760_v38 = vmul.f32 %v6834_v5, %v628_v26  ;;  %v3291_v29 = vadd.f32 %v3259_v27, %v3190_v24  ;;  %v8565_v15 = vadd.f32 %v3858_v36, %v3790_v28  ;;  %v8574_v2 = vld [vmem:[#allocation2 + $0x16f] sm:$0xff] }
 0x1c1   : > { %v2094_v9 = vadd.f32 %v2062_v30, %v1994_v12  ;;  %v2162_v37 = vmul.f32 %v6727_v48, %v728_v22  ;;  %v465_v60 = vmul.f32 %v11070_v7, %v8554_v41  ;;  %v796_v8 = vadd.f32 %v764_v42, %v696_v14  ;;  %v8576_v27 = vld [vmem:[#allocation2 + $0x169] sm:$0xff]  ;;  %v8583_v12 = vld [vmem:[%s10625_s2] ss:$0 sm:$0xff] }
 0x1c2   : > { %11082 = vst [vmem:[#allocation101_spill] sm:$0xff] %v8565_v15  ;;  %v2792_v63 = vadd.f32 %v2760_v38, %v2692_v46  ;;  %v2860_v49 = vmul.f32 %v6848_v21, %v728_v22  ;;  %v3359_v24 = vmul.f32 %v6999_v17, %v8505_v40  ;;  %v3459_v36 = vmul.f32 %v7005_v25, %v628_v26 }
 0x1c3   : > { %v3559_v28 = vmul.f32 %v7009_v56, %v728_v22  ;;  %v497_v14 = vadd.f32 %v8583_v12, %v465_v60  ;;  %v565_v42 = vmul.f32 %v11072_v33, %v8562_v19  ;;  %v1495_v30 = vadd.f32 %v1463_v20, %v1395_v52  ;;  %v8594_v22 = vld [vmem:[#allocation2 + $0x170] sm:$0xff]  ;;  %v11084_v33 = vld [vmem:[#allocation20_spill] sm:$0xff] }
 0x1c4   : > { %v3391_v46 = vadd.f32 %v3359_v24, %v3291_v29  ;;  %v3958_v38 = vmul.f32 %v7291_v45, %v8495_v54  ;;  %v8592_v3 = vmul.f32 %v10980_v59, %v8505_v40  ;;  %v2194_v15 = vadd.f32 %v2162_v37, %v2094_v9  ;;  %v8598_v60 = vld [vmem:[#allocation2 + $0x171] sm:$0xff] }
 0x1c5   : > { %v597_v7 = vadd.f32 %v565_v42, %v497_v14  ;;  %v665_v56 = vmul.f32 %v11078_v31, %v8574_v2  ;;  %v864_v52 = vmul.f32 %v11084_v33, %v8576_v27  ;;  %v2892_v20 = vadd.f32 %v2860_v49, %v2792_v63  ;;  %v8607_v40 = vld [vmem:[#allocation2 + $0x16a] sm:$0xff]  ;;  %v8609_v24 = vld [vmem:[#allocation2 + $0x172] sm:$0xff] }
 0x1c6   : > { %11083 = vst [vmem:[#allocation102_spill] sm:$0xff] %v8592_v3  ;;  %v8602_v29 = vadd.f32 %v3958_v38, %v3889_v51  ;;  %v8605_v54 = vmul.f32 %v11076_v61, %v628_v26  ;;  %v1164_v9 = vmul.f32 %v6559_v55, %v8554_v41  ;;  %v765_v14 = vmul.f32 %v11080_v32, %v8594_v22  ;;  %v8615_v3 = vld [vmem:[#allocation2 + $0x16b] sm:$0xff]  ;;  %v8621_v49 = vld [vmem:[#allocation2 + $0x173] sm:$0xff] }
 0x1c7   : > { %v697_v37 = vadd.f32 %v665_v56, %v597_v7  ;;  %v896_v42 = vadd.f32 %v864_v52, %v796_v8  ;;  %v1563_v51 = vmul.f32 %v10971_v53, %v8576_v27  ;;  %v3491_v63 = vadd.f32 %v3459_v36, %v3391_v46  ;;  %v11088_v36 = vld [vmem:[#allocation23_spill] sm:$0xff] }
 0x1c8   : > { %11085 = vst [vmem:[#allocation103_spill] sm:$0xff] %v8602_v29  ;;  %11086 = vst [vmem:[#allocation104_spill] sm:$0xff] %v8605_v54  ;;  %v865_v26 = vmul.f32 %v11084_v33, %v8598_v60  ;;  %v1196_v38 = vadd.f32 %v1164_v9, %v8478_v0  ;;  %v1264_v56 = vmul.f32 %v10982_v10, %v8562_v19  ;;  %v11087_v54 = vld [vmem:[#allocation22_spill] sm:$0xff] }
 0x1c9   : > { %v797_v7 = vadd.f32 %v765_v14, %v697_v37  ;;  %v964_v8 = vmul.f32 %v11087_v54, %v8607_v40  ;;  %v965_v52 = vmul.f32 %v11087_v54, %v8609_v24  ;;  %v1595_v29 = vadd.f32 %v1563_v51, %v1495_v30 }
 0x1ca   : > { %v1064_v46 = vmul.f32 %v11088_v36, %v8615_v3  ;;  %v1296_v33 = vadd.f32 %v1264_v56, %v1196_v38  ;;  %v1364_v32 = vmul.f32 %v11079_v13, %v8574_v2  ;;  %v1863_v0 = vmul.f32 %v6679_v35, %v8554_v41  ;;  %v352_v13 = vld [vmem:[%s6238_s21 + $0xc8] sm:$0xff] }
 0x1cb   : > { %v996_v9 = vadd.f32 %v964_v8, %v896_v42  ;;  %v1065_v37 = vmul.f32 %v11088_v36, %v8621_v49  ;;  %v1464_v14 = vmul.f32 %v11081_v47, %v8594_v22  ;;  %v1663_v30 = vmul.f32 %v10974_v11, %v8607_v40  ;;  %385 = vst.msk [vmem:[#allocation2 + $0x1f0] sm:$0xff] %vm237_vm0, %v352_v13 }
 0x1cc   : > { %v897_v51 = vadd.f32 %v865_v26, %v797_v7  ;;  %v1396_v54 = vadd.f32 %v1364_v32, %v1296_v33  ;;  %v1895_v38 = vadd.f32 %v1863_v0, %v8497_v58  ;;  %v1963_v56 = vmul.f32 %v6683_v44, %v8562_v19 }
 0x1cd   : > { %v3591_v31 = vadd.f32 %v3559_v28, %v3491_v63  ;;  %v1564_v42 = vmul.f32 %v10971_v53, %v8598_v60  ;;  %v1664_v8 = vmul.f32 %v10974_v11, %v8609_v24  ;;  %v1695_v36 = vadd.f32 %v1663_v30, %v1595_v29  ;;  %v11089_v28 = vld [vmem:[#allocation29_spill] sm:$0xff] }
 0x1ce   : > { %v1496_v47 = vadd.f32 %v1464_v14, %v1396_v54  ;;  %v1995_v61 = vadd.f32 %v1963_v56, %v1895_v38  ;;  %v2063_v33 = vmul.f32 %v6710_v57, %v8574_v2  ;;  %v2262_v58 = vmul.f32 %v10952_v18, %v8576_v27 }
 0x1cf   : > { %v8655_v32 = vadd.f32 %v1064_v46, %v996_v9  ;;  %v1763_v63 = vmul.f32 %v11089_v28, %v8615_v3  ;;  %v1764_v26 = vmul.f32 %v11089_v28, %v8621_v49  ;;  %v2561_v29 = vmul.f32 %v6810_v50, %v8554_v41 }
 0x1d0   : > { %v997_v13 = vadd.f32 %v965_v52, %v897_v51  ;;  %v2095_v54 = vadd.f32 %v2063_v33, %v1995_v61  ;;  %v2163_v7 = vmul.f32 %v6727_v48, %v8594_v22  ;;  %v2294_v0 = vadd.f32 %v2262_v58, %v2194_v15 }
 0x1d1   : > { %v1596_v14 = vadd.f32 %v1564_v42, %v1496_v47  ;;  %v2593_v30 = vadd.f32 %v2561_v29, %v8507_v23  ;;  %v2661_v46 = vmul.f32 %v6829_v62, %v8562_v19  ;;  %v2960_v9 = vmul.f32 %v6935_v43, %v8576_v27 }
 0x1d2   : > { %v1795_v38 = vadd.f32 %v1763_v63, %v1695_v36  ;;  %v2195_v56 = vadd.f32 %v2163_v7, %v2095_v54  ;;  %v2263_v28 = vmul.f32 %v10952_v18, %v8598_v60  ;;  %v2362_v61 = vmul.f32 %v10976_v4, %v8607_v40 }
 0x1d3   : > { %v2363_v15 = vmul.f32 %v10976_v4, %v8609_v24  ;;  %v2693_v47 = vadd.f32 %v2661_v46, %v2593_v30  ;;  %v2761_v23 = vmul.f32 %v6834_v5, %v8574_v2  ;;  %v2992_v52 = vadd.f32 %v2960_v9, %v2892_v20 }
 0x1d4   : > { %v2295_v51 = vadd.f32 %v2263_v28, %v2195_v56  ;;  %v2462_v42 = vmul.f32 %v6740_v39, %v8615_v3  ;;  %v3060_v36 = vmul.f32 %v6947_v34, %v8607_v40  ;;  %v3260_v33 = vmul.f32 %v6995_v1, %v8554_v41 }
 0x1d5   : > { %v8684_v58 = vadd.f32 %v1065_v37, %v997_v13  ;;  %v1696_v63 = vadd.f32 %v1664_v8, %v1596_v14  ;;  %v2394_v29 = vadd.f32 %v2362_v61, %v2294_v0  ;;  %v2793_v54 = vadd.f32 %v2761_v23, %v2693_v47  ;;  %v11090_v8 = vld [vmem:[#allocation31_spill] sm:$0xff]  ;;  %v8701_v61 = vld [vmem:[#allocation2 + $0x185] sm:$0xff] }
 0x1d6   : > { %v2861_v7 = vmul.f32 %v6848_v21, %v8594_v22  ;;  %v3092_v30 = vadd.f32 %v3060_v36, %v2992_v52  ;;  %v3292_v20 = vadd.f32 %v3260_v33, %v8556_v16  ;;  %v3360_v28 = vmul.f32 %v6999_v17, %v8562_v19  ;;  %v11091_v33 = vld [vmem:[#allocation35_spill] sm:$0xff] }
 0x1d7   : > { %v2395_v46 = vadd.f32 %v2363_v15, %v2295_v51  ;;  %v2463_v9 = vmul.f32 %v6740_v39, %v8621_v49  ;;  %v2961_v37 = vmul.f32 %v6935_v43, %v8598_v60  ;;  %v3160_v13 = vmul.f32 %v11090_v8, %v8615_v3 }
 0x1d8   : > { %v2893_v0 = vadd.f32 %v2861_v7, %v2793_v54  ;;  %v3392_v14 = vadd.f32 %v3360_v28, %v3292_v20  ;;  %v3460_v56 = vmul.f32 %v7005_v25, %v8574_v2  ;;  %v3659_v16 = vmul.f32 %v11068_v6, %v8576_v27  ;;  %v8711_v20 = vld [vmem:[#allocation2 + $0x186] sm:$0xff] }
 0x1d9   : > { %v8703_v15 = vadd.f32 %v1764_v26, %v1696_v63  ;;  %v2494_v47 = vadd.f32 %v2462_v42, %v2394_v29  ;;  %v3061_v23 = vmul.f32 %v6947_v34, %v8609_v24  ;;  %v3161_v52 = vmul.f32 %v11090_v8, %v8621_v49  ;;  %v11092_v42 = vld [vmem:[#allocation51_spill] sm:$0xff]  ;;  %v11093_v29 = vld [vmem:[#allocation12_spill] sm:$0xff] }
 0x1da   : > { %v3192_v51 = vadd.f32 %v3160_v13, %v3092_v30  ;;  %v3492_v36 = vadd.f32 %v3460_v56, %v3392_v14  ;;  %v3560_v54 = vmul.f32 %v11091_v33, %v8594_v22  ;;  %v3691_v7 = vadd.f32 %v3659_v16, %v3591_v31  ;;  %v11094_v31 = vld [vmem:[#allocation52_spill] sm:$0xff] }
 0x1db   : > { %v8713_v27 = vadd.f32 %v2463_v9, %v2395_v46  ;;  %v3660_v26 = vmul.f32 %v11068_v6, %v8598_v60  ;;  %v3759_v63 = vmul.f32 %v11092_v42, %v8607_v40  ;;  %v466_v28 = vmul.f32 %v11093_v29, %v8701_v61  ;;  %v11095_v60 = vld [vmem:[#allocation13_spill] sm:$0xff] }
 0x1dc   : > { %v2993_v8 = vadd.f32 %v2961_v37, %v2893_v0  ;;  %v3592_v30 = vadd.f32 %v3560_v54, %v3492_v36  ;;  %v3760_v13 = vmul.f32 %v11092_v42, %v8609_v24  ;;  %v3859_v22 = vmul.f32 %v11094_v31, %v8615_v3  ;;  %v630_v24 = vld [vmem:[#allocation2 + $0x187] sm:$0xff] }
 0x1dd   : > { %v3860_v46 = vmul.f32 %v11094_v31, %v8621_v49  ;;  %v498_v9 = vadd.f32 %v8583_v12, %v466_v28  ;;  %v566_v14 = vmul.f32 %v11095_v60, %v8711_v20  ;;  %v1165_v40 = vmul.f32 %v6559_v55, %v8701_v61  ;;  %v11102_v6 = vld [vmem:[#allocation25_spill] sm:$0xff] }
 0x1de   : > { %v3692_v56 = vadd.f32 %v3660_v26, %v3592_v30  ;;  %v3791_v37 = vadd.f32 %v3759_v63, %v3691_v7  ;;  %v3959_v0 = vmul.f32 %v7291_v45, %v8554_v41  ;;  %v1864_v3 = vmul.f32 %v6679_v35, %v8701_v61  ;;  %v11097_v63 = vld [vmem:[#allocation101_spill] sm:$0xff] }
 0x1df   : > { %v8738_v49 = vmul.f32 %v10980_v59, %v8562_v19  ;;  %v598_v16 = vadd.f32 %v566_v14, %v498_v9  ;;  %v1197_v36 = vadd.f32 %v1165_v40, %v8655_v32  ;;  %v1265_v54 = vmul.f32 %v10982_v10, %v8711_v20  ;;  %v11099_v19 = vld [vmem:[#allocation60_spill] sm:$0xff]  ;;  %v11101_v9 = vld [vmem:[#allocation17_spill] sm:$0xff]  ;;  %v730_v14 = vld [vmem:[#allocation2 + $0x188] sm:$0xff] }
 0x1e0   : > { %v3093_v28 = vadd.f32 %v3061_v23, %v2993_v8  ;;  %v1896_v26 = vadd.f32 %v1864_v3, %v1795_v38  ;;  %v1964_v7 = vmul.f32 %v6683_v44, %v8711_v20  ;;  %v2562_v41 = vmul.f32 %v6810_v50, %v8701_v61 }
 0x1e1   : > { %11096 = vst [vmem:[#allocation35_spill] sm:$0xff] %v8738_v49  ;;  %v8748_v30 = vadd.f32 %v3959_v0, %v11097_v63  ;;  %v8752_v49 = vmul.f32 %v11099_v19, %v8574_v2  ;;  %v666_v32 = vmul.f32 %v11101_v9, %v630_v24  ;;  %v1297_v40 = vadd.f32 %v1265_v54, %v1197_v36  ;;  %v8760_v63 = vld [vmem:[#allocation2 + $0x18d] sm:$0xff] }
 0x1e2   : > { %v3792_v31 = vadd.f32 %v3760_v13, %v3692_v56  ;;  %v1996_v8 = vadd.f32 %v1964_v7, %v1896_v26  ;;  %v2594_v38 = vadd.f32 %v2562_v41, %v2494_v47  ;;  %v2662_v23 = vmul.f32 %v6829_v62, %v8711_v20  ;;  %v11104_v36 = vld [vmem:[#allocation26_spill] sm:$0xff] }
 0x1e3   : > { %11098 = vst [vmem:[#allocation12_spill] sm:$0xff] %v8748_v30  ;;  %11100 = vst [vmem:[#allocation101_spill] sm:$0xff] %v8752_v49  ;;  %v3891_v3 = vadd.f32 %v3859_v22, %v3791_v37  ;;  %v698_v42 = vadd.f32 %v666_v32, %v598_v16  ;;  %v1365_v34 = vmul.f32 %v11102_v6, %v630_v24  ;;  %v11103_v49 = vld [vmem:[#allocation18_spill] sm:$0xff] }
 0x1e4   : > { %v3261_v0 = vmul.f32 %v6995_v1, %v8701_v61  ;;  %v8762_v2 = vadd.f32 %v3161_v52, %v3093_v28  ;;  %v766_v30 = vmul.f32 %v11103_v49, %v730_v14  ;;  %v2064_v13 = vmul.f32 %v6710_v57, %v630_v24  ;;  %v8768_v16 = vld [vmem:[#allocation2 + $0x18e] sm:$0xff] }
 0x1e5   : > { %v2694_v56 = vadd.f32 %v2662_v23, %v2594_v38  ;;  %v1397_v47 = vadd.f32 %v1365_v34, %v1297_v40  ;;  %v1465_v54 = vmul.f32 %v11104_v36, %v730_v14  ;;  %v2762_v22 = vmul.f32 %v6834_v5, %v630_v24  ;;  %v8778_v40 = vld [vmem:[#allocation2 + $0x18f] sm:$0xff] }
 0x1e6   : > { %v3293_v37 = vadd.f32 %v3261_v0, %v3192_v51  ;;  %v8770_v26 = vadd.f32 %v3860_v46, %v3792_v31  ;;  %v2096_v7 = vadd.f32 %v2064_v13, %v1996_v8  ;;  %v2164_v41 = vmul.f32 %v6727_v48, %v730_v14  ;;  %v8780_v51 = vld [vmem:[#allocation2 + $0x189] sm:$0xff] }
 0x1e7   : > { %v467_v52 = vmul.f32 %v11093_v29, %v8760_v63  ;;  %v798_v28 = vadd.f32 %v766_v30, %v698_v42  ;;  %v2794_v32 = vadd.f32 %v2762_v22, %v2694_v56  ;;  %v2862_v38 = vmul.f32 %v6848_v21, %v730_v14  ;;  %v8793_v56 = vld [vmem:[#allocation2 + $0x190] sm:$0xff] }
 0x1e8   : > { %11105 = vst [vmem:[#allocation105_spill] sm:$0xff] %v8770_v26  ;;  %v3361_v34 = vmul.f32 %v6999_v17, %v8711_v20  ;;  %v3461_v31 = vmul.f32 %v7005_v25, %v630_v24  ;;  %v3561_v46 = vmul.f32 %v11091_v33, %v730_v14  ;;  %v567_v23 = vmul.f32 %v11095_v60, %v8768_v16  ;;  %v11107_v60 = vld [vmem:[#allocation20_spill] sm:$0xff] }
 0x1e9   : > { %v499_v8 = vadd.f32 %v8583_v12, %v467_v52  ;;  %v1497_v42 = vadd.f32 %v1465_v54, %v1397_v47  ;;  %v3960_v0 = vmul.f32 %v7291_v45, %v8701_v61  ;;  %v8791_v13 = vmul.f32 %v10980_v59, %v8711_v20  ;;  %v8797_v52 = vld [vmem:[#allocation2 + $0x191] sm:$0xff] }
 0x1ea   : > { %v3393_v30 = vadd.f32 %v3361_v34, %v3293_v37  ;;  %v2196_v22 = vadd.f32 %v2164_v41, %v2096_v7  ;;  %v667_v14 = vmul.f32 %v11101_v9, %v8778_v40  ;;  %v866_v47 = vmul.f32 %v11107_v60, %v8780_v51  ;;  %v8808_v20 = vld [vmem:[#allocation2 + $0x18a] sm:$0xff]  ;;  %v8810_v34 = vld [vmem:[#allocation2 + $0x192] sm:$0xff] }
 0x1eb   : > { %11106 = vst [vmem:[#allocation106_spill] sm:$0xff] %v8791_v13  ;;  %v599_v26 = vadd.f32 %v567_v23, %v499_v8  ;;  %v8801_v54 = vadd.f32 %v2862_v38, %v2794_v32  ;;  %v8803_v37 = vadd.f32 %v3960_v0, %v3891_v3  ;;  %v8806_v61 = vmul.f32 %v11099_v19, %v630_v24  ;;  %v8816_v13 = vld [vmem:[#allocation2 + $0x18b] sm:$0xff]  ;;  %v8822_v38 = vld [vmem:[#allocation2 + $0x193] sm:$0xff] }
 0x1ec   : > { %v1166_v7 = vmul.f32 %v6559_v55, %v8760_v63  ;;  %v767_v8 = vmul.f32 %v11103_v49, %v8793_v56  ;;  %v898_v23 = vadd.f32 %v866_v47, %v798_v28  ;;  %v1565_v3 = vmul.f32 %v10971_v53, %v8780_v51 }
 0x1ed   : > { %11108 = vst [vmem:[#allocation107_spill] sm:$0xff] %v8803_v37  ;;  %11109 = vst [vmem:[#allocation108_spill] sm:$0xff] %v8806_v61  ;;  %v699_v41 = vadd.f32 %v667_v14, %v599_v26  ;;  %v3493_v32 = vadd.f32 %v3461_v31, %v3393_v30  ;;  %v867_v24 = vmul.f32 %v11107_v60, %v8797_v52  ;;  %v11110_v61 = vld [vmem:[#allocation22_spill] sm:$0xff]  ;;  %v11111_v31 = vld [vmem:[#allocation23_spill] sm:$0xff] }
 0x1ee   : > { %v1198_v0 = vadd.f32 %v1166_v7, %v8684_v58  ;;  %v1266_v26 = vmul.f32 %v10982_v10, %v8768_v16  ;;  %v966_v28 = vmul.f32 %v11110_v61, %v8808_v20  ;;  %v967_v47 = vmul.f32 %v11110_v61, %v8810_v34 }
 0x1ef   : > { %v799_v14 = vadd.f32 %v767_v8, %v699_v41  ;;  %v1597_v37 = vadd.f32 %v1565_v3, %v1497_v42  ;;  %v1066_v30 = vmul.f32 %v11111_v31, %v8816_v13  ;;  %v1366_v60 = vmul.f32 %v11102_v6, %v8778_v40 }
 0x1f0   : > { %v1298_v49 = vadd.f32 %v1266_v26, %v1198_v0  ;;  %v1865_v58 = vmul.f32 %v6679_v35, %v8760_v63  ;;  %v998_v7 = vadd.f32 %v966_v28, %v898_v23  ;;  %v1067_v41 = vmul.f32 %v11111_v31, %v8822_v38 }
 0x1f1   : > { %v1466_v8 = vmul.f32 %v11104_v36, %v8793_v56  ;;  %v1665_v42 = vmul.f32 %v10974_v11, %v8808_v20  ;;  %v899_v3 = vadd.f32 %v867_v24, %v799_v14  ;;  %v1965_v61 = vmul.f32 %v6683_v44, %v8768_v16 }
 0x1f2   : > { %v1398_v0 = vadd.f32 %v1366_v60, %v1298_v49  ;;  %v1897_v26 = vadd.f32 %v1865_v58, %v8703_v15  ;;  %v3593_v6 = vadd.f32 %v3561_v46, %v3493_v32  ;;  %v1566_v23 = vmul.f32 %v10971_v53, %v8797_v52  ;;  %v353_v15 = vld [vmem:[%s6238_s21 + $0xd0] sm:$0xff]  ;;  %v354_v49 = vld [vmem:[%s6238_s21 + $0xd8] sm:$0xff]  ;;  %v11112_v46 = vld [vmem:[#allocation29_spill] sm:$0xff] }
 0x1f3   : > { %v1666_v28 = vmul.f32 %v10974_v11, %v8810_v34  ;;  %v1697_v31 = vadd.f32 %v1665_v42, %v1597_v37  ;;  %v2065_v19 = vmul.f32 %v6710_v57, %v8778_v40  ;;  %v2264_v60 = vmul.f32 %v10952_v18, %v8780_v51  ;;  %386 = vst.msk [vmem:[#allocation2 + $0x208] sm:$0xff] %vm237_vm0, %v353_v15 }
 0x1f4   : > { %v1498_v9 = vadd.f32 %v1466_v8, %v1398_v0  ;;  %v1997_v36 = vadd.f32 %v1965_v61, %v1897_v26  ;;  %v8856_v24 = vadd.f32 %v1066_v30, %v998_v7  ;;  %v1765_v32 = vmul.f32 %v11112_v46, %v8816_v13  ;;  %387 = vst.msk [vmem:[#allocation2 + $0x210] sm:$0xff] %vm237_vm0, %v354_v49 }
 0x1f5   : > { %v1766_v14 = vmul.f32 %v11112_v46, %v8822_v38  ;;  %v2563_v37 = vmul.f32 %v6810_v50, %v8760_v63  ;;  %v999_v61 = vadd.f32 %v967_v47, %v899_v3  ;;  %v2165_v8 = vmul.f32 %v6727_v48, %v8793_v56  ;;  %v11113_v3 = vld [vmem:[#allocation30_spill] sm:$0xff] }
 0x1f6   : > { %v2097_v58 = vadd.f32 %v2065_v19, %v1997_v36  ;;  %v2296_v30 = vadd.f32 %v2264_v60, %v2196_v22  ;;  %v1598_v7 = vadd.f32 %v1566_v23, %v1498_v9  ;;  %v2663_v0 = vmul.f32 %v6829_v62, %v8768_v16 }
 0x1f7   : > { %v2595_v42 = vadd.f32 %v2563_v37, %v8713_v27  ;;  %v2962_v26 = vmul.f32 %v6935_v43, %v8780_v51  ;;  %v1797_v46 = vadd.f32 %v1765_v32, %v1697_v31  ;;  %v2265_v15 = vmul.f32 %v10952_v18, %v8797_v52 }
 0x1f8   : > { %v2197_v11 = vadd.f32 %v2165_v8, %v2097_v58  ;;  %v2364_v19 = vmul.f32 %v10976_v4, %v8808_v20  ;;  %v2365_v36 = vmul.f32 %v10976_v4, %v8810_v34  ;;  %v2763_v27 = vmul.f32 %v6834_v5, %v8778_v40 }
 0x1f9   : > { %v2695_v9 = vadd.f32 %v2663_v0, %v2595_v42  ;;  %v2994_v22 = vadd.f32 %v2962_v26, %v8801_v54  ;;  %v2464_v31 = vmul.f32 %v6740_v39, %v8816_v13  ;;  %v3062_v23 = vmul.f32 %v11113_v3, %v8808_v20 }
 0x1fa   : > { %v2297_v47 = vadd.f32 %v2265_v15, %v2197_v11  ;;  %v3262_v60 = vmul.f32 %v6995_v1, %v8760_v63  ;;  %v8888_v49 = vadd.f32 %v1067_v41, %v999_v61  ;;  %v1698_v32 = vadd.f32 %v1666_v28, %v1598_v7  ;;  %v11114_v28 = vld [vmem:[#allocation31_spill] sm:$0xff] }
 0x1fb   : > { %v2396_v37 = vadd.f32 %v2364_v19, %v2296_v30  ;;  %v2795_v58 = vadd.f32 %v2763_v27, %v2695_v9  ;;  %v2863_v8 = vmul.f32 %v6848_v21, %v8793_v56  ;;  %v3094_v42 = vadd.f32 %v3062_v23, %v2994_v22  ;;  %v8905_v9 = vld [vmem:[#allocation2 + $0x1a5] sm:$0xff] }
 0x1fc   : > { %v3294_v11 = vadd.f32 %v3262_v60, %v8762_v2  ;;  %v3362_v54 = vmul.f32 %v6999_v17, %v8768_v16  ;;  %v2397_v0 = vadd.f32 %v2365_v36, %v2297_v47  ;;  %v2465_v26 = vmul.f32 %v6740_v39, %v8822_v38  ;;  %v11115_v2 = vld [vmem:[#allocation50_spill] sm:$0xff] }
 0x1fd   : > { %v2963_v41 = vmul.f32 %v6935_v43, %v8797_v52  ;;  %v3162_v61 = vmul.f32 %v11114_v28, %v8816_v13  ;;  %v2895_v30 = vadd.f32 %v2863_v8, %v2795_v58  ;;  %v3462_v15 = vmul.f32 %v7005_v25, %v8778_v40 }
 0x1fe   : > { %v3394_v7 = vadd.f32 %v3362_v54, %v3294_v11  ;;  %v3661_v19 = vmul.f32 %v11115_v2, %v8780_v51  ;;  %v8907_v36 = vadd.f32 %v1766_v14, %v1698_v32  ;;  %v2496_v27 = vadd.f32 %v2464_v31, %v2396_v37  ;;  %v8915_v11 = vld [vmem:[#allocation2 + $0x1a6] sm:$0xff]  ;;  %v11116_v31 = vld [vmem:[#allocation51_spill] sm:$0xff] }
 0x1ff   : > { %v3063_v22 = vmul.f32 %v11113_v3, %v8810_v34  ;;  %v3163_v47 = vmul.f32 %v11114_v28, %v8822_v38  ;;  %v3194_v23 = vadd.f32 %v3162_v61, %v3094_v42  ;;  %v3562_v58 = vmul.f32 %v11091_v33, %v8793_v56 }
 0x200   : > { %v3494_v60 = vadd.f32 %v3462_v15, %v3394_v7  ;;  %v3693_v8 = vadd.f32 %v3661_v19, %v3593_v6  ;;  %v8917_v51 = vadd.f32 %v2465_v26, %v2397_v0  ;;  %v3662_v14 = vmul.f32 %v11115_v2, %v8797_v52  ;;  %v11117_v6 = vld [vmem:[#allocation52_spill] sm:$0xff]  ;;  %v11118_v52 = vld [vmem:[#allocation13_spill] sm:$0xff] }
 0x201   : > { %v3761_v32 = vmul.f32 %v11116_v31, %v8808_v20  ;;  %v468_v37 = vmul.f32 %v11093_v29, %v8905_v9  ;;  %v2995_v54 = vadd.f32 %v2963_v41, %v2895_v30  ;;  %v3762_v61 = vmul.f32 %v11116_v31, %v8810_v34  ;;  %v632_v34 = vld [vmem:[#allocation2 + $0x1a7] sm:$0xff] }
 0x202   : > { %v3594_v42 = vadd.f32 %v3562_v58, %v3494_v60  ;;  %v3861_v56 = vmul.f32 %v11117_v6, %v8816_v13  ;;  %v3862_v0 = vmul.f32 %v11117_v6, %v8822_v38  ;;  %v568_v7 = vmul.f32 %v11118_v52, %v8915_v11  ;;  %v11125_v2 = vld [vmem:[#allocation25_spill] sm:$0xff] }
 0x203   : > { %v500_v26 = vadd.f32 %v8583_v12, %v468_v37  ;;  %v1167_v20 = vmul.f32 %v6559_v55, %v8905_v9  ;;  %v3793_v41 = vadd.f32 %v3761_v32, %v3693_v8  ;;  %v3961_v30 = vmul.f32 %v7291_v45, %v8760_v63  ;;  %v11120_v32 = vld [vmem:[#allocation105_spill] sm:$0xff] }
 0x204   : > { %v3694_v15 = vadd.f32 %v3662_v14, %v3594_v42  ;;  %v1866_v13 = vmul.f32 %v6679_v35, %v8905_v9  ;;  %v8942_v38 = vmul.f32 %v10980_v59, %v8768_v16  ;;  %v1267_v58 = vmul.f32 %v10982_v10, %v8915_v11  ;;  %v11122_v16 = vld [vmem:[#allocation60_spill] sm:$0xff] }
 0x205   : > { %v600_v19 = vadd.f32 %v568_v7, %v500_v26  ;;  %v1199_v60 = vadd.f32 %v1167_v20, %v8856_v24  ;;  %v3095_v37 = vadd.f32 %v3063_v22, %v2995_v54  ;;  %v1966_v8 = vmul.f32 %v6683_v44, %v8915_v11  ;;  %v11124_v26 = vld [vmem:[#allocation17_spill] sm:$0xff]  ;;  %v732_v7 = vld [vmem:[#allocation2 + $0x1a8] sm:$0xff] }
 0x206   : > { %11119 = vst [vmem:[#allocation13_spill] sm:$0xff] %v8942_v38  ;;  %v1898_v14 = vadd.f32 %v1866_v13, %v1797_v46  ;;  %v2564_v63 = vmul.f32 %v6810_v50, %v8905_v9  ;;  %v8952_v42 = vadd.f32 %v3961_v30, %v11120_v32  ;;  %v8956_v38 = vmul.f32 %v11122_v16, %v8778_v40  ;;  %v8964_v32 = vld [vmem:[#allocation2 + $0x1ad] sm:$0xff] }
 0x207   : > { %v668_v24 = vmul.f32 %v11124_v26, %v632_v34  ;;  %v1299_v20 = vadd.f32 %v1267_v58, %v1199_v60  ;;  %v3794_v6 = vadd.f32 %v3762_v61, %v3694_v15  ;;  %v2664_v54 = vmul.f32 %v6829_v62, %v8915_v11  ;;  %v11127_v60 = vld [vmem:[#allocation26_spill] sm:$0xff] }
 0x208   : > { %11121 = vst [vmem:[#allocation105_spill] sm:$0xff] %v8952_v42  ;;  %11123 = vst [vmem:[#allocation109_spill] sm:$0xff] %v8956_v38  ;;  %v1998_v22 = vadd.f32 %v1966_v8, %v1898_v14  ;;  %v2596_v46 = vadd.f32 %v2564_v63, %v2496_v27  ;;  %v3893_v13 = vadd.f32 %v3861_v56, %v3793_v41  ;;  %v11126_v38 = vld [vmem:[#allocation18_spill] sm:$0xff] }
 0x209   : > { %v700_v31 = vadd.f32 %v668_v24, %v600_v19  ;;  %v1367_v28 = vmul.f32 %v11125_v2, %v632_v34  ;;  %v3263_v30 = vmul.f32 %v6995_v1, %v8905_v9  ;;  %v8966_v40 = vadd.f32 %v3163_v47, %v3095_v37  ;;  %v8972_v19 = vld [vmem:[#allocation2 + $0x1ae] sm:$0xff] }
 0x20a   : > { %v768_v42 = vmul.f32 %v11126_v38, %v732_v7  ;;  %v2066_v61 = vmul.f32 %v6710_v57, %v632_v34  ;;  %v2696_v15 = vadd.f32 %v2664_v54, %v2596_v46  ;;  %v1467_v58 = vmul.f32 %v11127_v60, %v732_v7 }
 0x20b   : > { %v1399_v27 = vadd.f32 %v1367_v28, %v1299_v20  ;;  %v2764_v56 = vmul.f32 %v6834_v5, %v632_v34  ;;  %v3295_v41 = vadd.f32 %v3263_v30, %v3194_v23  ;;  %v8974_v14 = vadd.f32 %v3862_v0, %v3794_v6  ;;  %v8982_v20 = vld [vmem:[#allocation2 + $0x1af] sm:$0xff] }
 0x20c   : > { %v2098_v8 = vadd.f32 %v2066_v61, %v1998_v22  ;;  %v2166_v63 = vmul.f32 %v6727_v48, %v732_v7  ;;  %v469_v47 = vmul.f32 %v11093_v29, %v8964_v32  ;;  %v800_v37 = vadd.f32 %v768_v42, %v700_v31  ;;  %v8984_v23 = vld [vmem:[#allocation2 + $0x1a9] sm:$0xff] }
 0x20d   : > { %11128 = vst [vmem:[#allocation110_spill] sm:$0xff] %v8974_v14  ;;  %v2796_v24 = vadd.f32 %v2764_v56, %v2696_v15  ;;  %v2864_v46 = vmul.f32 %v6848_v21, %v732_v7  ;;  %v3363_v28 = vmul.f32 %v6999_v17, %v8915_v11  ;;  %v3463_v6 = vmul.f32 %v7005_v25, %v632_v34  ;;  %v8997_v15 = vld [vmem:[#allocation2 + $0x1b0] sm:$0xff] }
 0x20e   : > { %v3563_v0 = vmul.f32 %v11091_v33, %v732_v7  ;;  %v501_v22 = vadd.f32 %v8583_v12, %v469_v47  ;;  %v569_v54 = vmul.f32 %v11118_v52, %v8972_v19  ;;  %v1499_v31 = vadd.f32 %v1467_v58, %v1399_v27  ;;  %v9001_v47 = vld [vmem:[#allocation2 + $0x1b1] sm:$0xff] }
 0x20f   : > { %v3395_v42 = vadd.f32 %v3363_v28, %v3295_v41  ;;  %v3962_v30 = vmul.f32 %v7291_v45, %v8905_v9  ;;  %v8995_v61 = vmul.f32 %v10980_v59, %v8915_v11  ;;  %v2198_v56 = vadd.f32 %v2166_v63, %v2098_v8  ;;  %v11130_v27 = vld [vmem:[#allocation20_spill] sm:$0xff]  ;;  %v9012_v28 = vld [vmem:[#allocation2 + $0x1aa] sm:$0xff] }
 0x210   : > { %v601_v14 = vadd.f32 %v569_v54, %v501_v22  ;;  %v669_v7 = vmul.f32 %v11124_v26, %v8982_v20  ;;  %v868_v58 = vmul.f32 %v11130_v27, %v8984_v23  ;;  %v9005_v41 = vadd.f32 %v2864_v46, %v2796_v24  ;;  %v9014_v8 = vld [vmem:[#allocation2 + $0x1b2] sm:$0xff]  ;;  %v355_v24 = vld [vmem:[%s6238_s21 + $0xe0] sm:$0xff] }
 0x211   : > { %11129 = vst [vmem:[#allocation111_spill] sm:$0xff] %v8995_v61  ;;  %v9007_v9 = vadd.f32 %v3962_v30, %v3893_v13  ;;  %v9010_v11 = vmul.f32 %v11122_v16, %v632_v34  ;;  %v1168_v63 = vmul.f32 %v6559_v55, %v8964_v32  ;;  %v769_v54 = vmul.f32 %v11126_v38, %v8997_v15  ;;  %v9020_v26 = vld [vmem:[#allocation2 + $0x1ab] sm:$0xff] }
 0x212   : > { %v701_v22 = vadd.f32 %v669_v7, %v601_v14  ;;  %v900_v61 = vadd.f32 %v868_v58, %v800_v37  ;;  %v1567_v13 = vmul.f32 %v10971_v53, %v8984_v23  ;;  %v356_v34 = vld [vmem:[%s6238_s21 + $0xe8] sm:$0xff]  ;;  %v3495_v46 = vadd.f32 %v3463_v6, %v3395_v42  ;;  %388 = vst.msk [vmem:[#allocation2 + $0x228] sm:$0xff] %vm237_vm0, %v355_v24 }
 0x213   : > { %11131 = vst [vmem:[#allocation112_spill] sm:$0xff] %v9007_v9  ;;  %11132 = vst [vmem:[#allocation113_spill] sm:$0xff] %v9010_v11  ;;  %v869_v30 = vmul.f32 %v11130_v27, %v9001_v47  ;;  %v9028_v11 = vld [vmem:[#allocation2 + $0x1b3] sm:$0xff]  ;;  %v1200_v9 = vadd.f32 %v1168_v63, %v8888_v49  ;;  %v1268_v14 = vmul.f32 %v10982_v10, %v8972_v19  ;;  %v11133_v7 = vld [vmem:[#allocation22_spill] sm:$0xff] }
 0x214   : > { %389 = vst.msk [vmem:[#allocation2 + $0x230] sm:$0xff] %vm237_vm0, %v356_v34  ;;  %v801_v37 = vadd.f32 %v769_v54, %v701_v22  ;;  %v968_v58 = vmul.f32 %v11133_v7, %v9012_v28  ;;  %v969_v6 = vmul.f32 %v11133_v7, %v9014_v8  ;;  %v1599_v42 = vadd.f32 %v1567_v13, %v1499_v31  ;;  %v11134_v27 = vld [vmem:[#allocation23_spill] sm:$0xff]  ;;  %v11135_v34 = vld [vmem:[#allocation28_spill] sm:$0xff] }
 0x215   : > { %v1068_v38 = vmul.f32 %v11134_v27, %v9020_v26  ;;  %v1300_v16 = vadd.f32 %v1268_v14, %v1200_v9  ;;  %v1368_v49 = vmul.f32 %v11125_v2, %v8982_v20  ;;  %v1867_v63 = vmul.f32 %v6679_v35, %v8964_v32 }
 0x216   : > { %v1000_v24 = vadd.f32 %v968_v58, %v900_v61  ;;  %v1069_v22 = vmul.f32 %v11134_v27, %v9028_v11  ;;  %v1468_v54 = vmul.f32 %v11127_v60, %v8997_v15  ;;  %v1667_v31 = vmul.f32 %v11135_v34, %v9012_v28 }
 0x217   : > { %v901_v13 = vadd.f32 %v869_v30, %v801_v37  ;;  %v1400_v7 = vadd.f32 %v1368_v49, %v1300_v16  ;;  %v1899_v9 = vadd.f32 %v1867_v63, %v8907_v36  ;;  %v1967_v14 = vmul.f32 %v6683_v44, %v8972_v19  ;;  %v11136_v30 = vld [vmem:[#allocation29_spill] sm:$0xff] }
 0x218   : > { %v3595_v2 = vadd.f32 %v3563_v0, %v3495_v46  ;;  %v1568_v61 = vmul.f32 %v10971_v53, %v9001_v47  ;;  %v1668_v58 = vmul.f32 %v11135_v34, %v9014_v8  ;;  %v1699_v27 = vadd.f32 %v1667_v31, %v1599_v42 }
 0x219   : > { %v1500_v10 = vadd.f32 %v1468_v54, %v1400_v7  ;;  %v1999_v60 = vadd.f32 %v1967_v14, %v1899_v9  ;;  %v2067_v59 = vmul.f32 %v6710_v57, %v8982_v20  ;;  %v2266_v16 = vmul.f32 %v10952_v18, %v8984_v23 }
 0x21a   : > { %v9062_v36 = vadd.f32 %v1068_v38, %v1000_v24  ;;  %v1767_v0 = vmul.f32 %v11136_v30, %v9020_v26  ;;  %v1768_v46 = vmul.f32 %v11136_v30, %v9028_v11  ;;  %v2565_v37 = vmul.f32 %v6810_v50, %v8964_v32 }
 0x21b   : > { %v1001_v42 = vadd.f32 %v969_v6, %v901_v13  ;;  %v2099_v7 = vadd.f32 %v2067_v59, %v1999_v60  ;;  %v2167_v49 = vmul.f32 %v6727_v48, %v8997_v15  ;;  %v2298_v63 = vadd.f32 %v2266_v16, %v2198_v56 }
 0x21c   : > { %v1600_v54 = vadd.f32 %v1568_v61, %v1500_v10  ;;  %v2597_v31 = vadd.f32 %v2565_v37, %v8917_v51  ;;  %v2665_v38 = vmul.f32 %v6829_v62, %v8972_v19  ;;  %v2964_v24 = vmul.f32 %v6935_v43, %v8984_v23 }
 0x21d   : > { %v9077_v9 = vadd.f32 %v1767_v0, %v1699_v27  ;;  %v2199_v14 = vadd.f32 %v2167_v49, %v2099_v7  ;;  %v2267_v6 = vmul.f32 %v10952_v18, %v9001_v47  ;;  %v2366_v59 = vmul.f32 %v10976_v4, %v9012_v28 }
 0x21e   : > { %v2367_v10 = vmul.f32 %v10976_v4, %v9014_v8  ;;  %v2697_v60 = vadd.f32 %v2665_v38, %v2597_v31  ;;  %v2765_v51 = vmul.f32 %v6834_v5, %v8982_v20  ;;  %v2996_v56 = vadd.f32 %v2964_v24, %v9005_v41 }
 0x21f   : > { %v2299_v13 = vadd.f32 %v2267_v6, %v2199_v14  ;;  %v2466_v27 = vmul.f32 %v6740_v39, %v9020_v26  ;;  %v3064_v61 = vmul.f32 %v11113_v3, %v9012_v28  ;;  %v3264_v16 = vmul.f32 %v6995_v1, %v8964_v32 }
 0x220   : > { %v9094_v0 = vadd.f32 %v1069_v22, %v1001_v42  ;;  %v1700_v37 = vadd.f32 %v1668_v58, %v1600_v54  ;;  %v2398_v7 = vadd.f32 %v2366_v59, %v2298_v63  ;;  %v2797_v49 = vadd.f32 %v2765_v51, %v2697_v60  ;;  %v11137_v58 = vld [vmem:[#allocation31_spill] sm:$0xff]  ;;  %v9111_v51 = vld [vmem:[#allocation2 + $0x1c5] sm:$0xff] }
 0x221   : > { %v2865_v31 = vmul.f32 %v6848_v21, %v8997_v15  ;;  %v3096_v38 = vadd.f32 %v3064_v61, %v2996_v56  ;;  %v3296_v41 = vadd.f32 %v3264_v16, %v8966_v40  ;;  %v3364_v24 = vmul.f32 %v6999_v17, %v8972_v19  ;;  %v11138_v40 = vld [vmem:[#allocation50_spill] sm:$0xff] }
 0x222   : > { %v2399_v14 = vadd.f32 %v2367_v10, %v2299_v13  ;;  %v2467_v6 = vmul.f32 %v6740_v39, %v9028_v11  ;;  %v2965_v22 = vmul.f32 %v6935_v43, %v9001_v47  ;;  %v3164_v42 = vmul.f32 %v11137_v58, %v9020_v26 }
 0x223   : > { %v2897_v63 = vadd.f32 %v2865_v31, %v2797_v49  ;;  %v3396_v54 = vadd.f32 %v3364_v24, %v3296_v41  ;;  %v3464_v59 = vmul.f32 %v7005_v25, %v8982_v20  ;;  %v3663_v60 = vmul.f32 %v11138_v40, %v8984_v23  ;;  %v9121_v24 = vld [vmem:[#allocation2 + $0x1c6] sm:$0xff] }
 0x224   : > { %v9113_v10 = vadd.f32 %v1768_v46, %v1700_v37  ;;  %v2498_v56 = vadd.f32 %v2466_v27, %v2398_v7  ;;  %v3065_v13 = vmul.f32 %v11113_v3, %v9014_v8  ;;  %v3165_v61 = vmul.f32 %v11137_v58, %v9028_v11  ;;  %v11139_v27 = vld [vmem:[#allocation51_spill] sm:$0xff]  ;;  %v11151_v3 = vld [vmem:[#allocation18_spill] sm:$0xff] }
 0x225   : > { %v3196_v16 = vadd.f32 %v3164_v42, %v3096_v38  ;;  %v3496_v49 = vadd.f32 %v3464_v59, %v3396_v54  ;;  %v3564_v31 = vmul.f32 %v11091_v33, %v8997_v15  ;;  %v3695_v41 = vadd.f32 %v3663_v60, %v3595_v2  ;;  %v11140_v15 = vld [vmem:[#allocation52_spill] sm:$0xff]  ;;  %v357_v60 = vld [vmem:[%s6238_s21 + $0xf0] sm:$0xff] }
 0x226   : > { %v9123_v23 = vadd.f32 %v2467_v6, %v2399_v14  ;;  %v3664_v46 = vmul.f32 %v11138_v40, %v9001_v47  ;;  %v3763_v37 = vmul.f32 %v11139_v27, %v9012_v28  ;;  %v470_v7 = vmul.f32 %v11093_v29, %v9111_v51  ;;  %390 = vst.msk [vmem:[#allocation2 + $0x248] sm:$0xff] %vm237_vm0, %v357_v60 }
 0x227   : > { %v2997_v38 = vadd.f32 %v2965_v22, %v2897_v63  ;;  %v3596_v42 = vadd.f32 %v3564_v31, %v3496_v49  ;;  %v3764_v2 = vmul.f32 %v11139_v27, %v9014_v8  ;;  %v3863_v14 = vmul.f32 %v11140_v15, %v9020_v26  ;;  %v9144_v8 = vld [vmem:[#allocation2 + $0x1c7] sm:$0xff]  ;;  %v11141_v49 = vld [vmem:[#allocation59_spill] sm:$0xff] }
 0x228   : > { %v3864_v6 = vmul.f32 %v11140_v15, %v9028_v11  ;;  %v502_v47 = vadd.f32 %v8583_v12, %v470_v7  ;;  %v570_v28 = vmul.f32 %v11118_v52, %v9121_v24  ;;  %v1169_v54 = vmul.f32 %v6559_v55, %v9111_v51  ;;  %v358_v11 = vld [vmem:[%s6238_s21 + $0xf8] sm:$0xff] }
 0x229   : > { %v3696_v59 = vadd.f32 %v3664_v46, %v3596_v42  ;;  %v3795_v22 = vadd.f32 %v3763_v37, %v3695_v41  ;;  %v3963_v63 = vmul.f32 %v7291_v45, %v8964_v32  ;;  %v1868_v26 = vmul.f32 %v6679_v35, %v9111_v51  ;;  %v11143_v46 = vld [vmem:[#allocation24_spill] sm:$0xff]  ;;  %391 = vst.msk [vmem:[#allocation2 + $0x250] sm:$0xff] %vm237_vm0, %v358_v11  ;;  %v734_v11 = vld [vmem:[#allocation2 + $0x1c8] sm:$0xff] }
 0x22a   : > { %v9152_v31 = vmul.f32 %v11141_v49, %v8972_v19  ;;  %v602_v7 = vadd.f32 %v570_v28, %v502_v47  ;;  %v1201_v15 = vadd.f32 %v1169_v54, %v9062_v36  ;;  %v1269_v41 = vmul.f32 %v11143_v46, %v9121_v24  ;;  %v11146_v36 = vld [vmem:[#allocation60_spill] sm:$0xff]  ;;  %v11148_v54 = vld [vmem:[#allocation17_spill] sm:$0xff] }
 0x22b   : > { %v3097_v32 = vadd.f32 %v3065_v13, %v2997_v38  ;;  %v1900_v37 = vadd.f32 %v1868_v26, %v9077_v9  ;;  %v1968_v42 = vmul.f32 %v6683_v44, %v9121_v24  ;;  %v2566_v19 = vmul.f32 %v6810_v50, %v9111_v51 }
 0x22c   : > { %11142 = vst [vmem:[#allocation28_spill] sm:$0xff] %v9152_v31  ;;  %v11144_v31 = vld [vmem:[#allocation110_spill] sm:$0xff]  ;;  %v9169_v28 = vmul.f32 %v11146_v36, %v8982_v20  ;;  %v670_v60 = vmul.f32 %v11148_v54, %v9144_v8  ;;  %v1301_v13 = vadd.f32 %v1269_v41, %v1201_v15  ;;  %v3796_v38 = vadd.f32 %v3764_v2, %v3696_v59 }
 0x22d   : > { %v9165_v47 = vadd.f32 %v3963_v63, %v11144_v31  ;;  %v2000_v9 = vadd.f32 %v1968_v42, %v1900_v37  ;;  %v2598_v26 = vadd.f32 %v2566_v19, %v2498_v56  ;;  %v2666_v27 = vmul.f32 %v6829_v62, %v9121_v24  ;;  %v11149_v63 = vld [vmem:[#allocation25_spill] sm:$0xff]  ;;  %v11152_v41 = vld [vmem:[#allocation26_spill] sm:$0xff] }
 0x22e   : > { %11147 = vst [vmem:[#allocation59_spill] sm:$0xff] %v9169_v28  ;;  %v3895_v40 = vadd.f32 %v3863_v14, %v3795_v22  ;;  %v702_v58 = vadd.f32 %v670_v60, %v602_v7  ;;  %v1369_v31 = vmul.f32 %v11149_v63, %v9144_v8  ;;  %v3265_v20 = vmul.f32 %v6995_v1, %v9111_v51  ;;  %v9179_v28 = vld [vmem:[#allocation2 + $0x1cd] sm:$0xff] }
 0x22f   : > { %11145 = vst [vmem:[#allocation29_spill] sm:$0xff] %v9165_v47  ;;  %v9181_v47 = vadd.f32 %v3165_v61, %v3097_v32  ;;  %v770_v15 = vmul.f32 %v11151_v3, %v734_v11  ;;  %v2068_v56 = vmul.f32 %v6710_v57, %v9144_v8  ;;  %v2698_v2 = vadd.f32 %v2666_v27, %v2598_v26  ;;  %v9189_v37 = vld [vmem:[#allocation2 + $0x1ce] sm:$0xff] }
 0x230   : > { %v1401_v59 = vadd.f32 %v1369_v31, %v1301_v13  ;;  %v1469_v14 = vmul.f32 %v11152_v41, %v734_v11  ;;  %v2766_v22 = vmul.f32 %v6834_v5, %v9144_v8  ;;  %v3297_v7 = vadd.f32 %v3265_v20, %v3196_v16  ;;  %v9199_v26 = vld [vmem:[#allocation2 + $0x1cf] sm:$0xff] }
 0x231   : > { %11150 = vst [vmem:[#allocation24_spill] sm:$0xff] %v9181_v47  ;;  %v9191_v42 = vadd.f32 %v3864_v6, %v3796_v38  ;;  %v2100_v19 = vadd.f32 %v2068_v56, %v2000_v9  ;;  %v2168_v61 = vmul.f32 %v6727_v48, %v734_v11  ;;  %v471_v32 = vmul.f32 %v11093_v29, %v9179_v28  ;;  %v9201_v16 = vld [vmem:[#allocation2 + $0x1c9] sm:$0xff] }
 0x232   : > { %v802_v60 = vadd.f32 %v770_v15, %v702_v58  ;;  %v2798_v47 = vadd.f32 %v2766_v22, %v2698_v2  ;;  %v2866_v27 = vmul.f32 %v6848_v21, %v734_v11  ;;  %v3365_v13 = vmul.f32 %v6999_v17, %v9121_v24  ;;  %v9215_v2 = vld [vmem:[#allocation2 + $0x1d0] sm:$0xff] }
 0x233   : > { %11153 = vst [vmem:[#allocation110_spill] sm:$0xff] %v9191_v42  ;;  %v3465_v6 = vmul.f32 %v7005_v25, %v9144_v8  ;;  %v3565_v38 = vmul.f32 %v11091_v33, %v734_v11  ;;  %v503_v9 = vadd.f32 %v8583_v12, %v471_v32  ;;  %v571_v58 = vmul.f32 %v11118_v52, %v9189_v37  ;;  %v9219_v12 = vld [vmem:[#allocation2 + $0x1d1] sm:$0xff] }
 0x234   : > { %v1501_v31 = vadd.f32 %v1469_v14, %v1401_v59  ;;  %v3397_v20 = vadd.f32 %v3365_v13, %v3297_v7  ;;  %v3964_v15 = vmul.f32 %v7291_v45, %v9111_v51  ;;  %v9213_v56 = vmul.f32 %v11141_v49, %v9121_v24  ;;  %v11155_v32 = vld [vmem:[#allocation20_spill] sm:$0xff]  ;;  %v9229_v24 = vld [vmem:[#allocation2 + $0x1ca] sm:$0xff] }
 0x235   : > { %v2200_v22 = vadd.f32 %v2168_v61, %v2100_v19  ;;  %v603_v42 = vadd.f32 %v571_v58, %v503_v9  ;;  %v671_v11 = vmul.f32 %v11148_v54, %v9199_v26  ;;  %v870_v59 = vmul.f32 %v11155_v32, %v9201_v16  ;;  %v9231_v13 = vld [vmem:[#allocation2 + $0x1d2] sm:$0xff] }
 0x236   : > { %11154 = vst [vmem:[#allocation114_spill] sm:$0xff] %v9213_v56  ;;  %v2898_v14 = vadd.f32 %v2866_v27, %v2798_v47  ;;  %v9223_v7 = vadd.f32 %v3964_v15, %v3895_v40  ;;  %v9227_v51 = vmul.f32 %v11146_v36, %v9144_v8  ;;  %v1170_v19 = vmul.f32 %v6559_v55, %v9179_v28  ;;  %v9237_v56 = vld [vmem:[#allocation2 + $0x1cb] sm:$0xff]  ;;  %v9243_v27 = vld [vmem:[#allocation2 + $0x1d3] sm:$0xff] }
 0x237   : > { %v703_v61 = vadd.f32 %v671_v11, %v603_v42  ;;  %v771_v9 = vmul.f32 %v11151_v3, %v9215_v2  ;;  %v902_v58 = vadd.f32 %v870_v59, %v802_v60  ;;  %v1569_v40 = vmul.f32 %v10971_v53, %v9201_v16 }
 0x238   : > { %11156 = vst [vmem:[#allocation115_spill] sm:$0xff] %v9223_v7  ;;  %11157 = vst [vmem:[#allocation116_spill] sm:$0xff] %v9227_v51  ;;  %v3497_v47 = vadd.f32 %v3465_v6, %v3397_v20  ;;  %v871_v8 = vmul.f32 %v11155_v32, %v9219_v12  ;;  %v1202_v15 = vadd.f32 %v1170_v19, %v9094_v0  ;;  %v11158_v51 = vld [vmem:[#allocation22_spill] sm:$0xff]  ;;  %v11159_v6 = vld [vmem:[#allocation23_spill] sm:$0xff] }
 0x239   : > { %v1270_v42 = vmul.f32 %v11143_v46, %v9189_v37  ;;  %v803_v11 = vadd.f32 %v771_v9, %v703_v61  ;;  %v970_v60 = vmul.f32 %v11158_v51, %v9229_v24  ;;  %v971_v59 = vmul.f32 %v11158_v51, %v9231_v13 }
 0x23a   : > { %v1601_v7 = vadd.f32 %v1569_v40, %v1501_v31  ;;  %v1070_v20 = vmul.f32 %v11159_v6, %v9237_v56  ;;  %v1370_v32 = vmul.f32 %v11149_v63, %v9199_v26  ;;  %v1869_v0 = vmul.f32 %v6679_v35, %v9179_v28 }
 0x23b   : > { %v1302_v3 = vadd.f32 %v1270_v42, %v1202_v15  ;;  %v1002_v19 = vadd.f32 %v970_v60, %v902_v58  ;;  %v1071_v61 = vmul.f32 %v11159_v6, %v9243_v27  ;;  %v1470_v9 = vmul.f32 %v11152_v41, %v9215_v2 }
 0x23c   : > { %v1669_v31 = vmul.f32 %v11135_v34, %v9229_v24  ;;  %v903_v40 = vadd.f32 %v871_v8, %v803_v11  ;;  %v1901_v15 = vadd.f32 %v1869_v0, %v9113_v10  ;;  %v1969_v42 = vmul.f32 %v6683_v44, %v9189_v37 }
 0x23d   : > { %v1402_v51 = vadd.f32 %v1370_v32, %v1302_v3  ;;  %v3597_v63 = vadd.f32 %v3565_v38, %v3497_v47  ;;  %v1570_v58 = vmul.f32 %v10971_v53, %v9219_v12  ;;  %v1670_v60 = vmul.f32 %v11135_v34, %v9231_v13 }
 0x23e   : > { %v1701_v6 = vadd.f32 %v1669_v31, %v1601_v7  ;;  %v2001_v41 = vadd.f32 %v1969_v42, %v1901_v15  ;;  %v2069_v36 = vmul.f32 %v6710_v57, %v9199_v26  ;;  %v2268_v3 = vmul.f32 %v10952_v18, %v9201_v16 }
 0x23f   : > { %v1502_v54 = vadd.f32 %v1470_v9, %v1402_v51  ;;  %v9275_v10 = vadd.f32 %v1070_v20, %v1002_v19  ;;  %v1769_v38 = vmul.f32 %v11136_v30, %v9237_v56  ;;  %v1770_v32 = vmul.f32 %v11136_v30, %v9243_v27 }
 0x240   : > { %v2567_v47 = vmul.f32 %v6810_v50, %v9179_v28  ;;  %v1003_v7 = vadd.f32 %v971_v59, %v903_v40  ;;  %v2101_v51 = vadd.f32 %v2069_v36, %v2001_v41  ;;  %v2169_v8 = vmul.f32 %v6727_v48, %v9215_v2 }
 0x241   : > { %v2300_v11 = vadd.f32 %v2268_v3, %v2200_v22  ;;  %v1602_v0 = vadd.f32 %v1570_v58, %v1502_v54  ;;  %v2667_v20 = vmul.f32 %v6829_v62, %v9189_v37  ;;  %v2966_v19 = vmul.f32 %v6935_v43, %v9201_v16 }
 0x242   : > { %v2599_v9 = vadd.f32 %v2567_v47, %v9123_v23  ;;  %v1801_v31 = vadd.f32 %v1769_v38, %v1701_v6  ;;  %v2201_v15 = vadd.f32 %v2169_v8, %v2101_v51  ;;  %v2269_v42 = vmul.f32 %v10952_v18, %v9219_v12  ;;  %v11160_v6 = vld [vmem:[#allocation30_spill] sm:$0xff] }
 0x243   : > { %v2368_v36 = vmul.f32 %v10976_v4, %v9229_v24  ;;  %v2369_v41 = vmul.f32 %v10976_v4, %v9231_v13  ;;  %v2767_v23 = vmul.f32 %v6834_v5, %v9199_v26  ;;  %v2998_v22 = vadd.f32 %v2966_v19, %v2898_v14  ;;  %v11161_v14 = vld [vmem:[#allocation24_spill] sm:$0xff] }
 0x244   : > { %v2699_v54 = vadd.f32 %v2667_v20, %v2599_v9  ;;  %v2301_v59 = vadd.f32 %v2269_v42, %v2201_v15  ;;  %v2468_v40 = vmul.f32 %v6740_v39, %v9237_v56  ;;  %v3066_v58 = vmul.f32 %v11160_v6, %v9229_v24 }
 0x245   : > { %v3266_v3 = vmul.f32 %v6995_v1, %v9179_v28  ;;  %v9304_v38 = vadd.f32 %v1071_v61, %v1003_v7  ;;  %v1702_v47 = vadd.f32 %v1670_v60, %v1602_v0  ;;  %v2400_v51 = vadd.f32 %v2368_v36, %v2300_v11  ;;  %v11162_v60 = vld [vmem:[#allocation31_spill] sm:$0xff] }
 0x246   : > { %v2799_v8 = vadd.f32 %v2767_v23, %v2699_v54  ;;  %v2867_v9 = vmul.f32 %v6848_v21, %v9215_v2  ;;  %v3098_v20 = vadd.f32 %v3066_v58, %v2998_v22  ;;  %v3366_v15 = vmul.f32 %v6999_v17, %v9189_v37  ;;  %v11163_v54 = vld [vmem:[#allocation50_spill] sm:$0xff] }
 0x247   : > { %v3298_v19 = vadd.f32 %v3266_v3, %v11161_v14  ;;  %v2401_v42 = vadd.f32 %v2369_v41, %v2301_v59  ;;  %v2469_v4 = vmul.f32 %v6740_v39, %v9243_v27  ;;  %v2967_v61 = vmul.f32 %v6935_v43, %v9219_v12  ;;  %v9321_v22 = vld [vmem:[#allocation2 + $0x1e5] sm:$0xff] }
 0x248   : > { %v3166_v7 = vmul.f32 %v11162_v60, %v9237_v56  ;;  %v2899_v11 = vadd.f32 %v2867_v9, %v2799_v8  ;;  %v3466_v36 = vmul.f32 %v7005_v25, %v9199_v26  ;;  %v3665_v23 = vmul.f32 %v11163_v54, %v9201_v16 }
 0x249   : > { %v3398_v0 = vadd.f32 %v3366_v15, %v3298_v19  ;;  %v9323_v41 = vadd.f32 %v1770_v32, %v1702_v47  ;;  %v2500_v59 = vadd.f32 %v2468_v40, %v2400_v51  ;;  %v3067_v58 = vmul.f32 %v11160_v6, %v9231_v13  ;;  %v9331_v15 = vld [vmem:[#allocation2 + $0x1e6] sm:$0xff]  ;;  %v11164_v40 = vld [vmem:[#allocation51_spill] sm:$0xff] }
 0x24a   : > { %v3167_v3 = vmul.f32 %v11162_v60, %v9243_v27  ;;  %v3198_v14 = vadd.f32 %v3166_v7, %v3098_v20  ;;  %v3566_v9 = vmul.f32 %v11091_v33, %v9215_v2  ;;  %v3697_v19 = vadd.f32 %v3665_v23, %v3597_v63  ;;  %v11165_v63 = vld [vmem:[#allocation52_spill] sm:$0xff] }
 0x24b   : > { %v3498_v8 = vadd.f32 %v3466_v36, %v3398_v0  ;;  %v9333_v16 = vadd.f32 %v2469_v4, %v2401_v42  ;;  %v3666_v32 = vmul.f32 %v11163_v54, %v9219_v12  ;;  %v3765_v47 = vmul.f32 %v11164_v40, %v9229_v24  ;;  %v5945_v12 = vld [vmem:[%s10625_s2] ss:$0 sm:$0xff] }
 0x24c   : > { %v472_v51 = vmul.f32 %v11093_v29, %v9321_v22  ;;  %v2999_v60 = vadd.f32 %v2967_v61, %v2899_v11  ;;  %v3766_v7 = vmul.f32 %v11164_v40, %v9231_v13  ;;  %v3865_v2 = vmul.f32 %v11165_v63, %v9237_v56  ;;  %v636_v56 = vld [vmem:[#allocation2 + $0x1e7] sm:$0xff] }
 0x24d   : > { %v3598_v20 = vadd.f32 %v3566_v9, %v3498_v8  ;;  %v3866_v4 = vmul.f32 %v11165_v63, %v9243_v27  ;;  %v572_v24 = vmul.f32 %v11118_v52, %v9331_v15  ;;  %v1171_v61 = vmul.f32 %v6559_v55, %v9321_v22  ;;  %v11172_v54 = vld [vmem:[#allocation25_spill] sm:$0xff] }
 0x24e   : > { %v504_v42 = vadd.f32 %v5945_v12, %v472_v51  ;;  %v3797_v0 = vadd.f32 %v3765_v47, %v3697_v19  ;;  %v3965_v13 = vmul.f32 %v7291_v45, %v9179_v28  ;;  %v1870_v27 = vmul.f32 %v6679_v35, %v9321_v22  ;;  %v11167_v47 = vld [vmem:[#allocation110_spill] sm:$0xff] }
 0x24f   : > { %v3698_v11 = vadd.f32 %v3666_v32, %v3598_v20  ;;  %v9360_v36 = vmul.f32 %v11141_v49, %v9189_v37  ;;  %v1203_v8 = vadd.f32 %v1171_v61, %v9275_v10  ;;  %v1271_v9 = vmul.f32 %v11143_v46, %v9331_v15  ;;  %v11169_v37 = vld [vmem:[#allocation60_spill] sm:$0xff] }
 0x250   : > { %v604_v23 = vadd.f32 %v572_v24, %v504_v42  ;;  %v3099_v51 = vadd.f32 %v3067_v58, %v2999_v60  ;;  %v1902_v32 = vadd.f32 %v1870_v27, %v1801_v31  ;;  %v1970_v19 = vmul.f32 %v6683_v44, %v9331_v15  ;;  %v11171_v42 = vld [vmem:[#allocation17_spill] sm:$0xff]  ;;  %v736_v24 = vld [vmem:[#allocation2 + $0x1e8] sm:$0xff] }
 0x251   : > { %11166 = vst [vmem:[#allocation24_spill] sm:$0xff] %v9360_v36  ;;  %v2568_v28 = vmul.f32 %v6810_v50, %v9321_v22  ;;  %v9370_v20 = vadd.f32 %v3965_v13, %v11167_v47  ;;  %v9374_v36 = vmul.f32 %v11169_v37, %v9199_v26  ;;  %v672_v10 = vmul.f32 %v11171_v42, %v636_v56  ;;  %v9382_v47 = vld [vmem:[#allocation2 + $0x1ed] sm:$0xff] }
 0x252   : > { %v1303_v61 = vadd.f32 %v1271_v9, %v1203_v8  ;;  %v3798_v63 = vadd.f32 %v3766_v7, %v3698_v11  ;;  %v2002_v60 = vadd.f32 %v1970_v19, %v1902_v32  ;;  %v2668_v58 = vmul.f32 %v6829_v62, %v9331_v15  ;;  %v11174_v8 = vld [vmem:[#allocation26_spill] sm:$0xff] }
 0x253   : > { %11168 = vst [vmem:[#allocation110_spill] sm:$0xff] %v9370_v20  ;;  %11170 = vst [vmem:[#allocation60_spill] sm:$0xff] %v9374_v36  ;;  %v2600_v31 = vadd.f32 %v2568_v28, %v2500_v59  ;;  %v3897_v27 = vadd.f32 %v3865_v2, %v3797_v0  ;;  %v704_v40 = vadd.f32 %v672_v10, %v604_v23  ;;  %v11173_v36 = vld [vmem:[#allocation18_spill] sm:$0xff] }
 0x254   : > { %v1371_v6 = vmul.f32 %v11172_v54, %v636_v56  ;;  %v3267_v13 = vmul.f32 %v6995_v1, %v9321_v22  ;;  %v9384_v26 = vadd.f32 %v3167_v3, %v3099_v51  ;;  %v772_v20 = vmul.f32 %v11173_v36, %v736_v24  ;;  %v9390_v23 = vld [vmem:[#allocation2 + $0x1ee] sm:$0xff] }
 0x255   : > { %v2070_v7 = vmul.f32 %v6710_v57, %v636_v56  ;;  %v2700_v11 = vadd.f32 %v2668_v58, %v2600_v31  ;;  %v1471_v9 = vmul.f32 %v11174_v8, %v736_v24  ;;  %v2768_v2 = vmul.f32 %v6834_v5, %v636_v56 }
 0x256   : > { %v1403_v59 = vadd.f32 %v1371_v6, %v1303_v61  ;;  %v3299_v0 = vadd.f32 %v3267_v13, %v3198_v14  ;;  %v9392_v32 = vadd.f32 %v3866_v4, %v3798_v63  ;;  %v2170_v28 = vmul.f32 %v6727_v48, %v736_v24  ;;  %v9400_v61 = vld [vmem:[#allocation2 + $0x1ef] sm:$0xff] }
 0x257   : > { %v2102_v19 = vadd.f32 %v2070_v7, %v2002_v60  ;;  %v473_v3 = vmul.f32 %v11093_v29, %v9382_v47  ;;  %v804_v51 = vadd.f32 %v772_v20, %v704_v40  ;;  %v2800_v10 = vadd.f32 %v2768_v2, %v2700_v11  ;;  %v9402_v14 = vld [vmem:[#allocation2 + $0x1e9] sm:$0xff] }
 0x258   : > { %v2868_v31 = vmul.f32 %v6848_v21, %v736_v24  ;;  %v3367_v6 = vmul.f32 %v6999_v17, %v9331_v15  ;;  %v3467_v63 = vmul.f32 %v7005_v25, %v636_v56  ;;  %v3567_v4 = vmul.f32 %v11091_v33, %v736_v24  ;;  %v9414_v7 = vld [vmem:[#allocation2 + $0x1f0] sm:$0xff] }
 0x259   : > { %v505_v60 = vadd.f32 %v5945_v12, %v473_v3  ;;  %v573_v58 = vmul.f32 %v11118_v52, %v9390_v23  ;;  %v1503_v29 = vadd.f32 %v1471_v9, %v1403_v59  ;;  %v3966_v20 = vmul.f32 %v7291_v45, %v9321_v22  ;;  %v9418_v12 = vld [vmem:[#allocation2 + $0x1f1] sm:$0xff] }
 0x25a   : > { %v3399_v40 = vadd.f32 %v3367_v6, %v3299_v0  ;;  %v9412_v13 = vmul.f32 %v11141_v49, %v9331_v15  ;;  %v2202_v11 = vadd.f32 %v2170_v28, %v2102_v19  ;;  %v673_v24 = vmul.f32 %v11171_v42, %v9400_v61  ;;  %v11176_v52 = vld [vmem:[#allocation20_spill] sm:$0xff]  ;;  %v9427_v15 = vld [vmem:[#allocation2 + $0x1ea] sm:$0xff] }
 0x25b   : > { %v605_v2 = vadd.f32 %v573_v58, %v505_v60  ;;  %v872_v59 = vmul.f32 %v11176_v52, %v9402_v14  ;;  %v2900_v9 = vadd.f32 %v2868_v31, %v2800_v10  ;;  %v9422_v0 = vadd.f32 %v3966_v20, %v3897_v27  ;;  %v9429_v3 = vld [vmem:[#allocation2 + $0x1f2] sm:$0xff] }
 0x25c   : > { %11175 = vst [vmem:[#allocation17_spill] sm:$0xff] %v9412_v13  ;;  %v9425_v22 = vmul.f32 %v11169_v37, %v636_v56  ;;  %v1172_v19 = vmul.f32 %v6559_v55, %v9382_v47  ;;  %v773_v42 = vmul.f32 %v11173_v36, %v9414_v7  ;;  %v9435_v60 = vld [vmem:[#allocation2 + $0x1eb] sm:$0xff]  ;;  %v1571_v27 = vmul.f32 %v10971_v53, %v9402_v14  ;;  %v9441_v31 = vld [vmem:[#allocation2 + $0x1f3] sm:$0xff] }
 0x25d   : > { %11177 = vst [vmem:[#allocation18_spill] sm:$0xff] %v9422_v0  ;;  %v705_v28 = vadd.f32 %v673_v24, %v605_v2  ;;  %v904_v6 = vadd.f32 %v872_v59, %v804_v51  ;;  %v3499_v10 = vadd.f32 %v3467_v63, %v3399_v40  ;;  %v873_v56 = vmul.f32 %v11176_v52, %v9418_v12  ;;  %v11179_v36 = vld [vmem:[#allocation22_spill] sm:$0xff]  ;;  %v11180_v63 = vld [vmem:[#allocation23_spill] sm:$0xff] }
 0x25e   : > { %11178 = vst [vmem:[#allocation20_spill] sm:$0xff] %v9425_v22  ;;  %v1204_v58 = vadd.f32 %v1172_v19, %v9304_v38  ;;  %v1272_v20 = vmul.f32 %v11143_v46, %v9390_v23  ;;  %v972_v51 = vmul.f32 %v11179_v36, %v9427_v15  ;;  %v973_v24 = vmul.f32 %v11179_v36, %v9429_v3 }
 0x25f   : > { %v805_v2 = vadd.f32 %v773_v42, %v705_v28  ;;  %v1603_v59 = vadd.f32 %v1571_v27, %v1503_v29  ;;  %v1072_v40 = vmul.f32 %v11180_v63, %v9435_v60  ;;  %v1372_v52 = vmul.f32 %v11172_v54, %v9400_v61 }
 0x260   : > { %v1304_v22 = vadd.f32 %v1272_v20, %v1204_v58  ;;  %v1871_v38 = vmul.f32 %v6679_v35, %v9382_v47  ;;  %v1004_v19 = vadd.f32 %v972_v51, %v904_v6  ;;  %v1073_v28 = vmul.f32 %v11180_v63, %v9441_v31 }
 0x261   : > { %v1472_v42 = vmul.f32 %v11174_v8, %v9414_v7  ;;  %v1671_v29 = vmul.f32 %v11135_v34, %v9427_v15  ;;  %v905_v27 = vadd.f32 %v873_v56, %v805_v2  ;;  %v1971_v20 = vmul.f32 %v6683_v44, %v9390_v23 }
 0x262   : > { %v1404_v36 = vadd.f32 %v1372_v52, %v1304_v22  ;;  %v1903_v58 = vadd.f32 %v1871_v38, %v9323_v41  ;;  %v3599_v13 = vadd.f32 %v3567_v4, %v3499_v10  ;;  %v1572_v6 = vmul.f32 %v10971_v53, %v9418_v12 }
 0x263   : > { %v1672_v51 = vmul.f32 %v11135_v34, %v9429_v3  ;;  %v1703_v63 = vadd.f32 %v1671_v29, %v1603_v59  ;;  %v2071_v54 = vmul.f32 %v6710_v57, %v9400_v61  ;;  %v2270_v22 = vmul.f32 %v10952_v18, %v9402_v14 }
 0x264   : > { %v1504_v0 = vadd.f32 %v1472_v42, %v1404_v36  ;;  %v2003_v8 = vadd.f32 %v1971_v20, %v1903_v58  ;;  %v1104_v41 = vadd.f32 %v1072_v40, %v1004_v19  ;;  %v1771_v56 = vmul.f32 %v11136_v30, %v9435_v60 }
 0x265   : > { %v1772_v4 = vmul.f32 %v11136_v30, %v9441_v31  ;;  %v2569_v10 = vmul.f32 %v6810_v50, %v9382_v47  ;;  %v1005_v2 = vadd.f32 %v973_v24, %v905_v27  ;;  %v2171_v52 = vmul.f32 %v6727_v48, %v9414_v7 }
 0x266   : > { %v2103_v59 = vadd.f32 %v2071_v54, %v2003_v8  ;;  %v2302_v38 = vadd.f32 %v2270_v22, %v2202_v11  ;;  %v1604_v42 = vadd.f32 %v1572_v6, %v1504_v0  ;;  %v2669_v40 = vmul.f32 %v6829_v62, %v9390_v23  ;;  %v11181_v54 = vld [vmem:[#allocation33_spill] sm:$0xff] }
 0x267   : > { %v2601_v29 = vadd.f32 %v2569_v10, %v9333_v16  ;;  %v2968_v19 = vmul.f32 %v6935_v43, %v9402_v14  ;;  %v1803_v36 = vadd.f32 %v1771_v56, %v1703_v63  ;;  %v2271_v20 = vmul.f32 %v10952_v18, %v9418_v12  ;;  %v11182_v63 = vld [vmem:[#allocation30_spill] sm:$0xff] }
 0x268   : > { %v2203_v58 = vadd.f32 %v2171_v52, %v2103_v59  ;;  %v2370_v8 = vmul.f32 %v11181_v54, %v9427_v15  ;;  %v2371_v11 = vmul.f32 %v11181_v54, %v9429_v3  ;;  %v2769_v16 = vmul.f32 %v6834_v5, %v9400_v61 }
 0x269   : > { %v2701_v0 = vadd.f32 %v2669_v40, %v2601_v29  ;;  %v3000_v24 = vadd.f32 %v2968_v19, %v2900_v9  ;;  %v2470_v6 = vmul.f32 %v6740_v39, %v9435_v60  ;;  %v3068_v22 = vmul.f32 %v11182_v63, %v9427_v15 }
 0x26a   : > { %v2303_v27 = vadd.f32 %v2271_v20, %v2203_v58  ;;  %v3268_v56 = vmul.f32 %v6995_v1, %v9382_v47  ;;  %v9500_v10 = vadd.f32 %v1073_v28, %v1005_v2  ;;  %v1704_v59 = vadd.f32 %v1672_v51, %v1604_v42  ;;  %v11183_v51 = vld [vmem:[#allocation31_spill] sm:$0xff] }
 0x26b   : > { %v2402_v52 = vadd.f32 %v2370_v8, %v2302_v38  ;;  %v2801_v54 = vadd.f32 %v2769_v16, %v2701_v0  ;;  %v2869_v29 = vmul.f32 %v6848_v21, %v9414_v7  ;;  %v3100_v40 = vadd.f32 %v3068_v22, %v3000_v24  ;;  %v9517_v16 = vld [vmem:[#allocation2 + $0x205] sm:$0xff] }
 0x26c   : > { %v3300_v9 = vadd.f32 %v3268_v56, %v9384_v26  ;;  %v3368_v19 = vmul.f32 %v6999_v17, %v9390_v23  ;;  %v2403_v58 = vadd.f32 %v2371_v11, %v2303_v27  ;;  %v2471_v20 = vmul.f32 %v6740_v39, %v9441_v31  ;;  %v11184_v26 = vld [vmem:[#allocation50_spill] sm:$0xff] }
 0x26d   : > { %v2969_v28 = vmul.f32 %v6935_v43, %v9418_v12  ;;  %v3168_v2 = vmul.f32 %v11183_v51, %v9435_v60  ;;  %v2901_v38 = vadd.f32 %v2869_v29, %v2801_v54  ;;  %v3468_v8 = vmul.f32 %v7005_v25, %v9400_v61 }
 0x26e   : > { %v3400_v42 = vadd.f32 %v3368_v19, %v3300_v9  ;;  %v3667_v0 = vmul.f32 %v11184_v26, %v9402_v14  ;;  %v9519_v11 = vadd.f32 %v1772_v4, %v1704_v59  ;;  %v2502_v24 = vadd.f32 %v2470_v6, %v2402_v52  ;;  %v1237_v19 = vld [vmem:[#allocation2 + $0x206] sm:$0xff]  ;;  %v11185_v4 = vld [vmem:[#allocation51_spill] sm:$0xff] }
 0x26f   : > { %v3069_v27 = vmul.f32 %v11182_v63, %v9429_v3  ;;  %v3169_v22 = vmul.f32 %v11183_v51, %v9441_v31  ;;  %v3200_v56 = vadd.f32 %v3168_v2, %v3100_v40  ;;  %v3568_v29 = vmul.f32 %v11091_v33, %v9414_v7  ;;  %v11186_v7 = vld [vmem:[#allocation52_spill] sm:$0xff] }
 0x270   : > { %v3500_v54 = vadd.f32 %v3468_v8, %v3400_v42  ;;  %v3699_v9 = vadd.f32 %v3667_v0, %v3599_v13  ;;  %v9527_v39 = vadd.f32 %v2471_v20, %v2403_v58  ;;  %v3668_v14 = vmul.f32 %v11184_v26, %v9418_v12 }
 0x271   : > { %v3767_v6 = vmul.f32 %v11185_v4, %v9427_v15  ;;  %v1173_v59 = vmul.f32 %v6559_v55, %v9517_v16  ;;  %v3001_v52 = vadd.f32 %v2969_v28, %v2901_v38  ;;  %v3768_v40 = vmul.f32 %v11185_v4, %v9429_v3  ;;  %v1337_v38 = vld [vmem:[#allocation2 + $0x207] sm:$0xff] }
 0x272   : > { %v3600_v51 = vadd.f32 %v3568_v29, %v3500_v54  ;;  %v3867_v13 = vmul.f32 %v11186_v7, %v9435_v60  ;;  %v3868_v58 = vmul.f32 %v11186_v7, %v9441_v31  ;;  %v1273_v12 = vmul.f32 %v11143_v46, %v1237_v19 }
 0x273   : > { %v1205_v20 = vadd.f32 %v1173_v59, %v1104_v41  ;;  %v1872_v15 = vmul.f32 %v6679_v35, %v9517_v16  ;;  %v3799_v42 = vadd.f32 %v3767_v6, %v3699_v9  ;;  %v3967_v28 = vmul.f32 %v7291_v45, %v9382_v47  ;;  %v1437_v6 = vld [vmem:[#allocation2 + $0x208] sm:$0xff] }
 0x274   : > { %v3700_v2 = vadd.f32 %v3668_v14, %v3600_v51  ;;  %v2570_v3 = vmul.f32 %v6810_v50, %v9517_v16  ;;  %v9550_v60 = vmul.f32 %v11141_v49, %v9390_v23  ;;  %v1972_v8 = vmul.f32 %v6683_v44, %v1237_v19  ;;  %v11189_v23 = vld [vmem:[#allocation25_spill] sm:$0xff]  ;;  %v9564_v59 = vld [vmem:[#allocation2 + $0x20d] sm:$0xff] }
 0x275   : > { %v1305_v31 = vadd.f32 %v1273_v12, %v1205_v20  ;;  %v1904_v41 = vadd.f32 %v1872_v15, %v1803_v36  ;;  %v3101_v0 = vadd.f32 %v3069_v27, %v3001_v52  ;;  %v2670_v51 = vmul.f32 %v6829_v62, %v1237_v19 }
 0x276   : > { %11187 = vst [vmem:[#allocation22_spill] sm:$0xff] %v9550_v60  ;;  %v2602_v54 = vadd.f32 %v2570_v3, %v2502_v24  ;;  %v3269_v29 = vmul.f32 %v6995_v1, %v9517_v16  ;;  %v9557_v47 = vadd.f32 %v3967_v28, %v9392_v32  ;;  %v9561_v9 = vmul.f32 %v11169_v37, %v9400_v61  ;;  %v9569_v3 = vld [vmem:[#allocation2 + $0x20e] sm:$0xff] }
 0x277   : > { %v1373_v14 = vmul.f32 %v11189_v23, %v1337_v38  ;;  %v2004_v36 = vadd.f32 %v1972_v8, %v1904_v41  ;;  %v3800_v27 = vadd.f32 %v3768_v40, %v3700_v2  ;;  %v2072_v24 = vmul.f32 %v6710_v57, %v1337_v38 }
 0x278   : > { %11188 = vst [vmem:[#allocation23_spill] sm:$0xff] %v9561_v9  ;;  %v2702_v52 = vadd.f32 %v2670_v51, %v2602_v54  ;;  %v3301_v20 = vadd.f32 %v3269_v29, %v3200_v56  ;;  %v3899_v12 = vadd.f32 %v3867_v13, %v3799_v42  ;;  %v2770_v32 = vmul.f32 %v6834_v5, %v1337_v38  ;;  %v11190_v9 = vld [vmem:[#allocation26_spill] sm:$0xff] }
 0x279   : > { %v1405_v15 = vadd.f32 %v1373_v14, %v1305_v31  ;;  %v3369_v28 = vmul.f32 %v6999_v17, %v1237_v19  ;;  %v9571_v61 = vadd.f32 %v3169_v22, %v3101_v0  ;;  %v1473_v60 = vmul.f32 %v11190_v9, %v1437_v6  ;;  %v9578_v42 = vld [vmem:[#allocation2 + $0x20f] sm:$0xff] }
 0x27a   : > { %v2104_v41 = vadd.f32 %v2072_v24, %v2004_v36  ;;  %v1174_v40 = vmul.f32 %v6559_v55, %v9564_v59  ;;  %v2172_v2 = vmul.f32 %v6727_v48, %v1437_v6  ;;  %v2802_v8 = vadd.f32 %v2770_v32, %v2702_v52  ;;  %v9592_v36 = vld [vmem:[#allocation2 + $0x210] sm:$0xff] }
 0x27b   : > { %v2870_v56 = vmul.f32 %v6848_v21, %v1437_v6  ;;  %v3401_v13 = vadd.f32 %v3369_v28, %v3301_v20  ;;  %v9580_v31 = vadd.f32 %v3868_v58, %v3800_v27  ;;  %v3469_v54 = vmul.f32 %v7005_v25, %v1337_v38  ;;  %v9594_v58 = vld [vmem:[#allocation2 + $0x209] sm:$0xff]  ;;  %v9607_v20 = vld [vmem:[#allocation2 + $0x212] sm:$0xff] }
 0x27c   : > { %v1206_v22 = vadd.f32 %v1174_v40, %v9500_v10  ;;  %v1274_v0 = vmul.f32 %v11143_v46, %v9569_v3  ;;  %v1505_v51 = vadd.f32 %v1473_v60, %v1405_v15  ;;  %v3569_v55 = vmul.f32 %v11091_v33, %v1437_v6  ;;  %v9601_v60 = vld [vmem:[#allocation2 + $0x211] sm:$0xff] }
 0x27d   : > { %v3968_v29 = vmul.f32 %v7291_v45, %v9517_v16  ;;  %v9590_v14 = vmul.f32 %v11141_v49, %v1237_v19  ;;  %v2204_v27 = vadd.f32 %v2172_v2, %v2104_v41  ;;  %v9597_v24 = vmul.f32 %v11169_v37, %v1337_v38  ;;  %v9603_v6 = vld [vmem:[#allocation2 + $0x20a] sm:$0xff] }
 0x27e   : > { %v1306_v10 = vadd.f32 %v1274_v0, %v1206_v22  ;;  %v1374_v46 = vmul.f32 %v11189_v23, %v9578_v42  ;;  %v2902_v16 = vadd.f32 %v2870_v56, %v2802_v8  ;;  %v3501_v52 = vadd.f32 %v3469_v54, %v3401_v13  ;;  %v9621_v40 = vld [vmem:[#allocation2 + $0x20b] sm:$0xff]  ;;  %v1738_v0 = vld [vmem:[#allocation2 + $0x213] sm:$0xff] }
 0x27f   : > { %11191 = vst [vmem:[#allocation30_spill] sm:$0xff] %v9590_v14  ;;  %11192 = vst [vmem:[#allocation50_spill] sm:$0xff] %v9597_v24  ;;  %v9605_v19 = vadd.f32 %v3968_v29, %v3899_v12  ;;  %v1873_v15 = vmul.f32 %v6679_v35, %v9564_v59  ;;  %v1474_v38 = vmul.f32 %v11190_v9, %v9592_v36 }
 0x280   : > { %v1406_v32 = vadd.f32 %v1374_v46, %v1306_v10  ;;  %v1573_v23 = vmul.f32 %v10971_v53, %v9594_v58  ;;  %v2272_v28 = vmul.f32 %v10952_v18, %v9594_v58  ;;  %v1574_v41 = vmul.f32 %v10971_v53, %v9601_v60 }
 0x281   : > { %11193 = vst [vmem:[#allocation51_spill] sm:$0xff] %v9605_v19  ;;  %v1673_v12 = vmul.f32 %v11135_v34, %v9603_v6  ;;  %v1905_v2 = vadd.f32 %v1873_v15, %v9519_v11  ;;  %v1973_v8 = vmul.f32 %v6683_v44, %v9569_v3  ;;  %v1674_v13 = vmul.f32 %v11135_v34, %v9607_v20 }
 0x282   : > { %v1506_v9 = vadd.f32 %v1474_v38, %v1406_v32  ;;  %v1605_v56 = vadd.f32 %v1573_v23, %v1505_v51  ;;  %v2304_v54 = vadd.f32 %v2272_v28, %v2204_v27  ;;  %v3601_v22 = vadd.f32 %v3569_v55, %v3501_v52  ;;  %v11194_v51 = vld [vmem:[#allocation33_spill] sm:$0xff] }
 0x283   : > { %v2005_v29 = vadd.f32 %v1973_v8, %v1905_v2  ;;  %v2073_v53 = vmul.f32 %v6710_v57, %v9578_v42  ;;  %v2571_v10 = vmul.f32 %v6810_v50, %v9564_v59  ;;  %v1773_v11 = vmul.f32 %v11136_v30, %v9621_v40 }
 0x284   : > { %v2173_v46 = vmul.f32 %v6727_v48, %v9592_v36  ;;  %v2372_v15 = vmul.f32 %v11194_v51, %v9603_v6  ;;  %v2671_v34 = vmul.f32 %v6829_v62, %v9569_v3  ;;  %v1606_v55 = vadd.f32 %v1574_v41, %v1506_v9 }
 0x285   : > { %v2105_v27 = vadd.f32 %v2073_v53, %v2005_v29  ;;  %v2603_v52 = vadd.f32 %v2571_v10, %v9527_v39  ;;  %v2970_v32 = vmul.f32 %v6935_v43, %v9594_v58  ;;  %v1705_v38 = vadd.f32 %v1673_v12, %v1605_v56  ;;  %v11195_v39 = vld [vmem:[#allocation34_spill] sm:$0xff] }
 0x286   : > { %v1774_v23 = vmul.f32 %v11136_v30, %v1738_v0  ;;  %v2273_v28 = vmul.f32 %v10952_v18, %v9601_v60  ;;  %v2404_v2 = vadd.f32 %v2372_v15, %v2304_v54  ;;  %v2771_v14 = vmul.f32 %v6834_v5, %v9578_v42 }
 0x287   : > { %v2205_v8 = vadd.f32 %v2173_v46, %v2105_v27  ;;  %v2703_v24 = vadd.f32 %v2671_v34, %v2603_v52  ;;  %v3002_v19 = vadd.f32 %v2970_v32, %v2902_v16  ;;  %v2373_v41 = vmul.f32 %v11194_v51, %v9607_v20 }
 0x288   : > { %v2472_v9 = vmul.f32 %v11195_v39, %v9621_v40  ;;  %v2871_v12 = vmul.f32 %v6848_v21, %v9592_v36  ;;  %v3270_v30 = vmul.f32 %v6995_v1, %v9564_v59  ;;  %v1706_v56 = vadd.f32 %v1674_v13, %v1606_v55 }
 0x289   : > { %v2305_v54 = vadd.f32 %v2273_v28, %v2205_v8  ;;  %v2803_v29 = vadd.f32 %v2771_v14, %v2703_v24  ;;  %v3070_v53 = vmul.f32 %v11182_v63, %v9603_v6  ;;  %v1805_v10 = vadd.f32 %v1773_v11, %v1705_v38  ;;  %v1838_v11 = vld [vmem:[#allocation2 + $0x225] sm:$0xff]  ;;  %v11196_v28 = vld [vmem:[#allocation31_spill] sm:$0xff] }
 0x28a   : > { %v2473_v16 = vmul.f32 %v11195_v39, %v1738_v0  ;;  %v3302_v46 = vadd.f32 %v3270_v30, %v9571_v61  ;;  %v3370_v15 = vmul.f32 %v6999_v17, %v9569_v3  ;;  %v2504_v34 = vadd.f32 %v2472_v9, %v2404_v2  ;;  %v1938_v30 = vld [vmem:[#allocation2 + $0x226] sm:$0xff] }
 0x28b   : > { %v2903_v27 = vadd.f32 %v2871_v12, %v2803_v29  ;;  %v2971_v52 = vmul.f32 %v6935_v43, %v9601_v60  ;;  %v3102_v32 = vadd.f32 %v3070_v53, %v3002_v19  ;;  %v2405_v13 = vadd.f32 %v2373_v41, %v2305_v54  ;;  %v2038_v29 = vld [vmem:[#allocation2 + $0x227] sm:$0xff] }
 0x28c   : > { %v3402_v55 = vadd.f32 %v3370_v15, %v3302_v46  ;;  %v3470_v14 = vmul.f32 %v7005_v25, %v9578_v42  ;;  %v3669_v24 = vmul.f32 %v11184_v26, %v9594_v58  ;;  %v1806_v38 = vadd.f32 %v1774_v23, %v1706_v56 }
 0x28d   : > { %v3071_v61 = vmul.f32 %v11182_v63, %v9607_v20  ;;  %v3170_v2 = vmul.f32 %v11196_v28, %v9621_v40  ;;  %v3171_v8 = vmul.f32 %v11196_v28, %v1738_v0  ;;  %v3003_v9 = vadd.f32 %v2971_v52, %v2903_v27 }
 0x28e   : > { %v3502_v19 = vadd.f32 %v3470_v14, %v3402_v55  ;;  %v3570_v41 = vmul.f32 %v11091_v33, %v9592_v36  ;;  %v3701_v12 = vadd.f32 %v3669_v24, %v3601_v22  ;;  %v3670_v58 = vmul.f32 %v11184_v26, %v9601_v60  ;;  %v2138_v24 = vld [vmem:[#allocation2 + $0x228] sm:$0xff] }
 0x28f   : > { %v3202_v54 = vadd.f32 %v3170_v2, %v3102_v32  ;;  %v3769_v23 = vmul.f32 %v11185_v4, %v9603_v6  ;;  %v1874_v56 = vmul.f32 %v6679_v35, %v1838_v11  ;;  %v9680_v53 = vadd.f32 %v2473_v16, %v2405_v13 }
 0x290   : > { %v3602_v46 = vadd.f32 %v3570_v41, %v3502_v19  ;;  %v3770_v15 = vmul.f32 %v11185_v4, %v9607_v20  ;;  %v3869_v36 = vmul.f32 %v11186_v7, %v9621_v40  ;;  %v3870_v22 = vmul.f32 %v11186_v7, %v1738_v0  ;;  %v9692_v40 = vld [vmem:[#allocation2 + $0x22d] sm:$0xff] }
 0x291   : > { %v1906_v27 = vadd.f32 %v1874_v56, %v1805_v10  ;;  %v1974_v60 = vmul.f32 %v6683_v44, %v1938_v30  ;;  %v2572_v52 = vmul.f32 %v6810_v50, %v1838_v11  ;;  %v3103_v6 = vadd.f32 %v3071_v61, %v3003_v9 }
 0x292   : > { %v3801_v32 = vadd.f32 %v3769_v23, %v3701_v12  ;;  %v2074_v55 = vmul.f32 %v6710_v57, %v2038_v29  ;;  %v3271_v16 = vmul.f32 %v6995_v1, %v1838_v11  ;;  %v3702_v13 = vadd.f32 %v3670_v58, %v3602_v46  ;;  %v9706_v58 = vld [vmem:[#allocation2 + $0x22e] sm:$0xff] }
 0x293   : > { %v2006_v14 = vadd.f32 %v1974_v60, %v1906_v27  ;;  %v2604_v20 = vadd.f32 %v2572_v52, %v2504_v34  ;;  %v2672_v2 = vmul.f32 %v6829_v62, %v1938_v30  ;;  %v3969_v0 = vmul.f32 %v7291_v45, %v9564_v59  ;;  %v9714_v60 = vld [vmem:[#allocation2 + $0x22f] sm:$0xff] }
 0x294   : > { %v9698_v10 = vmul.f32 %v11141_v49, %v9569_v3  ;;  %v9702_v61 = vmul.f32 %v11169_v37, %v9578_v42  ;;  %v3303_v9 = vadd.f32 %v3271_v16, %v3202_v54  ;;  %v2772_v34 = vmul.f32 %v6834_v5, %v2038_v29  ;;  %v2238_v52 = vld [vmem:[#allocation2 + $0x229] sm:$0xff] }
 0x295   : > { %v2106_v19 = vadd.f32 %v2074_v55, %v2006_v14  ;;  %v2704_v41 = vadd.f32 %v2672_v2, %v2604_v20  ;;  %v3371_v12 = vmul.f32 %v6999_v17, %v1938_v30  ;;  %v3901_v23 = vadd.f32 %v3869_v36, %v3801_v32  ;;  %v2239_v2 = vld [vmem:[#allocation2 + $0x231] sm:$0xff] }
 0x296   : > { %v9709_v59 = vadd.f32 %v3969_v0, %v9580_v31  ;;  %v2174_v3 = vmul.f32 %v6727_v48, %v2138_v24  ;;  %v1875_v56 = vmul.f32 %v6679_v35, %v9692_v40  ;;  %v3203_v42 = vadd.f32 %v3171_v8, %v3103_v6 }
 0x297   : > { %v3802_v46 = vadd.f32 %v3770_v15, %v3702_v13  ;;  %v2804_v54 = vadd.f32 %v2772_v34, %v2704_v41  ;;  %v3403_v27 = vadd.f32 %v3371_v12, %v3303_v9  ;;  %v2872_v16 = vmul.f32 %v6848_v21, %v2138_v24  ;;  %v2139_v15 = vld [vmem:[#allocation2 + $0x230] sm:$0xff] }
 0x298   : > { %v2206_v55 = vadd.f32 %v2174_v3, %v2106_v19  ;;  %v1907_v14 = vadd.f32 %v1875_v56, %v1806_v38  ;;  %v1975_v31 = vmul.f32 %v6683_v44, %v9706_v58  ;;  %v3471_v36 = vmul.f32 %v7005_v25, %v2038_v29 }
 0x299   : > { %v3571_v32 = vmul.f32 %v11091_v33, %v2138_v24  ;;  %v3970_v35 = vmul.f32 %v7291_v45, %v1838_v11  ;;  %v9723_v8 = vmul.f32 %v11141_v49, %v1938_v30  ;;  %v2904_v6 = vadd.f32 %v2872_v16, %v2804_v54  ;;  %v2338_v24 = vld [vmem:[#allocation2 + $0x22a] sm:$0xff]  ;;  %v2339_v11 = vld [vmem:[#allocation2 + $0x232] sm:$0xff] }
 0x29a   : > { %v2007_v13 = vadd.f32 %v1975_v31, %v1907_v14  ;;  %v2075_v20 = vmul.f32 %v6710_v57, %v9714_v60  ;;  %v2274_v38 = vmul.f32 %v10952_v18, %v2238_v52  ;;  %v9728_v0 = vadd.f32 %v3870_v22, %v3802_v46 }
 0x29b   : > { %v3503_v44 = vadd.f32 %v3471_v36, %v3403_v27  ;;  %v9731_v9 = vmul.f32 %v11169_v37, %v2038_v29  ;;  %v2573_v30 = vmul.f32 %v6810_v50, %v9692_v40  ;;  %v2175_v41 = vmul.f32 %v6727_v48, %v2139_v15  ;;  %v2438_v48 = vld [vmem:[#allocation2 + $0x22b] sm:$0xff] }
 0x29c   : > { %v2107_v19 = vadd.f32 %v2075_v20, %v2007_v13  ;;  %v2306_v34 = vadd.f32 %v2274_v38, %v2206_v55  ;;  %v2972_v57 = vmul.f32 %v6935_v43, %v2238_v52  ;;  %v9737_v12 = vadd.f32 %v3970_v35, %v3901_v23  ;;  %v2439_v35 = vld [vmem:[#allocation2 + $0x233] sm:$0xff] }
 0x29d   : > { %v2275_v22 = vmul.f32 %v10952_v18, %v2239_v2  ;;  %v2605_v3 = vadd.f32 %v2573_v30, %v9680_v53  ;;  %v2673_v29 = vmul.f32 %v6829_v62, %v9706_v58  ;;  %v2374_v46 = vmul.f32 %v11194_v51, %v2338_v24 }
 0x29e   : > { %v2207_v56 = vadd.f32 %v2175_v41, %v2107_v19  ;;  %v2375_v54 = vmul.f32 %v11194_v51, %v2339_v11  ;;  %v3004_v27 = vadd.f32 %v2972_v57, %v2904_v6  ;;  %v3603_v16 = vadd.f32 %v3571_v32, %v3503_v44 }
 0x29f   : > { %v2705_v55 = vadd.f32 %v2673_v29, %v2605_v3  ;;  %v2773_v23 = vmul.f32 %v6834_v5, %v9714_v60  ;;  %v3272_v18 = vmul.f32 %v6995_v1, %v9692_v40  ;;  %v2406_v53 = vadd.f32 %v2374_v46, %v2306_v34 }
 0x2a0   : > { %v2307_v14 = vadd.f32 %v2275_v22, %v2207_v56  ;;  %v2873_v31 = vmul.f32 %v6848_v21, %v2139_v15  ;;  %v3072_v36 = vmul.f32 %v11182_v63, %v2338_v24  ;;  %v3372_v51 = vmul.f32 %v6999_v17, %v9706_v58  ;;  %v2538_v22 = vld [vmem:[#allocation2 + $0x245] sm:$0xff] }
 0x2a1   : > { %v2805_v13 = vadd.f32 %v2773_v23, %v2705_v55  ;;  %v3304_v20 = vadd.f32 %v3272_v18, %v3203_v42  ;;  %v3671_v32 = vmul.f32 %v11184_v26, %v2238_v52  ;;  %v2474_v6 = vmul.f32 %v11195_v39, %v2438_v48  ;;  %v2638_v23 = vld [vmem:[#allocation2 + $0x246] sm:$0xff] }
 0x2a2   : > { %v2973_v38 = vmul.f32 %v6935_v43, %v2239_v2  ;;  %v3104_v44 = vadd.f32 %v3072_v36, %v3004_v27  ;;  %v3472_v30 = vmul.f32 %v7005_v25, %v9714_v60  ;;  %v2407_v19 = vadd.f32 %v2375_v54, %v2307_v14 }
 0x2a3   : > { %v2905_v41 = vadd.f32 %v2873_v31, %v2805_v13  ;;  %v3404_v34 = vadd.f32 %v3372_v51, %v3304_v20  ;;  %v3703_v57 = vadd.f32 %v3671_v32, %v3603_v16  ;;  %v2475_v42 = vmul.f32 %v11195_v39, %v2439_v35  ;;  %v2738_v13 = vld [vmem:[#allocation2 + $0x247] sm:$0xff] }
 0x2a4   : > { %v2506_v3 = vadd.f32 %v2474_v6, %v2406_v53  ;;  %v3073_v29 = vmul.f32 %v11182_v63, %v2339_v11  ;;  %v3172_v52 = vmul.f32 %v11196_v28, %v2438_v48  ;;  %v3173_v46 = vmul.f32 %v11196_v28, %v2439_v35 }
 0x2a5   : > { %v3005_v56 = vadd.f32 %v2973_v38, %v2905_v41  ;;  %v3504_v55 = vadd.f32 %v3472_v30, %v3404_v34  ;;  %v3771_v27 = vmul.f32 %v11185_v4, %v2338_v24  ;;  %v3572_v54 = vmul.f32 %v11091_v33, %v2139_v15  ;;  %v9773_v15 = vld [vmem:[#allocation2 + $0x24d] sm:$0xff] }
 0x2a6   : > { %v3204_v18 = vadd.f32 %v3172_v52, %v3104_v44  ;;  %v3672_v16 = vmul.f32 %v11184_v26, %v2239_v2  ;;  %v2574_v14 = vmul.f32 %v6810_v50, %v2538_v22  ;;  %v2507_v39 = vadd.f32 %v2475_v42, %v2407_v19  ;;  %v9783_v41 = vld [vmem:[#allocation2 + $0x24e] sm:$0xff] }
 0x2a7   : > { %v3772_v53 = vmul.f32 %v11185_v4, %v2339_v11  ;;  %v3803_v31 = vadd.f32 %v3771_v27, %v3703_v57  ;;  %v3871_v36 = vmul.f32 %v11186_v7, %v2438_v48  ;;  %v9769_v20 = vmul.f32 %v11186_v7, %v2439_v35  ;;  %v2838_v48 = vld [vmem:[#allocation2 + $0x248] sm:$0xff] }
 0x2a8   : > { %v2606_v51 = vadd.f32 %v2574_v14, %v2506_v3  ;;  %v2674_v24 = vmul.f32 %v6829_v62, %v2638_v23  ;;  %v3273_v32 = vmul.f32 %v6995_v1, %v2538_v22  ;;  %v3105_v2 = vadd.f32 %v3073_v29, %v3005_v56  ;;  %v2938_v42 = vld [vmem:[#allocation2 + $0x249] sm:$0xff] }
 0x2a9   : > { %v3604_v6 = vadd.f32 %v3572_v54, %v3504_v55  ;;  %v3971_v38 = vmul.f32 %v7291_v45, %v9692_v40  ;;  %v9779_v11 = vmul.f32 %v11141_v49, %v9706_v58  ;;  %v2774_v35 = vmul.f32 %v6834_v5, %v2738_v13  ;;  %v9796_v55 = vld [vmem:[#allocation2 + $0x24f] sm:$0xff] }
 0x2aa   : > { %v2706_v44 = vadd.f32 %v2674_v24, %v2606_v51  ;;  %v3305_v30 = vadd.f32 %v3273_v32, %v3204_v18  ;;  %v3373_v19 = vmul.f32 %v6999_v17, %v2638_v23  ;;  %v3903_v34 = vadd.f32 %v3871_v36, %v3803_v31  ;;  %v2839_v36 = vld [vmem:[#allocation2 + $0x250] sm:$0xff] }
 0x2ab   : > { %v9786_v57 = vadd.f32 %v3971_v38, %v9728_v0  ;;  %v9790_v40 = vmul.f32 %v11169_v37, %v9714_v60  ;;  %v2575_v58 = vmul.f32 %v6810_v50, %v9773_v15  ;;  %v2874_v29 = vmul.f32 %v6848_v21, %v2838_v48  ;;  %v3038_v60 = vld [vmem:[#allocation2 + $0x24a] sm:$0xff] }
 0x2ac   : > { %v2806_v3 = vadd.f32 %v2774_v35, %v2706_v44  ;;  %v3405_v52 = vadd.f32 %v3373_v19, %v3305_v30  ;;  %v3473_v56 = vmul.f32 %v7005_v25, %v2738_v13  ;;  %v3205_v27 = vadd.f32 %v3173_v46, %v3105_v2  ;;  %v2939_v46 = vld [vmem:[#allocation2 + $0x251] sm:$0xff] }
 0x2ad   : > { %v3704_v18 = vadd.f32 %v3672_v16, %v3604_v6  ;;  %v2607_v0 = vadd.f32 %v2575_v58, %v2507_v39  ;;  %v2675_v54 = vmul.f32 %v6829_v62, %v9783_v41  ;;  %v3573_v31 = vmul.f32 %v11091_v33, %v2838_v48  ;;  %v3138_v16 = vld [vmem:[#allocation2 + $0x24b] sm:$0xff]  ;;  %v3139_v30 = vld [vmem:[#allocation2 + $0x253] sm:$0xff] }
 0x2ae   : > { %v2906_v14 = vadd.f32 %v2874_v29, %v2806_v3  ;;  %v3972_v50 = vmul.f32 %v7291_v45, %v2538_v22  ;;  %v2974_v51 = vmul.f32 %v6935_v43, %v2938_v42  ;;  %v3505_v24 = vadd.f32 %v3473_v56, %v3405_v52  ;;  %v3039_v35 = vld [vmem:[#allocation2 + $0x252] sm:$0xff] }
 0x2af   : > { %v2707_v32 = vadd.f32 %v2675_v54, %v2607_v0  ;;  %v2775_v38 = vmul.f32 %v6834_v5, %v9796_v55  ;;  %v3274_v39 = vmul.f32 %v6995_v1, %v9773_v15  ;;  %v9808_v62 = vmul.f32 %v11141_v49, %v2638_v23 }
 0x2b0   : > { %v9811_v2 = vmul.f32 %v11169_v37, %v2738_v13  ;;  %v3006_v22 = vadd.f32 %v2974_v51, %v2906_v14  ;;  %v3074_v6 = vmul.f32 %v11182_v63, %v3038_v60  ;;  %v2875_v44 = vmul.f32 %v6848_v21, %v2839_v36  ;;  %v9830_v14 = vld [vmem:[%s10624_s1 + $0x28] sm:$0xff] }
 0x2b1   : > { %v2807_v48 = vadd.f32 %v2775_v38, %v2707_v32  ;;  %v3306_v5 = vadd.f32 %v3274_v39, %v3205_v27  ;;  %v3374_v19 = vmul.f32 %v6999_v17, %v9783_v41  ;;  %v3804_v58 = vadd.f32 %v3772_v53, %v3704_v18  ;;  %v4310_v38 = vld [vmem:[#allocation2 + $0xa9] sm:$0xff]  ;;  %v11201_v39 = vld [vmem:[#allocation21_spill] sm:$0xff] }
 0x2b2   : > { %v2975_v1 = vmul.f32 %v6935_v43, %v2939_v46  ;;  %v3106_v23 = vadd.f32 %v3074_v6, %v3006_v22  ;;  %v3174_v3 = vmul.f32 %v11196_v28, %v3138_v16  ;;  %v3605_v13 = vadd.f32 %v3573_v31, %v3505_v24  ;;  %v11200_v24 = vld [vmem:[#allocation19_spill] sm:$0xff] }
 0x2b3   : > { %v2907_v29 = vadd.f32 %v2875_v44, %v2807_v48  ;;  %v3406_v52 = vadd.f32 %v3374_v19, %v3306_v5  ;;  %v3474_v56 = vmul.f32 %v7005_v25, %v9796_v55  ;;  %v9821_v0 = vadd.f32 %v3972_v50, %v3903_v34  ;;  %v11197_v34 = vld [vmem:[#allocation41_spill] sm:$0xff]  ;;  %v11198_v50 = vld [vmem:[#allocation64_spill] sm:$0xff]  ;;  %v11203_v6 = vld [vmem:[#allocation63_spill] sm:$0xff] }
 0x2b4   : > { %v3075_v21 = vmul.f32 %v11182_v63, %v3039_v35  ;;  %v3175_v27 = vmul.f32 %v11196_v28, %v3139_v30  ;;  %v3206_v54 = vadd.f32 %v3174_v3, %v3106_v23  ;;  %v3574_v43 = vmul.f32 %v11091_v33, %v2839_v36  ;;  %v11199_v63 = vld [vmem:[#allocation62_spill] sm:$0xff]  ;;  %v5946_v28 = vld [vmem:[%s10624_s1 + $0x20] sm:$0xff] }
 0x2b5   : > { %v3007_v17 = vadd.f32 %v2975_v1, %v2907_v29  ;;  %v3506_v53 = vadd.f32 %v3474_v56, %v3406_v52  ;;  %v3673_v18 = vmul.f32 %v11184_v26, %v2938_v42  ;;  %v3674_v25 = vmul.f32 %v11184_v26, %v2939_v46  ;;  %v11202_v26 = vld [vmem:[#allocation44_spill] sm:$0xff]  ;;  %v5947_v44 = vld [vmem:[#allocation2 + $0xa8] sm:$0xff]  ;;  %v11204_v19 = vld [vmem:[#allocation9_spill] sm:$0xff] }
 0x2b6   : > { %v3307_v31 = vadd.f32 %v11197_v34, %v3206_v54  ;;  %v4078_v51 = vadd.f32 %v11199_v63, %v11198_v50  ;;  %v9840_v33 = vrot.slane %v5946_v28, %v11200_v24  ;;  %v9843_v22 = vrot.slane %v5946_v28, %v11201_v39  ;;  %v4410_v52 = vld [vmem:[#allocation2 + $0xaa] sm:$0xff] }
 0x2b7   : > { %v3107_v42 = vadd.f32 %v3075_v21, %v3007_v17  ;;  %v3606_v36 = vadd.f32 %v3574_v43, %v3506_v53  ;;  %v3705_v32 = vadd.f32 %v3673_v18, %v3605_v13  ;;  %v9850_v1 = vrot.slane %v9830_v14, %v11204_v19  ;;  %v11205_v56 = vld [vmem:[#allocation46_spill] sm:$0xff] }
 0x2b8   : > { %v3407_v46 = vadd.f32 %v11202_v26, %v3307_v31  ;;  %v4178_v48 = vadd.f32 %v11203_v6, %v4078_v51  ;;  %v4246_v5 = vmul.f32 %v5947_v44, %v9840_v33  ;;  %v3904_v23 = vadd.f32 %v9769_v20, %v3804_v58  ;;  %v11206_v53 = vld [vmem:[#allocation10_spill] sm:$0xff]  ;;  %v11207_v20 = vld [vmem:[#allocation43_spill] sm:$0xff] }
 0x2b9   : > { %v3207_v3 = vadd.f32 %v3175_v27, %v3107_v42  ;;  %v3706_v29 = vadd.f32 %v3674_v25, %v3606_v36  ;;  %v3773_v13 = vmul.f32 %v11185_v4, %v3038_v60  ;;  %v4346_v17 = vmul.f32 %v9843_v22, %v4310_v38  ;;  %v4510_v27 = vld [vmem:[#allocation2 + $0xab] sm:$0xff]  ;;  %v11208_v25 = vld [vmem:[#allocation48_spill] sm:$0xff]  ;;  %v11211_v38 = vld [vmem:[#allocation53_spill] sm:$0xff] }
 0x2ba   : > { %v3507_v21 = vadd.f32 %v11205_v56, %v3407_v46  ;;  %v4278_v54 = vadd.f32 %v4246_v5, %v4178_v48  ;;  %v9858_v43 = vrot.slane %v9830_v14, %v11206_v53  ;;  %v3774_v18 = vmul.f32 %v11185_v4, %v3039_v35  ;;  %v11209_v51 = vld [vmem:[#allocation11_spill] sm:$0xff]  ;;  %v11210_v35 = vld [vmem:[#allocation45_spill] sm:$0xff]  ;;  %v11212_v48 = vld [vmem:[#allocation14_spill] sm:$0xff] }
 0x2bb   : > { %v3805_v34 = vadd.f32 %v3773_v13, %v3705_v32  ;;  %v3873_v31 = vmul.f32 %v11186_v7, %v3138_v16  ;;  %v3308_v58 = vadd.f32 %v11207_v20, %v3207_v3  ;;  %v4446_v63 = vmul.f32 %v9850_v1, %v4410_v52  ;;  %v4611_v32 = vld [vmem:[#allocation2 + $0xc5] sm:$0xff]  ;;  %v11215_v3 = vld [vmem:[#allocation55_spill] sm:$0xff]  ;;  %v11218_v53 = vld [vmem:[#allocation16_spill] sm:$0xff] }
 0x2bc   : > { %v3607_v60 = vadd.f32 %v11208_v25, %v3507_v21  ;;  %v4378_v50 = vadd.f32 %v4346_v17, %v4278_v54  ;;  %v9867_v28 = vrot.slane %v9830_v14, %v11209_v51  ;;  %v3806_v42 = vadd.f32 %v3774_v18, %v3706_v29  ;;  %v11216_v56 = vld [vmem:[#allocation15_spill] sm:$0xff]  ;;  %v11217_v17 = vld [vmem:[#allocation49_spill] sm:$0xff]  ;;  %v11220_v18 = vld [vmem:[#allocation32_spill] sm:$0xff] }
 0x2bd   : > { %v3874_v36 = vmul.f32 %v11186_v7, %v3139_v30  ;;  %v3973_v4 = vmul.f32 %v7291_v45, %v9773_v15  ;;  %v3408_v16 = vadd.f32 %v11210_v35, %v3308_v58  ;;  %v4546_v6 = vmul.f32 %v9858_v43, %v4510_v27  ;;  %v11214_v7 = vld [vmem:[#allocation47_spill] sm:$0xff]  ;;  %v4711_v30 = vld [vmem:[#allocation2 + $0xc6] sm:$0xff] }
 0x2be   : > { %v3707_v26 = vadd.f32 %v11211_v38, %v3607_v60  ;;  %v4478_v46 = vadd.f32 %v4446_v63, %v4378_v50  ;;  %v9877_v44 = vrot.slane %v9830_v14, %v11212_v48  ;;  %v3905_v5 = vadd.f32 %v3873_v31, %v3805_v34  ;;  %v4911_v27 = vld [vmem:[#allocation2 + $0xc8] sm:$0xff]  ;;  %v4311_v60 = vld [vmem:[#allocation2 + $0xb1] sm:$0xff]  ;;  %v9912_v51 = vld [vmem:[%s10624_s1 + $0x30] ss:$0 sm:$0xff] }
 0x2bf   : > { %v9881_v19 = vmul.f32 %v11141_v49, %v9783_v41  ;;  %v9885_v45 = vmul.f32 %v11169_v37, %v9796_v55  ;;  %v3508_v15 = vadd.f32 %v11214_v7, %v3408_v16  ;;  %v4647_v52 = vmul.f32 %v9867_v28, %v4611_v32  ;;  %v4811_v41 = vld [vmem:[#allocation2 + $0xc7] sm:$0xff]  ;;  %v5948_v16 = vld [vmem:[#allocation2 + $0xb0] sm:$0xff]  ;;  %v11223_v32 = vld [vmem:[#allocation36_spill] sm:$0xff] }
 0x2c0   : > { %v3807_v29 = vadd.f32 %v11215_v3, %v3707_v26  ;;  %v4578_v13 = vadd.f32 %v4546_v6, %v4478_v46  ;;  %v9892_v21 = vrot.slane %v9830_v14, %v11216_v56  ;;  %v3906_v54 = vadd.f32 %v3874_v36, %v3806_v42  ;;  %v11219_v55 = vld [vmem:[#allocation61_spill] sm:$0xff]  ;;  %v11221_v50 = vld [vmem:[#allocation54_spill] sm:$0xff] }
 0x2c1   : > { %11213 = vst [vmem:[#allocation52_spill] sm:$0xff] %v9885_v45  ;;  %v3608_v49 = vadd.f32 %v11217_v17, %v3508_v15  ;;  %v9897_v37 = vrot.slane %v9830_v14, %v11218_v53  ;;  %v4079_v34 = vadd.f32 %v11220_v18, %v11219_v55  ;;  %v9901_v31 = vadd.f32 %v3973_v4, %v3904_v23  ;;  %v5011_v42 = vld [vmem:[#allocation2 + $0xc9] sm:$0xff]  ;;  %v11225_v26 = vld [vmem:[#allocation57_spill] sm:$0xff]  ;;  %v4411_v15 = vld [vmem:[#allocation2 + $0xb2] sm:$0xff] }
 0x2c2   : > { %v4679_v20 = vadd.f32 %v4647_v52, %v4578_v13  ;;  %v4747_v58 = vmul.f32 %v9877_v44, %v4711_v30  ;;  %v9906_v25 = vrot.slane %v9830_v14, %v11200_v24  ;;  %v9916_v23 = vrot.slane %v9830_v14, %v11201_v39  ;;  %v5211_v36 = vld [vmem:[#allocation2 + $0xcb] sm:$0xff]  ;;  %v11226_v30 = vld [vmem:[#allocation37_spill] sm:$0xff]  ;;  %v4511_v52 = vld [vmem:[#allocation2 + $0xb3] sm:$0xff] }
 0x2c3   : > { %v3708_v63 = vadd.f32 %v11221_v50, %v3608_v49  ;;  %v11222_v4 = vld [vmem:[#allocation71_spill] sm:$0xff]  ;;  %v4247_v24 = vmul.f32 %v5948_v16, %v9840_v33  ;;  %v9921_v38 = vadd.f32 %v11223_v32, %v3905_v5  ;;  %v3907_v46 = vadd.f32 %v11225_v26, %v3807_v29  ;;  %v11228_v17 = vld [vmem:[#allocation56_spill] sm:$0xff]  ;;  %v11231_v50 = vld [vmem:[#allocation65_spill] sm:$0xff] }
 0x2c4   : > { %v4179_v35 = vadd.f32 %v11222_v4, %v4079_v34  ;;  %v4779_v6 = vadd.f32 %v4747_v58, %v4679_v20  ;;  %v4847_v48 = vmul.f32 %v9892_v21, %v4811_v41  ;;  %v5111_v7 = vld [vmem:[#allocation2 + $0xca] sm:$0xff]  ;;  %v9926_v3 = vadd.f32 %v11226_v30, %v3906_v54 }
 0x2c5   : > { %11224 = vst [vmem:[#allocation25_spill] sm:$0xff] %v9921_v38  ;;  %v4947_v14 = vmul.f32 %v9897_v37, %v4911_v27  ;;  %v4347_v13 = vmul.f32 %v9843_v22, %v4311_v60  ;;  %v4612_v56 = vld [vmem:[#allocation2 + $0xcd] sm:$0xff]  ;;  %v3808_v5 = vadd.f32 %v11228_v17, %v3708_v63  ;;  %v5047_v29 = vmul.f32 %v9906_v25, %v5011_v42  ;;  %v11230_v27 = vld [vmem:[#allocation73_spill] sm:$0xff] }
 0x2c6   : > { %11227 = vst [vmem:[#allocation26_spill] sm:$0xff] %v9926_v3  ;;  %v4279_v39 = vadd.f32 %v4247_v24, %v4179_v35  ;;  %v4879_v49 = vadd.f32 %v4847_v48, %v4779_v6  ;;  %v5247_v53 = vmul.f32 %v9912_v51, %v5211_v36  ;;  %v4712_v41 = vld [vmem:[#allocation2 + $0xce] sm:$0xff]  ;;  %v5147_v55 = vmul.f32 %v9916_v23, %v5111_v7 }
 0x2c7   : > { %v4447_v54 = vmul.f32 %v9850_v1, %v4411_v15  ;;  %v4812_v34 = vld [vmem:[#allocation2 + $0xcf] sm:$0xff]  ;;  %v9938_v4 = vadd.f32 %v11231_v50, %v3907_v46  ;;  %v4547_v35 = vmul.f32 %v9858_v43, %v4511_v52  ;;  %v4648_v16 = vmul.f32 %v9867_v28, %v4612_v56  ;;  %v4613_v50 = vld [vmem:[#allocation2 + $0xe5] sm:$0xff] }
 0x2c8   : > { %v4379_v18 = vadd.f32 %v4347_v13, %v4279_v39  ;;  %v4912_v20 = vld [vmem:[#allocation2 + $0xd0] sm:$0xff]  ;;  %v11229_v58 = vld [vmem:[#allocation74_spill] sm:$0xff]  ;;  %v4979_v63 = vadd.f32 %v4947_v14, %v4879_v49  ;;  %v4748_v26 = vmul.f32 %v9877_v44, %v4712_v41  ;;  %v4848_v14 = vmul.f32 %v9892_v21, %v4812_v34 }
 0x2c9   : > { %v4080_v60 = vadd.f32 %v11230_v27, %v11229_v58  ;;  %11232 = vst [vmem:[#allocation33_spill] sm:$0xff] %v9938_v4  ;;  %v5012_v24 = vld [vmem:[#allocation2 + $0xd1] sm:$0xff]  ;;  %v5949_v39 = vld [vmem:[#allocation2 + $0xc8] sm:$0xff]  ;;  %v4948_v52 = vmul.f32 %v9897_v37, %v4912_v20  ;;  %v4348_v41 = vmul.f32 %v5011_v42, %v9843_v22  ;;  %v4448_v20 = vmul.f32 %v5111_v7, %v9850_v1 }
 0x2ca   : > { %v4479_v32 = vadd.f32 %v4447_v54, %v4379_v18  ;;  %v5112_v6 = vld [vmem:[#allocation2 + $0xd2] sm:$0xff]  ;;  %v4248_v13 = vmul.f32 %v5949_v39, %v9840_v33  ;;  %v11234_v17 = vld [vmem:[#allocation58_spill] sm:$0xff]  ;;  %v5079_v46 = vadd.f32 %v5047_v29, %v4979_v63  ;;  %v5048_v56 = vmul.f32 %v9906_v25, %v5012_v24 }
 0x2cb   : > { %v5212_v48 = vld [vmem:[#allocation2 + $0xd3] sm:$0xff]  ;;  %v3908_v58 = vadd.f32 %v11234_v17, %v3808_v5  ;;  %v5148_v27 = vmul.f32 %v9916_v23, %v5112_v6  ;;  %v5013_v17 = vld [vmem:[#allocation2 + $0xe9] sm:$0xff] }
 0x2cc   : > { %v11233_v15 = vld [vmem:[#allocation75_spill] sm:$0xff]  ;;  %v4579_v49 = vadd.f32 %v4547_v35, %v4479_v32  ;;  %v5179_v54 = vadd.f32 %v5147_v55, %v5079_v46  ;;  %v11235_v5 = vld [vmem:[#allocation72_spill] sm:$0xff]  ;;  %v4548_v35 = vmul.f32 %v5211_v36, %v9858_v43  ;;  %v4813_v32 = vld [vmem:[#allocation2 + $0xe7] sm:$0xff] }
 0x2cd   : > { %v4180_v30 = vadd.f32 %v11233_v15, %v4080_v60  ;;  %v9952_v60 = vmul.f32 %v9912_v51, %v5212_v48  ;;  %v4713_v15 = vld [vmem:[#allocation2 + $0xe6] sm:$0xff]  ;;  %v11236_v29 = vld [vmem:[#allocation27_spill] sm:$0xff]  ;;  %v11239_v46 = vld [vmem:[#allocation76_spill] sm:$0xff] }
 0x2ce   : > { %v4081_v63 = vadd.f32 %v11236_v29, %v11235_v5  ;;  %v4680_v34 = vadd.f32 %v4648_v16, %v4579_v49  ;;  %v9961_v55 = vadd.f32 %v5247_v53, %v5179_v54  ;;  %v5950_v3 = vld [vmem:[#allocation2 + $0xd0] sm:$0xff]  ;;  %v4649_v49 = vmul.f32 %v9867_v28, %v4613_v50 }
 0x2cf   : > { %v4280_v18 = vadd.f32 %v4248_v13, %v4180_v30  ;;  %v11237_v30 = vld [vmem:[#allocation66_spill] sm:$0xff]  ;;  %v4249_v38 = vmul.f32 %v5950_v3, %v9840_v33  ;;  %v4749_v7 = vmul.f32 %v9877_v44, %v4713_v15  ;;  %v4349_v54 = vmul.f32 %v5012_v24, %v9843_v22 }
 0x2d0   : > { %v9959_v42 = vadd.f32 %v11237_v30, %v3908_v58  ;;  %v4913_v13 = vld [vmem:[#allocation2 + $0xe8] sm:$0xff]  ;;  %v4181_v4 = vadd.f32 %v11239_v46, %v4081_v63  ;;  %v4780_v5 = vadd.f32 %v4748_v26, %v4680_v34  ;;  %v5708_v36 = vmul.f32 -1.442695, %v9961_v55 }
 0x2d1   : > { %v4380_v39 = vadd.f32 %v4348_v41, %v4280_v18  ;;  %v4849_v58 = vmul.f32 %v9892_v21, %v4813_v32  ;;  %v5113_v18 = vld [vmem:[#allocation2 + $0xea] sm:$0xff]  ;;  %v4949_v30 = vmul.f32 %v9897_v37, %v4913_v13  ;;  %v5049_v3 = vmul.f32 %v9906_v25, %v5013_v17 }
 0x2d2   : > { %11238 = vst [vmem:[#allocation34_spill] sm:$0xff] %v9959_v42  ;;  %v5213_v53 = vld [vmem:[#allocation2 + $0xeb] sm:$0xff]  ;;  %v4281_v41 = vadd.f32 %v4249_v38, %v4181_v4  ;;  %v4880_v29 = vadd.f32 %v4848_v14, %v4780_v5  ;;  %5814 = vpow2.f32 %v5708_v36  ;;  %v4449_v50 = vmul.f32 %v5112_v6, %v9850_v1 }
 0x2d3   : > { %v4480_v16 = vadd.f32 %v4448_v20, %v4380_v39  ;;  %v4614_v15 = vld [vmem:[#allocation2 + $0xed] sm:$0xff]  ;;  %v5149_v38 = vmul.f32 %v9916_v23, %v5113_v18  ;;  %v5249_v4 = vmul.f32 %v9912_v51, %v5213_v53 }
 0x2d4   : > { %v4381_v26 = vadd.f32 %v4349_v54, %v4281_v41  ;;  %v4714_v34 = vld [vmem:[#allocation2 + $0xee] sm:$0xff]  ;;  %v4980_v46 = vadd.f32 %v4948_v52, %v4880_v29  ;;  %v4650_v52 = vmul.f32 %v9867_v28, %v4614_v15  ;;  %v4615_v15 = vld [vmem:[#allocation2 + $0x105] sm:$0xff] }
 0x2d5   : > { %v4580_v63 = vadd.f32 %v4548_v35, %v4480_v16  ;;  %v11240_v39 = vld [vmem:[#allocation79_spill] sm:$0xff]  ;;  %v11241_v20 = vld [vmem:[#allocation78_spill] sm:$0xff]  ;;  %v4549_v35 = vmul.f32 %v5212_v48, %v9858_v43  ;;  %v11242_v16 = vld [vmem:[#allocation80_spill] sm:$0xff]  ;;  %v4350_v48 = vmul.f32 %v5013_v17, %v9843_v22 }
 0x2d6   : > { %v4082_v32 = vadd.f32 %v11241_v20, %v11240_v39  ;;  %v4814_v24 = vld [vmem:[#allocation2 + $0xef] sm:$0xff]  ;;  %v4481_v14 = vadd.f32 %v4449_v50, %v4381_v26  ;;  %v5080_v54 = vadd.f32 %v5048_v56, %v4980_v46  ;;  %v11244_v46 = vld [vmem:[#allocation81_spill] sm:$0xff] }
 0x2d7   : > { %v4681_v42 = vadd.f32 %v4649_v49, %v4580_v63  ;;  %v4914_v13 = vld [vmem:[#allocation2 + $0xf0] sm:$0xff]  ;;  %v5951_v6 = vld [vmem:[#allocation2 + $0xe8] sm:$0xff]  ;;  %v4750_v49 = vmul.f32 %v9877_v44, %v4714_v34  ;;  %v4850_v63 = vmul.f32 %v9892_v21, %v4814_v24  ;;  %v11243_v34 = vld [vmem:[#allocation77_spill] sm:$0xff] }
 0x2d8   : > { %v5014_v5 = vld [vmem:[#allocation2 + $0xf1] sm:$0xff]  ;;  %v4182_v36 = vadd.f32 %v11242_v16, %v4082_v32  ;;  %v4250_v41 = vmul.f32 %v5951_v6, %v9840_v33  ;;  %v4581_v29 = vadd.f32 %v4549_v35, %v4481_v14  ;;  %v5180_v50 = vadd.f32 %v5148_v27, %v5080_v54 }
 0x2d9   : > { %v4781_v45 = vadd.f32 %v4749_v7, %v4681_v42  ;;  %v5114_v39 = vld [vmem:[#allocation2 + $0xf2] sm:$0xff]  ;;  %v4950_v32 = vmul.f32 %v9897_v37, %v4914_v13  ;;  %v5050_v16 = vmul.f32 %v9906_v25, %v5014_v5  ;;  %v4450_v7 = vmul.f32 %v5113_v18, %v9850_v1  ;;  %v4715_v13 = vld [vmem:[#allocation2 + $0x106] sm:$0xff] }
 0x2da   : > { %v4282_v26 = vadd.f32 %v4250_v41, %v4182_v36  ;;  %v4682_v6 = vadd.f32 %v4650_v52, %v4581_v29  ;;  %v5214_v56 = vld [vmem:[#allocation2 + $0xf3] sm:$0xff]  ;;  %v4083_v14 = vadd.f32 %v11244_v46, %v11243_v34  ;;  %v9990_v24 = vadd.f32 %v9952_v60, %v5180_v50  ;;  %v11245_v36 = vld [vmem:[#allocation82_spill] sm:$0xff] }
 0x2db   : > { %v4881_v20 = vadd.f32 %v4849_v58, %v4781_v45  ;;  %v5150_v27 = vmul.f32 %v9916_v23, %v5114_v39  ;;  %v4550_v45 = vmul.f32 %v5213_v53, %v9858_v43  ;;  %v5952_v54 = vld [vmem:[#allocation2 + $0xf0] sm:$0xff]  ;;  %v4651_v60 = vmul.f32 %v9867_v28, %v4615_v15 }
 0x2dc   : > { %v4382_v42 = vadd.f32 %v4350_v48, %v4282_v26  ;;  %v4782_v17 = vadd.f32 %v4750_v49, %v4682_v6  ;;  %v4183_v41 = vadd.f32 %v11245_v36, %v4083_v14  ;;  %v4251_v18 = vmul.f32 %v5952_v54, %v9840_v33  ;;  %v4915_v14 = vld [vmem:[#allocation2 + $0x108] sm:$0xff] }
 0x2dd   : > { %v4981_v35 = vadd.f32 %v4949_v30, %v4881_v20  ;;  %v5709_v52 = vmul.f32 -1.442695, %v9990_v24  ;;  %v5250_v26 = vmul.f32 %v9912_v51, %v5214_v56  ;;  %v5815_v30 = vpop.eup %5814  ;;  %v4815_v20 = vld [vmem:[#allocation2 + $0x107] sm:$0xff]  ;;  %v4351_v49 = vmul.f32 %v5014_v5, %v9843_v22 }
 0x2de   : > { %v4482_v58 = vadd.f32 %v4450_v7, %v4382_v42  ;;  %v4882_v48 = vadd.f32 %v4850_v63, %v4782_v17  ;;  %v4283_v53 = vadd.f32 %v4251_v18, %v4183_v41  ;;  %v5407_v6 = vadd.f32 1.0, %v5815_v30  ;;  %v4616_v36 = vld [vmem:[#allocation2 + $0x10d] sm:$0xff] }
 0x2df   : > { %v5081_v29 = vadd.f32 %v5049_v3, %v4981_v35  ;;  %5816 = vpow2.f32 %v5709_v52  ;;  %v4751_v7 = vmul.f32 %v9877_v44, %v4715_v13  ;;  %v4451_v35 = vmul.f32 %v5114_v39, %v9850_v1  ;;  %v4716_v41 = vld [vmem:[#allocation2 + $0x10e] sm:$0xff]  ;;  %v11246_v13 = vld [vmem:[#allocation85_spill] sm:$0xff] }
 0x2e0   : > { %v4582_v50 = vadd.f32 %v4550_v45, %v4482_v58  ;;  %v4982_v34 = vadd.f32 %v4950_v32, %v4882_v48  ;;  %v4383_v3 = vadd.f32 %v4351_v49, %v4283_v53  ;;  %5818 = vrcp.f32 %v5407_v6  ;;  %v5015_v58 = vld [vmem:[#allocation2 + $0x109] sm:$0xff]  ;;  %v11247_v32 = vld [vmem:[#allocation84_spill] sm:$0xff] }
 0x2e1   : > { %v5181_v42 = vadd.f32 %v5149_v38, %v5081_v29  ;;  %v4851_v63 = vmul.f32 %v9892_v21, %v4815_v20  ;;  %v4551_v45 = vmul.f32 %v5214_v56, %v9858_v43  ;;  %v4084_v54 = vadd.f32 %v11247_v32, %v11246_v13  ;;  %v5115_v52 = vld [vmem:[#allocation2 + $0x10a] sm:$0xff] }
 0x2e2   : > { %v4683_v46 = vadd.f32 %v4651_v60, %v4582_v50  ;;  %v5082_v5 = vadd.f32 %v5050_v16, %v4982_v34  ;;  %v4483_v38 = vadd.f32 %v4451_v35, %v4383_v3  ;;  %v4951_v39 = vmul.f32 %v9897_v37, %v4915_v14  ;;  %v5953_v29 = vld [vmem:[#allocation2 + $0x108] sm:$0xff]  ;;  %v4916_v20 = vld [vmem:[#allocation2 + $0x110] sm:$0xff] }
 0x2e3   : > { %v10002_v15 = vadd.f32 %v5249_v4, %v5181_v42  ;;  %v4652_v4 = vmul.f32 %v9867_v28, %v4616_v36  ;;  %v4252_v60 = vmul.f32 %v5953_v29, %v9840_v33  ;;  %v5215_v16 = vld [vmem:[#allocation2 + $0x10b] sm:$0xff]  ;;  %v5051_v6 = vmul.f32 %v9906_v25, %v5015_v58 }
 0x2e4   : > { %v4783_v17 = vadd.f32 %v4751_v7, %v4683_v46  ;;  %v5182_v30 = vadd.f32 %v5150_v27, %v5082_v5  ;;  %v4583_v48 = vadd.f32 %v4551_v45, %v4483_v38  ;;  %v4816_v50 = vld [vmem:[#allocation2 + $0x10f] sm:$0xff]  ;;  %v4752_v42 = vmul.f32 %v9877_v44, %v4716_v41 }
 0x2e5   : > { %v5710_v18 = vmul.f32 -1.442695, %v10002_v15  ;;  %v11248_v53 = vld [vmem:[#allocation86_spill] sm:$0xff]  ;;  %v4352_v7 = vmul.f32 %v5015_v58, %v9843_v22  ;;  %v5016_v3 = vld [vmem:[#allocation2 + $0x111] sm:$0xff]  ;;  %v5151_v36 = vmul.f32 %v9916_v23, %v5115_v52  ;;  %v4852_v45 = vmul.f32 %v9892_v21, %v4816_v50 }
 0x2e6   : > { %v4883_v56 = vadd.f32 %v4851_v63, %v4783_v17  ;;  %v4184_v49 = vadd.f32 %v11248_v53, %v4084_v54  ;;  %v10016_v34 = vadd.f32 %v5250_v26, %v5182_v30  ;;  %v4684_v14 = vadd.f32 %v4652_v4, %v4583_v48  ;;  %v5116_v27 = vld [vmem:[#allocation2 + $0x112] sm:$0xff] }
 0x2e7   : > { %5820 = vpow2.f32 %v5710_v18  ;;  %v5251_v63 = vmul.f32 %v9912_v51, %v5215_v16  ;;  %v4952_v5 = vmul.f32 %v9897_v37, %v4916_v20  ;;  %v5052_v13 = vmul.f32 %v9906_v25, %v5016_v3  ;;  %v11249_v18 = vld [vmem:[#allocation83_spill] sm:$0xff] }
 0x2e8   : > { %v4983_v46 = vadd.f32 %v4951_v39, %v4883_v56  ;;  %v4284_v35 = vadd.f32 %v4252_v60, %v4184_v49  ;;  %v5711_v17 = vmul.f32 -1.442695, %v10016_v34  ;;  %v4784_v41 = vadd.f32 %v4752_v42, %v4684_v14  ;;  %v11250_v39 = vld [vmem:[#allocation87_spill] sm:$0xff]  ;;  %v4617_v56 = vld [vmem:[#allocation2 + $0x125] sm:$0xff] }
 0x2e9   : > { %v5817_v26 = vpop.eup %5816  ;;  %v5152_v32 = vmul.f32 %v9916_v23, %v5116_v27  ;;  %v4452_v54 = vmul.f32 %v5115_v52, %v9850_v1  ;;  %v4085_v4 = vadd.f32 %v11250_v39, %v11249_v18  ;;  %v5216_v50 = vld [vmem:[#allocation2 + $0x113] sm:$0xff]  ;;  %v4552_v53 = vmul.f32 %v5215_v16, %v9858_v43  ;;  %v4717_v49 = vld [vmem:[#allocation2 + $0x126] sm:$0xff] }
 0x2ea   : > { %v5083_v38 = vadd.f32 %v5051_v6, %v4983_v46  ;;  %v4384_v58 = vadd.f32 %v4352_v7, %v4284_v35  ;;  %v5408_v29 = vadd.f32 1.0, %v5817_v26  ;;  %5822 = vpow2.f32 %v5711_v17  ;;  %v5819_v48 = vpop.eup %5818  ;;  %v11251_v6 = vld [vmem:[#allocation88_spill] sm:$0xff]  ;;  %v5954_v7 = vld [vmem:[#allocation2 + $0x110] sm:$0xff] }
 0x2eb   : > { %v4884_v30 = vadd.f32 %v4852_v45, %v4784_v41  ;;  %v4185_v42 = vadd.f32 %v11251_v6, %v4085_v4  ;;  %v4253_v52 = vmul.f32 %v5954_v7, %v9840_v33  ;;  %v5503_v46 = vmul.f32 %v5819_v48, %v9961_v55  ;;  %v5017_v39 = vld [vmem:[#allocation2 + $0x129] sm:$0xff] }
 0x2ec   : > { %v5183_v60 = vadd.f32 %v5151_v36, %v5083_v38  ;;  %v4484_v20 = vadd.f32 %v4452_v54, %v4384_v58  ;;  %5824 = vrcp.f32 %v5408_v29  ;;  %v4817_v36 = vld [vmem:[#allocation2 + $0x127] sm:$0xff]  ;;  %v4653_v17 = vmul.f32 %v9867_v28, %v4617_v56 }
 0x2ed   : > { %v4984_v35 = vadd.f32 %v4952_v5, %v4884_v30  ;;  %v4917_v38 = vld [vmem:[#allocation2 + $0x128] sm:$0xff]  ;;  %v4285_v41 = vadd.f32 %v4253_v52, %v4185_v42  ;;  %v4353_v16 = vmul.f32 %v5016_v3, %v9843_v22  ;;  %5535 = vst.msk [vmem:[%s10038_s5] sm:$0xff] %vm237_vm0, %v5503_v46  ;;  %v4753_v5 = vmul.f32 %v9877_v44, %v4717_v49  ;;  %v11252_v42 = vld [vmem:[#allocation91_spill] sm:$0xff] }
 0x2ee   : > { %v10032_v14 = vadd.f32 %v5251_v63, %v5183_v60  ;;  %v4584_v45 = vadd.f32 %v4552_v53, %v4484_v20  ;;  %v5252_v63 = vmul.f32 %v9912_v51, %v5216_v50  ;;  %v4853_v18 = vmul.f32 %v9892_v21, %v4817_v36  ;;  %v4618_v29 = vld [vmem:[#allocation2 + $0x12d] sm:$0xff] }
 0x2ef   : > { %v5084_v58 = vadd.f32 %v5052_v13, %v4984_v35  ;;  %v4385_v4 = vadd.f32 %v4353_v16, %v4285_v41  ;;  %v4453_v3 = vmul.f32 %v5116_v27, %v9850_v1  ;;  %v4953_v56 = vmul.f32 %v9897_v37, %v4917_v38  ;;  %v5117_v13 = vld [vmem:[#allocation2 + $0x12a] sm:$0xff]  ;;  %v11254_v38 = vld [vmem:[#allocation92_spill] sm:$0xff] }
 0x2f0   : > { %v5712_v55 = vmul.f32 -1.442695, %v10032_v14  ;;  %v4685_v54 = vadd.f32 %v4653_v17, %v4584_v45  ;;  %v5217_v20 = vld [vmem:[#allocation2 + $0x12b] sm:$0xff]  ;;  %v4553_v49 = vmul.f32 %v5216_v50, %v9858_v43  ;;  %v5053_v27 = vmul.f32 %v9906_v25, %v5017_v39 }
 0x2f1   : > { %v5821_v26 = vpop.eup %5820  ;;  %v5184_v30 = vadd.f32 %v5152_v32, %v5084_v58  ;;  %v4485_v53 = vadd.f32 %v4453_v3, %v4385_v4  ;;  %v4718_v6 = vld [vmem:[#allocation2 + $0x12e] sm:$0xff]  ;;  %v4654_v35 = vmul.f32 %v9867_v28, %v4618_v29 }
 0x2f2   : > { %v5409_v60 = vadd.f32 1.0, %v5821_v26  ;;  %5826 = vpow2.f32 %v5712_v55  ;;  %v4785_v48 = vadd.f32 %v4753_v5, %v4685_v54  ;;  %v11253_v7 = vld [vmem:[#allocation90_spill] sm:$0xff]  ;;  %v4918_v17 = vld [vmem:[#allocation2 + $0x130] sm:$0xff]  ;;  %v5153_v5 = vmul.f32 %v9916_v23, %v5117_v13 }
 0x2f3   : > { %v4086_v52 = vadd.f32 %v11253_v7, %v11252_v42  ;;  %v10051_v46 = vadd.f32 %v5252_v63, %v5184_v30  ;;  %v4585_v36 = vadd.f32 %v4553_v49, %v4485_v53  ;;  %v4818_v45 = vld [vmem:[#allocation2 + $0x12f] sm:$0xff]  ;;  %v5253_v63 = vmul.f32 %v9912_v51, %v5217_v20 }
 0x2f4   : > { %5828 = vrcp.f32 %v5409_v60  ;;  %v4885_v32 = vadd.f32 %v4853_v18, %v4785_v48  ;;  %v5955_v16 = vld [vmem:[#allocation2 + $0x128] sm:$0xff]  ;;  %v5823_v55 = vpop.eup %5822  ;;  %v4754_v26 = vmul.f32 %v9877_v44, %v4718_v6  ;;  %v5018_v3 = vld [vmem:[#allocation2 + $0x131] sm:$0xff]  ;;  %v4854_v30 = vmul.f32 %v9892_v21, %v4818_v45 }
 0x2f5   : > { %v4186_v41 = vadd.f32 %v11254_v38, %v4086_v52  ;;  %v4254_v50 = vmul.f32 %v5955_v16, %v9840_v33  ;;  %v5713_v58 = vmul.f32 -1.442695, %v10051_v46  ;;  %v5410_v54 = vadd.f32 1.0, %v5823_v55  ;;  %v5118_v53 = vld [vmem:[#allocation2 + $0x132] sm:$0xff]  ;;  %v11255_v38 = vld [vmem:[#allocation89_spill] sm:$0xff] }
 0x2f6   : > { %v4985_v4 = vadd.f32 %v4953_v56, %v4885_v32  ;;  %v4686_v18 = vadd.f32 %v4654_v35, %v4585_v36  ;;  %v5825_v60 = vpop.eup %5824  ;;  %v4954_v48 = vmul.f32 %v9897_v37, %v4918_v17  ;;  %v5218_v49 = vld [vmem:[#allocation2 + $0x133] sm:$0xff]  ;;  %v4354_v42 = vmul.f32 %v5017_v39, %v9843_v22  ;;  %v4619_v36 = vld [vmem:[#allocation2 + $0x145] sm:$0xff] }
 0x2f7   : > { %v4286_v29 = vadd.f32 %v4254_v50, %v4186_v41  ;;  %5830 = vpow2.f32 %v5713_v58  ;;  %v5504_v7 = vmul.f32 %v5825_v60, %v9990_v24  ;;  %v5054_v56 = vmul.f32 %v9906_v25, %v5018_v3  ;;  %v11256_v41 = vld [vmem:[#allocation93_spill] sm:$0xff] }
 0x2f8   : > { %5832 = vrcp.f32 %v5410_v54  ;;  %v5085_v6 = vadd.f32 %v5053_v27, %v4985_v4  ;;  %v4786_v52 = vadd.f32 %v4754_v26, %v4686_v18  ;;  %v4454_v32 = vmul.f32 %v5117_v13, %v9850_v1  ;;  %v4719_v50 = vld [vmem:[#allocation2 + $0x146] sm:$0xff]  ;;  %v5956_v13 = vld [vmem:[#allocation2 + $0x130] sm:$0xff] }
 0x2f9   : > { %v4386_v35 = vadd.f32 %v4354_v42, %v4286_v29  ;;  %v4087_v45 = vadd.f32 %v11256_v41, %v11255_v38  ;;  %5536 = vst.msk [vmem:[%s10038_s5 + $0x8] sm:$0xff] %vm237_vm0, %v5504_v7  ;;  %v5154_v39 = vmul.f32 %v9916_v23, %v5118_v53  ;;  %v5254_v24 = vmul.f32 %v9912_v51, %v5218_v49  ;;  %v11257_v26 = vld [vmem:[#allocation94_spill] sm:$0xff] }
 0x2fa   : > { %v5185_v17 = vadd.f32 %v5153_v5, %v5085_v6  ;;  %v4886_v16 = vadd.f32 %v4854_v30, %v4786_v52  ;;  %v4554_v58 = vmul.f32 %v5217_v20, %v9858_v43  ;;  %v4255_v4 = vmul.f32 %v5956_v13, %v9840_v33  ;;  %v4819_v30 = vld [vmem:[#allocation2 + $0x147] sm:$0xff] }
 0x2fb   : > { %v4486_v55 = vadd.f32 %v4454_v32, %v4386_v35  ;;  %v4187_v54 = vadd.f32 %v11257_v26, %v4087_v45  ;;  %v4655_v5 = vmul.f32 %v9867_v28, %v4619_v36  ;;  %v4755_v6 = vmul.f32 %v9877_v44, %v4719_v50  ;;  %v4919_v52 = vld [vmem:[#allocation2 + $0x148] sm:$0xff] }
 0x2fc   : > { %v5827_v27 = vpop.eup %5826  ;;  %v10076_v29 = vadd.f32 %v5253_v63, %v5185_v17  ;;  %v4986_v60 = vadd.f32 %v4954_v48, %v4886_v16  ;;  %v4355_v20 = vmul.f32 %v5018_v3, %v9843_v22  ;;  %v5019_v41 = vld [vmem:[#allocation2 + $0x149] sm:$0xff]  ;;  %v4855_v36 = vmul.f32 %v9892_v21, %v4819_v30 }
 0x2fd   : > { %v5411_v18 = vadd.f32 1.0, %v5827_v27  ;;  %v4586_v7 = vadd.f32 %v4554_v58, %v4486_v55  ;;  %v4287_v35 = vadd.f32 %v4255_v4, %v4187_v54  ;;  %v4455_v17 = vmul.f32 %v5118_v53, %v9850_v1  ;;  %v4620_v3 = vld [vmem:[#allocation2 + $0x14d] sm:$0xff]  ;;  %v11258_v27 = vld [vmem:[#allocation97_spill] sm:$0xff] }
 0x2fe   : > { %v5829_v42 = vpop.eup %5828  ;;  %v5714_v38 = vmul.f32 -1.442695, %v10076_v29  ;;  %v5086_v63 = vadd.f32 %v5054_v56, %v4986_v60  ;;  %v4955_v50 = vmul.f32 %v9897_v37, %v4919_v52  ;;  %v5055_v56 = vmul.f32 %v9906_v25, %v5019_v41  ;;  %v5119_v60 = vld [vmem:[#allocation2 + $0x14a] sm:$0xff] }
 0x2ff   : > { %v5505_v32 = vmul.f32 %v5829_v42, %v10002_v15  ;;  %5834 = vrcp.f32 %v5411_v18  ;;  %v4687_v48 = vadd.f32 %v4655_v5, %v4586_v7  ;;  %v4387_v45 = vadd.f32 %v4355_v20, %v4287_v35  ;;  %v11259_v15 = vld [vmem:[#allocation96_spill] sm:$0xff]  ;;  %v11260_v5 = vld [vmem:[#allocation98_spill] sm:$0xff] }
 0x300   : > { %5836 = vpow2.f32 %v5714_v38  ;;  %v5186_v16 = vadd.f32 %v5154_v39, %v5086_v63  ;;  %v4088_v55 = vadd.f32 %v11259_v15, %v11258_v27  ;;  %v4555_v13 = vmul.f32 %v5218_v49, %v9858_v43  ;;  %v4720_v39 = vld [vmem:[#allocation2 + $0x14e] sm:$0xff] }
 0x301   : > { %5537 = vst.msk [vmem:[%s10038_s5 + $0x10] sm:$0xff] %vm237_vm0, %v5505_v32  ;;  %v5831_v58 = vpop.eup %5830  ;;  %v4787_v26 = vadd.f32 %v4755_v6, %v4687_v48  ;;  %v4487_v54 = vadd.f32 %v4455_v17, %v4387_v45  ;;  %v5957_v42 = vld [vmem:[#allocation2 + $0x148] sm:$0xff]  ;;  %v4656_v32 = vmul.f32 %v9867_v28, %v4620_v3  ;;  %v4920_v38 = vld [vmem:[#allocation2 + $0x150] sm:$0xff]  ;;  %v4356_v48 = vmul.f32 %v5019_v41, %v9843_v22 }
 0x302   : > { %v5833_v4 = vpop.eup %5832  ;;  %v5412_v18 = vadd.f32 1.0, %v5831_v58  ;;  %v10092_v53 = vadd.f32 %v5254_v24, %v5186_v16  ;;  %v4188_v30 = vadd.f32 %v11260_v5, %v4088_v55  ;;  %v4256_v7 = vmul.f32 %v5957_v42, %v9840_v33  ;;  %v5219_v35 = vld [vmem:[#allocation2 + $0x14b] sm:$0xff] }
 0x303   : > { %v5506_v52 = vmul.f32 %v5833_v4, %v10016_v34  ;;  %v4887_v6 = vadd.f32 %v4855_v36, %v4787_v26  ;;  %v4587_v20 = vadd.f32 %v4555_v13, %v4487_v54  ;;  %v4820_v24 = vld [vmem:[#allocation2 + $0x14f] sm:$0xff]  ;;  %v5155_v17 = vmul.f32 %v9916_v23, %v5119_v60 }
 0x304   : > { %5838 = vrcp.f32 %v5412_v18  ;;  %v5715_v49 = vmul.f32 -1.442695, %v10092_v53  ;;  %v4288_v63 = vadd.f32 %v4256_v7, %v4188_v30  ;;  %v4756_v34 = vmul.f32 %v9877_v44, %v4720_v39  ;;  %v5020_v36 = vld [vmem:[#allocation2 + $0x151] sm:$0xff] }
 0x305   : > { %5538 = vst.msk [vmem:[%s10038_s5 + $0x18] sm:$0xff] %vm237_vm0, %v5506_v52  ;;  %v4987_v45 = vadd.f32 %v4955_v50, %v4887_v6  ;;  %v4688_v16 = vadd.f32 %v4656_v32, %v4587_v20  ;;  %v5255_v3 = vmul.f32 %v9912_v51, %v5219_v35  ;;  %v5120_v27 = vld [vmem:[#allocation2 + $0x152] sm:$0xff]  ;;  %v4456_v55 = vmul.f32 %v5119_v60, %v9850_v1  ;;  %v4621_v50 = vld [vmem:[#allocation2 + $0x165] sm:$0xff] }
 0x306   : > { %5840 = vpow2.f32 %v5715_v49  ;;  %v4388_v15 = vadd.f32 %v4356_v48, %v4288_v63  ;;  %v4856_v41 = vmul.f32 %v9892_v21, %v4820_v24  ;;  %v4956_v54 = vmul.f32 %v9897_v37, %v4920_v38  ;;  %v5220_v18 = vld [vmem:[#allocation2 + $0x153] sm:$0xff]  ;;  %v4721_v20 = vld [vmem:[#allocation2 + $0x166] sm:$0xff] }
 0x307   : > { %v5087_v58 = vadd.f32 %v5055_v56, %v4987_v45  ;;  %v4788_v26 = vadd.f32 %v4756_v34, %v4688_v16  ;;  %v5056_v4 = vmul.f32 %v9906_v25, %v5020_v36  ;;  %v4556_v5 = vmul.f32 %v5219_v35, %v9858_v43  ;;  %v11261_v30 = vld [vmem:[#allocation95_spill] sm:$0xff]  ;;  %v4821_v38 = vld [vmem:[#allocation2 + $0x167] sm:$0xff]  ;;  %v11263_v63 = vld [vmem:[#allocation100_spill] sm:$0xff] }
 0x308   : > { %v4488_v39 = vadd.f32 %v4456_v55, %v4388_v15  ;;  %v11262_v42 = vld [vmem:[#allocation99_spill] sm:$0xff]  ;;  %v5156_v6 = vmul.f32 %v9916_v23, %v5120_v27  ;;  %v4657_v24 = vmul.f32 %v9867_v28, %v4621_v50  ;;  %v4921_v15 = vld [vmem:[#allocation2 + $0x168] sm:$0xff] }
 0x309   : > { %v5835_v13 = vpop.eup %5834  ;;  %v4089_v7 = vadd.f32 %v11262_v42, %v11261_v30  ;;  %v5187_v56 = vadd.f32 %v5155_v17, %v5087_v58  ;;  %v4888_v52 = vadd.f32 %v4856_v41, %v4788_v26  ;;  %v5958_v45 = vld [vmem:[#allocation2 + $0x150] sm:$0xff]  ;;  %v5256_v17 = vmul.f32 %v9912_v51, %v5220_v18 }
 0x30a   : > { %v5507_v60 = vmul.f32 %v5835_v13, %v10032_v14  ;;  %v5837_v32 = vpop.eup %5836  ;;  %v4588_v49 = vadd.f32 %v4556_v5, %v4488_v39  ;;  %v4257_v35 = vmul.f32 %v5958_v45, %v9840_v33  ;;  %v4757_v58 = vmul.f32 %v9877_v44, %v4721_v20  ;;  %v5021_v5 = vld [vmem:[#allocation2 + $0x169] sm:$0xff] }
 0x30b   : > { %v4189_v48 = vadd.f32 %v11263_v63, %v4089_v7  ;;  %v5413_v16 = vadd.f32 1.0, %v5837_v32  ;;  %v10119_v34 = vadd.f32 %v5255_v3, %v5187_v56  ;;  %v4988_v14 = vadd.f32 %v4956_v54, %v4888_v52  ;;  %v4622_v52 = vld [vmem:[#allocation2 + $0x16d] sm:$0xff] }
 0x30c   : > { %5539 = vst.msk [vmem:[%s10038_s5 + $0x20] sm:$0xff] %vm237_vm0, %v5507_v60  ;;  %v4689_v55 = vadd.f32 %v4657_v24, %v4588_v49  ;;  %v4357_v41 = vmul.f32 %v5020_v36, %v9843_v22  ;;  %v4857_v39 = vmul.f32 %v9892_v21, %v4821_v38  ;;  %v4957_v54 = vmul.f32 %v9897_v37, %v4921_v15  ;;  %v5121_v36 = vld [vmem:[#allocation2 + $0x16a] sm:$0xff] }
 0x30d   : > { %v4289_v26 = vadd.f32 %v4257_v35, %v4189_v48  ;;  %5842 = vrcp.f32 %v5413_v16  ;;  %v5716_v50 = vmul.f32 -1.442695, %v10119_v34  ;;  %v5088_v13 = vadd.f32 %v5056_v4, %v4988_v14  ;;  %v11264_v20 = vld [vmem:[#allocation103_spill] sm:$0xff]  ;;  %v11265_v32 = vld [vmem:[#allocation102_spill] sm:$0xff] }
 0x30e   : > { %v5839_v30 = vpop.eup %5838  ;;  %v4789_v3 = vadd.f32 %v4757_v58, %v4689_v55  ;;  %v4457_v7 = vmul.f32 %v5120_v27, %v9850_v1  ;;  %v4090_v4 = vadd.f32 %v11265_v32, %v11264_v20  ;;  %v5057_v38 = vmul.f32 %v9906_v25, %v5021_v5  ;;  %v4722_v35 = vld [vmem:[#allocation2 + $0x16e] sm:$0xff] }
 0x30f   : > { %v4389_v42 = vadd.f32 %v4357_v41, %v4289_v26  ;;  %v5508_v60 = vmul.f32 %v5839_v30, %v10051_v46  ;;  %5844 = vpow2.f32 %v5716_v50  ;;  %v5188_v56 = vadd.f32 %v5156_v6, %v5088_v13  ;;  %v5221_v46 = vld [vmem:[#allocation2 + $0x16b] sm:$0xff]  ;;  %v11266_v6 = vld [vmem:[#allocation104_spill] sm:$0xff] }
 0x310   : > { %v5841_v49 = vpop.eup %5840  ;;  %v4889_v24 = vadd.f32 %v4857_v39, %v4789_v3  ;;  %v4557_v48 = vmul.f32 %v5220_v18, %v9858_v43  ;;  %v4190_v16 = vadd.f32 %v11266_v6, %v4090_v4  ;;  %v5959_v14 = vld [vmem:[#allocation2 + $0x168] sm:$0xff]  ;;  %v5157_v58 = vmul.f32 %v9916_v23, %v5121_v36  ;;  %v4922_v13 = vld [vmem:[#allocation2 + $0x170] sm:$0xff] }
 0x311   : > { %v4489_v63 = vadd.f32 %v4457_v7, %v4389_v42  ;;  %5540 = vst.msk [vmem:[%s10038_s5 + $0x28] sm:$0xff] %vm237_vm0, %v5508_v60  ;;  %v5414_v45 = vadd.f32 1.0, %v5841_v49  ;;  %v10135_v27 = vadd.f32 %v5256_v17, %v5188_v56  ;;  %v4258_v15 = vmul.f32 %v5959_v14, %v9840_v33  ;;  %v4822_v50 = vld [vmem:[#allocation2 + $0x16f] sm:$0xff] }
 0x312   : > { %v4989_v55 = vadd.f32 %v4957_v54, %v4889_v24  ;;  %v4658_v41 = vmul.f32 %v9867_v28, %v4622_v52  ;;  %v4358_v39 = vmul.f32 %v5021_v5, %v9843_v22  ;;  %v5257_v3 = vmul.f32 %v9912_v51, %v5221_v46  ;;  %v5022_v54 = vld [vmem:[#allocation2 + $0x171] sm:$0xff]  ;;  %v4623_v24 = vld [vmem:[#allocation2 + $0x185] sm:$0xff] }
 0x313   : > { %v4589_v26 = vadd.f32 %v4557_v48, %v4489_v63  ;;  %5846 = vrcp.f32 %v5414_v45  ;;  %v5717_v18 = vmul.f32 -1.442695, %v10135_v27  ;;  %v4290_v17 = vadd.f32 %v4258_v15, %v4190_v16  ;;  %v5122_v49 = vld [vmem:[#allocation2 + $0x172] sm:$0xff] }
 0x314   : > { %v5089_v30 = vadd.f32 %v5057_v38, %v4989_v55  ;;  %v4758_v7 = vmul.f32 %v9877_v44, %v4722_v35  ;;  %v4858_v60 = vmul.f32 %v9892_v21, %v4822_v50  ;;  %v4458_v52 = vmul.f32 %v5121_v36, %v9850_v1  ;;  %v11267_v5 = vld [vmem:[#allocation12_spill] sm:$0xff]  ;;  %v11268_v38 = vld [vmem:[#allocation35_spill] sm:$0xff]  ;;  %v11269_v50 = vld [vmem:[#allocation101_spill] sm:$0xff] }
 0x315   : > { %v4690_v42 = vadd.f32 %v4658_v41, %v4589_v26  ;;  %5848 = vpow2.f32 %v5717_v18  ;;  %v4390_v56 = vadd.f32 %v4358_v39, %v4290_v17  ;;  %v4958_v4 = vmul.f32 %v9897_v37, %v4922_v13  ;;  %v5960_v16 = vld [vmem:[#allocation2 + $0x170] sm:$0xff]  ;;  %v4723_v26 = vld [vmem:[#allocation2 + $0x186] sm:$0xff] }
 0x316   : > { %v5189_v20 = vadd.f32 %v5157_v58, %v5089_v30  ;;  %v4091_v63 = vadd.f32 %v11268_v38, %v11267_v5  ;;  %v5058_v45 = vmul.f32 %v9906_v25, %v5022_v54  ;;  %v4558_v6 = vmul.f32 %v5221_v46, %v9858_v43  ;;  %v5222_v58 = vld [vmem:[#allocation2 + $0x173] sm:$0xff]  ;;  %v4823_v41 = vld [vmem:[#allocation2 + $0x187] sm:$0xff] }
 0x317   : > { %v4790_v32 = vadd.f32 %v4758_v7, %v4690_v42  ;;  %v5843_v48 = vpop.eup %5842  ;;  %v4490_v35 = vadd.f32 %v4458_v52, %v4390_v56  ;;  %v4259_v14 = vmul.f32 %v5960_v16, %v9840_v33  ;;  %v5158_v17 = vmul.f32 %v9916_v23, %v5122_v49  ;;  %v4923_v7 = vld [vmem:[#allocation2 + $0x188] sm:$0xff] }
 0x318   : > { %v5509_v36 = vmul.f32 %v5843_v48, %v10076_v29  ;;  %v10154_v15 = vadd.f32 %v5257_v3, %v5189_v20  ;;  %v4191_v18 = vadd.f32 %v11269_v50, %v4091_v63  ;;  %v4659_v30 = vmul.f32 %v9867_v28, %v4623_v24  ;;  %v5023_v24 = vld [vmem:[#allocation2 + $0x189] sm:$0xff] }
 0x319   : > { %v4890_v55 = vadd.f32 %v4858_v60, %v4790_v32  ;;  %v5845_v13 = vpop.eup %5844  ;;  %v4590_v39 = vadd.f32 %v4558_v6, %v4490_v35  ;;  %v4359_v46 = vmul.f32 %v5022_v54, %v9843_v22  ;;  %v5258_v56 = vmul.f32 %v9912_v51, %v5222_v58  ;;  %v4624_v35 = vld [vmem:[#allocation2 + $0x18d] sm:$0xff] }
 0x31a   : > { %5541 = vst.msk [vmem:[%s10038_s5 + $0x30] sm:$0xff] %vm237_vm0, %v5509_v36  ;;  %v5415_v42 = vadd.f32 1.0, %v5845_v13  ;;  %v5718_v29 = vmul.f32 -1.442695, %v10154_v15  ;;  %v4291_v60 = vadd.f32 %v4259_v14, %v4191_v18  ;;  %v4759_v20 = vmul.f32 %v9877_v44, %v4723_v26  ;;  %v11270_v6 = vld [vmem:[#allocation107_spill] sm:$0xff]  ;;  %v11271_v16 = vld [vmem:[#allocation106_spill] sm:$0xff] }
 0x31b   : > { %v4990_v3 = vadd.f32 %v4958_v4, %v4890_v55  ;;  %v4691_v52 = vadd.f32 %v4659_v30, %v4590_v39  ;;  %v4859_v32 = vmul.f32 %v9892_v21, %v4823_v41  ;;  %v4459_v54 = vmul.f32 %v5122_v49, %v9850_v1  ;;  %v5123_v26 = vld [vmem:[#allocation2 + $0x18a] sm:$0xff]  ;;  %v11272_v39 = vld [vmem:[#allocation108_spill] sm:$0xff] }
 0x31c   : > { %5850 = vrcp.f32 %v5415_v42  ;;  %v4391_v38 = vadd.f32 %v4359_v46, %v4291_v60  ;;  %v4959_v4 = vmul.f32 %v9897_v37, %v4923_v7  ;;  %v4092_v14 = vadd.f32 %v11271_v16, %v11270_v6  ;;  %v4724_v13 = vld [vmem:[#allocation2 + $0x18e] sm:$0xff] }
 0x31d   : > { %v5090_v5 = vadd.f32 %v5058_v45, %v4990_v3  ;;  %v5847_v63 = vpop.eup %5846  ;;  %5852 = vpow2.f32 %v5718_v29  ;;  %v4791_v48 = vadd.f32 %v4759_v20, %v4691_v52  ;;  %v4559_v45 = vmul.f32 %v5222_v58, %v9858_v43  ;;  %v5961_v46 = vld [vmem:[#allocation2 + $0x188] sm:$0xff]  ;;  %v4924_v20 = vld [vmem:[#allocation2 + $0x190] sm:$0xff] }
 0x31e   : > { %v5510_v36 = vmul.f32 %v5847_v63, %v10092_v53  ;;  %v4491_v41 = vadd.f32 %v4459_v54, %v4391_v38  ;;  %v5059_v49 = vmul.f32 %v9906_v25, %v5023_v24  ;;  %v4192_v30 = vadd.f32 %v11272_v39, %v4092_v14  ;;  %v5223_v53 = vld [vmem:[#allocation2 + $0x18b] sm:$0xff] }
 0x31f   : > { %v5190_v55 = vadd.f32 %v5158_v17, %v5090_v5  ;;  %v5849_v50 = vpop.eup %5848  ;;  %v4891_v18 = vadd.f32 %v4859_v32, %v4791_v48  ;;  %v4260_v42 = vmul.f32 %v5961_v46, %v9840_v33  ;;  %v4660_v7 = vmul.f32 %v9867_v28, %v4624_v35  ;;  %v4824_v52 = vld [vmem:[#allocation2 + $0x18f] sm:$0xff]  ;;  %v4625_v35 = vld [vmem:[#allocation2 + $0x1a5] sm:$0xff] }
 0x320   : > { %5542 = vst.msk [vmem:[%s10038_s5 + $0x38] sm:$0xff] %vm237_vm0, %v5510_v36  ;;  %v5416_v29 = vadd.f32 1.0, %v5849_v50  ;;  %v4591_v17 = vadd.f32 %v4559_v45, %v4491_v41  ;;  %v5159_v60 = vmul.f32 %v9916_v23, %v5123_v26  ;;  %v4360_v5 = vmul.f32 %v5023_v24, %v9843_v22  ;;  %v5024_v6 = vld [vmem:[#allocation2 + $0x191] sm:$0xff] }
 0x321   : > { %v10177_v3 = vadd.f32 %v5258_v56, %v5190_v55  ;;  %v4991_v58 = vadd.f32 %v4959_v4, %v4891_v18  ;;  %v4292_v32 = vadd.f32 %v4260_v42, %v4192_v30  ;;  %v4760_v63 = vmul.f32 %v9877_v44, %v4724_v13  ;;  %v5124_v41 = vld [vmem:[#allocation2 + $0x192] sm:$0xff]  ;;  %v4725_v18 = vld [vmem:[#allocation2 + $0x1a6] sm:$0xff] }
 0x322   : > { %5854 = vrcp.f32 %v5416_v29  ;;  %v4692_v54 = vadd.f32 %v4660_v7, %v4591_v17  ;;  %v5259_v48 = vmul.f32 %v9912_v51, %v5223_v53  ;;  %v4460_v4 = vmul.f32 %v5123_v26, %v9850_v1  ;;  %v11274_v13 = vld [vmem:[#allocation13_spill] sm:$0xff]  ;;  %v5962_v42 = vld [vmem:[#allocation2 + $0x190] sm:$0xff] }
 0x323   : > { %v5719_v38 = vmul.f32 -1.442695, %v10177_v3  ;;  %v5091_v56 = vadd.f32 %v5059_v49, %v4991_v58  ;;  %v4392_v16 = vadd.f32 %v4360_v5, %v4292_v32  ;;  %v4860_v36 = vmul.f32 %v9892_v21, %v4824_v52  ;;  %v11273_v49 = vld [vmem:[#allocation105_spill] sm:$0xff] }
 0x324   : > { %v4792_v14 = vadd.f32 %v4760_v63, %v4692_v54  ;;  %v4960_v24 = vmul.f32 %v9897_v37, %v4924_v20  ;;  %v4560_v50 = vmul.f32 %v5223_v53, %v9858_v43  ;;  %v4093_v51 = vadd.f32 %v11274_v13, %v11273_v49  ;;  %v5224_v53 = vld [vmem:[#allocation2 + $0x193] sm:$0xff]  ;;  %v4825_v52 = vld [vmem:[#allocation2 + $0x1a7] sm:$0xff] }
 0x325   : > { %5856 = vpow2.f32 %v5719_v38  ;;  %v5191_v55 = vadd.f32 %v5159_v60, %v5091_v56  ;;  %v4492_v45 = vadd.f32 %v4460_v4, %v4392_v16  ;;  %v5060_v26 = vmul.f32 %v9906_v25, %v5024_v6  ;;  %v11275_v20 = vld [vmem:[#allocation109_spill] sm:$0xff]  ;;  %v4925_v4 = vld [vmem:[#allocation2 + $0x1a8] sm:$0xff] }
 0x326   : > { %v5851_v39 = vpop.eup %5850  ;;  %v4892_v30 = vadd.f32 %v4860_v36, %v4792_v14  ;;  %v4661_v46 = vmul.f32 %v9867_v28, %v4625_v35  ;;  %v4261_v29 = vmul.f32 %v5962_v42, %v9840_v33  ;;  %v4193_v32 = vadd.f32 %v11275_v20, %v4093_v51  ;;  %v10207_v36 = vld [vmem:[%s10624_s1 + $0x30] ss:$0 sm:$0xff] }
 0x327   : > { %v5853_v17 = vpop.eup %5852  ;;  %v5511_v7 = vmul.f32 %v5851_v39, %v10119_v34  ;;  %v10195_v58 = vadd.f32 %v5259_v48, %v5191_v55  ;;  %v4592_v60 = vadd.f32 %v4560_v50, %v4492_v45  ;;  %v5160_v54 = vmul.f32 %v9916_v23, %v5124_v41  ;;  %v5025_v34 = vld [vmem:[#allocation2 + $0x1a9] sm:$0xff] }
 0x328   : > { %v5417_v5 = vadd.f32 1.0, %v5853_v17  ;;  %v4992_v38 = vadd.f32 %v4960_v24, %v4892_v30  ;;  %v4761_v63 = vmul.f32 %v9877_v44, %v4725_v18  ;;  %v4293_v48 = vadd.f32 %v4261_v29, %v4193_v32  ;;  %v5125_v50 = vld [vmem:[#allocation2 + $0x1aa] sm:$0xff] }
 0x329   : > { %5543 = vst.msk [vmem:[%s10038_s5 + $0x40] sm:$0xff] %vm237_vm0, %v5511_v7  ;;  %v5720_v56 = vmul.f32 -1.442695, %v10195_v58  ;;  %v4693_v16 = vadd.f32 %v4661_v46, %v4592_v60  ;;  %v4361_v35 = vmul.f32 %v5024_v6, %v9843_v22  ;;  %v5260_v24 = vmul.f32 %v10207_v36, %v5224_v53  ;;  %v4626_v30 = vld [vmem:[#allocation2 + $0x1ad] sm:$0xff] }
 0x32a   : > { %5858 = vrcp.f32 %v5417_v5  ;;  %v5092_v14 = vadd.f32 %v5060_v26, %v4992_v38  ;;  %v4861_v55 = vmul.f32 %v9892_v21, %v4825_v52  ;;  %v4461_v49 = vmul.f32 %v5124_v41, %v9850_v1  ;;  %v11276_v26 = vld [vmem:[#allocation112_spill] sm:$0xff]  ;;  %v11277_v46 = vld [vmem:[#allocation111_spill] sm:$0xff]  ;;  %v11278_v38 = vld [vmem:[#allocation113_spill] sm:$0xff] }
 0x32b   : > { %5860 = vpow2.f32 %v5720_v56  ;;  %v4793_v45 = vadd.f32 %v4761_v63, %v4693_v16  ;;  %v4393_v18 = vadd.f32 %v4361_v35, %v4293_v48  ;;  %v4961_v6 = vmul.f32 %v9897_v37, %v4925_v4  ;;  %v5225_v7 = vld [vmem:[#allocation2 + $0x1ab] sm:$0xff] }
 0x32c   : > { %v5855_v13 = vpop.eup %5854  ;;  %v5192_v51 = vadd.f32 %v5160_v54, %v5092_v14  ;;  %v5061_v39 = vmul.f32 %v9906_v25, %v5025_v34  ;;  %v4094_v42 = vadd.f32 %v11277_v46, %v11276_v26  ;;  %v4561_v52 = vmul.f32 %v5224_v53, %v9858_v43  ;;  %v4726_v5 = vld [vmem:[#allocation2 + $0x1ae] sm:$0xff] }
 0x32d   : > { %v5512_v29 = vmul.f32 %v5855_v13, %v10135_v27  ;;  %v4893_v17 = vadd.f32 %v4861_v55, %v4793_v45  ;;  %v4493_v60 = vadd.f32 %v4461_v49, %v4393_v18  ;;  %v5161_v32 = vmul.f32 %v9916_v23, %v5125_v50  ;;  %v5964_v63 = vld [vmem:[#allocation2 + $0x1a8] sm:$0xff] }
 0x32e   : > { %v10218_v41 = vadd.f32 %v5260_v24, %v5192_v51  ;;  %v4194_v54 = vadd.f32 %v11278_v38, %v4094_v42  ;;  %v4262_v56 = vmul.f32 %v5964_v63, %v9840_v33  ;;  %v4662_v48 = vmul.f32 %v9867_v28, %v4626_v30  ;;  %v4826_v35 = vld [vmem:[#allocation2 + $0x1af] sm:$0xff] }
 0x32f   : > { %v5857_v20 = vpop.eup %5856  ;;  %5544 = vst.msk [vmem:[%s10038_s5 + $0x48] sm:$0xff] %vm237_vm0, %v5512_v29  ;;  %v4993_v27 = vadd.f32 %v4961_v6, %v4893_v17  ;;  %v4593_v4 = vadd.f32 %v4561_v52, %v4493_v60  ;;  %v5261_v14 = vmul.f32 %v10207_v36, %v5225_v7  ;;  %v4926_v24 = vld [vmem:[#allocation2 + $0x1b0] sm:$0xff]  ;;  %v4362_v45 = vmul.f32 %v5025_v34, %v9843_v22  ;;  %v4627_v60 = vld [vmem:[#allocation2 + $0x1c5] sm:$0xff]  ;;  %v11280_v34 = vld [vmem:[#allocation28_spill] sm:$0xff] }
 0x330   : > { %v5418_v16 = vadd.f32 1.0, %v5857_v20  ;;  %v5721_v53 = vmul.f32 -1.442695, %v10218_v41  ;;  %v4294_v55 = vadd.f32 %v4262_v56, %v4194_v54  ;;  %v4762_v13 = vmul.f32 %v9877_v44, %v4726_v5  ;;  %v5026_v51 = vld [vmem:[#allocation2 + $0x1b1] sm:$0xff]  ;;  %v11279_v52 = vld [vmem:[#allocation29_spill] sm:$0xff] }
 0x331   : > { %v5093_v18 = vadd.f32 %v5061_v39, %v4993_v27  ;;  %v4694_v49 = vadd.f32 %v4662_v48, %v4593_v4  ;;  %v4862_v6 = vmul.f32 %v9892_v21, %v4826_v35  ;;  %v4462_v30 = vmul.f32 %v5125_v50, %v9850_v1  ;;  %v5126_v17 = vld [vmem:[#allocation2 + $0x1b2] sm:$0xff]  ;;  %v4727_v48 = vld [vmem:[#allocation2 + $0x1c6] sm:$0xff] }
 0x332   : > { %5862 = vrcp.f32 %v5418_v16  ;;  %v4394_v26 = vadd.f32 %v4362_v45, %v4294_v55  ;;  %v4962_v29 = vmul.f32 %v9897_v37, %v4926_v24  ;;  %v4095_v20 = vadd.f32 %v11280_v34, %v11279_v52  ;;  %v5965_v63 = vld [vmem:[#allocation2 + $0x1b0] sm:$0xff] }
 0x333   : > { %5864 = vpow2.f32 %v5721_v53  ;;  %v5193_v46 = vadd.f32 %v5161_v32, %v5093_v18  ;;  %v4794_v42 = vadd.f32 %v4762_v13, %v4694_v49  ;;  %v5062_v38 = vmul.f32 %v9906_v25, %v5026_v51  ;;  %v5226_v4 = vld [vmem:[#allocation2 + $0x1b3] sm:$0xff]  ;;  %v4827_v13 = vld [vmem:[#allocation2 + $0x1c7] sm:$0xff] }
 0x334   : > { %v5859_v39 = vpop.eup %5858  ;;  %v4494_v5 = vadd.f32 %v4462_v30, %v4394_v26  ;;  %v4562_v54 = vmul.f32 %v5225_v7, %v9858_v43  ;;  %v4263_v56 = vmul.f32 %v5965_v63, %v9840_v33  ;;  %v11281_v35 = vld [vmem:[#allocation59_spill] sm:$0xff]  ;;  %v5162_v55 = vmul.f32 %v9916_v23, %v5126_v17 }
 0x335   : > { %v5861_v50 = vpop.eup %5860  ;;  %v5513_v32 = vmul.f32 %v5859_v39, %v10154_v15  ;;  %v10239_v16 = vadd.f32 %v5261_v14, %v5193_v46  ;;  %v4894_v27 = vadd.f32 %v4862_v6, %v4794_v42  ;;  %v4195_v53 = vadd.f32 %v11281_v35, %v4095_v20  ;;  %v4927_v15 = vld [vmem:[#allocation2 + $0x1c8] sm:$0xff] }
 0x336   : > { %v5419_v24 = vadd.f32 1.0, %v5861_v50  ;;  %v4594_v45 = vadd.f32 %v4562_v54, %v4494_v5  ;;  %v4663_v18 = vmul.f32 %v9867_v28, %v4627_v60  ;;  %v4363_v6 = vmul.f32 %v5026_v51, %v9843_v22  ;;  %v5027_v42 = vld [vmem:[#allocation2 + $0x1c9] sm:$0xff] }
 0x337   : > { %5545 = vst.msk [vmem:[%s10038_s5 + $0x50] sm:$0xff] %vm237_vm0, %v5513_v32  ;;  %v5722_v7 = vmul.f32 -1.442695, %v10239_v16  ;;  %v4994_v49 = vadd.f32 %v4962_v29, %v4894_v27  ;;  %v4295_v14 = vadd.f32 %v4263_v56, %v4195_v53  ;;  %v5262_v26 = vmul.f32 %v10207_v36, %v5226_v4  ;;  %v4628_v5 = vld [vmem:[#allocation2 + $0x1cd] sm:$0xff] }
 0x338   : > { %5866 = vrcp.f32 %v5419_v24  ;;  %v4695_v30 = vadd.f32 %v4663_v18, %v4594_v45  ;;  %v4763_v46 = vmul.f32 %v9877_v44, %v4727_v48  ;;  %v4463_v34 = vmul.f32 %v5126_v17, %v9850_v1  ;;  %v11282_v54 = vld [vmem:[#allocation115_spill] sm:$0xff]  ;;  %v11283_v51 = vld [vmem:[#allocation114_spill] sm:$0xff]  ;;  %v11284_v45 = vld [vmem:[#allocation116_spill] sm:$0xff] }
 0x339   : > { %5868 = vpow2.f32 %v5722_v7  ;;  %v5094_v52 = vadd.f32 %v5062_v38, %v4994_v49  ;;  %v4395_v60 = vadd.f32 %v4363_v6, %v4295_v14  ;;  %v4863_v29 = vmul.f32 %v9892_v21, %v4827_v13  ;;  %v5127_v27 = vld [vmem:[#allocation2 + $0x1ca] sm:$0xff] }
 0x33a   : > { %v4795_v20 = vadd.f32 %v4763_v46, %v4695_v30  ;;  %v4963_v39 = vmul.f32 %v9897_v37, %v4927_v15  ;;  %v4096_v63 = vadd.f32 %v11283_v51, %v11282_v54  ;;  %v5063_v32 = vmul.f32 %v9906_v25, %v5027_v42  ;;  %v4728_v24 = vld [vmem:[#allocation2 + $0x1ce] sm:$0xff] }
 0x33b   : > { %v5194_v50 = vadd.f32 %v5162_v55, %v5094_v52  ;;  %v4495_v48 = vadd.f32 %v4463_v34, %v4395_v60  ;;  %v4563_v38 = vmul.f32 %v5226_v4, %v9858_v43  ;;  %v5966_v7 = vld [vmem:[#allocation2 + $0x1c8] sm:$0xff]  ;;  %v4664_v6 = vmul.f32 %v9867_v28, %v4628_v5  ;;  %v4928_v46 = vld [vmem:[#allocation2 + $0x1d0] sm:$0xff] }
 0x33c   : > { %v5863_v56 = vpop.eup %5862  ;;  %v4895_v53 = vadd.f32 %v4863_v29, %v4795_v20  ;;  %v4196_v18 = vadd.f32 %v11284_v45, %v4096_v63  ;;  %v4264_v49 = vmul.f32 %v5966_v7, %v9840_v33  ;;  %v5227_v55 = vld [vmem:[#allocation2 + $0x1cb] sm:$0xff]  ;;  %v5163_v30 = vmul.f32 %v9916_v23, %v5127_v27 }
 0x33d   : > { %v5865_v35 = vpop.eup %5864  ;;  %v5514_v17 = vmul.f32 %v5863_v56, %v10177_v3  ;;  %v10260_v15 = vadd.f32 %v5262_v26, %v5194_v50  ;;  %v4595_v14 = vadd.f32 %v4563_v38, %v4495_v48  ;;  %v4828_v3 = vld [vmem:[#allocation2 + $0x1cf] sm:$0xff]  ;;  %v4364_v60 = vmul.f32 %v5027_v42, %v9843_v22 }
 0x33e   : > { %v5420_v13 = vadd.f32 1.0, %v5865_v35  ;;  %v4995_v4 = vadd.f32 %v4963_v39, %v4895_v53  ;;  %v4296_v52 = vadd.f32 %v4264_v49, %v4196_v18  ;;  %v4764_v26 = vmul.f32 %v9877_v44, %v4728_v24  ;;  %v4629_v39 = vld [vmem:[#allocation2 + $0x1e5] sm:$0xff]  ;;  %v5028_v38 = vld [vmem:[#allocation2 + $0x1d1] sm:$0xff] }
 0x33f   : > { %5546 = vst.msk [vmem:[%s10038_s5 + $0x58] sm:$0xff] %vm237_vm0, %v5514_v17  ;;  %v5723_v34 = vmul.f32 -1.442695, %v10260_v15  ;;  %v4696_v20 = vadd.f32 %v4664_v6, %v4595_v14  ;;  %v5263_v54 = vmul.f32 %v10207_v36, %v5227_v55  ;;  %v4464_v51 = vmul.f32 %v5127_v27, %v9850_v1  ;;  %v11285_v53 = vld [vmem:[#allocation110_spill] sm:$0xff]  ;;  %v11286_v24 = vld [vmem:[#allocation24_spill] sm:$0xff] }
 0x340   : > { %5870 = vrcp.f32 %v5420_v13  ;;  %v5095_v29 = vadd.f32 %v5063_v32, %v4995_v4  ;;  %v4396_v5 = vadd.f32 %v4364_v60, %v4296_v52  ;;  %v4864_v56 = vmul.f32 %v9892_v21, %v4828_v3  ;;  %v4729_v32 = vld [vmem:[#allocation2 + $0x1e6] sm:$0xff]  ;;  %v5967_v13 = vld [vmem:[#allocation2 + $0x1d0] sm:$0xff]  ;;  %v11287_v52 = vld [vmem:[#allocation60_spill] sm:$0xff] }
 0x341   : > { %5872 = vpow2.f32 %v5723_v34  ;;  %v4796_v63 = vadd.f32 %v4764_v26, %v4696_v20  ;;  %v4964_v50 = vmul.f32 %v9897_v37, %v4928_v46  ;;  %v4564_v17 = vmul.f32 %v5227_v55, %v9858_v43  ;;  %v5228_v3 = vld [vmem:[#allocation2 + $0x1d3] sm:$0xff]  ;;  %v4829_v46 = vld [vmem:[#allocation2 + $0x1e7] sm:$0xff] }
 0x342   : > { %v5867_v42 = vpop.eup %5866  ;;  %v5195_v48 = vadd.f32 %v5163_v30, %v5095_v29  ;;  %v4496_v35 = vadd.f32 %v4464_v51, %v4396_v5  ;;  %v4097_v45 = vadd.f32 %v11286_v24, %v11285_v53  ;;  %v4665_v49 = vmul.f32 %v9867_v28, %v4629_v39  ;;  %v5128_v30 = vld [vmem:[#allocation2 + $0x1d2] sm:$0xff]  ;;  %v4929_v5 = vld [vmem:[#allocation2 + $0x1e8] sm:$0xff] }
 0x343   : > { %v5869_v18 = vpop.eup %5868  ;;  %v5515_v27 = vmul.f32 %v5867_v42, %v10195_v58  ;;  %v4896_v7 = vadd.f32 %v4864_v56, %v4796_v63  ;;  %v4265_v14 = vmul.f32 %v5967_v13, %v9840_v33  ;;  %v5064_v58 = vmul.f32 %v9906_v25, %v5028_v38  ;;  %v5029_v51 = vld [vmem:[#allocation2 + $0x1e9] sm:$0xff] }
 0x344   : > { %v5421_v6 = vadd.f32 1.0, %v5869_v18  ;;  %v10279_v4 = vadd.f32 %v5263_v54, %v5195_v48  ;;  %v4596_v55 = vadd.f32 %v4564_v17, %v4496_v35  ;;  %v4197_v60 = vadd.f32 %v11287_v52, %v4097_v45  ;;  %v5129_v35 = vld [vmem:[#allocation2 + $0x1ea] sm:$0xff] }
 0x345   : > { %5547 = vst.msk [vmem:[%s10038_s5 + $0x60] sm:$0xff] %vm237_vm0, %v5515_v27  ;;  %v4996_v34 = vadd.f32 %v4964_v50, %v4896_v7  ;;  %v4765_v20 = vmul.f32 %v9877_v44, %v4729_v32  ;;  %v4365_v26 = vmul.f32 %v5028_v38, %v9843_v22  ;;  %v5164_v56 = vmul.f32 %v9916_v23, %v5128_v30  ;;  %v4630_v18 = vld [vmem:[#allocation2 + $0x1ed] sm:$0xff]  ;;  %v11289_v7 = vld [vmem:[#allocation17_spill] sm:$0xff] }
 0x346   : > { %5874 = vrcp.f32 %v5421_v6  ;;  %v5724_v29 = vmul.f32 -1.442695, %v10279_v4  ;;  %v4697_v54 = vadd.f32 %v4665_v49, %v4596_v55  ;;  %v4297_v39 = vadd.f32 %v4265_v14, %v4197_v60  ;;  %v11288_v27 = vld [vmem:[#allocation18_spill] sm:$0xff] }
 0x347   : > { %v5096_v63 = vadd.f32 %v5064_v58, %v4996_v34  ;;  %v5264_v42 = vmul.f32 %v10207_v36, %v5228_v3  ;;  %v4865_v50 = vmul.f32 %v9892_v21, %v4829_v46  ;;  %v4465_v38 = vmul.f32 %v5128_v30, %v9850_v1  ;;  %v5229_v6 = vld [vmem:[#allocation2 + $0x1eb] sm:$0xff]  ;;  %v11290_v58 = vld [vmem:[#allocation20_spill] sm:$0xff] }
 0x348   : > { %5876 = vpow2.f32 %v5724_v29  ;;  %v4797_v48 = vadd.f32 %v4765_v20, %v4697_v54  ;;  %v4397_v17 = vadd.f32 %v4365_v26, %v4297_v39  ;;  %v4965_v24 = vmul.f32 %v9897_v37, %v4929_v5  ;;  %v4730_v34 = vld [vmem:[#allocation2 + $0x1ee] sm:$0xff] }
 0x349   : > { %v5196_v53 = vadd.f32 %v5164_v56, %v5096_v63  ;;  %v5065_v45 = vmul.f32 %v9906_v25, %v5029_v51  ;;  %v4098_v49 = vadd.f32 %v11289_v7, %v11288_v27  ;;  %v4565_v46 = vmul.f32 %v5228_v3, %v9858_v43  ;;  %v5968_v26 = vld [vmem:[#allocation2 + $0x1e8] sm:$0xff] }
 0x34a   : > { %v5871_v32 = vpop.eup %5870  ;;  %v4897_v14 = vadd.f32 %v4865_v50, %v4797_v48  ;;  %v4497_v55 = vadd.f32 %v4465_v38, %v4397_v17  ;;  %v5165_v60 = vmul.f32 %v9916_v23, %v5129_v35  ;;  %v4266_v29 = vmul.f32 %v5968_v26, %v9840_v33  ;;  %v4830_v63 = vld [vmem:[#allocation2 + $0x1ef] sm:$0xff] }
 0x34b   : > { %v5516_v13 = vmul.f32 %v5871_v32, %v10218_v41  ;;  %v5873_v52 = vpop.eup %5872  ;;  %v10298_v30 = vadd.f32 %v5264_v42, %v5196_v53  ;;  %v4198_v20 = vadd.f32 %v11290_v58, %v4098_v49  ;;  %v4666_v39 = vmul.f32 %v9867_v28, %v4630_v18  ;;  %v4930_v42 = vld [vmem:[#allocation2 + $0x1f0] sm:$0xff] }
 0x34c   : > { %v5422_v54 = vadd.f32 1.0, %v5873_v52  ;;  %v4997_v41 = vadd.f32 %v4965_v24, %v4897_v14  ;;  %v4597_v5 = vadd.f32 %v4565_v46, %v4497_v55  ;;  %v5265_v56 = vmul.f32 %v10207_v36, %v5229_v6  ;;  %v5030_v53 = vld [vmem:[#allocation2 + $0x1f1] sm:$0xff] }
 0x34d   : > { %5548 = vst.msk [vmem:[%s10038_s5 + $0x68] sm:$0xff] %vm237_vm0, %v5516_v13  ;;  %v5725_v3 = vmul.f32 -1.442695, %v10298_v30  ;;  %v4298_v50 = vadd.f32 %v4266_v29, %v4198_v20  ;;  %v4366_v48 = vmul.f32 %v5029_v51, %v9843_v22  ;;  %v4766_v32 = vmul.f32 %v9877_v44, %v4730_v34  ;;  %v5130_v55 = vld [vmem:[#allocation2 + $0x1f2] sm:$0xff]  ;;  %v4631_v51 = vld [vmem:[#allocation2 + $0x205] sm:$0xff] }
 0x34e   : > { %5878 = vrcp.f32 %v5422_v54  ;;  %v5097_v17 = vadd.f32 %v5065_v45, %v4997_v41  ;;  %v4698_v38 = vadd.f32 %v4666_v39, %v4597_v5  ;;  %v4866_v24 = vmul.f32 %v9892_v21, %v4830_v63  ;;  %v11291_v45 = vld [vmem:[#allocation22_spill] sm:$0xff]  ;;  %v5230_v29 = vld [vmem:[#allocation2 + $0x1f3] sm:$0xff] }
 0x34f   : > { %5880 = vpow2.f32 %v5725_v3  ;;  %v4398_v27 = vadd.f32 %v4366_v48, %v4298_v50  ;;  %v4466_v18 = vmul.f32 %v5129_v35, %v9850_v1  ;;  %v4966_v14 = vmul.f32 %v9897_v37, %v4930_v42  ;;  %v4731_v54 = vld [vmem:[#allocation2 + $0x206] sm:$0xff]  ;;  %v11292_v41 = vld [vmem:[#allocation23_spill] sm:$0xff] }
 0x350   : > { %v5875_v7 = vpop.eup %5874  ;;  %v5197_v49 = vadd.f32 %v5165_v60, %v5097_v17  ;;  %v4798_v13 = vadd.f32 %v4766_v32, %v4698_v38  ;;  %v4099_v46 = vadd.f32 %v11291_v45, %v9557_v47  ;;  %v5066_v34 = vmul.f32 %v9906_v25, %v5030_v53  ;;  %v5969_v39 = vld [vmem:[#allocation2 + $0x1f0] sm:$0xff]  ;;  %v4831_v50 = vld [vmem:[#allocation2 + $0x207] sm:$0xff] }
 0x351   : > { %v5517_v52 = vmul.f32 %v5875_v7, %v10239_v16  ;;  %v4498_v58 = vadd.f32 %v4466_v18, %v4398_v27  ;;  %v4566_v20 = vmul.f32 %v5229_v6, %v9858_v43  ;;  %v4267_v63 = vmul.f32 %v5969_v39, %v9840_v33  ;;  %v4931_v48 = vld [vmem:[#allocation2 + $0x208] sm:$0xff] }
 0x352   : > { %v5877_v26 = vpop.eup %5876  ;;  %v10318_v35 = vadd.f32 %v5265_v56, %v5197_v49  ;;  %v4898_v60 = vadd.f32 %v4866_v24, %v4798_v13  ;;  %v4199_v5 = vadd.f32 %v11292_v41, %v4099_v46  ;;  %v5166_v16 = vmul.f32 %v9916_v23, %v5130_v55  ;;  %v5031_v18 = vld [vmem:[#allocation2 + $0x209] sm:$0xff] }
 0x353   : > { %5549 = vst.msk [vmem:[%s10038_s5 + $0x70] sm:$0xff] %vm237_vm0, %v5517_v52  ;;  %v5423_v47 = vadd.f32 1.0, %v5877_v26  ;;  %v4598_v3 = vadd.f32 %v4566_v20, %v4498_v58  ;;  %v4667_v42 = vmul.f32 %v9867_v28, %v4631_v51  ;;  %v4367_v38 = vmul.f32 %v5030_v53, %v9843_v22  ;;  %v4632_v46 = vld [vmem:[#allocation2 + $0x20d] sm:$0xff] }
 0x354   : > { %v5726_v6 = vmul.f32 -1.442695, %v10318_v35  ;;  %v4998_v56 = vadd.f32 %v4966_v14, %v4898_v60  ;;  %v4299_v17 = vadd.f32 %v4267_v63, %v4199_v5  ;;  %v5266_v32 = vmul.f32 %v10207_v36, %v5230_v29  ;;  %v11293_v52 = vld [vmem:[#allocation51_spill] sm:$0xff]  ;;  %v11294_v53 = vld [vmem:[#allocation30_spill] sm:$0xff] }
 0x355   : > { %5882 = vrcp.f32 %v5423_v47  ;;  %v4699_v24 = vadd.f32 %v4667_v42, %v4598_v3  ;;  %v4767_v27 = vmul.f32 %v9877_v44, %v4731_v54  ;;  %v4467_v13 = vmul.f32 %v5130_v55, %v9850_v1  ;;  %v5131_v54 = vld [vmem:[#allocation2 + $0x20a] sm:$0xff] }
 0x356   : > { %5884 = vpow2.f32 %v5726_v6  ;;  %v5098_v7 = vadd.f32 %v5066_v34, %v4998_v56  ;;  %v4399_v49 = vadd.f32 %v4367_v38, %v4299_v17  ;;  %v4867_v14 = vmul.f32 %v9892_v21, %v4831_v50  ;;  %v4732_v63 = vld [vmem:[#allocation2 + $0x20e] sm:$0xff] }
 0x357   : > { %v4799_v51 = vadd.f32 %v4767_v27, %v4699_v24  ;;  %v4967_v45 = vmul.f32 %v9897_v37, %v4931_v48  ;;  %v4100_v58 = vadd.f32 %v11294_v53, %v11293_v52  ;;  %v5067_v60 = vmul.f32 %v9906_v25, %v5031_v18  ;;  %v11295_v47 = vld [vmem:[#allocation50_spill] sm:$0xff]  ;;  %v4932_v24 = vld [vmem:[#allocation2 + $0x210] sm:$0xff] }
 0x358   : > { %v5879_v20 = vpop.eup %5878  ;;  %v5198_v26 = vadd.f32 %v5166_v16, %v5098_v7  ;;  %v4499_v41 = vadd.f32 %v4467_v13, %v4399_v49  ;;  %v4567_v34 = vmul.f32 %v5230_v29, %v9858_v43  ;;  %v5970_v42 = vld [vmem:[#allocation2 + $0x208] sm:$0xff]  ;;  %v4668_v17 = vmul.f32 %v9867_v28, %v4632_v46 }
 0x359   : > { %v5881_v5 = vpop.eup %5880  ;;  %v5518_v55 = vmul.f32 %v5879_v20, %v10260_v15  ;;  %v4899_v39 = vadd.f32 %v4867_v14, %v4799_v51  ;;  %v4200_v3 = vadd.f32 %v11295_v47, %v4100_v58  ;;  %v4268_v6 = vmul.f32 %v5970_v42, %v9840_v33  ;;  %v5231_v16 = vld [vmem:[#allocation2 + $0x20b] sm:$0xff] }
 0x35a   : > { %v5424_v56 = vadd.f32 1.0, %v5881_v5  ;;  %v10340_v50 = vadd.f32 %v5266_v32, %v5198_v26  ;;  %v4599_v48 = vadd.f32 %v4567_v34, %v4499_v41  ;;  %v5167_v38 = vmul.f32 %v9916_v23, %v5131_v54  ;;  %v4832_v15 = vld [vmem:[#allocation2 + $0x20f] sm:$0xff] }
 0x35b   : > { %5550 = vst.msk [vmem:[%s10038_s5 + $0x78] sm:$0xff] %vm237_vm0, %v5518_v55  ;;  %v4999_v29 = vadd.f32 %v4967_v45, %v4899_v39  ;;  %v4300_v27 = vadd.f32 %v4268_v6, %v4200_v3  ;;  %v4368_v7 = vmul.f32 %v5031_v18, %v9843_v22  ;;  %v4768_v32 = vmul.f32 %v9877_v44, %v4732_v63  ;;  %v4633_v45 = vld [vmem:[#allocation2 + $0x225] sm:$0xff]  ;;  %v5032_v41 = vld [vmem:[#allocation2 + $0x211] sm:$0xff] }
 0x35c   : > { %5886 = vrcp.f32 %v5424_v56  ;;  %v5727_v49 = vmul.f32 -1.442695, %v10340_v50  ;;  %v4700_v13 = vadd.f32 %v4668_v17, %v4599_v48  ;;  %v5267_v14 = vmul.f32 %v10207_v36, %v5231_v16  ;;  %v5971_v3 = vld [vmem:[#allocation2 + $0x210] sm:$0xff] }
 0x35d   : > { %v5099_v51 = vadd.f32 %v5067_v60, %v4999_v29  ;;  %v4400_v46 = vadd.f32 %v4368_v7, %v4300_v27  ;;  %v4468_v52 = vmul.f32 %v5131_v54, %v9850_v1  ;;  %v4868_v58 = vmul.f32 %v9892_v21, %v4832_v15  ;;  %v4733_v60 = vld [vmem:[#allocation2 + $0x226] sm:$0xff]  ;;  %v5132_v48 = vld [vmem:[#allocation2 + $0x212] sm:$0xff] }
 0x35e   : > { %5888 = vpow2.f32 %v5727_v49  ;;  %v4800_v53 = vadd.f32 %v4768_v32, %v4700_v13  ;;  %v4968_v20 = vmul.f32 %v9897_v37, %v4932_v24  ;;  %v4568_v5 = vmul.f32 %v5231_v16, %v9858_v43  ;;  %v5232_v17 = vld [vmem:[#allocation2 + $0x213] sm:$0xff]  ;;  %v4833_v29 = vld [vmem:[#allocation2 + $0x227] sm:$0xff] }
 0x35f   : > { %v5883_v18 = vpop.eup %5882  ;;  %v5199_v26 = vadd.f32 %v5167_v38, %v5099_v51  ;;  %v4500_v34 = vadd.f32 %v4468_v52, %v4400_v46  ;;  %v4101_v55 = vadd.f32 %v9698_v10, %v9709_v59  ;;  %v4669_v47 = vmul.f32 %v9867_v28, %v4633_v45  ;;  %v4933_v7 = vld [vmem:[#allocation2 + $0x228] sm:$0xff] }
 0x360   : > { %v5885_v39 = vpop.eup %5884  ;;  %v5519_v54 = vmul.f32 %v5883_v18, %v10279_v4  ;;  %v4900_v63 = vadd.f32 %v4868_v58, %v4800_v53  ;;  %v4269_v42 = vmul.f32 %v5971_v3, %v9840_v33  ;;  %v5068_v59 = vmul.f32 %v9906_v25, %v5032_v41  ;;  %v5033_v49 = vld [vmem:[#allocation2 + $0x229] sm:$0xff] }
 0x361   : > { %v5425_v6 = vadd.f32 1.0, %v5885_v39  ;;  %v10359_v56 = vadd.f32 %v5267_v14, %v5199_v26  ;;  %v4600_v16 = vadd.f32 %v4568_v5, %v4500_v34  ;;  %v4201_v38 = vadd.f32 %v9702_v61, %v4101_v55  ;;  %v5133_v52 = vld [vmem:[#allocation2 + $0x22a] sm:$0xff] }
 0x362   : > { %5551 = vst.msk [vmem:[%s10038_s5 + $0x80] sm:$0xff] %vm237_vm0, %v5519_v54  ;;  %v5000_v10 = vadd.f32 %v4968_v20, %v4900_v63  ;;  %v4769_v4 = vmul.f32 %v9877_v44, %v4733_v60  ;;  %v4369_v15 = vmul.f32 %v5032_v41, %v9843_v22  ;;  %v5168_v51 = vmul.f32 %v9916_v23, %v5132_v48  ;;  %v4634_v41 = vld [vmem:[#allocation2 + $0x22d] sm:$0xff] }
 0x363   : > { %5890 = vrcp.f32 %v5425_v6  ;;  %v5728_v24 = vmul.f32 -1.442695, %v10359_v56  ;;  %v4701_v27 = vadd.f32 %v4669_v47, %v4600_v16  ;;  %v4301_v13 = vadd.f32 %v4269_v42, %v4201_v38  ;;  %v5233_v55 = vld [vmem:[#allocation2 + $0x22b] sm:$0xff] }
 0x364   : > { %v5100_v32 = vadd.f32 %v5068_v59, %v5000_v10  ;;  %v5268_v61 = vmul.f32 %v10207_v36, %v5232_v17  ;;  %v4869_v14 = vmul.f32 %v9892_v21, %v4833_v29  ;;  %v4469_v53 = vmul.f32 %v5132_v48, %v9850_v1  ;;  %v4734_v42 = vld [vmem:[#allocation2 + $0x22e] sm:$0xff] }
 0x365   : > { %5892 = vpow2.f32 %v5728_v24  ;;  %v4801_v46 = vadd.f32 %v4769_v4, %v4701_v27  ;;  %v4401_v45 = vadd.f32 %v4369_v15, %v4301_v13  ;;  %v4969_v18 = vmul.f32 %v9897_v37, %v4933_v7  ;;  %v5972_v48 = vld [vmem:[#allocation2 + $0x228] sm:$0xff]  ;;  %v4934_v59 = vld [vmem:[#allocation2 + $0x230] sm:$0xff] }
 0x366   : > { %v5887_v58 = vpop.eup %5886  ;;  %v5200_v20 = vadd.f32 %v5168_v51, %v5100_v32  ;;  %v5069_v26 = vmul.f32 %v9906_v25, %v5033_v49  ;;  %v4102_v34 = vadd.f32 %v9723_v8, %v9737_v12  ;;  %v4569_v54 = vmul.f32 %v5232_v17, %v9858_v43  ;;  %v4834_v38 = vld [vmem:[#allocation2 + $0x22f] sm:$0xff] }
 0x367   : > { %v5520_v5 = vmul.f32 %v5887_v58, %v10298_v30  ;;  %v4901_v60 = vadd.f32 %v4869_v14, %v4801_v46  ;;  %v4501_v39 = vadd.f32 %v4469_v53, %v4401_v45  ;;  %v5169_v3 = vmul.f32 %v9916_v23, %v5133_v52  ;;  %v5034_v7 = vld [vmem:[#allocation2 + $0x231] sm:$0xff] }
 0x368   : > { %v5889_v63 = vpop.eup %5888  ;;  %v10378_v47 = vadd.f32 %v5268_v61, %v5200_v20  ;;  %v4202_v6 = vadd.f32 %v9731_v9, %v4102_v34  ;;  %v4270_v16 = vmul.f32 %v5972_v48, %v9840_v33  ;;  %v4670_v29 = vmul.f32 %v9867_v28, %v4634_v41  ;;  %v5134_v53 = vld [vmem:[#allocation2 + $0x232] sm:$0xff]  ;;  %v4835_v48 = vld [vmem:[#allocation2 + $0x247] sm:$0xff] }
 0x369   : > { %5552 = vst.msk [vmem:[%s10038_s5 + $0x88] sm:$0xff] %vm237_vm0, %v5520_v5  ;;  %v5426_v8 = vadd.f32 1.0, %v5889_v63  ;;  %v5001_v12 = vadd.f32 %v4969_v18, %v4901_v60  ;;  %v4601_v30 = vadd.f32 %v4569_v54, %v4501_v39  ;;  %v5269_v10 = vmul.f32 %v10207_v36, %v5233_v55  ;;  %v5234_v60 = vld [vmem:[#allocation2 + $0x233] sm:$0xff]  ;;  %v4735_v39 = vld [vmem:[#allocation2 + $0x246] sm:$0xff] }
 0x36a   : > { %v5729_v17 = vmul.f32 -1.442695, %v10378_v47  ;;  %v4302_v4 = vadd.f32 %v4270_v16, %v4202_v6  ;;  %v4370_v15 = vmul.f32 %v5033_v49, %v9843_v22  ;;  %v4770_v27 = vmul.f32 %v9877_v44, %v4734_v42  ;;  %v4635_v49 = vld [vmem:[#allocation2 + $0x245] sm:$0xff]  ;;  %v5973_v63 = vld [vmem:[#allocation2 + $0x230] sm:$0xff] }
 0x36b   : > { %5894 = vrcp.f32 %v5426_v8  ;;  %v5101_v9 = vadd.f32 %v5069_v26, %v5001_v12  ;;  %v4702_v24 = vadd.f32 %v4670_v29, %v4601_v30  ;;  %v4870_v13 = vmul.f32 %v9892_v21, %v4834_v38  ;;  %v4935_v16 = vld [vmem:[#allocation2 + $0x248] sm:$0xff] }
 0x36c   : > { %5896 = vpow2.f32 %v5729_v17  ;;  %v4402_v32 = vadd.f32 %v4370_v15, %v4302_v4  ;;  %v4470_v51 = vmul.f32 %v5133_v52, %v9850_v1  ;;  %v4970_v45 = vmul.f32 %v9897_v37, %v4934_v59  ;;  %v5035_v38 = vld [vmem:[#allocation2 + $0x249] sm:$0xff] }
 0x36d   : > { %v5891_v61 = vpop.eup %5890  ;;  %v5201_v14 = vadd.f32 %v5169_v3, %v5101_v9  ;;  %v4802_v46 = vadd.f32 %v4770_v27, %v4702_v24  ;;  %v4103_v58 = vadd.f32 %v9779_v11, %v9786_v57  ;;  %v5070_v18 = vmul.f32 %v9906_v25, %v5034_v7  ;;  %v4636_v24 = vld [vmem:[#allocation2 + $0x24d] sm:$0xff] }
 0x36e   : > { %v5521_v20 = vmul.f32 %v5891_v61, %v10318_v35  ;;  %v4502_v26 = vadd.f32 %v4470_v51, %v4402_v32  ;;  %v4570_v41 = vmul.f32 %v5233_v55, %v9858_v43  ;;  %v4271_v3 = vmul.f32 %v5973_v63, %v9840_v33  ;;  %v5135_v51 = vld [vmem:[#allocation2 + $0x24a] sm:$0xff] }
 0x36f   : > { %v5893_v34 = vpop.eup %5892  ;;  %v10398_v52 = vadd.f32 %v5269_v10, %v5201_v14  ;;  %v4902_v5 = vadd.f32 %v4870_v13, %v4802_v46  ;;  %v4203_v54 = vadd.f32 %v9790_v40, %v4103_v58  ;;  %v5170_v57 = vmul.f32 %v9916_v23, %v5134_v53 }
 0x370   : > { %5553 = vst.msk [vmem:[%s10038_s5 + $0x90] sm:$0xff] %vm237_vm0, %v5521_v20  ;;  %v5427_v11 = vadd.f32 1.0, %v5893_v34  ;;  %v4602_v35 = vadd.f32 %v4570_v41, %v4502_v26  ;;  %v4671_v42 = vmul.f32 %v9867_v28, %v4635_v49  ;;  %v4371_v12 = vmul.f32 %v5034_v7, %v9843_v22  ;;  %v4736_v49 = vld [vmem:[#allocation2 + $0x24e] sm:$0xff] }
 0x371   : > { %v5730_v55 = vmul.f32 -1.442695, %v10398_v52  ;;  %v5002_v6 = vadd.f32 %v4970_v45, %v4902_v5  ;;  %v4303_v8 = vadd.f32 %v4271_v3, %v4203_v54  ;;  %v5270_v40 = vmul.f32 %v10207_v36, %v5234_v60  ;;  %v5974_v20 = vld [vmem:[#allocation2 + $0x248] sm:$0xff] }
 0x372   : > { %5898 = vrcp.f32 %v5427_v11  ;;  %v4703_v30 = vadd.f32 %v4671_v42, %v4602_v35  ;;  %v4771_v29 = vmul.f32 %v9877_v44, %v4735_v39  ;;  %v4471_v59 = vmul.f32 %v5134_v53, %v9850_v1  ;;  %v5235_v26 = vld [vmem:[#allocation2 + $0x24b] sm:$0xff] }
 0x373   : > { %5900 = vpow2.f32 %v5730_v55  ;;  %v5102_v17 = vadd.f32 %v5070_v18, %v5002_v6  ;;  %v4403_v10 = vadd.f32 %v4371_v12, %v4303_v8  ;;  %v4871_v15 = vmul.f32 %v9892_v21, %v4835_v48  ;;  %v4936_v39 = vld [vmem:[#allocation2 + $0x250] sm:$0xff]  ;;  %v4637_v6 = vld [vmem:[#allocation2 + $0x265] sm:$0xff] }
 0x374   : > { %v4803_v4 = vadd.f32 %v4771_v29, %v4703_v30  ;;  %v4971_v9 = vmul.f32 %v9897_v37, %v4935_v16  ;;  %v4104_v27 = vadd.f32 %v9808_v62, %v9821_v0  ;;  %v5071_v32 = vmul.f32 %v9906_v25, %v5035_v38  ;;  %v5036_v30 = vld [vmem:[#allocation2 + $0x251] sm:$0xff] }
 0x375   : > { %v5895_v7 = vpop.eup %5894  ;;  %v5202_v13 = vadd.f32 %v5170_v57, %v5102_v17  ;;  %v4503_v61 = vadd.f32 %v4471_v59, %v4403_v10  ;;  %v4571_v14 = vmul.f32 %v5234_v60, %v9858_v43  ;;  %v4272_v18 = vmul.f32 %v5974_v20, %v9840_v33  ;;  %v4737_v17 = vld [vmem:[#allocation2 + $0x266] sm:$0xff] }
 0x376   : > { %v5897_v46 = vpop.eup %5896  ;;  %v5522_v45 = vmul.f32 %v5895_v7, %v10340_v50  ;;  %v4903_v53 = vadd.f32 %v4871_v15, %v4803_v4  ;;  %v4204_v58 = vadd.f32 %v9811_v2, %v4104_v27  ;;  %v4672_v34 = vmul.f32 %v9867_v28, %v4636_v24  ;;  %v4836_v50 = vld [vmem:[#allocation2 + $0x24f] sm:$0xff] }
 0x377   : > { %v5428_v62 = vadd.f32 1.0, %v5897_v46  ;;  %v10420_v0 = vadd.f32 %v5270_v40, %v5202_v13  ;;  %v4603_v41 = vadd.f32 %v4571_v14, %v4503_v61  ;;  %v5171_v60 = vmul.f32 %v9916_v23, %v5135_v51  ;;  %v5975_v24 = vld [vmem:[#allocation2 + $0x250] sm:$0xff]  ;;  %v4837_v14 = vld [vmem:[#allocation2 + $0x267] sm:$0xff]  ;;  %v11296_v46 = vld [vmem:[#allocation52_spill] sm:$0xff] }
 0x378   : > { %5554 = vst.msk [vmem:[%s10038_s5 + $0x98] sm:$0xff] %vm237_vm0, %v5522_v45  ;;  %v5003_v5 = vadd.f32 %v4971_v9, %v4903_v53  ;;  %v4304_v54 = vadd.f32 %v4272_v18, %v4204_v58  ;;  %v4372_v2 = vmul.f32 %v5035_v38, %v9843_v22  ;;  %v4772_v11 = vmul.f32 %v9877_v44, %v4736_v49  ;;  %v4937_v20 = vld [vmem:[#allocation2 + $0x268] sm:$0xff] }
 0x379   : > { %5902 = vrcp.f32 %v5428_v62  ;;  %v5731_v63 = vmul.f32 -1.442695, %v10420_v0  ;;  %v4704_v3 = vadd.f32 %v4672_v34, %v4603_v41  ;;  %v5271_v35 = vmul.f32 %v10207_v36, %v5235_v26  ;;  %v5037_v18 = vld [vmem:[#allocation2 + $0x269] sm:$0xff] }
 0x37a   : > { %v5103_v57 = vadd.f32 %v5071_v32, %v5003_v5  ;;  %v4404_v42 = vadd.f32 %v4372_v2, %v4304_v54  ;;  %v4472_v55 = vmul.f32 %v5135_v51, %v9850_v1  ;;  %v4872_v16 = vmul.f32 %v9892_v21, %v4836_v50  ;;  %v5136_v32 = vld [vmem:[#allocation2 + $0x252] sm:$0xff]  ;;  %v5137_v50 = vld [vmem:[#allocation2 + $0x26a] sm:$0xff] }
 0x37b   : > { %5904 = vpow2.f32 %v5731_v63  ;;  %v4804_v48 = vadd.f32 %v4772_v11, %v4704_v3  ;;  %v4972_v8 = vmul.f32 %v9897_v37, %v4936_v39  ;;  %v4572_v38 = vmul.f32 %v5235_v26, %v9858_v43  ;;  %v5236_v51 = vld [vmem:[#allocation2 + $0x253] sm:$0xff] }
 0x37c   : > { %v5899_v12 = vpop.eup %5898  ;;  %v5203_v40 = vadd.f32 %v5171_v60, %v5103_v57  ;;  %v4504_v29 = vadd.f32 %v4472_v55, %v4404_v42  ;;  %v4105_v10 = vadd.f32 %v9881_v19, %v9901_v31  ;;  %v4673_v9 = vmul.f32 %v9867_v28, %v4637_v6  ;;  %v4638_v57 = vld [vmem:[#allocation2 + $0x26d] sm:$0xff] }
 0x37d   : > { %v5901_v59 = vpop.eup %5900  ;;  %v5523_v4 = vmul.f32 %v5899_v12, %v10359_v56  ;;  %v4904_v15 = vadd.f32 %v4872_v16, %v4804_v48  ;;  %v4273_v27 = vmul.f32 %v5975_v24, %v9840_v33  ;;  %v5072_v31 = vmul.f32 %v9906_v25, %v5036_v30  ;;  %v11298_v42 = vld [vmem:[#allocation38_spill] sm:$0xff] }
 0x37e   : > { %v5429_v7 = vadd.f32 1.0, %v5901_v59  ;;  %v10439_v13 = vadd.f32 %v5271_v35, %v5203_v40  ;;  %v4604_v61 = vadd.f32 %v4572_v38, %v4504_v29  ;;  %v4205_v45 = vadd.f32 %v11296_v46, %v4105_v10  ;;  %v11297_v35 = vld [vmem:[#allocation25_spill] sm:$0xff]  ;;  %v5237_v16 = vld [vmem:[#allocation2 + $0x26b] sm:$0xff] }
 0x37f   : > { %5555 = vst.msk [vmem:[%s10038_s5 + $0xa0] sm:$0xff] %vm237_vm0, %v5523_v4  ;;  %v5004_v19 = vadd.f32 %v4972_v8, %v4904_v15  ;;  %v4773_v56 = vmul.f32 %v9877_v44, %v4737_v17  ;;  %v4373_v53 = vmul.f32 %v5036_v30, %v9843_v22  ;;  %v5172_v41 = vmul.f32 %v9916_v23, %v5136_v32  ;;  %v4738_v38 = vld [vmem:[#allocation2 + $0x26e] sm:$0xff]  ;;  %v11299_v17 = vld [vmem:[#allocation40_spill] sm:$0xff] }
 0x380   : > { %5906 = vrcp.f32 %v5429_v7  ;;  %v5732_v49 = vmul.f32 -1.442695, %v10439_v13  ;;  %v4705_v58 = vadd.f32 %v4673_v9, %v4604_v61  ;;  %v4305_v62 = vadd.f32 %v4273_v27, %v4205_v45  ;;  %v5976_v59 = vld [vmem:[#allocation2 + $0x268] sm:$0xff] }
 0x381   : > { %v5104_v26 = vadd.f32 %v5072_v31, %v5004_v19  ;;  %v5272_v34 = vmul.f32 %v10207_v36, %v5236_v51  ;;  %v4873_v5 = vmul.f32 %v9892_v21, %v4837_v14  ;;  %v4473_v54 = vmul.f32 %v5136_v32, %v9850_v1  ;;  %v4838_v27 = vld [vmem:[#allocation2 + $0x26f] sm:$0xff] }
 0x382   : > { %5908 = vpow2.f32 %v5732_v49  ;;  %v4805_v60 = vadd.f32 %v4773_v56, %v4705_v58  ;;  %v4405_v39 = vadd.f32 %v4373_v53, %v4305_v62  ;;  %v4973_v3 = vmul.f32 %v9897_v37, %v4937_v20  ;;  %v5038_v31 = vld [vmem:[#allocation2 + $0x271] sm:$0xff] }
 0x383   : > { %v5903_v2 = vpop.eup %5902  ;;  %v5204_v63 = vadd.f32 %v5172_v41, %v5104_v26  ;;  %v5073_v11 = vmul.f32 %v9906_v25, %v5037_v18  ;;  %v4106_v55 = vadd.f32 %v11298_v42, %v11297_v35  ;;  %v4573_v12 = vmul.f32 %v5236_v51, %v9858_v43  ;;  %v4938_v51 = vld [vmem:[#allocation2 + $0x270] sm:$0xff]  ;;  %v11300_v41 = vld [vmem:[#allocation26_spill] sm:$0xff] }
 0x384   : > { %v5524_v6 = vmul.f32 %v5903_v2, %v10378_v47  ;;  %v4905_v48 = vadd.f32 %v4873_v5, %v4805_v60  ;;  %v4505_v8 = vadd.f32 %v4473_v54, %v4405_v39  ;;  %v5173_v29 = vmul.f32 %v9916_v23, %v5137_v50  ;;  %v5138_v26 = vld [vmem:[#allocation2 + $0x272] sm:$0xff]  ;;  %v11302_v35 = vld [vmem:[#allocation42_spill] sm:$0xff] }
 0x385   : > { %v5905_v40 = vpop.eup %5904  ;;  %v10458_v30 = vadd.f32 %v5272_v34, %v5204_v63  ;;  %v4206_v10 = vadd.f32 %v11299_v17, %v4106_v55  ;;  %v4274_v4 = vmul.f32 %v5976_v59, %v9840_v33  ;;  %v4674_v24 = vmul.f32 %v9867_v28, %v4638_v57  ;;  %v11301_v34 = vld [vmem:[#allocation39_spill] sm:$0xff]  ;;  %v4739_v57 = vld [vmem:[#allocation2 + $0x286] sm:$0xff] }
 0x386   : > { %5556 = vst.msk [vmem:[%s10038_s5 + $0xa8] sm:$0xff] %vm237_vm0, %v5524_v6  ;;  %v5430_v15 = vadd.f32 1.0, %v5905_v40  ;;  %v5005_v47 = vadd.f32 %v4973_v3, %v4905_v48  ;;  %v4605_v9 = vadd.f32 %v4573_v12, %v4505_v8  ;;  %v5273_v32 = vmul.f32 %v10207_v36, %v5237_v16  ;;  %v5977_v55 = vld [vmem:[#allocation2 + $0x270] sm:$0xff] }
 0x387   : > { %v5733_v7 = vmul.f32 -1.442695, %v10458_v30  ;;  %v4306_v61 = vadd.f32 %v4274_v4, %v4206_v10  ;;  %v4374_v14 = vmul.f32 %v5037_v18, %v9843_v22  ;;  %v4774_v19 = vmul.f32 %v9877_v44, %v4738_v38  ;;  %v4639_v18 = vld [vmem:[#allocation2 + $0x285] sm:$0xff]  ;;  %v10491_v59 = vld [vmem:[%s10624_s1 + $0x30] ss:$0 sm:$0xff] }
 0x388   : > { %5910 = vrcp.f32 %v5430_v15  ;;  %v5105_v46 = vadd.f32 %v5073_v11, %v5005_v47  ;;  %v4706_v45 = vadd.f32 %v4674_v24, %v4605_v9  ;;  %v4874_v56 = vmul.f32 %v9892_v21, %v4838_v27  ;;  %v5238_v11 = vld [vmem:[#allocation2 + $0x273] sm:$0xff]  ;;  %v4939_v38 = vld [vmem:[#allocation2 + $0x288] sm:$0xff] }
 0x389   : > { %5912 = vpow2.f32 %v5733_v7  ;;  %v4406_v53 = vadd.f32 %v4374_v14, %v4306_v61  ;;  %v4474_v49 = vmul.f32 %v5137_v50, %v9850_v1  ;;  %v4974_v36 = vmul.f32 %v9897_v37, %v4938_v51  ;;  %v5039_v9 = vld [vmem:[#allocation2 + $0x289] sm:$0xff] }
 0x38a   : > { %v5907_v58 = vpop.eup %5906  ;;  %v5205_v20 = vadd.f32 %v5173_v29, %v5105_v46  ;;  %v4806_v62 = vadd.f32 %v4774_v19, %v4706_v45  ;;  %v4107_v5 = vadd.f32 %v11301_v34, %v11300_v41  ;;  %v5074_v39 = vmul.f32 %v9906_v25, %v5038_v31  ;;  %v4839_v29 = vld [vmem:[#allocation2 + $0x287] sm:$0xff]  ;;  %v11304_v19 = vld [vmem:[#allocation67_spill] sm:$0xff] }
 0x38b   : > { %v5525_v60 = vmul.f32 %v5907_v58, %v10398_v52  ;;  %v4506_v54 = vadd.f32 %v4474_v49, %v4406_v53  ;;  %v4574_v2 = vmul.f32 %v5237_v16, %v9858_v43  ;;  %v4275_v6 = vmul.f32 %v5977_v55, %v9840_v33  ;;  %v4240_v24 = vld [vmem:[#allocation2 + $0x288] sm:$0xff]  ;;  %v11303_v45 = vld [vmem:[#allocation33_spill] sm:$0xff] }
 0x38c   : > { %v5909_v63 = vpop.eup %5908  ;;  %v10478_v50 = vadd.f32 %v5273_v32, %v5205_v20  ;;  %v4906_v3 = vadd.f32 %v4874_v56, %v4806_v62  ;;  %v4207_v42 = vadd.f32 %v11302_v35, %v4107_v5  ;;  %v5174_v52 = vmul.f32 %v9916_v23, %v5138_v26  ;;  %v4640_v46 = vld [vmem:[#allocation2 + $0x28d] sm:$0xff]  ;;  %v11305_v34 = vld [vmem:[#allocation69_spill] sm:$0xff] }
 0x38d   : > { %5557 = vst.msk [vmem:[%s10038_s5 + $0xb0] sm:$0xff] %vm237_vm0, %v5525_v60  ;;  %v5431_v48 = vadd.f32 1.0, %v5909_v63  ;;  %v4606_v8 = vadd.f32 %v4574_v2, %v4506_v54  ;;  %v4675_v12 = vmul.f32 %v9867_v28, %v4639_v18  ;;  %v4375_v10 = vmul.f32 %v5038_v31, %v9843_v22  ;;  %v5139_v58 = vld [vmem:[#allocation2 + $0x28a] sm:$0xff] }
 0x38e   : > { %v5734_v16 = vmul.f32 -1.442695, %v10478_v50  ;;  %v5006_v40 = vadd.f32 %v4974_v36, %v4906_v3  ;;  %v4307_v17 = vadd.f32 %v4275_v6, %v4207_v42  ;;  %v5274_v4 = vmul.f32 %v10491_v59, %v5238_v11  ;;  %v4740_v41 = vld [vmem:[#allocation2 + $0x28e] sm:$0xff] }
 0x38f   : > { %5914 = vrcp.f32 %v5431_v48  ;;  %v4707_v15 = vadd.f32 %v4675_v12, %v4606_v8  ;;  %v4775_v47 = vmul.f32 %v9877_v44, %v4739_v57  ;;  %v4475_v32 = vmul.f32 %v5138_v26, %v9850_v1  ;;  %v5239_v2 = vld [vmem:[#allocation2 + $0x28b] sm:$0xff] }
 0x390   : > { %5916 = vpow2.f32 %v5734_v16  ;;  %v5106_v27 = vadd.f32 %v5074_v39, %v5006_v40  ;;  %v4407_v7 = vadd.f32 %v4375_v10, %v4307_v17  ;;  %v4875_v61 = vmul.f32 %v9892_v21, %v4839_v29  ;;  %v4840_v35 = vld [vmem:[#allocation2 + $0x28f] sm:$0xff] }
 0x391   : > { %v4807_v51 = vadd.f32 %v4775_v47, %v4707_v15  ;;  %v4975_v14 = vmul.f32 %v9897_v37, %v4939_v38  ;;  %v4108_v31 = vadd.f32 %v11304_v19, %v11303_v45  ;;  %v5075_v49 = vmul.f32 %v9906_v25, %v5039_v9  ;;  %v4241_v8 = vld [vmem:[#allocation2 + $0x290] sm:$0xff] }
 0x392   : > { %v5911_v56 = vpop.eup %5910  ;;  %v5206_v53 = vadd.f32 %v5174_v52, %v5106_v27  ;;  %v4507_v20 = vadd.f32 %v4475_v32, %v4407_v7  ;;  %v4575_v62 = vmul.f32 %v5238_v11, %v9858_v43  ;;  %v4276_v60 = vmul.f32 %v9840_v33, %v4240_v24  ;;  %v4641_v52 = vld [vmem:[#allocation2 + $0x2a5] sm:$0xff]  ;;  %v4940_v40 = vld [vmem:[#allocation2 + $0x290] sm:$0xff] }
 0x393   : > { %v5913_v36 = vpop.eup %5912  ;;  %v5526_v26 = vmul.f32 %v5911_v56, %v10420_v0  ;;  %v4907_v18 = vadd.f32 %v4875_v61, %v4807_v51  ;;  %v4208_v5 = vadd.f32 %v11305_v34, %v4108_v31  ;;  %v4676_v3 = vmul.f32 %v9867_v28, %v4640_v46  ;;  %v4741_v7 = vld [vmem:[#allocation2 + $0x2a6] sm:$0xff]  ;;  %v11307_v51 = vld [vmem:[#allocation68_spill] sm:$0xff] }
 0x394   : > { %v5432_v39 = vadd.f32 1.0, %v5913_v36  ;;  %v10505_v54 = vadd.f32 %v5274_v4, %v5206_v53  ;;  %v4607_v63 = vadd.f32 %v4575_v62, %v4507_v20  ;;  %v5175_v11 = vmul.f32 %v9916_v23, %v5139_v58  ;;  %v11306_v32 = vld [vmem:[#allocation34_spill] sm:$0xff]  ;;  %v5240_v34 = vld [vmem:[#allocation2 + $0x293] sm:$0xff] }
 0x395   : > { %5558 = vst.msk [vmem:[%s10038_s5 + $0xb8] sm:$0xff] %vm237_vm0, %v5526_v26  ;;  %v5007_v57 = vadd.f32 %v4975_v14, %v4907_v18  ;;  %v4308_v0 = vadd.f32 %v4276_v60, %v4208_v5  ;;  %v4376_v42 = vmul.f32 %v5039_v9, %v9843_v22  ;;  %v4776_v48 = vmul.f32 %v9877_v44, %v4740_v41  ;;  %v5040_v9 = vld [vmem:[#allocation2 + $0x291] sm:$0xff]  ;;  %v4841_v20 = vld [vmem:[#allocation2 + $0x2a7] sm:$0xff] }
 0x396   : > { %5918 = vrcp.f32 %v5432_v39  ;;  %v5735_v55 = vmul.f32 -1.442695, %v10505_v54  ;;  %v4708_v6 = vadd.f32 %v4676_v3, %v4607_v63  ;;  %v5275_v16 = vmul.f32 %v10491_v59, %v5239_v2  ;;  %v11308_v62 = vld [vmem:[#allocation70_spill] sm:$0xff] }
 0x397   : > { %v5107_v12 = vadd.f32 %v5075_v49, %v5007_v57  ;;  %v4408_v29 = vadd.f32 %v4376_v42, %v4308_v0  ;;  %v4476_v38 = vmul.f32 %v5139_v58, %v9850_v1  ;;  %v4876_v10 = vmul.f32 %v9892_v21, %v4840_v35  ;;  %v5140_v49 = vld [vmem:[#allocation2 + $0x292] sm:$0xff]  ;;  %v4941_v60 = vld [vmem:[#allocation2 + $0x2a8] sm:$0xff] }
 0x398   : > { %5920 = vpow2.f32 %v5735_v55  ;;  %v4808_v17 = vadd.f32 %v4776_v48, %v4708_v6  ;;  %v4576_v4 = vmul.f32 %v5239_v2, %v9858_v43  ;;  %v4677_v27 = vmul.f32 %v9867_v28, %v4641_v52  ;;  %v4642_v57 = vld [vmem:[#allocation2 + $0x2ad] sm:$0xff] }
 0x399   : > { %v5915_v15 = vpop.eup %5914  ;;  %v5207_v47 = vadd.f32 %v5175_v11, %v5107_v12  ;;  %v4508_v24 = vadd.f32 %v4476_v38, %v4408_v29  ;;  %v4109_v61 = vadd.f32 %v11307_v51, %v11306_v32  ;;  %v4976_v19 = vmul.f32 %v9897_v37, %v4940_v40  ;;  %v5041_v48 = vld [vmem:[#allocation2 + $0x2a9] sm:$0xff] }
 0x39a   : > { %v5917_v14 = vpop.eup %5916  ;;  %v5527_v46 = vmul.f32 %v5915_v15, %v10439_v13  ;;  %v4908_v45 = vadd.f32 %v4876_v10, %v4808_v17  ;;  %v4277_v31 = vmul.f32 %v9840_v33, %v4241_v8  ;;  %v5076_v18 = vmul.f32 %v9906_v25, %v5040_v9  ;;  %v4742_v10 = vld [vmem:[#allocation2 + $0x2ae] sm:$0xff] }
 0x39b   : > { %v5433_v56 = vadd.f32 1.0, %v5917_v14  ;;  %v10524_v53 = vadd.f32 %v5275_v16, %v5207_v47  ;;  %v4608_v58 = vadd.f32 %v4576_v4, %v4508_v24  ;;  %v4209_v36 = vadd.f32 %v11308_v62, %v4109_v61  ;;  %v5141_v16 = vld [vmem:[#allocation2 + $0x2aa] sm:$0xff]  ;;  %v5142_v62 = vld [vmem:[#allocation2 + $0x2b2] sm:$0xff] }
 0x39c   : > { %5559 = vst.msk [vmem:[%s10038_s5 + $0xc0] sm:$0xff] %vm237_vm0, %v5527_v46  ;;  %v5008_v26 = vadd.f32 %v4976_v19, %v4908_v45  ;;  %v4777_v13 = vmul.f32 %v9877_v44, %v4741_v7  ;;  %v4377_v41 = vmul.f32 %v5040_v9, %v9843_v22  ;;  %v5176_v63 = vmul.f32 %v9916_v23, %v5140_v49  ;;  %v5241_v24 = vld [vmem:[#allocation2 + $0x2ab] sm:$0xff] }
 0x39d   : > { %5922 = vrcp.f32 %v5433_v56  ;;  %v5736_v33 = vmul.f32 -1.442695, %v10524_v53  ;;  %v4709_v5 = vadd.f32 %v4677_v27, %v4608_v58  ;;  %v4309_v39 = vadd.f32 %v4277_v31, %v4209_v36  ;;  %v4942_v32 = vld [vmem:[#allocation2 + $0x2b0] sm:$0xff] }
 0x39e   : > { %v5108_v2 = vadd.f32 %v5076_v18, %v5008_v26  ;;  %v4877_v3 = vmul.f32 %v9892_v21, %v4841_v20  ;;  %v4477_v0 = vmul.f32 %v5140_v49, %v9850_v1  ;;  %v5276_v55 = vmul.f32 %v10491_v59, %v5240_v34  ;;  %v5042_v31 = vld [vmem:[#allocation2 + $0x2b1] sm:$0xff] }
 0x39f   : > { %5924 = vpow2.f32 %v5736_v33  ;;  %v4809_v11 = vadd.f32 %v4777_v13, %v4709_v5  ;;  %v4409_v35 = vadd.f32 %v4377_v41, %v4309_v39  ;;  %v4977_v6 = vmul.f32 %v9897_v37, %v4941_v60  ;;  %v5242_v13 = vld [vmem:[#allocation2 + $0x2b3] sm:$0xff] }
 0x3a0   : > { %v5919_v22 = vpop.eup %5918  ;;  %v5208_v42 = vadd.f32 %v5176_v63, %v5108_v2  ;;  %v4577_v52 = vmul.f32 %v5240_v34, %v9858_v43  ;;  %v4678_v29 = vmul.f32 %v9867_v28, %v4642_v57  ;;  %v5077_v15 = vmul.f32 %v9906_v25, %v5041_v48 }
 0x3a1   : > { %v5528_v8 = vmul.f32 %v5919_v22, %v10458_v30  ;;  %v4909_v12 = vadd.f32 %v4877_v3, %v4809_v11  ;;  %v4509_v40 = vadd.f32 %v4477_v0, %v4409_v35  ;;  %v5177_v43 = vmul.f32 %v9916_v23, %v5141_v16  ;;  %v4842_v30 = vld [vmem:[#allocation2 + $0x2af] sm:$0xff] }
 0x3a2   : > { %v5921_v38 = vpop.eup %5920  ;;  %v5308_v17 = vadd.f32 %v5276_v55, %v5208_v42  ;;  %v4778_v28 = vmul.f32 %v9877_v44, %v4742_v10  ;;  %v5277_v14 = vmul.f32 %v10491_v59, %v5241_v24  ;;  %v4878_v45 = vmul.f32 %v9892_v21, %v4842_v30 }
 0x3a3   : > { %5560 = vst.msk [vmem:[%s10038_s5 + $0xc8] sm:$0xff] %vm237_vm0, %v5528_v8  ;;  %v5434_v1 = vadd.f32 1.0, %v5921_v38  ;;  %v5009_v4 = vadd.f32 %v4977_v6, %v4909_v12  ;;  %v4609_v47 = vadd.f32 %v4577_v52, %v4509_v40  ;;  %v4978_v20 = vmul.f32 %v9897_v37, %v4942_v32 }
 0x3a4   : > { %v5737_v9 = vmul.f32 -1.442695, %v5308_v17  ;;  %v5078_v18 = vmul.f32 %v9906_v25, %v5042_v31  ;;  %v5278_v37 = vmul.f32 %v10491_v59, %v5242_v13 }
 0x3a5   : > { %5926 = vrcp.f32 %v5434_v1  ;;  %v5109_v27 = vadd.f32 %v5077_v15, %v5009_v4  ;;  %v4710_v7 = vadd.f32 %v4678_v29, %v4609_v47 }
 0x3a6   : > { %5928 = vpow2.f32 %v5737_v9 }
 0x3a7   : > { %v5923_v51 = vpop.eup %5922  ;;  %v5209_v61 = vadd.f32 %v5177_v43, %v5109_v27  ;;  %v4810_v46 = vadd.f32 %v4778_v28, %v4710_v7 }
 0x3a8   : > { %v5529_v19 = vmul.f32 %v5923_v51, %v10478_v50  ;;  %v5178_v50 = vmul.f32 %v9916_v23, %v5142_v62 }
 0x3a9   : > { %v5925_v56 = vpop.eup %5924  ;;  %v5309_v49 = vadd.f32 %v5277_v14, %v5209_v61  ;;  %v4910_v58 = vadd.f32 %v4878_v45, %v4810_v46 }
 0x3aa   : > { %5561 = vst.msk [vmem:[%s10038_s5 + $0xd0] sm:$0xff] %vm237_vm0, %v5529_v19  ;;  %v5435_v44 = vadd.f32 1.0, %v5925_v56 }
 0x3ab   : > { %v5738_v36 = vmul.f32 -1.442695, %v5309_v49  ;;  %v5010_v26 = vadd.f32 %v4978_v20, %v4910_v58 }
 0x3ac   : > { %5930 = vrcp.f32 %v5435_v44 }
 0x3ad   : > { %5932 = vpow2.f32 %v5738_v36  ;;  %v5110_v21 = vadd.f32 %v5078_v18, %v5010_v26 }
 0x3af   : > { %v5927_v41 = vpop.eup %5926  ;;  %v5210_v33 = vadd.f32 %v5178_v50, %v5110_v21 }
 0x3b0   : > { %v5929_v34 = vpop.eup %5928  ;;  %v5530_v5 = vmul.f32 %v5927_v41, %v10505_v54 }
 0x3b1   : > { %v5436_v60 = vadd.f32 1.0, %v5929_v34  ;;  %v5310_v39 = vadd.f32 %v5278_v37, %v5210_v33 }
 0x3b2   : > { %5562 = vst.msk [vmem:[%s10038_s5 + $0xd8] sm:$0xff] %vm237_vm0, %v5530_v5 }
 0x3b3   : > { %5934 = vrcp.f32 %v5436_v60  ;;  %v5739_v25 = vmul.f32 -1.442695, %v5310_v39 }
 0x3b5   : > { %5936 = vpow2.f32 %v5739_v25 }
 0x3b6   : > { %v5931_v2 = vpop.eup %5930 }
 0x3b7   : > { %v5933_v23 = vpop.eup %5932  ;;  %v5531_v63 = vmul.f32 %v5931_v2, %v10524_v53 }
 0x3b8   : > { %v5437_v3 = vadd.f32 1.0, %v5933_v23 }
 0x3b9   : > { %5563 = vst.msk [vmem:[%s10038_s5 + $0xe0] sm:$0xff] %vm237_vm0, %v5531_v63 }
 0x3ba   : > { %5938 = vrcp.f32 %v5437_v3 }
 0x3bd   : > { %v5935_v59 = vpop.eup %5934 }
 0x3be   : > { %v5532_v54 = vmul.f32 %v5935_v59, %v5308_v17 }
 0x3bf   : > { %v5937_v57 = vpop.eup %5936 }
 0x3c0   : > { %5564 = vst.msk [vmem:[%s10038_s5 + $0xe8] sm:$0xff] %vm237_vm0, %v5532_v54  ;;  %v5438_v11 = vadd.f32 1.0, %v5937_v57 }
 0x3c2   : > { %5940 = vrcp.f32 %v5438_v11 }
 0x3c4   : > { %v5939_v35 = vpop.eup %5938 }
 0x3c5   : > { %v5533_v0 = vmul.f32 %v5939_v35, %v5309_v49 }
 0x3c7   : > { %5565 = vst.msk [vmem:[%s10038_s5 + $0xf0] sm:$0xff] %vm237_vm0, %v5533_v0 }
 0x3cc   : > { %v5941_v53 = vpop.eup %5940 }
 0x3cd   : > { %v5534_v22 = vmul.f32 %v5941_v53, %v5310_v39 }
 0x3cf   : > { %5566 = vst.msk [vmem:[%s10038_s5 + $0xf8] sm:$0xff] %vm237_vm0, %v5534_v22 }
 0x3d0   : > { %6022 = shalt.err (!%p6019_p5)
}
 0x3d1   : > { %s6023_s30 = scalar_lea.hbm %s10570_s10, 4096  ;;  %s6027_s18 = scalar_lea.hbm %s10626_s3, 8192 }
 0x3d2   : > { %p6024_p4 = scmp.ne.s32.totalorder %s10570_s10, %s6023_s30  ;;  %p6028_p12 = scmp.lt.u32.totalorder %s10570_s10, %s10626_s3 }
 0x3d3   : > { %p6029_p1 = scmp.lt.u32.totalorder %s6027_s18, %s6023_s30  ;;  %p6031_p8 = scmp.lt.u32.totalorder %s6023_s30, %s10570_s10 }
 0x3d4   : > { %p6025_p7 = pnand %p6024_p4, %p11309_p9 }
 0x3d5   : > { %p6030_p3 = por %p6029_p1, %p6028_p12 }
 0x3d6   : > { %p6026_p10 = pneg %p6025_p7 }
 0x3d7   : > { %p6032_p11 = por %p6031_p8, %p6030_p3 }
 0x3d9   : > { %p6033_p0 = pnand %p6032_p11, %p6026_p10 }
 0x3db   : > { %6036 = shalt.err (!%p6033_p0)
}
 0x3dc   : > { %s6098_s24 = smov 128   ;;  %s6099_s6 = smov 8  }
 0x3dd   : > { %5749 = dma.vmem_to_hbm [thread:$0]  (%p11309_p9), %s10572_s8, 4096, %s10570_s10, %s5568_s22, %s6098_s24, %s6098_s24, %s6099_s6  }
 0x3de PF: > { %s5597_s9 = sand.u32 1, %s6071_s12   ;;  %p11310_p6 = scmp.ne.s32.totalorder %s10846_s27, 0 }
 0x3df   : > { %p11311_p13 = scmp.ge.s32.totalorder %s6091_s17, 2  ;;  %s5598_s21 = scalar_lea.sflag [#allocation5], %s5597_s9 }
 0x3e1   : > { %p5756_p2 = pnand %p11311_p13, %p11310_p6 }
 0x3e3   : > { %6066 = dma.done.wait (!%p5756_p2), %s5598_s21, 4096  }
 0x3e4   : > { %6068 = vsyncadd (!%p5756_p2), %s5598_s21, 4294963200  ;;  %s19_s17 = sadd.s32 1, %s6091_s17   ;;  %s11312_s12 = smov %s6075_s13 }
 0x3e5   : > { %p16_p5 = scmp.ge.s32.totalorder %s19_s17, 4   ;;  %s11313_s13 = smov %s6079_s14 }
 0x3e6   : > { %s11314_s14 = smov %s6176_s26  ;;  %s11315_s15 = smov %s6087_s16 }
 0x3e7   : > { %s11316_s16 = smov %s11318_s20  ;;  %18 = sbr.rel (!%p16_p5) target bundleno = 6 (0x6), region = 89 }
 0x3ee   :  { %5603 = vsyncpa [#allocation4], 1 }
 0x3ef   :  { %5605 = vsyncpa [#allocation4 + $0x1], 1 }
 0x3f0   :  { %5606 = vsyncpa [#allocation5], 1 }
 0x3f1   :  { %5608 = vsyncpa [#allocation5 + $0x1], 1 }

</bundles_post_ra>
